<compile_context>
chip_gen: v6e
topology: v6e:2x2x1
jax: 0.10.0
libtpu: 0.0.40
codegen_flags: <defaults>
</compile_context>

<pallas_src>
import functools

import numpy as np

import jax
import jax.numpy as jnp
from jax.experimental import pallas as pl
from jax.experimental.pallas import tpu as pltpu

# ---------------- small-shape config (structure mirrors the module) ---------
IMAGE_SIZE = 28          # stands in for 224
PATCH      = 14          # DINOv2 ViT-S patch size -> (28/14)^2 = 4 patches/frame
P_FRAME    = (IMAGE_SIZE // PATCH) ** 2
VIT_DIM    = 128         # stands in for 384 (kept a multiple of 128 -> lane dense)
VIT_HEADS  = 4           # stands in for 6
VIT_LAYERS = 2           # stands in for 12 DINOv2 blocks
VIT_MLP    = 4 * VIT_DIM
MEMORY     = 4           # memory_size
EMBED      = 128         # embed_size (stands in for 512, lane dense)
DEC_HEADS  = 4           # stands in for 8
DEC_FF     = 256         # stands in for 2048
DEC_LAYERS = 2
LN_EPS     = 1e-5

NT_DIM_NUMBERS = (((1,), (1,)), ((), ()))   # q @ k^T without materializing k.T
VMEM_LIMIT = 64 * 1024 * 1024


# ---------------- in-kernel helpers ------------------------------------------
def _mm(a, w):
    """MXU matmul: bf16 operands, f32 accumulation."""
    return jnp.dot(a.astype(jnp.bfloat16), w.astype(jnp.bfloat16),
                   preferred_element_type=jnp.float32)


def _ln(x, g, b):
    """LayerNorm over the last dim, f32 statistics."""
    mu = jnp.mean(x, axis=-1, keepdims=True)
    xc = x - mu
    var = jnp.mean(xc * xc, axis=-1, keepdims=True)
    return xc * jax.lax.rsqrt(var + LN_EPS) * g + b


def _mha(q, k, v, wo, nheads, ctx_ref, mask_bias=None):
    """Multi-head attention on [L, D] operands; returns ctx @ wo (no bias).

    Per-head contexts are written into lane-contiguous slices of the ctx VMEM
    scratch, then one full-K [Lq, D] @ [D, D] matmul does the out-projection.
    """
    Lq, D = q.shape
    dh = D // nheads
    scale = 1.0 / float(dh) ** 0.5
    for h in range(nheads):
        sl = slice(h * dh, (h + 1) * dh)
        qh = q[:, sl].astype(jnp.bfloat16)
        kh = k[:, sl].astype(jnp.bfloat16)
        vh = v[:, sl].astype(jnp.bfloat16)
        s = jax.lax.dot_general(qh, kh, NT_DIM_NUMBERS,
                                preferred_element_type=jnp.float32) * scale
        if mask_bias is not None:
            s = s + mask_bias
        s = s - jnp.max(s, axis=-1, keepdims=True)
        p = jnp.exp(s)
        p = p * pl.reciprocal(jnp.sum(p, axis=-1, keepdims=True), approx=True)
        ctx_ref[:, sl] = jnp.dot(p.astype(jnp.bfloat16), vh,
                                 preferred_element_type=jnp.float32)
    return _mm(ctx_ref[...], wo)


# ---------------- kernel 1: fully fused dual ViT encoder ---------------------
def _vit_encoder_kernel(patches_ref, wpatch_ref, add_ref,
                        pos1h_ref, fidr_ref, fidc_ref,
                        ln1g, ln1b, wqkv, bqkv, wo, bo,
                        ln2g, ln2b, w1, b1, w2, b2,
                        lnfg, lnfb,
                        o_ref, resid_ref, ctx_ref, *, n_heads):
    l = pl.program_id(1)
    D = resid_ref.shape[-1]

    @pl.when(l == 0)
    def _embed():
        # patch embed + (CLS + pos-embed + folded bias) via tiny one-hot matmul
        tok = _mm(patches_ref[0], wpatch_ref[0])
        tok = tok + jnp.dot(pos1h_ref[...], add_ref[0],
                            preferred_element_type=jnp.float32)
        resid_ref[...] = tok

    # per-frame block-diagonal attention bias, built from tiny frame-id vectors
    mask = jnp.where(fidr_ref[...] == fidc_ref[...],
                     jnp.float32(0.0), jnp.float32(-1e9))

    x = resid_ref[...]
    h = _ln(x, ln1g[0, 0], ln1b[0, 0])
    qkv = _mm(h, wqkv[0, 0]) + bqkv[0, 0]                     # fused [D, 3D] QKV
    attn = _mha(qkv[:, :D], qkv[:, D:2 * D], qkv[:, 2 * D:],
                wo[0, 0], n_heads, ctx_ref, mask_bias=mask)
    x = x + attn + bo[0, 0]

    h = _ln(x, ln2g[0, 0], ln2b[0, 0])
    # TODO(synk): PyTorch nn.GELU uses the exact erf form; tanh approximation here.
    h = jax.nn.gelu(_mm(h, w1[0, 0]) + b1[0, 0])
    x = x + _mm(h, w2[0, 0]) + b2[0, 0]

    resid_ref[...] = x

    @pl.when(l == pl.num_programs(1) - 1)
    def _final():                                             # DINOv2 final norm
        o_ref[0] = _ln(x, lnfg[0], lnfb[0])


def vit_encode(patches, w_patch, add, pos1h, fid_r, fid_c, vit):
    _, NL, _ = patches.shape
    D = w_patch.shape[-1]
    n_layers = vit["wqkv"].shape[1]

    def const_spec(a):
        return pl.BlockSpec(a.shape, lambda m, l, _n=a.ndim: (0,) * _n)

    def model_spec(a):
        rest = a.shape[1:]
        return pl.BlockSpec((1,) + rest, lambda m, l, _n=len(rest): (m,) + (0,) * _n)

    def layer_spec(a):
        rest = a.shape[2:]
        return pl.BlockSpec((1, 1) + rest,
                            lambda m, l, _n=len(rest): (m, l) + (0,) * _n)

    bf16 = lambda a: a.astype(jnp.bfloat16)
    model_in = (patches, w_patch, add)
    const_in = (pos1h, fid_r, fid_c)
    layer_w = (vit["ln1_g"], vit["ln1_b"], bf16(vit["wqkv"]), vit["bqkv"],
               bf16(vit["wo"]), vit["bo"], vit["ln2_g"], vit["ln2_b"],
               bf16(vit["w1"]), vit["b1"], bf16(vit["w2"]), vit["b2"])
    model_w = (vit["lnf_g"], vit["lnf_b"])

    in_specs = ([model_spec(a) for a in model_in]
                + [const_spec(a) for a in const_in]
                + [layer_spec(a) for a in layer_w]
                + [model_spec(a) for a in model_w])

    return pl.pallas_call(
        functools.partial(_vit_encoder_kernel, n_heads=VIT_HEADS),
        grid=(2, n_layers),
        in_specs=in_specs,
        out_specs=pl.BlockSpec((1, NL, D), lambda m, l: (m, 0, 0)),
        out_shape=jax.ShapeDtypeStruct((2, NL, D), jnp.float32),
        scratch_shapes=[pltpu.VMEM((NL, D), jnp.float32),   # resident residual
                        pltpu.VMEM((NL, D), jnp.float32)],  # attention context
        compiler_params=pltpu.CompilerParams(
            dimension_semantics=("parallel", "arbitrary"),
            vmem_limit_bytes=VMEM_LIMIT),
    )(*model_in, *const_in, *layer_w, *model_w)


# ---------------- kernel 2: fully fused TransformerDecoder -------------------
def _decoder_kernel(q0_ref, mem_ref,
                    wqkv, bqkv, wo, bo, ln1g, ln1b,
                    wq, bq, wkv, bkv, wo2, bo2, ln2g, ln2b,
                    w1, b1, w2, b2, ln3g, ln3b,
                    pw, pb,
                    o_ref, resid_ref, ctx_ref, *, n_heads):
    l = pl.program_id(1)
    D = resid_ref.shape[-1]

    @pl.when(l == 0)
    def _init():
        resid_ref[...] = q0_ref[...]

    x = resid_ref[...]                                  # [Lq, D]
    mem = mem_ref[0]                                    # [Lk, D]

    # self-attention (fused QKV) + post-norm residual
    qkv = _mm(x, wqkv[0]) + bqkv[0]
    sa = _mha(qkv[:, :D], qkv[:, D:2 * D], qkv[:, 2 * D:], wo[0], n_heads, ctx_ref)
    x = _ln(x + sa + bo[0], ln1g[0], ln1b[0])

    # cross-attention (fused KV projection on the memory)
    q2 = _mm(x, wq[0]) + bq[0]
    kv = _mm(mem, wkv[0]) + bkv[0]
    ca = _mha(q2, kv[:, :D], kv[:, D:], wo2[0], n_heads, ctx_ref)
    x = _ln(x + ca + bo2[0], ln2g[0], ln2b[0])

    # feed-forward (ReLU) + post-norm residual
    h = jnp.maximum(_mm(x, w1[0]) + b1[0], 0.0)
    x = _ln(x + _mm(h, w2[0]) + b2[0], ln3g[0], ln3b[0])

    resid_ref[...] = x

    # TODO(synk): decoder-layer dropout omitted (module never .eval()'d; stochastic).
    @pl.when(l == pl.num_programs(1) - 1)
    def _project():                                     # final project_layer fused in
        o_ref[0] = _mm(x, pw[...]) + pb[...]


def decoder_forward(q0, mem, dec, proj_w, proj_b):
    B, Lk, D = mem.shape
    Lq = q0.shape[0]
    n_layers = dec["wqkv"].shape[0]
    Dout = proj_w.shape[-1]

    def const_spec(a):
        return pl.BlockSpec(a.shape, lambda b, l, _n=a.ndim: (0,) * _n)

    def layer_spec(a):
        rest = a.shape[1:]
        return pl.BlockSpec((1,) + rest, lambda b, l, _n=len(rest): (l,) + (0,) * _n)

    bf16 = lambda a: a.astype(jnp.bfloat16)
    layer_w = (bf16(dec["wqkv"]), dec["bqkv"], bf16(dec["wo"]), dec["bo"],
               dec["ln1_g"], dec["ln1_b"],
               bf16(dec["wq"]), dec["bq"], bf16(dec["wkv"]), dec["bkv"],
               bf16(dec["wo2"]), dec["bo2"], dec["ln2_g"], dec["ln2_b"],
               bf16(dec["w1"]), dec["b1"], bf16(dec["w2"]), dec["b2"],
               dec["ln3_g"], dec["ln3_b"])

    in_specs = ([const_spec(q0),
                 pl.BlockSpec((1, Lk, D), lambda b, l: (b, 0, 0))]
                + [layer_spec(a) for a in layer_w]
                + [const_spec(proj_w), const_spec(proj_b)])

    return pl.pallas_call(
        functools.partial(_decoder_kernel, n_heads=DEC_HEADS),
        grid=(B, n_layers),
        in_specs=in_specs,
        out_specs=pl.BlockSpec((1, Lq, Dout), lambda b, l: (b, 0, 0)),
        out_shape=jax.ShapeDtypeStruct((B, Lq, Dout), jnp.float32),
        scratch_shapes=[pltpu.VMEM((Lq, D), jnp.float32),   # resident query stream
                        pltpu.VMEM((Lq, D), jnp.float32)],  # attention context
        compiler_params=pltpu.CompilerParams(
            dimension_semantics=("parallel", "arbitrary"),
            vmem_limit_bytes=VMEM_LIMIT),
    )(q0, mem, *layer_w, bf16(proj_w), proj_b)


# ---------------- full forward ------------------------------------------------
def navdp_rgbd_backbone_forward(images, depths, params):
    if images.ndim == 4:
        B, T = images.shape[0], 1
        imgs, deps = images[:, None], depths[:, None]
    else:
        B, T = images.shape[:2]
        imgs, deps = images, depths
    N = B * T
    gh = gw = IMAGE_SIZE // PATCH
    L = P_FRAME + 1
    D = VIT_DIM
    K3 = PATCH * PATCH * 3
    NL = N * L

    # ---- patch extraction (tiny XLA reshapes/transposes), channel-fastest K --
    def extract(x):                                   # (N, H, W, 3) -> (N, P, K3)
        x = x.reshape(N, gh, PATCH, gw, PATCH, 3)
        return x.transpose(0, 1, 3, 2, 4, 5).reshape(N, P_FRAME, K3)

    rgb_patches = extract(imgs.astype(jnp.float32).reshape(N, IMAGE_SIZE, IMAGE_SIZE, 3))
    dep3 = jnp.broadcast_to(
        deps.astype(jnp.float32).reshape(N, IMAGE_SIZE, IMAGE_SIZE, 1),
        (N, IMAGE_SIZE, IMAGE_SIZE, 3))               # depth 1->3 channel replication
    dep_patches = extract(dep3)

    # ---- fold (x - mean)/std into the RGB patch-embed weights (exact) --------
    mean, std = params["preprocess_mean"], params["preprocess_std"]
    inv_std_cols = jnp.tile(1.0 / std, PATCH * PATCH)          # channel-fastest K order
    mean_cols = jnp.tile(mean, PATCH * PATCH)
    w_rgb = params["rgb_patch_w"] * inv_std_cols[:, None]
    b_rgb = params["rgb_patch_b"] - (mean_cols * inv_std_cols) @ params["rgb_patch_w"]
    w_dep, b_dep = params["depth_patch_w"], params["depth_patch_b"]

    # ---- zero "patch" row for the CLS slot; stack modalities; bf16 boundary --
    rgb_p = jnp.pad(rgb_patches, ((0, 0), (1, 0), (0, 0))).reshape(NL, K3)
    dep_p = jnp.pad(dep_patches, ((0, 0), (1, 0), (0, 0))).reshape(NL, K3)
    patches = jnp.stack([rgb_p, dep_p], 0).astype(jnp.bfloat16)
    w_patch = jnp.stack([w_rgb, w_dep], 0).astype(jnp.bfloat16)

    vit = params["vit"]
    add = jnp.stack([                                  # per-frame [L, D] add terms
        jnp.concatenate([vit["cls"][0] + vit["pos"][0, :1],
                         vit["pos"][0, 1:] + b_rgb], axis=0),
        jnp.concatenate([vit["cls"][1] + vit["pos"][1, :1],
                         vit["pos"][1, 1:] + b_dep], axis=0)], 0)

    # ---- tiny static index helpers (avoid vector int div/mod in-kernel) ------
    rows = np.arange(NL)
    pos1h = jnp.asarray((rows[:, None] % L) == np.arange(L)[None, :], jnp.float32)
    fid_r = jnp.asarray((rows // L)[:, None], jnp.float32)
    fid_c = jnp.asarray((rows // L)[None, :], jnp.float32)

    # ---- one fused pallas_call: patch-embed + all ViT blocks + final LN ------
    tokens = vit_encode(patches, w_patch, add, pos1h, fid_r, fid_c, vit)  # (2,NL,D)

    # ---- drop CLS, rebuild [B, T*P, D] token streams --------------------------
    tok = tokens.reshape(2, N, L, D)[:, :, 1:, :]
    image_token = tok[0].reshape(B, T * P_FRAME, D)
    depth_token = tok[1].reshape(B, T * P_FRAME, D)

    former_token = jnp.concatenate([image_token, depth_token], axis=1)
    Lk = former_token.shape[1]
    former_token = former_token + params["former_pe"][:Lk][None]

    q0 = params["former_query"][: MEMORY * 16]         # same initial query for all B

    # ---- one fused pallas_call: all decoder layers + final projection --------
    return decoder_forward(q0, former_token, params["decoder"],
                           params["proj_w"], params["proj_b"])


# ---------------- deterministic parameter init --------------------------------
def _dense(key, shape, scale=0.02):
    return scale * jax.random.normal(key, shape, dtype=jnp.float32)


def init_params(key):
    D, Ly, F = VIT_DIM, VIT_LAYERS, VIT_MLP
    Ld, Fd = DEC_LAYERS, DEC_FF
    K3 = PATCH * PATCH * 3
    ks = jax.random.split(key, 20)

    def ones(shape):
        return jnp.ones(shape, jnp.float32)

    def zeros(shape):
        return jnp.zeros(shape, jnp.float32)

    vit = dict(
        cls=_dense(ks[0], (2, 1, D)),
        pos=_dense(ks[1], (2, P_FRAME + 1, D)),
        ln1_g=ones((2, Ly, 1, D)), ln1_b=zeros((2, Ly, 1, D)),
        wqkv=_dense(ks[2], (2, Ly, D, 3 * D)), bqkv=zeros((2, Ly, 1, 3 * D)),
        wo=_dense(ks[3], (2, Ly, D, D)), bo=zeros((2, Ly, 1, D)),
        ln2_g=ones((2, Ly, 1, D)), ln2_b=zeros((2, Ly, 1, D)),
        w1=_dense(ks[4], (2, Ly, D, F)), b1=zeros((2, Ly, 1, F)),
        w2=_dense(ks[5], (2, Ly, F, D)), b2=zeros((2, Ly, 1, D)),
        lnf_g=ones((2, 1, D)), lnf_b=zeros((2, 1, D)),
    )
    dec = dict(
        wqkv=_dense(ks[6], (Ld, D, 3 * D)), bqkv=zeros((Ld, 1, 3 * D)),
        wo=_dense(ks[7], (Ld, D, D)), bo=zeros((Ld, 1, D)),
        ln1_g=ones((Ld, 1, D)), ln1_b=zeros((Ld, 1, D)),
        wq=_dense(ks[8], (Ld, D, D)), bq=zeros((Ld, 1, D)),
        wkv=_dense(ks[9], (Ld, D, 2 * D)), bkv=zeros((Ld, 1, 2 * D)),
        wo2=_dense(ks[10], (Ld, D, D)), bo2=zeros((Ld, 1, D)),
        ln2_g=ones((Ld, 1, D)), ln2_b=zeros((Ld, 1, D)),
        w1=_dense(ks[11], (Ld, D, Fd)), b1=zeros((Ld, 1, Fd)),
        w2=_dense(ks[12], (Ld, Fd, D)), b2=zeros((Ld, 1, D)),
        ln3_g=ones((Ld, 1, D)), ln3_b=zeros((Ld, 1, D)),
    )
    return dict(
        preprocess_mean=jnp.array([0.485, 0.456, 0.406], jnp.float32),
        preprocess_std=jnp.array([0.229, 0.224, 0.225], jnp.float32),
        rgb_patch_w=_dense(ks[13], (K3, D)), rgb_patch_b=zeros((1, D)),
        depth_patch_w=_dense(ks[14], (K3, D)), depth_patch_b=zeros((1, D)),
        vit=vit,
        former_query=_dense(ks[15], (MEMORY * 16, D)),
        former_pe=_dense(ks[16], ((MEMORY + 1) * P_FRAME, D)),
        decoder=dec,
        proj_w=_dense(ks[17], (D, EMBED)),
        proj_b=zeros((1, EMBED)),
    )


# ---------------- main ---------------------------------------------------------
if __name__ == "__main__":
    key = jax.random.PRNGKey(0)
    k_img, k_dep, k_par = jax.random.split(key, 3)

    B, T = 2, 2
    images = jax.random.uniform(k_img, (B, T, IMAGE_SIZE, IMAGE_SIZE, 3), jnp.float32)
    depths = jax.random.uniform(k_dep, (B, T, IMAGE_SIZE, IMAGE_SIZE, 1), jnp.float32) * 5.0
    params = init_params(k_par)

    fwd = jax.jit(navdp_rgbd_backbone_forward)
    memory_token = jax.block_until_ready(fwd(images, depths, params))

    assert memory_token.shape == (B, MEMORY * 16, EMBED), memory_token.shape
    assert memory_token.dtype == jnp.float32
    assert bool(jnp.all(jnp.isfinite(memory_token)))
    print("KERNEL_OK")
</pallas_src>

<mosaic_0001>
module attributes {stable_mosaic.version = 11 : i64} {
  func.func @_vit_encoder_kernel(%arg0: i32, %arg1: i32, %arg2: memref<1x20x588xbf16, #tpu.memory_space<vmem>>, %arg3: memref<1x588x128xbf16, #tpu.memory_space<vmem>>, %arg4: memref<1x5x128xf32, #tpu.memory_space<vmem>>, %arg5: memref<20x5xf32, #tpu.memory_space<vmem>>, %arg6: memref<20x1xf32, #tpu.memory_space<vmem>>, %arg7: memref<1x20xf32, #tpu.memory_space<vmem>>, %arg8: memref<1x1x1x128xf32, #tpu.memory_space<vmem>>, %arg9: memref<1x1x1x128xf32, #tpu.memory_space<vmem>>, %arg10: memref<1x1x128x384xbf16, #tpu.memory_space<vmem>>, %arg11: memref<1x1x1x384xf32, #tpu.memory_space<vmem>>, %arg12: memref<1x1x128x128xbf16, #tpu.memory_space<vmem>>, %arg13: memref<1x1x1x128xf32, #tpu.memory_space<vmem>>, %arg14: memref<1x1x1x128xf32, #tpu.memory_space<vmem>>, %arg15: memref<1x1x1x128xf32, #tpu.memory_space<vmem>>, %arg16: memref<1x1x128x512xbf16, #tpu.memory_space<vmem>>, %arg17: memref<1x1x1x512xf32, #tpu.memory_space<vmem>>, %arg18: memref<1x1x512x128xbf16, #tpu.memory_space<vmem>>, %arg19: memref<1x1x1x128xf32, #tpu.memory_space<vmem>>, %arg20: memref<1x1x128xf32, #tpu.memory_space<vmem>>, %arg21: memref<1x1x128xf32, #tpu.memory_space<vmem>>, %arg22: memref<1x20x128xf32, #tpu.memory_space<vmem>>, %arg23: memref<20x128xf32, #tpu.memory_space<vmem>>, %arg24: memref<20x128xf32, #tpu.memory_space<vmem>>) attributes {dimension_semantics = [#tpu.dimension_semantics<parallel>, #tpu.dimension_semantics<arbitrary>], iteration_bounds = array<i64: 2, 2>, scalar_prefetch = 0 : i64, scratch_operands = 2 : i64, tpu.core_type = #tpu.core_type<tc>, window_params = [{transform_indices = @transform_0, window_bounds = array<i64: 1, 20, 588>}, {transform_indices = @transform_1, window_bounds = array<i64: 1, 588, 128>}, {transform_indices = @transform_2, window_bounds = array<i64: 1, 5, 128>}, {pipeline_mode = #tpu.pipeline_mode<synchronous>, transform_indices = @transform_3, window_bounds = array<i64: 20, 5>}, {pipeline_mode = #tpu.pipeline_mode<synchronous>, transform_indices = @transform_4, window_bounds = array<i64: 20, 1>}, {pipeline_mode = #tpu.pipeline_mode<synchronous>, transform_indices = @transform_5, window_bounds = array<i64: 1, 20>}, {transform_indices = @transform_6, window_bounds = array<i64: 1, 1, 1, 128>}, {transform_indices = @transform_7, window_bounds = array<i64: 1, 1, 1, 128>}, {transform_indices = @transform_8, window_bounds = array<i64: 1, 1, 128, 384>}, {transform_indices = @transform_9, window_bounds = array<i64: 1, 1, 1, 384>}, {transform_indices = @transform_10, window_bounds = array<i64: 1, 1, 128, 128>}, {transform_indices = @transform_11, window_bounds = array<i64: 1, 1, 1, 128>}, {transform_indices = @transform_12, window_bounds = array<i64: 1, 1, 1, 128>}, {transform_indices = @transform_13, window_bounds = array<i64: 1, 1, 1, 128>}, {transform_indices = @transform_14, window_bounds = array<i64: 1, 1, 128, 512>}, {transform_indices = @transform_15, window_bounds = array<i64: 1, 1, 1, 512>}, {transform_indices = @transform_16, window_bounds = array<i64: 1, 1, 512, 128>}, {transform_indices = @transform_17, window_bounds = array<i64: 1, 1, 1, 128>}, {transform_indices = @transform_18, window_bounds = array<i64: 1, 1, 128>}, {transform_indices = @transform_19, window_bounds = array<i64: 1, 1, 128>}, {transform_indices = @transform_20, window_bounds = array<i64: 1, 20, 128>}]} {
    %c0_i32 = arith.constant 0 : i32
    %0 = arith.cmpi eq, %arg1, %c0_i32 : i32
    %1 = arith.extui %0 : i1 to i32
    %c0_i32_0 = arith.constant 0 : i32
    %2 = arith.cmpi ne, %1, %c0_i32_0 : i32
    scf.if %2 {
      %c0_103 = arith.constant 0 : index
      %c0_104 = arith.constant 0 : index
      %c0_105 = arith.constant 0 : index
      %207 = vector.load %arg2[%c0_103, %c0_104, %c0_105] : memref<1x20x588xbf16, #tpu.memory_space<vmem>>, vector<1x20x588xbf16>
      %208 = vector.shape_cast %207 : vector<1x20x588xbf16> to vector<20x588xbf16>
      %c0_106 = arith.constant 0 : index
      %c0_107 = arith.constant 0 : index
      %c0_108 = arith.constant 0 : index
      %209 = vector.load %arg3[%c0_106, %c0_107, %c0_108] : memref<1x588x128xbf16, #tpu.memory_space<vmem>>, vector<1x588x128xbf16>
      %210 = vector.shape_cast %209 : vector<1x588x128xbf16> to vector<588x128xbf16>
      %cst_109 = arith.constant dense<0.000000e+00> : vector<20x128xf32>
      %211 = tpu.matmul %208, %210, %cst_109 {dimension_numbers = #tpu.dot_dimension_numbers<[1], [0], [0], [1], [0, 0, 1, 1], [], []>} : vector<20x588xbf16>, vector<588x128xbf16>, vector<20x128xf32> -> vector<20x128xf32>
      %c0_110 = arith.constant 0 : index
      %c0_111 = arith.constant 0 : index
      %212 = vector.load %arg5[%c0_110, %c0_111] : memref<20x5xf32, #tpu.memory_space<vmem>>, vector<20x5xf32>
      %c0_112 = arith.constant 0 : index
      %c0_113 = arith.constant 0 : index
      %c0_114 = arith.constant 0 : index
      %213 = vector.load %arg4[%c0_112, %c0_113, %c0_114] : memref<1x5x128xf32, #tpu.memory_space<vmem>>, vector<1x5x128xf32>
      %214 = vector.shape_cast %213 : vector<1x5x128xf32> to vector<5x128xf32>
      %cst_115 = arith.constant dense<0.000000e+00> : vector<20x128xf32>
      %215 = tpu.matmul %212, %214, %cst_115 {dimension_numbers = #tpu.dot_dimension_numbers<[1], [0], [0], [1], [0, 0, 1, 1], [], []>} : vector<20x5xf32>, vector<5x128xf32>, vector<20x128xf32> -> vector<20x128xf32>
      %216 = arith.addf %211, %215 : vector<20x128xf32>
      %c0_116 = arith.constant 0 : index
      %c0_117 = arith.constant 0 : index
      %217 = vector.load %arg23[%c0_116, %c0_117] : memref<20x128xf32, #tpu.memory_space<vmem>>, vector<20x128xf32>
      tpu.vector_store %arg23[%c0_116, %c0_117], %216 {strides = array<i32>} : memref<20x128xf32, #tpu.memory_space<vmem>>, vector<20x128xf32>,
    } else {
    }
    %c0 = arith.constant 0 : index
    %c0_1 = arith.constant 0 : index
    %3 = vector.load %arg6[%c0, %c0_1] : memref<20x1xf32, #tpu.memory_space<vmem>>, vector<20x1xf32>
    %c0_2 = arith.constant 0 : index
    %c0_3 = arith.constant 0 : index
    %4 = vector.load %arg7[%c0_2, %c0_3] : memref<1x20xf32, #tpu.memory_space<vmem>>, vector<1x20xf32>
    %5 = vector.broadcast %3 : vector<20x1xf32> to vector<20x20xf32>
    %6 = vector.broadcast %4 : vector<1x20xf32> to vector<20x20xf32>
    %7 = arith.cmpf oeq, %5, %6 : vector<20x20xf32>
    %cst = arith.constant 0.000000e+00 : f32
    %cst_4 = arith.constant -1.000000e+09 : f32
    %8 = vector.broadcast %cst : f32 to vector<20x20xf32>
    %9 = vector.broadcast %cst_4 : f32 to vector<20x20xf32>
    %10 = arith.select %7, %8, %9 : vector<20x20xi1>, vector<20x20xf32>
    %c0_5 = arith.constant 0 : index
    %c0_6 = arith.constant 0 : index
    %11 = vector.load %arg23[%c0_5, %c0_6] : memref<20x128xf32, #tpu.memory_space<vmem>>, vector<20x128xf32>
    %c0_7 = arith.constant 0 : index
    %c0_8 = arith.constant 0 : index
    %c0_9 = arith.constant 0 : index
    %c0_10 = arith.constant 0 : index
    %12 = vector.load %arg8[%c0_7, %c0_8, %c0_9, %c0_10] : memref<1x1x1x128xf32, #tpu.memory_space<vmem>>, vector<1x1x1x128xf32>
    %13 = vector.shape_cast %12 : vector<1x1x1x128xf32> to vector<1x128xf32>
    %c0_11 = arith.constant 0 : index
    %c0_12 = arith.constant 0 : index
    %c0_13 = arith.constant 0 : index
    %c0_14 = arith.constant 0 : index
    %14 = vector.load %arg9[%c0_11, %c0_12, %c0_13, %c0_14] : memref<1x1x1x128xf32, #tpu.memory_space<vmem>>, vector<1x1x1x128xf32>
    %15 = vector.shape_cast %14 : vector<1x1x1x128xf32> to vector<1x128xf32>
    %cst_15 = arith.constant dense<0.000000e+00> : vector<20xf32>
    %16 = vector.multi_reduction <add>, %11, %cst_15 [1] : vector<20x128xf32> to vector<20xf32>
    %17 = vector.shape_cast %16 : vector<20xf32> to vector<20x1xf32>
    %cst_16 = arith.constant 1.280000e+02 : f32
    %18 = vector.broadcast %cst_16 : f32 to vector<20x1xf32>
    %19 = arith.divf %17, %18 : vector<20x1xf32>
    %20 = vector.broadcast %19 : vector<20x1xf32> to vector<20x128xf32>
    %21 = arith.subf %11, %20 : vector<20x128xf32>
    %22 = arith.mulf %21, %21 : vector<20x128xf32>
    %cst_17 = arith.constant dense<0.000000e+00> : vector<20xf32>
    %23 = vector.multi_reduction <add>, %22, %cst_17 [1] : vector<20x128xf32> to vector<20xf32>
    %24 = vector.shape_cast %23 : vector<20xf32> to vector<20x1xf32>
    %cst_18 = arith.constant 1.280000e+02 : f32
    %25 = vector.broadcast %cst_18 : f32 to vector<20x1xf32>
    %26 = arith.divf %24, %25 : vector<20x1xf32>
    %cst_19 = arith.constant 9.99999974E-6 : f32
    %27 = vector.broadcast %cst_19 : f32 to vector<20x1xf32>
    %28 = arith.addf %26, %27 : vector<20x1xf32>
    %29 = math.rsqrt %28 : vector<20x1xf32>
    %30 = vector.broadcast %29 : vector<20x1xf32> to vector<20x128xf32>
    %31 = arith.mulf %21, %30 : vector<20x128xf32>
    %32 = vector.broadcast %13 : vector<1x128xf32> to vector<20x128xf32>
    %33 = arith.mulf %31, %32 : vector<20x128xf32>
    %34 = vector.broadcast %15 : vector<1x128xf32> to vector<20x128xf32>
    %35 = arith.addf %33, %34 : vector<20x128xf32>
    %c0_20 = arith.constant 0 : index
    %c0_21 = arith.constant 0 : index
    %c0_22 = arith.constant 0 : index
    %c0_23 = arith.constant 0 : index
    %36 = vector.load %arg10[%c0_20, %c0_21, %c0_22, %c0_23] : memref<1x1x128x384xbf16, #tpu.memory_space<vmem>>, vector<1x1x128x384xbf16>
    %37 = vector.shape_cast %36 : vector<1x1x128x384xbf16> to vector<128x384xbf16>
    %38 = arith.truncf %35 : vector<20x128xf32> to vector<20x128xbf16>
    %cst_24 = arith.constant dense<0.000000e+00> : vector<20x384xf32>
    %39 = tpu.matmul %38, %37, %cst_24 {dimension_numbers = #tpu.dot_dimension_numbers<[1], [0], [0], [1], [0, 0, 1, 1], [], []>} : vector<20x128xbf16>, vector<128x384xbf16>, vector<20x384xf32> -> vector<20x384xf32>
    %c0_25 = arith.constant 0 : index
    %c0_26 = arith.constant 0 : index
    %c0_27 = arith.constant 0 : index
    %c0_28 = arith.constant 0 : index
    %40 = vector.load %arg11[%c0_25, %c0_26, %c0_27, %c0_28] : memref<1x1x1x384xf32, #tpu.memory_space<vmem>>, vector<1x1x1x384xf32>
    %41 = vector.shape_cast %40 : vector<1x1x1x384xf32> to vector<1x384xf32>
    %42 = vector.broadcast %41 : vector<1x384xf32> to vector<20x384xf32>
    %43 = arith.addf %39, %42 : vector<20x384xf32>
    %44 = vector.extract_strided_slice %43 {offsets = [0, 0], sizes = [20, 128], strides = [1, 1]} : vector<20x384xf32> to vector<20x128xf32>
    %45 = vector.extract_strided_slice %43 {offsets = [0, 128], sizes = [20, 128], strides = [1, 1]} : vector<20x384xf32> to vector<20x128xf32>
    %46 = vector.extract_strided_slice %43 {offsets = [0, 256], sizes = [20, 128], strides = [1, 1]} : vector<20x384xf32> to vector<20x128xf32>
    %c0_29 = arith.constant 0 : index
    %c0_30 = arith.constant 0 : index
    %c0_31 = arith.constant 0 : index
    %c0_32 = arith.constant 0 : index
    %47 = vector.load %arg12[%c0_29, %c0_30, %c0_31, %c0_32] : memref<1x1x128x128xbf16, #tpu.memory_space<vmem>>, vector<1x1x128x128xbf16>
    %48 = vector.shape_cast %47 : vector<1x1x128x128xbf16> to vector<128x128xbf16>
    %49 = vector.extract_strided_slice %44 {offsets = [0, 0], sizes = [20, 32], strides = [1, 1]} : vector<20x128xf32> to vector<20x32xf32>
    %50 = arith.truncf %49 : vector<20x32xf32> to vector<20x32xbf16>
    %51 = vector.extract_strided_slice %45 {offsets = [0, 0], sizes = [20, 32], strides = [1, 1]} : vector<20x128xf32> to vector<20x32xf32>
    %52 = arith.truncf %51 : vector<20x32xf32> to vector<20x32xbf16>
    %53 = vector.extract_strided_slice %46 {offsets = [0, 0], sizes = [20, 32], strides = [1, 1]} : vector<20x128xf32> to vector<20x32xf32>
    %54 = arith.truncf %53 : vector<20x32xf32> to vector<20x32xbf16>
    %cst_33 = arith.constant dense<0.000000e+00> : vector<20x20xf32>
    %55 = tpu.matmul %50, %52, %cst_33 {dimension_numbers = #tpu.dot_dimension_numbers<[1], [1], [0], [0], [0, 0, 1, 0], [], []>} : vector<20x32xbf16>, vector<20x32xbf16>, vector<20x20xf32> -> vector<20x20xf32>
    %cst_34 = arith.constant 0.176776692 : f32
    %56 = vector.broadcast %cst_34 : f32 to vector<20x20xf32>
    %57 = arith.mulf %55, %56 : vector<20x20xf32>
    %58 = arith.addf %57, %10 : vector<20x20xf32>
    %cst_35 = arith.constant dense<0xFF800000> : vector<20xf32>
    %59 = vector.multi_reduction <maximumf>, %58, %cst_35 [1] : vector<20x20xf32> to vector<20xf32>
    %60 = vector.shape_cast %59 : vector<20xf32> to vector<20x1xf32>
    %61 = vector.broadcast %60 : vector<20x1xf32> to vector<20x20xf32>
    %62 = arith.subf %58, %61 : vector<20x20xf32>
    %63 = math.exp %62 : vector<20x20xf32>
    %cst_36 = arith.constant dense<0.000000e+00> : vector<20xf32>
    %64 = vector.multi_reduction <add>, %63, %cst_36 [1] : vector<20x20xf32> to vector<20xf32>
    %65 = vector.shape_cast %64 : vector<20xf32> to vector<20x1xf32>
    %66 = tpu.reciprocal %65 {approx = true} : vector<20x1xf32> -> vector<20x1xf32>
    %67 = vector.broadcast %66 : vector<20x1xf32> to vector<20x20xf32>
    %68 = arith.mulf %63, %67 : vector<20x20xf32>
    %69 = arith.truncf %68 : vector<20x20xf32> to vector<20x20xbf16>
    %cst_37 = arith.constant dense<0.000000e+00> : vector<20x32xf32>
    %70 = tpu.matmul %69, %54, %cst_37 {dimension_numbers = #tpu.dot_dimension_numbers<[1], [0], [0], [1], [0, 0, 1, 1], [], []>} : vector<20x20xbf16>, vector<20x32xbf16>, vector<20x32xf32> -> vector<20x32xf32>
    %c0_38 = arith.constant 0 : index
    %c0_39 = arith.constant 0 : index
    %71 = vector.load %arg24[%c0_38, %c0_39] : memref<20x128xf32, #tpu.memory_space<vmem>>, vector<20x32xf32>
    tpu.vector_store %arg24[%c0_38, %c0_39], %70 {strides = array<i32>} : memref<20x128xf32, #tpu.memory_space<vmem>>, vector<20x32xf32>,
    %72 = vector.extract_strided_slice %44 {offsets = [0, 32], sizes = [20, 32], strides = [1, 1]} : vector<20x128xf32> to vector<20x32xf32>
    %73 = arith.truncf %72 : vector<20x32xf32> to vector<20x32xbf16>
    %74 = vector.extract_strided_slice %45 {offsets = [0, 32], sizes = [20, 32], strides = [1, 1]} : vector<20x128xf32> to vector<20x32xf32>
    %75 = arith.truncf %74 : vector<20x32xf32> to vector<20x32xbf16>
    %76 = vector.extract_strided_slice %46 {offsets = [0, 32], sizes = [20, 32], strides = [1, 1]} : vector<20x128xf32> to vector<20x32xf32>
    %77 = arith.truncf %76 : vector<20x32xf32> to vector<20x32xbf16>
    %cst_40 = arith.constant dense<0.000000e+00> : vector<20x20xf32>
    %78 = tpu.matmul %73, %75, %cst_40 {dimension_numbers = #tpu.dot_dimension_numbers<[1], [1], [0], [0], [0, 0, 1, 0], [], []>} : vector<20x32xbf16>, vector<20x32xbf16>, vector<20x20xf32> -> vector<20x20xf32>
    %cst_41 = arith.constant 0.176776692 : f32
    %79 = vector.broadcast %cst_41 : f32 to vector<20x20xf32>
    %80 = arith.mulf %78, %79 : vector<20x20xf32>
    %81 = arith.addf %80, %10 : vector<20x20xf32>
    %cst_42 = arith.constant dense<0xFF800000> : vector<20xf32>
    %82 = vector.multi_reduction <maximumf>, %81, %cst_42 [1] : vector<20x20xf32> to vector<20xf32>
    %83 = vector.shape_cast %82 : vector<20xf32> to vector<20x1xf32>
    %84 = vector.broadcast %83 : vector<20x1xf32> to vector<20x20xf32>
    %85 = arith.subf %81, %84 : vector<20x20xf32>
    %86 = math.exp %85 : vector<20x20xf32>
    %cst_43 = arith.constant dense<0.000000e+00> : vector<20xf32>
    %87 = vector.multi_reduction <add>, %86, %cst_43 [1] : vector<20x20xf32> to vector<20xf32>
    %88 = vector.shape_cast %87 : vector<20xf32> to vector<20x1xf32>
    %89 = tpu.reciprocal %88 {approx = true} : vector<20x1xf32> -> vector<20x1xf32>
    %90 = vector.broadcast %89 : vector<20x1xf32> to vector<20x20xf32>
    %91 = arith.mulf %86, %90 : vector<20x20xf32>
    %92 = arith.truncf %91 : vector<20x20xf32> to vector<20x20xbf16>
    %cst_44 = arith.constant dense<0.000000e+00> : vector<20x32xf32>
    %93 = tpu.matmul %92, %77, %cst_44 {dimension_numbers = #tpu.dot_dimension_numbers<[1], [0], [0], [1], [0, 0, 1, 1], [], []>} : vector<20x20xbf16>, vector<20x32xbf16>, vector<20x32xf32> -> vector<20x32xf32>
    %c0_45 = arith.constant 0 : index
    %c32 = arith.constant 32 : index
    %94 = vector.load %arg24[%c0_45, %c32] : memref<20x128xf32, #tpu.memory_space<vmem>>, vector<20x32xf32>
    tpu.vector_store %arg24[%c0_45, %c32], %93 {strides = array<i32>} : memref<20x128xf32, #tpu.memory_space<vmem>>, vector<20x32xf32>,
    %95 = vector.extract_strided_slice %44 {offsets = [0, 64], sizes = [20, 32], strides = [1, 1]} : vector<20x128xf32> to vector<20x32xf32>
    %96 = arith.truncf %95 : vector<20x32xf32> to vector<20x32xbf16>
    %97 = vector.extract_strided_slice %45 {offsets = [0, 64], sizes = [20, 32], strides = [1, 1]} : vector<20x128xf32> to vector<20x32xf32>
    %98 = arith.truncf %97 : vector<20x32xf32> to vector<20x32xbf16>
    %99 = vector.extract_strided_slice %46 {offsets = [0, 64], sizes = [20, 32], strides = [1, 1]} : vector<20x128xf32> to vector<20x32xf32>
    %100 = arith.truncf %99 : vector<20x32xf32> to vector<20x32xbf16>
    %cst_46 = arith.constant dense<0.000000e+00> : vector<20x20xf32>
    %101 = tpu.matmul %96, %98, %cst_46 {dimension_numbers = #tpu.dot_dimension_numbers<[1], [1], [0], [0], [0, 0, 1, 0], [], []>} : vector<20x32xbf16>, vector<20x32xbf16>, vector<20x20xf32> -> vector<20x20xf32>
    %cst_47 = arith.constant 0.176776692 : f32
    %102 = vector.broadcast %cst_47 : f32 to vector<20x20xf32>
    %103 = arith.mulf %101, %102 : vector<20x20xf32>
    %104 = arith.addf %103, %10 : vector<20x20xf32>
    %cst_48 = arith.constant dense<0xFF800000> : vector<20xf32>
    %105 = vector.multi_reduction <maximumf>, %104, %cst_48 [1] : vector<20x20xf32> to vector<20xf32>
    %106 = vector.shape_cast %105 : vector<20xf32> to vector<20x1xf32>
    %107 = vector.broadcast %106 : vector<20x1xf32> to vector<20x20xf32>
    %108 = arith.subf %104, %107 : vector<20x20xf32>
    %109 = math.exp %108 : vector<20x20xf32>
    %cst_49 = arith.constant dense<0.000000e+00> : vector<20xf32>
    %110 = vector.multi_reduction <add>, %109, %cst_49 [1] : vector<20x20xf32> to vector<20xf32>
    %111 = vector.shape_cast %110 : vector<20xf32> to vector<20x1xf32>
    %112 = tpu.reciprocal %111 {approx = true} : vector<20x1xf32> -> vector<20x1xf32>
    %113 = vector.broadcast %112 : vector<20x1xf32> to vector<20x20xf32>
    %114 = arith.mulf %109, %113 : vector<20x20xf32>
    %115 = arith.truncf %114 : vector<20x20xf32> to vector<20x20xbf16>
    %cst_50 = arith.constant dense<0.000000e+00> : vector<20x32xf32>
    %116 = tpu.matmul %115, %100, %cst_50 {dimension_numbers = #tpu.dot_dimension_numbers<[1], [0], [0], [1], [0, 0, 1, 1], [], []>} : vector<20x20xbf16>, vector<20x32xbf16>, vector<20x32xf32> -> vector<20x32xf32>
    %c0_51 = arith.constant 0 : index
    %c64 = arith.constant 64 : index
    %117 = vector.load %arg24[%c0_51, %c64] : memref<20x128xf32, #tpu.memory_space<vmem>>, vector<20x32xf32>
    tpu.vector_store %arg24[%c0_51, %c64], %116 {strides = array<i32>} : memref<20x128xf32, #tpu.memory_space<vmem>>, vector<20x32xf32>,
    %118 = vector.extract_strided_slice %44 {offsets = [0, 96], sizes = [20, 32], strides = [1, 1]} : vector<20x128xf32> to vector<20x32xf32>
    %119 = arith.truncf %118 : vector<20x32xf32> to vector<20x32xbf16>
    %120 = vector.extract_strided_slice %45 {offsets = [0, 96], sizes = [20, 32], strides = [1, 1]} : vector<20x128xf32> to vector<20x32xf32>
    %121 = arith.truncf %120 : vector<20x32xf32> to vector<20x32xbf16>
    %122 = vector.extract_strided_slice %46 {offsets = [0, 96], sizes = [20, 32], strides = [1, 1]} : vector<20x128xf32> to vector<20x32xf32>
    %123 = arith.truncf %122 : vector<20x32xf32> to vector<20x32xbf16>
    %cst_52 = arith.constant dense<0.000000e+00> : vector<20x20xf32>
    %124 = tpu.matmul %119, %121, %cst_52 {dimension_numbers = #tpu.dot_dimension_numbers<[1], [1], [0], [0], [0, 0, 1, 0], [], []>} : vector<20x32xbf16>, vector<20x32xbf16>, vector<20x20xf32> -> vector<20x20xf32>
    %cst_53 = arith.constant 0.176776692 : f32
    %125 = vector.broadcast %cst_53 : f32 to vector<20x20xf32>
    %126 = arith.mulf %124, %125 : vector<20x20xf32>
    %127 = arith.addf %126, %10 : vector<20x20xf32>
    %cst_54 = arith.constant dense<0xFF800000> : vector<20xf32>
    %128 = vector.multi_reduction <maximumf>, %127, %cst_54 [1] : vector<20x20xf32> to vector<20xf32>
    %129 = vector.shape_cast %128 : vector<20xf32> to vector<20x1xf32>
    %130 = vector.broadcast %129 : vector<20x1xf32> to vector<20x20xf32>
    %131 = arith.subf %127, %130 : vector<20x20xf32>
    %132 = math.exp %131 : vector<20x20xf32>
    %cst_55 = arith.constant dense<0.000000e+00> : vector<20xf32>
    %133 = vector.multi_reduction <add>, %132, %cst_55 [1] : vector<20x20xf32> to vector<20xf32>
    %134 = vector.shape_cast %133 : vector<20xf32> to vector<20x1xf32>
    %135 = tpu.reciprocal %134 {approx = true} : vector<20x1xf32> -> vector<20x1xf32>
    %136 = vector.broadcast %135 : vector<20x1xf32> to vector<20x20xf32>
    %137 = arith.mulf %132, %136 : vector<20x20xf32>
    %138 = arith.truncf %137 : vector<20x20xf32> to vector<20x20xbf16>
    %cst_56 = arith.constant dense<0.000000e+00> : vector<20x32xf32>
    %139 = tpu.matmul %138, %123, %cst_56 {dimension_numbers = #tpu.dot_dimension_numbers<[1], [0], [0], [1], [0, 0, 1, 1], [], []>} : vector<20x20xbf16>, vector<20x32xbf16>, vector<20x32xf32> -> vector<20x32xf32>
    %c0_57 = arith.constant 0 : index
    %c96 = arith.constant 96 : index
    %140 = vector.load %arg24[%c0_57, %c96] : memref<20x128xf32, #tpu.memory_space<vmem>>, vector<20x32xf32>
    tpu.vector_store %arg24[%c0_57, %c96], %139 {strides = array<i32>} : memref<20x128xf32, #tpu.memory_space<vmem>>, vector<20x32xf32>,
    %c0_58 = arith.constant 0 : index
    %c0_59 = arith.constant 0 : index
    %141 = vector.load %arg24[%c0_58, %c0_59] : memref<20x128xf32, #tpu.memory_space<vmem>>, vector<20x128xf32>
    %142 = arith.truncf %141 : vector<20x128xf32> to vector<20x128xbf16>
    %cst_60 = arith.constant dense<0.000000e+00> : vector<20x128xf32>
    %143 = tpu.matmul %142, %48, %cst_60 {dimension_numbers = #tpu.dot_dimension_numbers<[1], [0], [0], [1], [0, 0, 1, 1], [], []>} : vector<20x128xbf16>, vector<128x128xbf16>, vector<20x128xf32> -> vector<20x128xf32>
    %144 = arith.addf %11, %143 : vector<20x128xf32>
    %c0_61 = arith.constant 0 : index
    %c0_62 = arith.constant 0 : index
    %c0_63 = arith.constant 0 : index
    %c0_64 = arith.constant 0 : index
    %145 = vector.load %arg13[%c0_61, %c0_62, %c0_63, %c0_64] : memref<1x1x1x128xf32, #tpu.memory_space<vmem>>, vector<1x1x1x128xf32>
    %146 = vector.shape_cast %145 : vector<1x1x1x128xf32> to vector<1x128xf32>
    %147 = vector.broadcast %146 : vector<1x128xf32> to vector<20x128xf32>
    %148 = arith.addf %144, %147 : vector<20x128xf32>
    %c0_65 = arith.constant 0 : index
    %c0_66 = arith.constant 0 : index
    %c0_67 = arith.constant 0 : index
    %c0_68 = arith.constant 0 : index
    %149 = vector.load %arg14[%c0_65, %c0_66, %c0_67, %c0_68] : memref<1x1x1x128xf32, #tpu.memory_space<vmem>>, vector<1x1x1x128xf32>
    %150 = vector.shape_cast %149 : vector<1x1x1x128xf32> to vector<1x128xf32>
    %c0_69 = arith.constant 0 : index
    %c0_70 = arith.constant 0 : index
    %c0_71 = arith.constant 0 : index
    %c0_72 = arith.constant 0 : index
    %151 = vector.load %arg15[%c0_69, %c0_70, %c0_71, %c0_72] : memref<1x1x1x128xf32, #tpu.memory_space<vmem>>, vector<1x1x1x128xf32>
    %152 = vector.shape_cast %151 : vector<1x1x1x128xf32> to vector<1x128xf32>
    %cst_73 = arith.constant dense<0.000000e+00> : vector<20xf32>
    %153 = vector.multi_reduction <add>, %148, %cst_73 [1] : vector<20x128xf32> to vector<20xf32>
    %154 = vector.shape_cast %153 : vector<20xf32> to vector<20x1xf32>
    %cst_74 = arith.constant 1.280000e+02 : f32
    %155 = vector.broadcast %cst_74 : f32 to vector<20x1xf32>
    %156 = arith.divf %154, %155 : vector<20x1xf32>
    %157 = vector.broadcast %156 : vector<20x1xf32> to vector<20x128xf32>
    %158 = arith.subf %148, %157 : vector<20x128xf32>
    %159 = arith.mulf %158, %158 : vector<20x128xf32>
    %cst_75 = arith.constant dense<0.000000e+00> : vector<20xf32>
    %160 = vector.multi_reduction <add>, %159, %cst_75 [1] : vector<20x128xf32> to vector<20xf32>
    %161 = vector.shape_cast %160 : vector<20xf32> to vector<20x1xf32>
    %cst_76 = arith.constant 1.280000e+02 : f32
    %162 = vector.broadcast %cst_76 : f32 to vector<20x1xf32>
    %163 = arith.divf %161, %162 : vector<20x1xf32>
    %cst_77 = arith.constant 9.99999974E-6 : f32
    %164 = vector.broadcast %cst_77 : f32 to vector<20x1xf32>
    %165 = arith.addf %163, %164 : vector<20x1xf32>
    %166 = math.rsqrt %165 : vector<20x1xf32>
    %167 = vector.broadcast %166 : vector<20x1xf32> to vector<20x128xf32>
    %168 = arith.mulf %158, %167 : vector<20x128xf32>
    %169 = vector.broadcast %150 : vector<1x128xf32> to vector<20x128xf32>
    %170 = arith.mulf %168, %169 : vector<20x128xf32>
    %171 = vector.broadcast %152 : vector<1x128xf32> to vector<20x128xf32>
    %172 = arith.addf %170, %171 : vector<20x128xf32>
    %c0_78 = arith.constant 0 : index
    %c0_79 = arith.constant 0 : index
    %c0_80 = arith.constant 0 : index
    %c0_81 = arith.constant 0 : index
    %173 = vector.load %arg16[%c0_78, %c0_79, %c0_80, %c0_81] : memref<1x1x128x512xbf16, #tpu.memory_space<vmem>>, vector<1x1x128x512xbf16>
    %174 = vector.shape_cast %173 : vector<1x1x128x512xbf16> to vector<128x512xbf16>
    %175 = arith.truncf %172 : vector<20x128xf32> to vector<20x128xbf16>
    %cst_82 = arith.constant dense<0.000000e+00> : vector<20x512xf32>
    %176 = tpu.matmul %175, %174, %cst_82 {dimension_numbers = #tpu.dot_dimension_numbers<[1], [0], [0], [1], [0, 0, 1, 1], [], []>} : vector<20x128xbf16>, vector<128x512xbf16>, vector<20x512xf32> -> vector<20x512xf32>
    %c0_83 = arith.constant 0 : index
    %c0_84 = arith.constant 0 : index
    %c0_85 = arith.constant 0 : index
    %c0_86 = arith.constant 0 : index
    %177 = vector.load %arg17[%c0_83, %c0_84, %c0_85, %c0_86] : memref<1x1x1x512xf32, #tpu.memory_space<vmem>>, vector<1x1x1x512xf32>
    %178 = vector.shape_cast %177 : vector<1x1x1x512xf32> to vector<1x512xf32>
    %179 = vector.broadcast %178 : vector<1x512xf32> to vector<20x512xf32>
    %180 = arith.addf %176, %179 : vector<20x512xf32>
    %181 = arith.mulf %180, %180 : vector<20x512xf32>
    %182 = arith.mulf %180, %181 : vector<20x512xf32>
    %cst_87 = arith.constant 4.471500e-02 : f32
    %183 = vector.broadcast %cst_87 : f32 to vector<20x512xf32>
    %184 = arith.mulf %183, %182 : vector<20x512xf32>
    %185 = arith.addf %180, %184 : vector<20x512xf32>
    %cst_88 = arith.constant 0.797884583 : f32
    %186 = vector.broadcast %cst_88 : f32 to vector<20x512xf32>
    %187 = arith.mulf %186, %185 : vector<20x512xf32>
    %188 = math.tanh %187 : vector<20x512xf32>
    %cst_89 = arith.constant 1.000000e+00 : f32
    %189 = vector.broadcast %cst_89 : f32 to vector<20x512xf32>
    %190 = arith.addf %189, %188 : vector<20x512xf32>
    %cst_90 = arith.constant 5.000000e-01 : f32
    %191 = vector.broadcast %cst_90 : f32 to vector<20x512xf32>
    %192 = arith.mulf %191, %190 : vector<20x512xf32>
    %193 = arith.mulf %180, %192 : vector<20x512xf32>
    %c0_91 = arith.constant 0 : index
    %c0_92 = arith.constant 0 : index
    %c0_93 = arith.constant 0 : index
    %c0_94 = arith.constant 0 : index
    %194 = vector.load %arg18[%c0_91, %c0_92, %c0_93, %c0_94] : memref<1x1x512x128xbf16, #tpu.memory_space<vmem>>, vector<1x1x512x128xbf16>
    %195 = vector.shape_cast %194 : vector<1x1x512x128xbf16> to vector<512x128xbf16>
    %196 = arith.truncf %193 : vector<20x512xf32> to vector<20x512xbf16>
    %cst_95 = arith.constant dense<0.000000e+00> : vector<20x128xf32>
    %197 = tpu.matmul %196, %195, %cst_95 {dimension_numbers = #tpu.dot_dimension_numbers<[1], [0], [0], [1], [0, 0, 1, 1], [], []>} : vector<20x512xbf16>, vector<512x128xbf16>, vector<20x128xf32> -> vector<20x128xf32>
    %198 = arith.addf %148, %197 : vector<20x128xf32>
    %c0_96 = arith.constant 0 : index
    %c0_97 = arith.constant 0 : index
    %c0_98 = arith.constant 0 : index
    %c0_99 = arith.constant 0 : index
    %199 = vector.load %arg19[%c0_96, %c0_97, %c0_98, %c0_99] : memref<1x1x1x128xf32, #tpu.memory_space<vmem>>, vector<1x1x1x128xf32>
    %200 = vector.shape_cast %199 : vector<1x1x1x128xf32> to vector<1x128xf32>
    %201 = vector.broadcast %200 : vector<1x128xf32> to vector<20x128xf32>
    %202 = arith.addf %198, %201 : vector<20x128xf32>
    %c0_100 = arith.constant 0 : index
    %c0_101 = arith.constant 0 : index
    %203 = vector.load %arg23[%c0_100, %c0_101] : memref<20x128xf32, #tpu.memory_space<vmem>>, vector<20x128xf32>
    tpu.vector_store %arg23[%c0_100, %c0_101], %202 {strides = array<i32>} : memref<20x128xf32, #tpu.memory_space<vmem>>, vector<20x128xf32>,
    %c1_i32 = arith.constant 1 : i32
    %204 = arith.cmpi eq, %arg1, %c1_i32 : i32
    %205 = arith.extui %204 : i1 to i32
    %c0_i32_102 = arith.constant 0 : i32
    %206 = arith.cmpi ne, %205, %c0_i32_102 : i32
    scf.if %206 {
      %c0_103 = arith.constant 0 : index
      %c0_104 = arith.constant 0 : index
      %c0_105 = arith.constant 0 : index
      %207 = vector.load %arg20[%c0_103, %c0_104, %c0_105] : memref<1x1x128xf32, #tpu.memory_space<vmem>>, vector<1x1x128xf32>
      %208 = vector.shape_cast %207 : vector<1x1x128xf32> to vector<1x128xf32>
      %c0_106 = arith.constant 0 : index
      %c0_107 = arith.constant 0 : index
      %c0_108 = arith.constant 0 : index
      %209 = vector.load %arg21[%c0_106, %c0_107, %c0_108] : memref<1x1x128xf32, #tpu.memory_space<vmem>>, vector<1x1x128xf32>
      %210 = vector.shape_cast %209 : vector<1x1x128xf32> to vector<1x128xf32>
      %cst_109 = arith.constant dense<0.000000e+00> : vector<20xf32>
      %211 = vector.multi_reduction <add>, %202, %cst_109 [1] : vector<20x128xf32> to vector<20xf32>
      %212 = vector.shape_cast %211 : vector<20xf32> to vector<20x1xf32>
      %cst_110 = arith.constant 1.280000e+02 : f32
      %213 = vector.broadcast %cst_110 : f32 to vector<20x1xf32>
      %214 = arith.divf %212, %213 : vector<20x1xf32>
      %215 = vector.broadcast %214 : vector<20x1xf32> to vector<20x128xf32>
      %216 = arith.subf %202, %215 : vector<20x128xf32>
      %217 = arith.mulf %216, %216 : vector<20x128xf32>
      %cst_111 = arith.constant dense<0.000000e+00> : vector<20xf32>
      %218 = vector.multi_reduction <add>, %217, %cst_111 [1] : vector<20x128xf32> to vector<20xf32>
      %219 = vector.shape_cast %218 : vector<20xf32> to vector<20x1xf32>
      %cst_112 = arith.constant 1.280000e+02 : f32
      %220 = vector.broadcast %cst_112 : f32 to vector<20x1xf32>
      %221 = arith.divf %219, %220 : vector<20x1xf32>
      %cst_113 = arith.constant 9.99999974E-6 : f32
      %222 = vector.broadcast %cst_113 : f32 to vector<20x1xf32>
      %223 = arith.addf %221, %222 : vector<20x1xf32>
      %224 = math.rsqrt %223 : vector<20x1xf32>
      %225 = vector.broadcast %224 : vector<20x1xf32> to vector<20x128xf32>
      %226 = arith.mulf %216, %225 : vector<20x128xf32>
      %227 = vector.broadcast %208 : vector<1x128xf32> to vector<20x128xf32>
      %228 = arith.mulf %226, %227 : vector<20x128xf32>
      %229 = vector.broadcast %210 : vector<1x128xf32> to vector<20x128xf32>
      %230 = arith.addf %228, %229 : vector<20x128xf32>
      %c0_114 = arith.constant 0 : index
      %c0_115 = arith.constant 0 : index
      %c0_116 = arith.constant 0 : index
      %231 = vector.load %arg22[%c0_114, %c0_115, %c0_116] : memref<1x20x128xf32, #tpu.memory_space<vmem>>, vector<1x20x128xf32>
      %232 = vector.shape_cast %231 : vector<1x20x128xf32> to vector<20x128xf32>
      %233 = vector.shape_cast %230 : vector<20x128xf32> to vector<1x20x128xf32>
      tpu.vector_store %arg22[%c0_114, %c0_115, %c0_116], %233 {strides = array<i32>} : memref<1x20x128xf32, #tpu.memory_space<vmem>>, vector<1x20x128xf32>,
    } else {
    }
    return
  }
  func.func @transform_0(%arg0: i32, %arg1: i32) -> (i32, i32, i32) {
    %c0_i32 = arith.constant 0 : i32
    %c0_i32_0 = arith.constant 0 : i32
    %c0_i32_1 = arith.constant 0 : i32
    return %arg0, %c0_i32, %c0_i32_0 : i32, i32, i32
  }
  func.func @transform_1(%arg0: i32, %arg1: i32) -> (i32, i32, i32) {
    %c0_i32 = arith.constant 0 : i32
    %c0_i32_0 = arith.constant 0 : i32
    %c0_i32_1 = arith.constant 0 : i32
    return %arg0, %c0_i32, %c0_i32_0 : i32, i32, i32
  }
  func.func @transform_2(%arg0: i32, %arg1: i32) -> (i32, i32, i32) {
    %c0_i32 = arith.constant 0 : i32
    %c0_i32_0 = arith.constant 0 : i32
    %c0_i32_1 = arith.constant 0 : i32
    return %arg0, %c0_i32, %c0_i32_0 : i32, i32, i32
  }
  func.func @transform_3(%arg0: i32, %arg1: i32) -> (i32, i32) {
    %c0_i32 = arith.constant 0 : i32
    %c0_i32_0 = arith.constant 0 : i32
    %c0_i32_1 = arith.constant 0 : i32
    return %c0_i32, %c0_i32_0 : i32, i32
  }
  func.func @transform_4(%arg0: i32, %arg1: i32) -> (i32, i32) {
    %c0_i32 = arith.constant 0 : i32
    %c0_i32_0 = arith.constant 0 : i32
    %c0_i32_1 = arith.constant 0 : i32
    return %c0_i32, %c0_i32_0 : i32, i32
  }
  func.func @transform_5(%arg0: i32, %arg1: i32) -> (i32, i32) {
    %c0_i32 = arith.constant 0 : i32
    %c0_i32_0 = arith.constant 0 : i32
    %c0_i32_1 = arith.constant 0 : i32
    return %c0_i32, %c0_i32_0 : i32, i32
  }
  func.func @transform_6(%arg0: i32, %arg1: i32) -> (i32, i32, i32, i32) {
    %c0_i32 = arith.constant 0 : i32
    %c0_i32_0 = arith.constant 0 : i32
    %c0_i32_1 = arith.constant 0 : i32
    return %arg0, %arg1, %c0_i32, %c0_i32_0 : i32, i32, i32, i32
  }
  func.func @transform_7(%arg0: i32, %arg1: i32) -> (i32, i32, i32, i32) {
    %c0_i32 = arith.constant 0 : i32
    %c0_i32_0 = arith.constant 0 : i32
    %c0_i32_1 = arith.constant 0 : i32
    return %arg0, %arg1, %c0_i32, %c0_i32_0 : i32, i32, i32, i32
  }
  func.func @transform_8(%arg0: i32, %arg1: i32) -> (i32, i32, i32, i32) {
    %c0_i32 = arith.constant 0 : i32
    %c0_i32_0 = arith.constant 0 : i32
    %c0_i32_1 = arith.constant 0 : i32
    return %arg0, %arg1, %c0_i32, %c0_i32_0 : i32, i32, i32, i32
  }
  func.func @transform_9(%arg0: i32, %arg1: i32) -> (i32, i32, i32, i32) {
    %c0_i32 = arith.constant 0 : i32
    %c0_i32_0 = arith.constant 0 : i32
    %c0_i32_1 = arith.constant 0 : i32
    return %arg0, %arg1, %c0_i32, %c0_i32_0 : i32, i32, i32, i32
  }
  func.func @transform_10(%arg0: i32, %arg1: i32) -> (i32, i32, i32, i32) {
    %c0_i32 = arith.constant 0 : i32
    %c0_i32_0 = arith.constant 0 : i32
    %c0_i32_1 = arith.constant 0 : i32
    return %arg0, %arg1, %c0_i32, %c0_i32_0 : i32, i32, i32, i32
  }
  func.func @transform_11(%arg0: i32, %arg1: i32) -> (i32, i32, i32, i32) {
    %c0_i32 = arith.constant 0 : i32
    %c0_i32_0 = arith.constant 0 : i32
    %c0_i32_1 = arith.constant 0 : i32
    return %arg0, %arg1, %c0_i32, %c0_i32_0 : i32, i32, i32, i32
  }
  func.func @transform_12(%arg0: i32, %arg1: i32) -> (i32, i32, i32, i32) {
    %c0_i32 = arith.constant 0 : i32
    %c0_i32_0 = arith.constant 0 : i32
    %c0_i32_1 = arith.constant 0 : i32
    return %arg0, %arg1, %c0_i32, %c0_i32_0 : i32, i32, i32, i32
  }
  func.func @transform_13(%arg0: i32, %arg1: i32) -> (i32, i32, i32, i32) {
    %c0_i32 = arith.constant 0 : i32
    %c0_i32_0 = arith.constant 0 : i32
    %c0_i32_1 = arith.constant 0 : i32
    return %arg0, %arg1, %c0_i32, %c0_i32_0 : i32, i32, i32, i32
  }
  func.func @transform_14(%arg0: i32, %arg1: i32) -> (i32, i32, i32, i32) {
    %c0_i32 = arith.constant 0 : i32
    %c0_i32_0 = arith.constant 0 : i32
    %c0_i32_1 = arith.constant 0 : i32
    return %arg0, %arg1, %c0_i32, %c0_i32_0 : i32, i32, i32, i32
  }
  func.func @transform_15(%arg0: i32, %arg1: i32) -> (i32, i32, i32, i32) {
    %c0_i32 = arith.constant 0 : i32
    %c0_i32_0 = arith.constant 0 : i32
    %c0_i32_1 = arith.constant 0 : i32
    return %arg0, %arg1, %c0_i32, %c0_i32_0 : i32, i32, i32, i32
  }
  func.func @transform_16(%arg0: i32, %arg1: i32) -> (i32, i32, i32, i32) {
    %c0_i32 = arith.constant 0 : i32
    %c0_i32_0 = arith.constant 0 : i32
    %c0_i32_1 = arith.constant 0 : i32
    return %arg0, %arg1, %c0_i32, %c0_i32_0 : i32, i32, i32, i32
  }
  func.func @transform_17(%arg0: i32, %arg1: i32) -> (i32, i32, i32, i32) {
    %c0_i32 = arith.constant 0 : i32
    %c0_i32_0 = arith.constant 0 : i32
    %c0_i32_1 = arith.constant 0 : i32
    return %arg0, %arg1, %c0_i32, %c0_i32_0 : i32, i32, i32, i32
  }
  func.func @transform_18(%arg0: i32, %arg1: i32) -> (i32, i32, i32) {
    %c0_i32 = arith.constant 0 : i32
    %c0_i32_0 = arith.constant 0 : i32
    %c0_i32_1 = arith.constant 0 : i32
    return %arg0, %c0_i32, %c0_i32_0 : i32, i32, i32
  }
  func.func @transform_19(%arg0: i32, %arg1: i32) -> (i32, i32, i32) {
    %c0_i32 = arith.constant 0 : i32
    %c0_i32_0 = arith.constant 0 : i32
    %c0_i32_1 = arith.constant 0 : i32
    return %arg0, %c0_i32, %c0_i32_0 : i32, i32, i32
  }
  func.func @transform_20(%arg0: i32, %arg1: i32) -> (i32, i32, i32) {
    %c0_i32 = arith.constant 0 : i32
    %c0_i32_0 = arith.constant 0 : i32
    %c0_i32_1 = arith.constant 0 : i32
    return %arg0, %c0_i32, %c0_i32_0 : i32, i32, i32
  }
}

module attributes {stable_mosaic.version = 11 : i64} {
  func.func @_decoder_kernel(%arg0: i32, %arg1: i32, %arg2: memref<64x128xf32, #tpu.memory_space<vmem>>, %arg3: memref<1x16x128xf32, #tpu.memory_space<vmem>>, %arg4: memref<1x128x384xbf16, #tpu.memory_space<vmem>>, %arg5: memref<1x1x384xf32, #tpu.memory_space<vmem>>, %arg6: memref<1x128x128xbf16, #tpu.memory_space<vmem>>, %arg7: memref<1x1x128xf32, #tpu.memory_space<vmem>>, %arg8: memref<1x1x128xf32, #tpu.memory_space<vmem>>, %arg9: memref<1x1x128xf32, #tpu.memory_space<vmem>>, %arg10: memref<1x128x128xbf16, #tpu.memory_space<vmem>>, %arg11: memref<1x1x128xf32, #tpu.memory_space<vmem>>, %arg12: memref<1x128x256xbf16, #tpu.memory_space<vmem>>, %arg13: memref<1x1x256xf32, #tpu.memory_space<vmem>>, %arg14: memref<1x128x128xbf16, #tpu.memory_space<vmem>>, %arg15: memref<1x1x128xf32, #tpu.memory_space<vmem>>, %arg16: memref<1x1x128xf32, #tpu.memory_space<vmem>>, %arg17: memref<1x1x128xf32, #tpu.memory_space<vmem>>, %arg18: memref<1x128x256xbf16, #tpu.memory_space<vmem>>, %arg19: memref<1x1x256xf32, #tpu.memory_space<vmem>>, %arg20: memref<1x256x128xbf16, #tpu.memory_space<vmem>>, %arg21: memref<1x1x128xf32, #tpu.memory_space<vmem>>, %arg22: memref<1x1x128xf32, #tpu.memory_space<vmem>>, %arg23: memref<1x1x128xf32, #tpu.memory_space<vmem>>, %arg24: memref<128x128xbf16, #tpu.memory_space<vmem>>, %arg25: memref<1x128xf32, #tpu.memory_space<vmem>>, %arg26: memref<1x64x128xf32, #tpu.memory_space<vmem>>, %arg27: memref<64x128xf32, #tpu.memory_space<vmem>>, %arg28: memref<64x128xf32, #tpu.memory_space<vmem>>) attributes {dimension_semantics = [#tpu.dimension_semantics<parallel>, #tpu.dimension_semantics<arbitrary>], iteration_bounds = array<i64: 2, 2>, scalar_prefetch = 0 : i64, scratch_operands = 2 : i64, tpu.core_type = #tpu.core_type<tc>, window_params = [{pipeline_mode = #tpu.pipeline_mode<synchronous>, transform_indices = @transform_0, window_bounds = array<i64: 64, 128>}, {transform_indices = @transform_1, window_bounds = array<i64: 1, 16, 128>}, {transform_indices = @transform_2, window_bounds = array<i64: 1, 128, 384>}, {transform_indices = @transform_3, window_bounds = array<i64: 1, 1, 384>}, {transform_indices = @transform_4, window_bounds = array<i64: 1, 128, 128>}, {transform_indices = @transform_5, window_bounds = array<i64: 1, 1, 128>}, {transform_indices = @transform_6, window_bounds = array<i64: 1, 1, 128>}, {transform_indices = @transform_7, window_bounds = array<i64: 1, 1, 128>}, {transform_indices = @transform_8, window_bounds = array<i64: 1, 128, 128>}, {transform_indices = @transform_9, window_bounds = array<i64: 1, 1, 128>}, {transform_indices = @transform_10, window_bounds = array<i64: 1, 128, 256>}, {transform_indices = @transform_11, window_bounds = array<i64: 1, 1, 256>}, {transform_indices = @transform_12, window_bounds = array<i64: 1, 128, 128>}, {transform_indices = @transform_13, window_bounds = array<i64: 1, 1, 128>}, {transform_indices = @transform_14, window_bounds = array<i64: 1, 1, 128>}, {transform_indices = @transform_15, window_bounds = array<i64: 1, 1, 128>}, {transform_indices = @transform_16, window_bounds = array<i64: 1, 128, 256>}, {transform_indices = @transform_17, window_bounds = array<i64: 1, 1, 256>}, {transform_indices = @transform_18, window_bounds = array<i64: 1, 256, 128>}, {transform_indices = @transform_19, window_bounds = array<i64: 1, 1, 128>}, {transform_indices = @transform_20, window_bounds = array<i64: 1, 1, 128>}, {transform_indices = @transform_21, window_bounds = array<i64: 1, 1, 128>}, {pipeline_mode = #tpu.pipeline_mode<synchronous>, transform_indices = @transform_22, window_bounds = array<i64: 128, 128>}, {pipeline_mode = #tpu.pipeline_mode<synchronous>, transform_indices = @transform_23, window_bounds = array<i64: 1, 128>}, {transform_indices = @transform_24, window_bounds = array<i64: 1, 64, 128>}]} {
    %c0_i32 = arith.constant 0 : i32
    %0 = arith.cmpi eq, %arg1, %c0_i32 : i32
    %1 = arith.extui %0 : i1 to i32
    %c0_i32_0 = arith.constant 0 : i32
    %2 = arith.cmpi ne, %1, %c0_i32_0 : i32
    scf.if %2 {
      %c0_147 = arith.constant 0 : index
      %c0_148 = arith.constant 0 : index
      %326 = vector.load %arg2[%c0_147, %c0_148] : memref<64x128xf32, #tpu.memory_space<vmem>>, vector<64x128xf32>
      %c0_149 = arith.constant 0 : index
      %c0_150 = arith.constant 0 : index
      %327 = vector.load %arg27[%c0_149, %c0_150] : memref<64x128xf32, #tpu.memory_space<vmem>>, vector<64x128xf32>
      tpu.vector_store %arg27[%c0_149, %c0_150], %326 {strides = array<i32>} : memref<64x128xf32, #tpu.memory_space<vmem>>, vector<64x128xf32>,
    } else {
    }
    %c0 = arith.constant 0 : index
    %c0_1 = arith.constant 0 : index
    %3 = vector.load %arg27[%c0, %c0_1] : memref<64x128xf32, #tpu.memory_space<vmem>>, vector<64x128xf32>
    %c0_2 = arith.constant 0 : index
    %c0_3 = arith.constant 0 : index
    %c0_4 = arith.constant 0 : index
    %4 = vector.load %arg3[%c0_2, %c0_3, %c0_4] : memref<1x16x128xf32, #tpu.memory_space<vmem>>, vector<1x16x128xf32>
    %5 = vector.shape_cast %4 : vector<1x16x128xf32> to vector<16x128xf32>
    %c0_5 = arith.constant 0 : index
    %c0_6 = arith.constant 0 : index
    %c0_7 = arith.constant 0 : index
    %6 = vector.load %arg4[%c0_5, %c0_6, %c0_7] : memref<1x128x384xbf16, #tpu.memory_space<vmem>>, vector<1x128x384xbf16>
    %7 = vector.shape_cast %6 : vector<1x128x384xbf16> to vector<128x384xbf16>
    %8 = arith.truncf %3 : vector<64x128xf32> to vector<64x128xbf16>
    %cst = arith.constant dense<0.000000e+00> : vector<64x384xf32>
    %9 = tpu.matmul %8, %7, %cst {dimension_numbers = #tpu.dot_dimension_numbers<[1], [0], [0], [1], [0, 0, 1, 1], [], []>} : vector<64x128xbf16>, vector<128x384xbf16>, vector<64x384xf32> -> vector<64x384xf32>
    %c0_8 = arith.constant 0 : index
    %c0_9 = arith.constant 0 : index
    %c0_10 = arith.constant 0 : index
    %10 = vector.load %arg5[%c0_8, %c0_9, %c0_10] : memref<1x1x384xf32, #tpu.memory_space<vmem>>, vector<1x1x384xf32>
    %11 = vector.shape_cast %10 : vector<1x1x384xf32> to vector<1x384xf32>
    %12 = vector.broadcast %11 : vector<1x384xf32> to vector<64x384xf32>
    %13 = arith.addf %9, %12 : vector<64x384xf32>
    %14 = vector.extract_strided_slice %13 {offsets = [0, 0], sizes = [64, 128], strides = [1, 1]} : vector<64x384xf32> to vector<64x128xf32>
    %15 = vector.extract_strided_slice %13 {offsets = [0, 128], sizes = [64, 128], strides = [1, 1]} : vector<64x384xf32> to vector<64x128xf32>
    %16 = vector.extract_strided_slice %13 {offsets = [0, 256], sizes = [64, 128], strides = [1, 1]} : vector<64x384xf32> to vector<64x128xf32>
    %c0_11 = arith.constant 0 : index
    %c0_12 = arith.constant 0 : index
    %c0_13 = arith.constant 0 : index
    %17 = vector.load %arg6[%c0_11, %c0_12, %c0_13] : memref<1x128x128xbf16, #tpu.memory_space<vmem>>, vector<1x128x128xbf16>
    %18 = vector.shape_cast %17 : vector<1x128x128xbf16> to vector<128x128xbf16>
    %19 = vector.extract_strided_slice %14 {offsets = [0, 0], sizes = [64, 32], strides = [1, 1]} : vector<64x128xf32> to vector<64x32xf32>
    %20 = arith.truncf %19 : vector<64x32xf32> to vector<64x32xbf16>
    %21 = vector.extract_strided_slice %15 {offsets = [0, 0], sizes = [64, 32], strides = [1, 1]} : vector<64x128xf32> to vector<64x32xf32>
    %22 = arith.truncf %21 : vector<64x32xf32> to vector<64x32xbf16>
    %23 = vector.extract_strided_slice %16 {offsets = [0, 0], sizes = [64, 32], strides = [1, 1]} : vector<64x128xf32> to vector<64x32xf32>
    %24 = arith.truncf %23 : vector<64x32xf32> to vector<64x32xbf16>
    %cst_14 = arith.constant dense<0.000000e+00> : vector<64x64xf32>
    %25 = tpu.matmul %20, %22, %cst_14 {dimension_numbers = #tpu.dot_dimension_numbers<[1], [1], [0], [0], [0, 0, 1, 0], [], []>} : vector<64x32xbf16>, vector<64x32xbf16>, vector<64x64xf32> -> vector<64x64xf32>
    %cst_15 = arith.constant 0.176776692 : f32
    %26 = vector.broadcast %cst_15 : f32 to vector<64x64xf32>
    %27 = arith.mulf %25, %26 : vector<64x64xf32>
    %cst_16 = arith.constant dense<0xFF800000> : vector<64xf32>
    %28 = vector.multi_reduction <maximumf>, %27, %cst_16 [1] : vector<64x64xf32> to vector<64xf32>
    %29 = vector.shape_cast %28 : vector<64xf32> to vector<64x1xf32>
    %30 = vector.broadcast %29 : vector<64x1xf32> to vector<64x64xf32>
    %31 = arith.subf %27, %30 : vector<64x64xf32>
    %32 = math.exp %31 : vector<64x64xf32>
    %cst_17 = arith.constant dense<0.000000e+00> : vector<64xf32>
    %33 = vector.multi_reduction <add>, %32, %cst_17 [1] : vector<64x64xf32> to vector<64xf32>
    %34 = vector.shape_cast %33 : vector<64xf32> to vector<64x1xf32>
    %35 = tpu.reciprocal %34 {approx = true} : vector<64x1xf32> -> vector<64x1xf32>
    %36 = vector.broadcast %35 : vector<64x1xf32> to vector<64x64xf32>
    %37 = arith.mulf %32, %36 : vector<64x64xf32>
    %38 = arith.truncf %37 : vector<64x64xf32> to vector<64x64xbf16>
    %cst_18 = arith.constant dense<0.000000e+00> : vector<64x32xf32>
    %39 = tpu.matmul %38, %24, %cst_18 {dimension_numbers = #tpu.dot_dimension_numbers<[1], [0], [0], [1], [0, 0, 1, 1], [], []>} : vector<64x64xbf16>, vector<64x32xbf16>, vector<64x32xf32> -> vector<64x32xf32>
    %c0_19 = arith.constant 0 : index
    %c0_20 = arith.constant 0 : index
    %40 = vector.load %arg28[%c0_19, %c0_20] : memref<64x128xf32, #tpu.memory_space<vmem>>, vector<64x32xf32>
    tpu.vector_store %arg28[%c0_19, %c0_20], %39 {strides = array<i32>} : memref<64x128xf32, #tpu.memory_space<vmem>>, vector<64x32xf32>,
    %41 = vector.extract_strided_slice %14 {offsets = [0, 32], sizes = [64, 32], strides = [1, 1]} : vector<64x128xf32> to vector<64x32xf32>
    %42 = arith.truncf %41 : vector<64x32xf32> to vector<64x32xbf16>
    %43 = vector.extract_strided_slice %15 {offsets = [0, 32], sizes = [64, 32], strides = [1, 1]} : vector<64x128xf32> to vector<64x32xf32>
    %44 = arith.truncf %43 : vector<64x32xf32> to vector<64x32xbf16>
    %45 = vector.extract_strided_slice %16 {offsets = [0, 32], sizes = [64, 32], strides = [1, 1]} : vector<64x128xf32> to vector<64x32xf32>
    %46 = arith.truncf %45 : vector<64x32xf32> to vector<64x32xbf16>
    %cst_21 = arith.constant dense<0.000000e+00> : vector<64x64xf32>
    %47 = tpu.matmul %42, %44, %cst_21 {dimension_numbers = #tpu.dot_dimension_numbers<[1], [1], [0], [0], [0, 0, 1, 0], [], []>} : vector<64x32xbf16>, vector<64x32xbf16>, vector<64x64xf32> -> vector<64x64xf32>
    %cst_22 = arith.constant 0.176776692 : f32
    %48 = vector.broadcast %cst_22 : f32 to vector<64x64xf32>
    %49 = arith.mulf %47, %48 : vector<64x64xf32>
    %cst_23 = arith.constant dense<0xFF800000> : vector<64xf32>
    %50 = vector.multi_reduction <maximumf>, %49, %cst_23 [1] : vector<64x64xf32> to vector<64xf32>
    %51 = vector.shape_cast %50 : vector<64xf32> to vector<64x1xf32>
    %52 = vector.broadcast %51 : vector<64x1xf32> to vector<64x64xf32>
    %53 = arith.subf %49, %52 : vector<64x64xf32>
    %54 = math.exp %53 : vector<64x64xf32>
    %cst_24 = arith.constant dense<0.000000e+00> : vector<64xf32>
    %55 = vector.multi_reduction <add>, %54, %cst_24 [1] : vector<64x64xf32> to vector<64xf32>
    %56 = vector.shape_cast %55 : vector<64xf32> to vector<64x1xf32>
    %57 = tpu.reciprocal %56 {approx = true} : vector<64x1xf32> -> vector<64x1xf32>
    %58 = vector.broadcast %57 : vector<64x1xf32> to vector<64x64xf32>
    %59 = arith.mulf %54, %58 : vector<64x64xf32>
    %60 = arith.truncf %59 : vector<64x64xf32> to vector<64x64xbf16>
    %cst_25 = arith.constant dense<0.000000e+00> : vector<64x32xf32>
    %61 = tpu.matmul %60, %46, %cst_25 {dimension_numbers = #tpu.dot_dimension_numbers<[1], [0], [0], [1], [0, 0, 1, 1], [], []>} : vector<64x64xbf16>, vector<64x32xbf16>, vector<64x32xf32> -> vector<64x32xf32>
    %c0_26 = arith.constant 0 : index
    %c32 = arith.constant 32 : index
    %62 = vector.load %arg28[%c0_26, %c32] : memref<64x128xf32, #tpu.memory_space<vmem>>, vector<64x32xf32>
    tpu.vector_store %arg28[%c0_26, %c32], %61 {strides = array<i32>} : memref<64x128xf32, #tpu.memory_space<vmem>>, vector<64x32xf32>,
    %63 = vector.extract_strided_slice %14 {offsets = [0, 64], sizes = [64, 32], strides = [1, 1]} : vector<64x128xf32> to vector<64x32xf32>
    %64 = arith.truncf %63 : vector<64x32xf32> to vector<64x32xbf16>
    %65 = vector.extract_strided_slice %15 {offsets = [0, 64], sizes = [64, 32], strides = [1, 1]} : vector<64x128xf32> to vector<64x32xf32>
    %66 = arith.truncf %65 : vector<64x32xf32> to vector<64x32xbf16>
    %67 = vector.extract_strided_slice %16 {offsets = [0, 64], sizes = [64, 32], strides = [1, 1]} : vector<64x128xf32> to vector<64x32xf32>
    %68 = arith.truncf %67 : vector<64x32xf32> to vector<64x32xbf16>
    %cst_27 = arith.constant dense<0.000000e+00> : vector<64x64xf32>
    %69 = tpu.matmul %64, %66, %cst_27 {dimension_numbers = #tpu.dot_dimension_numbers<[1], [1], [0], [0], [0, 0, 1, 0], [], []>} : vector<64x32xbf16>, vector<64x32xbf16>, vector<64x64xf32> -> vector<64x64xf32>
    %cst_28 = arith.constant 0.176776692 : f32
    %70 = vector.broadcast %cst_28 : f32 to vector<64x64xf32>
    %71 = arith.mulf %69, %70 : vector<64x64xf32>
    %cst_29 = arith.constant dense<0xFF800000> : vector<64xf32>
    %72 = vector.multi_reduction <maximumf>, %71, %cst_29 [1] : vector<64x64xf32> to vector<64xf32>
    %73 = vector.shape_cast %72 : vector<64xf32> to vector<64x1xf32>
    %74 = vector.broadcast %73 : vector<64x1xf32> to vector<64x64xf32>
    %75 = arith.subf %71, %74 : vector<64x64xf32>
    %76 = math.exp %75 : vector<64x64xf32>
    %cst_30 = arith.constant dense<0.000000e+00> : vector<64xf32>
    %77 = vector.multi_reduction <add>, %76, %cst_30 [1] : vector<64x64xf32> to vector<64xf32>
    %78 = vector.shape_cast %77 : vector<64xf32> to vector<64x1xf32>
    %79 = tpu.reciprocal %78 {approx = true} : vector<64x1xf32> -> vector<64x1xf32>
    %80 = vector.broadcast %79 : vector<64x1xf32> to vector<64x64xf32>
    %81 = arith.mulf %76, %80 : vector<64x64xf32>
    %82 = arith.truncf %81 : vector<64x64xf32> to vector<64x64xbf16>
    %cst_31 = arith.constant dense<0.000000e+00> : vector<64x32xf32>
    %83 = tpu.matmul %82, %68, %cst_31 {dimension_numbers = #tpu.dot_dimension_numbers<[1], [0], [0], [1], [0, 0, 1, 1], [], []>} : vector<64x64xbf16>, vector<64x32xbf16>, vector<64x32xf32> -> vector<64x32xf32>
    %c0_32 = arith.constant 0 : index
    %c64 = arith.constant 64 : index
    %84 = vector.load %arg28[%c0_32, %c64] : memref<64x128xf32, #tpu.memory_space<vmem>>, vector<64x32xf32>
    tpu.vector_store %arg28[%c0_32, %c64], %83 {strides = array<i32>} : memref<64x128xf32, #tpu.memory_space<vmem>>, vector<64x32xf32>,
    %85 = vector.extract_strided_slice %14 {offsets = [0, 96], sizes = [64, 32], strides = [1, 1]} : vector<64x128xf32> to vector<64x32xf32>
    %86 = arith.truncf %85 : vector<64x32xf32> to vector<64x32xbf16>
    %87 = vector.extract_strided_slice %15 {offsets = [0, 96], sizes = [64, 32], strides = [1, 1]} : vector<64x128xf32> to vector<64x32xf32>
    %88 = arith.truncf %87 : vector<64x32xf32> to vector<64x32xbf16>
    %89 = vector.extract_strided_slice %16 {offsets = [0, 96], sizes = [64, 32], strides = [1, 1]} : vector<64x128xf32> to vector<64x32xf32>
    %90 = arith.truncf %89 : vector<64x32xf32> to vector<64x32xbf16>
    %cst_33 = arith.constant dense<0.000000e+00> : vector<64x64xf32>
    %91 = tpu.matmul %86, %88, %cst_33 {dimension_numbers = #tpu.dot_dimension_numbers<[1], [1], [0], [0], [0, 0, 1, 0], [], []>} : vector<64x32xbf16>, vector<64x32xbf16>, vector<64x64xf32> -> vector<64x64xf32>
    %cst_34 = arith.constant 0.176776692 : f32
    %92 = vector.broadcast %cst_34 : f32 to vector<64x64xf32>
    %93 = arith.mulf %91, %92 : vector<64x64xf32>
    %cst_35 = arith.constant dense<0xFF800000> : vector<64xf32>
    %94 = vector.multi_reduction <maximumf>, %93, %cst_35 [1] : vector<64x64xf32> to vector<64xf32>
    %95 = vector.shape_cast %94 : vector<64xf32> to vector<64x1xf32>
    %96 = vector.broadcast %95 : vector<64x1xf32> to vector<64x64xf32>
    %97 = arith.subf %93, %96 : vector<64x64xf32>
    %98 = math.exp %97 : vector<64x64xf32>
    %cst_36 = arith.constant dense<0.000000e+00> : vector<64xf32>
    %99 = vector.multi_reduction <add>, %98, %cst_36 [1] : vector<64x64xf32> to vector<64xf32>
    %100 = vector.shape_cast %99 : vector<64xf32> to vector<64x1xf32>
    %101 = tpu.reciprocal %100 {approx = true} : vector<64x1xf32> -> vector<64x1xf32>
    %102 = vector.broadcast %101 : vector<64x1xf32> to vector<64x64xf32>
    %103 = arith.mulf %98, %102 : vector<64x64xf32>
    %104 = arith.truncf %103 : vector<64x64xf32> to vector<64x64xbf16>
    %cst_37 = arith.constant dense<0.000000e+00> : vector<64x32xf32>
    %105 = tpu.matmul %104, %90, %cst_37 {dimension_numbers = #tpu.dot_dimension_numbers<[1], [0], [0], [1], [0, 0, 1, 1], [], []>} : vector<64x64xbf16>, vector<64x32xbf16>, vector<64x32xf32> -> vector<64x32xf32>
    %c0_38 = arith.constant 0 : index
    %c96 = arith.constant 96 : index
    %106 = vector.load %arg28[%c0_38, %c96] : memref<64x128xf32, #tpu.memory_space<vmem>>, vector<64x32xf32>
    tpu.vector_store %arg28[%c0_38, %c96], %105 {strides = array<i32>} : memref<64x128xf32, #tpu.memory_space<vmem>>, vector<64x32xf32>,
    %c0_39 = arith.constant 0 : index
    %c0_40 = arith.constant 0 : index
    %107 = vector.load %arg28[%c0_39, %c0_40] : memref<64x128xf32, #tpu.memory_space<vmem>>, vector<64x128xf32>
    %108 = arith.truncf %107 : vector<64x128xf32> to vector<64x128xbf16>
    %cst_41 = arith.constant dense<0.000000e+00> : vector<64x128xf32>
    %109 = tpu.matmul %108, %18, %cst_41 {dimension_numbers = #tpu.dot_dimension_numbers<[1], [0], [0], [1], [0, 0, 1, 1], [], []>} : vector<64x128xbf16>, vector<128x128xbf16>, vector<64x128xf32> -> vector<64x128xf32>
    %110 = arith.addf %3, %109 : vector<64x128xf32>
    %c0_42 = arith.constant 0 : index
    %c0_43 = arith.constant 0 : index
    %c0_44 = arith.constant 0 : index
    %111 = vector.load %arg7[%c0_42, %c0_43, %c0_44] : memref<1x1x128xf32, #tpu.memory_space<vmem>>, vector<1x1x128xf32>
    %112 = vector.shape_cast %111 : vector<1x1x128xf32> to vector<1x128xf32>
    %113 = vector.broadcast %112 : vector<1x128xf32> to vector<64x128xf32>
    %114 = arith.addf %110, %113 : vector<64x128xf32>
    %c0_45 = arith.constant 0 : index
    %c0_46 = arith.constant 0 : index
    %c0_47 = arith.constant 0 : index
    %115 = vector.load %arg8[%c0_45, %c0_46, %c0_47] : memref<1x1x128xf32, #tpu.memory_space<vmem>>, vector<1x1x128xf32>
    %116 = vector.shape_cast %115 : vector<1x1x128xf32> to vector<1x128xf32>
    %c0_48 = arith.constant 0 : index
    %c0_49 = arith.constant 0 : index
    %c0_50 = arith.constant 0 : index
    %117 = vector.load %arg9[%c0_48, %c0_49, %c0_50] : memref<1x1x128xf32, #tpu.memory_space<vmem>>, vector<1x1x128xf32>
    %118 = vector.shape_cast %117 : vector<1x1x128xf32> to vector<1x128xf32>
    %cst_51 = arith.constant dense<0.000000e+00> : vector<64xf32>
    %119 = vector.multi_reduction <add>, %114, %cst_51 [1] : vector<64x128xf32> to vector<64xf32>
    %120 = vector.shape_cast %119 : vector<64xf32> to vector<64x1xf32>
    %cst_52 = arith.constant 1.280000e+02 : f32
    %121 = vector.broadcast %cst_52 : f32 to vector<64x1xf32>
    %122 = arith.divf %120, %121 : vector<64x1xf32>
    %123 = vector.broadcast %122 : vector<64x1xf32> to vector<64x128xf32>
    %124 = arith.subf %114, %123 : vector<64x128xf32>
    %125 = arith.mulf %124, %124 : vector<64x128xf32>
    %cst_53 = arith.constant dense<0.000000e+00> : vector<64xf32>
    %126 = vector.multi_reduction <add>, %125, %cst_53 [1] : vector<64x128xf32> to vector<64xf32>
    %127 = vector.shape_cast %126 : vector<64xf32> to vector<64x1xf32>
    %cst_54 = arith.constant 1.280000e+02 : f32
    %128 = vector.broadcast %cst_54 : f32 to vector<64x1xf32>
    %129 = arith.divf %127, %128 : vector<64x1xf32>
    %cst_55 = arith.constant 9.99999974E-6 : f32
    %130 = vector.broadcast %cst_55 : f32 to vector<64x1xf32>
    %131 = arith.addf %129, %130 : vector<64x1xf32>
    %132 = math.rsqrt %131 : vector<64x1xf32>
    %133 = vector.broadcast %132 : vector<64x1xf32> to vector<64x128xf32>
    %134 = arith.mulf %124, %133 : vector<64x128xf32>
    %135 = vector.broadcast %116 : vector<1x128xf32> to vector<64x128xf32>
    %136 = arith.mulf %134, %135 : vector<64x128xf32>
    %137 = vector.broadcast %118 : vector<1x128xf32> to vector<64x128xf32>
    %138 = arith.addf %136, %137 : vector<64x128xf32>
    %c0_56 = arith.constant 0 : index
    %c0_57 = arith.constant 0 : index
    %c0_58 = arith.constant 0 : index
    %139 = vector.load %arg10[%c0_56, %c0_57, %c0_58] : memref<1x128x128xbf16, #tpu.memory_space<vmem>>, vector<1x128x128xbf16>
    %140 = vector.shape_cast %139 : vector<1x128x128xbf16> to vector<128x128xbf16>
    %141 = arith.truncf %138 : vector<64x128xf32> to vector<64x128xbf16>
    %cst_59 = arith.constant dense<0.000000e+00> : vector<64x128xf32>
    %142 = tpu.matmul %141, %140, %cst_59 {dimension_numbers = #tpu.dot_dimension_numbers<[1], [0], [0], [1], [0, 0, 1, 1], [], []>} : vector<64x128xbf16>, vector<128x128xbf16>, vector<64x128xf32> -> vector<64x128xf32>
    %c0_60 = arith.constant 0 : index
    %c0_61 = arith.constant 0 : index
    %c0_62 = arith.constant 0 : index
    %143 = vector.load %arg11[%c0_60, %c0_61, %c0_62] : memref<1x1x128xf32, #tpu.memory_space<vmem>>, vector<1x1x128xf32>
    %144 = vector.shape_cast %143 : vector<1x1x128xf32> to vector<1x128xf32>
    %145 = vector.broadcast %144 : vector<1x128xf32> to vector<64x128xf32>
    %146 = arith.addf %142, %145 : vector<64x128xf32>
    %c0_63 = arith.constant 0 : index
    %c0_64 = arith.constant 0 : index
    %c0_65 = arith.constant 0 : index
    %147 = vector.load %arg12[%c0_63, %c0_64, %c0_65] : memref<1x128x256xbf16, #tpu.memory_space<vmem>>, vector<1x128x256xbf16>
    %148 = vector.shape_cast %147 : vector<1x128x256xbf16> to vector<128x256xbf16>
    %149 = arith.truncf %5 : vector<16x128xf32> to vector<16x128xbf16>
    %cst_66 = arith.constant dense<0.000000e+00> : vector<16x256xf32>
    %150 = tpu.matmul %149, %148, %cst_66 {dimension_numbers = #tpu.dot_dimension_numbers<[1], [0], [0], [1], [0, 0, 1, 1], [], []>} : vector<16x128xbf16>, vector<128x256xbf16>, vector<16x256xf32> -> vector<16x256xf32>
    %c0_67 = arith.constant 0 : index
    %c0_68 = arith.constant 0 : index
    %c0_69 = arith.constant 0 : index
    %151 = vector.load %arg13[%c0_67, %c0_68, %c0_69] : memref<1x1x256xf32, #tpu.memory_space<vmem>>, vector<1x1x256xf32>
    %152 = vector.shape_cast %151 : vector<1x1x256xf32> to vector<1x256xf32>
    %153 = vector.broadcast %152 : vector<1x256xf32> to vector<16x256xf32>
    %154 = arith.addf %150, %153 : vector<16x256xf32>
    %155 = vector.extract_strided_slice %154 {offsets = [0, 0], sizes = [16, 128], strides = [1, 1]} : vector<16x256xf32> to vector<16x128xf32>
    %156 = vector.extract_strided_slice %154 {offsets = [0, 128], sizes = [16, 128], strides = [1, 1]} : vector<16x256xf32> to vector<16x128xf32>
    %c0_70 = arith.constant 0 : index
    %c0_71 = arith.constant 0 : index
    %c0_72 = arith.constant 0 : index
    %157 = vector.load %arg14[%c0_70, %c0_71, %c0_72] : memref<1x128x128xbf16, #tpu.memory_space<vmem>>, vector<1x128x128xbf16>
    %158 = vector.shape_cast %157 : vector<1x128x128xbf16> to vector<128x128xbf16>
    %159 = vector.extract_strided_slice %146 {offsets = [0, 0], sizes = [64, 32], strides = [1, 1]} : vector<64x128xf32> to vector<64x32xf32>
    %160 = arith.truncf %159 : vector<64x32xf32> to vector<64x32xbf16>
    %161 = vector.extract_strided_slice %155 {offsets = [0, 0], sizes = [16, 32], strides = [1, 1]} : vector<16x128xf32> to vector<16x32xf32>
    %162 = arith.truncf %161 : vector<16x32xf32> to vector<16x32xbf16>
    %163 = vector.extract_strided_slice %156 {offsets = [0, 0], sizes = [16, 32], strides = [1, 1]} : vector<16x128xf32> to vector<16x32xf32>
    %164 = arith.truncf %163 : vector<16x32xf32> to vector<16x32xbf16>
    %cst_73 = arith.constant dense<0.000000e+00> : vector<64x16xf32>
    %165 = tpu.matmul %160, %162, %cst_73 {dimension_numbers = #tpu.dot_dimension_numbers<[1], [1], [0], [0], [0, 0, 1, 0], [], []>} : vector<64x32xbf16>, vector<16x32xbf16>, vector<64x16xf32> -> vector<64x16xf32>
    %cst_74 = arith.constant 0.176776692 : f32
    %166 = vector.broadcast %cst_74 : f32 to vector<64x16xf32>
    %167 = arith.mulf %165, %166 : vector<64x16xf32>
    %cst_75 = arith.constant dense<0xFF800000> : vector<64xf32>
    %168 = vector.multi_reduction <maximumf>, %167, %cst_75 [1] : vector<64x16xf32> to vector<64xf32>
    %169 = vector.shape_cast %168 : vector<64xf32> to vector<64x1xf32>
    %170 = vector.broadcast %169 : vector<64x1xf32> to vector<64x16xf32>
    %171 = arith.subf %167, %170 : vector<64x16xf32>
    %172 = math.exp %171 : vector<64x16xf32>
    %cst_76 = arith.constant dense<0.000000e+00> : vector<64xf32>
    %173 = vector.multi_reduction <add>, %172, %cst_76 [1] : vector<64x16xf32> to vector<64xf32>
    %174 = vector.shape_cast %173 : vector<64xf32> to vector<64x1xf32>
    %175 = tpu.reciprocal %174 {approx = true} : vector<64x1xf32> -> vector<64x1xf32>
    %176 = vector.broadcast %175 : vector<64x1xf32> to vector<64x16xf32>
    %177 = arith.mulf %172, %176 : vector<64x16xf32>
    %178 = arith.truncf %177 : vector<64x16xf32> to vector<64x16xbf16>
    %cst_77 = arith.constant dense<0.000000e+00> : vector<64x32xf32>
    %179 = tpu.matmul %178, %164, %cst_77 {dimension_numbers = #tpu.dot_dimension_numbers<[1], [0], [0], [1], [0, 0, 1, 1], [], []>} : vector<64x16xbf16>, vector<16x32xbf16>, vector<64x32xf32> -> vector<64x32xf32>
    %c0_78 = arith.constant 0 : index
    %c0_79 = arith.constant 0 : index
    %180 = vector.load %arg28[%c0_78, %c0_79] : memref<64x128xf32, #tpu.memory_space<vmem>>, vector<64x32xf32>
    tpu.vector_store %arg28[%c0_78, %c0_79], %179 {strides = array<i32>} : memref<64x128xf32, #tpu.memory_space<vmem>>, vector<64x32xf32>,
    %181 = vector.extract_strided_slice %146 {offsets = [0, 32], sizes = [64, 32], strides = [1, 1]} : vector<64x128xf32> to vector<64x32xf32>
    %182 = arith.truncf %181 : vector<64x32xf32> to vector<64x32xbf16>
    %183 = vector.extract_strided_slice %155 {offsets = [0, 32], sizes = [16, 32], strides = [1, 1]} : vector<16x128xf32> to vector<16x32xf32>
    %184 = arith.truncf %183 : vector<16x32xf32> to vector<16x32xbf16>
    %185 = vector.extract_strided_slice %156 {offsets = [0, 32], sizes = [16, 32], strides = [1, 1]} : vector<16x128xf32> to vector<16x32xf32>
    %186 = arith.truncf %185 : vector<16x32xf32> to vector<16x32xbf16>
    %cst_80 = arith.constant dense<0.000000e+00> : vector<64x16xf32>
    %187 = tpu.matmul %182, %184, %cst_80 {dimension_numbers = #tpu.dot_dimension_numbers<[1], [1], [0], [0], [0, 0, 1, 0], [], []>} : vector<64x32xbf16>, vector<16x32xbf16>, vector<64x16xf32> -> vector<64x16xf32>
    %cst_81 = arith.constant 0.176776692 : f32
    %188 = vector.broadcast %cst_81 : f32 to vector<64x16xf32>
    %189 = arith.mulf %187, %188 : vector<64x16xf32>
    %cst_82 = arith.constant dense<0xFF800000> : vector<64xf32>
    %190 = vector.multi_reduction <maximumf>, %189, %cst_82 [1] : vector<64x16xf32> to vector<64xf32>
    %191 = vector.shape_cast %190 : vector<64xf32> to vector<64x1xf32>
    %192 = vector.broadcast %191 : vector<64x1xf32> to vector<64x16xf32>
    %193 = arith.subf %189, %192 : vector<64x16xf32>
    %194 = math.exp %193 : vector<64x16xf32>
    %cst_83 = arith.constant dense<0.000000e+00> : vector<64xf32>
    %195 = vector.multi_reduction <add>, %194, %cst_83 [1] : vector<64x16xf32> to vector<64xf32>
    %196 = vector.shape_cast %195 : vector<64xf32> to vector<64x1xf32>
    %197 = tpu.reciprocal %196 {approx = true} : vector<64x1xf32> -> vector<64x1xf32>
    %198 = vector.broadcast %197 : vector<64x1xf32> to vector<64x16xf32>
    %199 = arith.mulf %194, %198 : vector<64x16xf32>
    %200 = arith.truncf %199 : vector<64x16xf32> to vector<64x16xbf16>
    %cst_84 = arith.constant dense<0.000000e+00> : vector<64x32xf32>
    %201 = tpu.matmul %200, %186, %cst_84 {dimension_numbers = #tpu.dot_dimension_numbers<[1], [0], [0], [1], [0, 0, 1, 1], [], []>} : vector<64x16xbf16>, vector<16x32xbf16>, vector<64x32xf32> -> vector<64x32xf32>
    %c0_85 = arith.constant 0 : index
    %c32_86 = arith.constant 32 : index
    %202 = vector.load %arg28[%c0_85, %c32_86] : memref<64x128xf32, #tpu.memory_space<vmem>>, vector<64x32xf32>
    tpu.vector_store %arg28[%c0_85, %c32_86], %201 {strides = array<i32>} : memref<64x128xf32, #tpu.memory_space<vmem>>, vector<64x32xf32>,
    %203 = vector.extract_strided_slice %146 {offsets = [0, 64], sizes = [64, 32], strides = [1, 1]} : vector<64x128xf32> to vector<64x32xf32>
    %204 = arith.truncf %203 : vector<64x32xf32> to vector<64x32xbf16>
    %205 = vector.extract_strided_slice %155 {offsets = [0, 64], sizes = [16, 32], strides = [1, 1]} : vector<16x128xf32> to vector<16x32xf32>
    %206 = arith.truncf %205 : vector<16x32xf32> to vector<16x32xbf16>
    %207 = vector.extract_strided_slice %156 {offsets = [0, 64], sizes = [16, 32], strides = [1, 1]} : vector<16x128xf32> to vector<16x32xf32>
    %208 = arith.truncf %207 : vector<16x32xf32> to vector<16x32xbf16>
    %cst_87 = arith.constant dense<0.000000e+00> : vector<64x16xf32>
    %209 = tpu.matmul %204, %206, %cst_87 {dimension_numbers = #tpu.dot_dimension_numbers<[1], [1], [0], [0], [0, 0, 1, 0], [], []>} : vector<64x32xbf16>, vector<16x32xbf16>, vector<64x16xf32> -> vector<64x16xf32>
    %cst_88 = arith.constant 0.176776692 : f32
    %210 = vector.broadcast %cst_88 : f32 to vector<64x16xf32>
    %211 = arith.mulf %209, %210 : vector<64x16xf32>
    %cst_89 = arith.constant dense<0xFF800000> : vector<64xf32>
    %212 = vector.multi_reduction <maximumf>, %211, %cst_89 [1] : vector<64x16xf32> to vector<64xf32>
    %213 = vector.shape_cast %212 : vector<64xf32> to vector<64x1xf32>
    %214 = vector.broadcast %213 : vector<64x1xf32> to vector<64x16xf32>
    %215 = arith.subf %211, %214 : vector<64x16xf32>
    %216 = math.exp %215 : vector<64x16xf32>
    %cst_90 = arith.constant dense<0.000000e+00> : vector<64xf32>
    %217 = vector.multi_reduction <add>, %216, %cst_90 [1] : vector<64x16xf32> to vector<64xf32>
    %218 = vector.shape_cast %217 : vector<64xf32> to vector<64x1xf32>
    %219 = tpu.reciprocal %218 {approx = true} : vector<64x1xf32> -> vector<64x1xf32>
    %220 = vector.broadcast %219 : vector<64x1xf32> to vector<64x16xf32>
    %221 = arith.mulf %216, %220 : vector<64x16xf32>
    %222 = arith.truncf %221 : vector<64x16xf32> to vector<64x16xbf16>
    %cst_91 = arith.constant dense<0.000000e+00> : vector<64x32xf32>
    %223 = tpu.matmul %222, %208, %cst_91 {dimension_numbers = #tpu.dot_dimension_numbers<[1], [0], [0], [1], [0, 0, 1, 1], [], []>} : vector<64x16xbf16>, vector<16x32xbf16>, vector<64x32xf32> -> vector<64x32xf32>
    %c0_92 = arith.constant 0 : index
    %c64_93 = arith.constant 64 : index
    %224 = vector.load %arg28[%c0_92, %c64_93] : memref<64x128xf32, #tpu.memory_space<vmem>>, vector<64x32xf32>
    tpu.vector_store %arg28[%c0_92, %c64_93], %223 {strides = array<i32>} : memref<64x128xf32, #tpu.memory_space<vmem>>, vector<64x32xf32>,
    %225 = vector.extract_strided_slice %146 {offsets = [0, 96], sizes = [64, 32], strides = [1, 1]} : vector<64x128xf32> to vector<64x32xf32>
    %226 = arith.truncf %225 : vector<64x32xf32> to vector<64x32xbf16>
    %227 = vector.extract_strided_slice %155 {offsets = [0, 96], sizes = [16, 32], strides = [1, 1]} : vector<16x128xf32> to vector<16x32xf32>
    %228 = arith.truncf %227 : vector<16x32xf32> to vector<16x32xbf16>
    %229 = vector.extract_strided_slice %156 {offsets = [0, 96], sizes = [16, 32], strides = [1, 1]} : vector<16x128xf32> to vector<16x32xf32>
    %230 = arith.truncf %229 : vector<16x32xf32> to vector<16x32xbf16>
    %cst_94 = arith.constant dense<0.000000e+00> : vector<64x16xf32>
    %231 = tpu.matmul %226, %228, %cst_94 {dimension_numbers = #tpu.dot_dimension_numbers<[1], [1], [0], [0], [0, 0, 1, 0], [], []>} : vector<64x32xbf16>, vector<16x32xbf16>, vector<64x16xf32> -> vector<64x16xf32>
    %cst_95 = arith.constant 0.176776692 : f32
    %232 = vector.broadcast %cst_95 : f32 to vector<64x16xf32>
    %233 = arith.mulf %231, %232 : vector<64x16xf32>
    %cst_96 = arith.constant dense<0xFF800000> : vector<64xf32>
    %234 = vector.multi_reduction <maximumf>, %233, %cst_96 [1] : vector<64x16xf32> to vector<64xf32>
    %235 = vector.shape_cast %234 : vector<64xf32> to vector<64x1xf32>
    %236 = vector.broadcast %235 : vector<64x1xf32> to vector<64x16xf32>
    %237 = arith.subf %233, %236 : vector<64x16xf32>
    %238 = math.exp %237 : vector<64x16xf32>
    %cst_97 = arith.constant dense<0.000000e+00> : vector<64xf32>
    %239 = vector.multi_reduction <add>, %238, %cst_97 [1] : vector<64x16xf32> to vector<64xf32>
    %240 = vector.shape_cast %239 : vector<64xf32> to vector<64x1xf32>
    %241 = tpu.reciprocal %240 {approx = true} : vector<64x1xf32> -> vector<64x1xf32>
    %242 = vector.broadcast %241 : vector<64x1xf32> to vector<64x16xf32>
    %243 = arith.mulf %238, %242 : vector<64x16xf32>
    %244 = arith.truncf %243 : vector<64x16xf32> to vector<64x16xbf16>
    %cst_98 = arith.constant dense<0.000000e+00> : vector<64x32xf32>
    %245 = tpu.matmul %244, %230, %cst_98 {dimension_numbers = #tpu.dot_dimension_numbers<[1], [0], [0], [1], [0, 0, 1, 1], [], []>} : vector<64x16xbf16>, vector<16x32xbf16>, vector<64x32xf32> -> vector<64x32xf32>
    %c0_99 = arith.constant 0 : index
    %c96_100 = arith.constant 96 : index
    %246 = vector.load %arg28[%c0_99, %c96_100] : memref<64x128xf32, #tpu.memory_space<vmem>>, vector<64x32xf32>
    tpu.vector_store %arg28[%c0_99, %c96_100], %245 {strides = array<i32>} : memref<64x128xf32, #tpu.memory_space<vmem>>, vector<64x32xf32>,
    %c0_101 = arith.constant 0 : index
    %c0_102 = arith.constant 0 : index
    %247 = vector.load %arg28[%c0_101, %c0_102] : memref<64x128xf32, #tpu.memory_space<vmem>>, vector<64x128xf32>
    %248 = arith.truncf %247 : vector<64x128xf32> to vector<64x128xbf16>
    %cst_103 = arith.constant dense<0.000000e+00> : vector<64x128xf32>
    %249 = tpu.matmul %248, %158, %cst_103 {dimension_numbers = #tpu.dot_dimension_numbers<[1], [0], [0], [1], [0, 0, 1, 1], [], []>} : vector<64x128xbf16>, vector<128x128xbf16>, vector<64x128xf32> -> vector<64x128xf32>
    %250 = arith.addf %138, %249 : vector<64x128xf32>
    %c0_104 = arith.constant 0 : index
    %c0_105 = arith.constant 0 : index
    %c0_106 = arith.constant 0 : index
    %251 = vector.load %arg15[%c0_104, %c0_105, %c0_106] : memref<1x1x128xf32, #tpu.memory_space<vmem>>, vector<1x1x128xf32>
    %252 = vector.shape_cast %251 : vector<1x1x128xf32> to vector<1x128xf32>
    %253 = vector.broadcast %252 : vector<1x128xf32> to vector<64x128xf32>
    %254 = arith.addf %250, %253 : vector<64x128xf32>
    %c0_107 = arith.constant 0 : index
    %c0_108 = arith.constant 0 : index
    %c0_109 = arith.constant 0 : index
    %255 = vector.load %arg16[%c0_107, %c0_108, %c0_109] : memref<1x1x128xf32, #tpu.memory_space<vmem>>, vector<1x1x128xf32>
    %256 = vector.shape_cast %255 : vector<1x1x128xf32> to vector<1x128xf32>
    %c0_110 = arith.constant 0 : index
    %c0_111 = arith.constant 0 : index
    %c0_112 = arith.constant 0 : index
    %257 = vector.load %arg17[%c0_110, %c0_111, %c0_112] : memref<1x1x128xf32, #tpu.memory_space<vmem>>, vector<1x1x128xf32>
    %258 = vector.shape_cast %257 : vector<1x1x128xf32> to vector<1x128xf32>
    %cst_113 = arith.constant dense<0.000000e+00> : vector<64xf32>
    %259 = vector.multi_reduction <add>, %254, %cst_113 [1] : vector<64x128xf32> to vector<64xf32>
    %260 = vector.shape_cast %259 : vector<64xf32> to vector<64x1xf32>
    %cst_114 = arith.constant 1.280000e+02 : f32
    %261 = vector.broadcast %cst_114 : f32 to vector<64x1xf32>
    %262 = arith.divf %260, %261 : vector<64x1xf32>
    %263 = vector.broadcast %262 : vector<64x1xf32> to vector<64x128xf32>
    %264 = arith.subf %254, %263 : vector<64x128xf32>
    %265 = arith.mulf %264, %264 : vector<64x128xf32>
    %cst_115 = arith.constant dense<0.000000e+00> : vector<64xf32>
    %266 = vector.multi_reduction <add>, %265, %cst_115 [1] : vector<64x128xf32> to vector<64xf32>
    %267 = vector.shape_cast %266 : vector<64xf32> to vector<64x1xf32>
    %cst_116 = arith.constant 1.280000e+02 : f32
    %268 = vector.broadcast %cst_116 : f32 to vector<64x1xf32>
    %269 = arith.divf %267, %268 : vector<64x1xf32>
    %cst_117 = arith.constant 9.99999974E-6 : f32
    %270 = vector.broadcast %cst_117 : f32 to vector<64x1xf32>
    %271 = arith.addf %269, %270 : vector<64x1xf32>
    %272 = math.rsqrt %271 : vector<64x1xf32>
    %273 = vector.broadcast %272 : vector<64x1xf32> to vector<64x128xf32>
    %274 = arith.mulf %264, %273 : vector<64x128xf32>
    %275 = vector.broadcast %256 : vector<1x128xf32> to vector<64x128xf32>
    %276 = arith.mulf %274, %275 : vector<64x128xf32>
    %277 = vector.broadcast %258 : vector<1x128xf32> to vector<64x128xf32>
    %278 = arith.addf %276, %277 : vector<64x128xf32>
    %c0_118 = arith.constant 0 : index
    %c0_119 = arith.constant 0 : index
    %c0_120 = arith.constant 0 : index
    %279 = vector.load %arg18[%c0_118, %c0_119, %c0_120] : memref<1x128x256xbf16, #tpu.memory_space<vmem>>, vector<1x128x256xbf16>
    %280 = vector.shape_cast %279 : vector<1x128x256xbf16> to vector<128x256xbf16>
    %281 = arith.truncf %278 : vector<64x128xf32> to vector<64x128xbf16>
    %cst_121 = arith.constant dense<0.000000e+00> : vector<64x256xf32>
    %282 = tpu.matmul %281, %280, %cst_121 {dimension_numbers = #tpu.dot_dimension_numbers<[1], [0], [0], [1], [0, 0, 1, 1], [], []>} : vector<64x128xbf16>, vector<128x256xbf16>, vector<64x256xf32> -> vector<64x256xf32>
    %c0_122 = arith.constant 0 : index
    %c0_123 = arith.constant 0 : index
    %c0_124 = arith.constant 0 : index
    %283 = vector.load %arg19[%c0_122, %c0_123, %c0_124] : memref<1x1x256xf32, #tpu.memory_space<vmem>>, vector<1x1x256xf32>
    %284 = vector.shape_cast %283 : vector<1x1x256xf32> to vector<1x256xf32>
    %285 = vector.broadcast %284 : vector<1x256xf32> to vector<64x256xf32>
    %286 = arith.addf %282, %285 : vector<64x256xf32>
    %cst_125 = arith.constant 0.000000e+00 : f32
    %287 = vector.broadcast %cst_125 : f32 to vector<64x256xf32>
    %288 = arith.maximumf %286, %287 : vector<64x256xf32>
    %c0_126 = arith.constant 0 : index
    %c0_127 = arith.constant 0 : index
    %c0_128 = arith.constant 0 : index
    %289 = vector.load %arg20[%c0_126, %c0_127, %c0_128] : memref<1x256x128xbf16, #tpu.memory_space<vmem>>, vector<1x256x128xbf16>
    %290 = vector.shape_cast %289 : vector<1x256x128xbf16> to vector<256x128xbf16>
    %291 = arith.truncf %288 : vector<64x256xf32> to vector<64x256xbf16>
    %cst_129 = arith.constant dense<0.000000e+00> : vector<64x128xf32>
    %292 = tpu.matmul %291, %290, %cst_129 {dimension_numbers = #tpu.dot_dimension_numbers<[1], [0], [0], [1], [0, 0, 1, 1], [], []>} : vector<64x256xbf16>, vector<256x128xbf16>, vector<64x128xf32> -> vector<64x128xf32>
    %293 = arith.addf %278, %292 : vector<64x128xf32>
    %c0_130 = arith.constant 0 : index
    %c0_131 = arith.constant 0 : index
    %c0_132 = arith.constant 0 : index
    %294 = vector.load %arg21[%c0_130, %c0_131, %c0_132] : memref<1x1x128xf32, #tpu.memory_space<vmem>>, vector<1x1x128xf32>
    %295 = vector.shape_cast %294 : vector<1x1x128xf32> to vector<1x128xf32>
    %296 = vector.broadcast %295 : vector<1x128xf32> to vector<64x128xf32>
    %297 = arith.addf %293, %296 : vector<64x128xf32>
    %c0_133 = arith.constant 0 : index
    %c0_134 = arith.constant 0 : index
    %c0_135 = arith.constant 0 : index
    %298 = vector.load %arg22[%c0_133, %c0_134, %c0_135] : memref<1x1x128xf32, #tpu.memory_space<vmem>>, vector<1x1x128xf32>
    %299 = vector.shape_cast %298 : vector<1x1x128xf32> to vector<1x128xf32>
    %c0_136 = arith.constant 0 : index
    %c0_137 = arith.constant 0 : index
    %c0_138 = arith.constant 0 : index
    %300 = vector.load %arg23[%c0_136, %c0_137, %c0_138] : memref<1x1x128xf32, #tpu.memory_space<vmem>>, vector<1x1x128xf32>
    %301 = vector.shape_cast %300 : vector<1x1x128xf32> to vector<1x128xf32>
    %cst_139 = arith.constant dense<0.000000e+00> : vector<64xf32>
    %302 = vector.multi_reduction <add>, %297, %cst_139 [1] : vector<64x128xf32> to vector<64xf32>
    %303 = vector.shape_cast %302 : vector<64xf32> to vector<64x1xf32>
    %cst_140 = arith.constant 1.280000e+02 : f32
    %304 = vector.broadcast %cst_140 : f32 to vector<64x1xf32>
    %305 = arith.divf %303, %304 : vector<64x1xf32>
    %306 = vector.broadcast %305 : vector<64x1xf32> to vector<64x128xf32>
    %307 = arith.subf %297, %306 : vector<64x128xf32>
    %308 = arith.mulf %307, %307 : vector<64x128xf32>
    %cst_141 = arith.constant dense<0.000000e+00> : vector<64xf32>
    %309 = vector.multi_reduction <add>, %308, %cst_141 [1] : vector<64x128xf32> to vector<64xf32>
    %310 = vector.shape_cast %309 : vector<64xf32> to vector<64x1xf32>
    %cst_142 = arith.constant 1.280000e+02 : f32
    %311 = vector.broadcast %cst_142 : f32 to vector<64x1xf32>
    %312 = arith.divf %310, %311 : vector<64x1xf32>
    %cst_143 = arith.constant 9.99999974E-6 : f32
    %313 = vector.broadcast %cst_143 : f32 to vector<64x1xf32>
    %314 = arith.addf %312, %313 : vector<64x1xf32>
    %315 = math.rsqrt %314 : vector<64x1xf32>
    %316 = vector.broadcast %315 : vector<64x1xf32> to vector<64x128xf32>
    %317 = arith.mulf %307, %316 : vector<64x128xf32>
    %318 = vector.broadcast %299 : vector<1x128xf32> to vector<64x128xf32>
    %319 = arith.mulf %317, %318 : vector<64x128xf32>
    %320 = vector.broadcast %301 : vector<1x128xf32> to vector<64x128xf32>
    %321 = arith.addf %319, %320 : vector<64x128xf32>
    %c0_144 = arith.constant 0 : index
    %c0_145 = arith.constant 0 : index
    %322 = vector.load %arg27[%c0_144, %c0_145] : memref<64x128xf32, #tpu.memory_space<vmem>>, vector<64x128xf32>
    tpu.vector_store %arg27[%c0_144, %c0_145], %321 {strides = array<i32>} : memref<64x128xf32, #tpu.memory_space<vmem>>, vector<64x128xf32>,
    %c1_i32 = arith.constant 1 : i32
    %323 = arith.cmpi eq, %arg1, %c1_i32 : i32
    %324 = arith.extui %323 : i1 to i32
    %c0_i32_146 = arith.constant 0 : i32
    %325 = arith.cmpi ne, %324, %c0_i32_146 : i32
    scf.if %325 {
      %c0_147 = arith.constant 0 : index
      %c0_148 = arith.constant 0 : index
      %326 = vector.load %arg24[%c0_147, %c0_148] : memref<128x128xbf16, #tpu.memory_space<vmem>>, vector<128x128xbf16>
      %327 = arith.truncf %321 : vector<64x128xf32> to vector<64x128xbf16>
      %cst_149 = arith.constant dense<0.000000e+00> : vector<64x128xf32>
      %328 = tpu.matmul %327, %326, %cst_149 {dimension_numbers = #tpu.dot_dimension_numbers<[1], [0], [0], [1], [0, 0, 1, 1], [], []>} : vector<64x128xbf16>, vector<128x128xbf16>, vector<64x128xf32> -> vector<64x128xf32>
      %c0_150 = arith.constant 0 : index
      %c0_151 = arith.constant 0 : index
      %329 = vector.load %arg25[%c0_150, %c0_151] : memref<1x128xf32, #tpu.memory_space<vmem>>, vector<1x128xf32>
      %330 = vector.broadcast %329 : vector<1x128xf32> to vector<64x128xf32>
      %331 = arith.addf %328, %330 : vector<64x128xf32>
      %c0_152 = arith.constant 0 : index
      %c0_153 = arith.constant 0 : index
      %c0_154 = arith.constant 0 : index
      %332 = vector.load %arg26[%c0_152, %c0_153, %c0_154] : memref<1x64x128xf32, #tpu.memory_space<vmem>>, vector<1x64x128xf32>
      %333 = vector.shape_cast %332 : vector<1x64x128xf32> to vector<64x128xf32>
      %334 = vector.shape_cast %331 : vector<64x128xf32> to vector<1x64x128xf32>
      tpu.vector_store %arg26[%c0_152, %c0_153, %c0_154], %334 {strides = array<i32>} : memref<1x64x128xf32, #tpu.memory_space<vmem>>, vector<1x64x128xf32>,
    } else {
    }
    return
  }
  func.func @transform_0(%arg0: i32, %arg1: i32) -> (i32, i32) {
    %c0_i32 = arith.constant 0 : i32
    %c0_i32_0 = arith.constant 0 : i32
    %c0_i32_1 = arith.constant 0 : i32
    return %c0_i32, %c0_i32_0 : i32, i32
  }
  func.func @transform_1(%arg0: i32, %arg1: i32) -> (i32, i32, i32) {
    %c0_i32 = arith.constant 0 : i32
    %c0_i32_0 = arith.constant 0 : i32
    %c0_i32_1 = arith.constant 0 : i32
    return %arg0, %c0_i32, %c0_i32_0 : i32, i32, i32
  }
  func.func @transform_2(%arg0: i32, %arg1: i32) -> (i32, i32, i32) {
    %c0_i32 = arith.constant 0 : i32
    %c0_i32_0 = arith.constant 0 : i32
    %c0_i32_1 = arith.constant 0 : i32
    return %arg1, %c0_i32, %c0_i32_0 : i32, i32, i32
  }
  func.func @transform_3(%arg0: i32, %arg1: i32) -> (i32, i32, i32) {
    %c0_i32 = arith.constant 0 : i32
    %c0_i32_0 = arith.constant 0 : i32
    %c0_i32_1 = arith.constant 0 : i32
    return %arg1, %c0_i32, %c0_i32_0 : i32, i32, i32
  }
  func.func @transform_4(%arg0: i32, %arg1: i32) -> (i32, i32, i32) {
    %c0_i32 = arith.constant 0 : i32
    %c0_i32_0 = arith.constant 0 : i32
    %c0_i32_1 = arith.constant 0 : i32
    return %arg1, %c0_i32, %c0_i32_0 : i32, i32, i32
  }
  func.func @transform_5(%arg0: i32, %arg1: i32) -> (i32, i32, i32) {
    %c0_i32 = arith.constant 0 : i32
    %c0_i32_0 = arith.constant 0 : i32
    %c0_i32_1 = arith.constant 0 : i32
    return %arg1, %c0_i32, %c0_i32_0 : i32, i32, i32
  }
  func.func @transform_6(%arg0: i32, %arg1: i32) -> (i32, i32, i32) {
    %c0_i32 = arith.constant 0 : i32
    %c0_i32_0 = arith.constant 0 : i32
    %c0_i32_1 = arith.constant 0 : i32
    return %arg1, %c0_i32, %c0_i32_0 : i32, i32, i32
  }
  func.func @transform_7(%arg0: i32, %arg1: i32) -> (i32, i32, i32) {
    %c0_i32 = arith.constant 0 : i32
    %c0_i32_0 = arith.constant 0 : i32
    %c0_i32_1 = arith.constant 0 : i32
    return %arg1, %c0_i32, %c0_i32_0 : i32, i32, i32
  }
  func.func @transform_8(%arg0: i32, %arg1: i32) -> (i32, i32, i32) {
    %c0_i32 = arith.constant 0 : i32
    %c0_i32_0 = arith.constant 0 : i32
    %c0_i32_1 = arith.constant 0 : i32
    return %arg1, %c0_i32, %c0_i32_0 : i32, i32, i32
  }
  func.func @transform_9(%arg0: i32, %arg1: i32) -> (i32, i32, i32) {
    %c0_i32 = arith.constant 0 : i32
    %c0_i32_0 = arith.constant 0 : i32
    %c0_i32_1 = arith.constant 0 : i32
    return %arg1, %c0_i32, %c0_i32_0 : i32, i32, i32
  }
  func.func @transform_10(%arg0: i32, %arg1: i32) -> (i32, i32, i32) {
    %c0_i32 = arith.constant 0 : i32
    %c0_i32_0 = arith.constant 0 : i32
    %c0_i32_1 = arith.constant 0 : i32
    return %arg1, %c0_i32, %c0_i32_0 : i32, i32, i32
  }
  func.func @transform_11(%arg0: i32, %arg1: i32) -> (i32, i32, i32) {
    %c0_i32 = arith.constant 0 : i32
    %c0_i32_0 = arith.constant 0 : i32
    %c0_i32_1 = arith.constant 0 : i32
    return %arg1, %c0_i32, %c0_i32_0 : i32, i32, i32
  }
  func.func @transform_12(%arg0: i32, %arg1: i32) -> (i32, i32, i32) {
    %c0_i32 = arith.constant 0 : i32
    %c0_i32_0 = arith.constant 0 : i32
    %c0_i32_1 = arith.constant 0 : i32
    return %arg1, %c0_i32, %c0_i32_0 : i32, i32, i32
  }
  func.func @transform_13(%arg0: i32, %arg1: i32) -> (i32, i32, i32) {
    %c0_i32 = arith.constant 0 : i32
    %c0_i32_0 = arith.constant 0 : i32
    %c0_i32_1 = arith.constant 0 : i32
    return %arg1, %c0_i32, %c0_i32_0 : i32, i32, i32
  }
  func.func @transform_14(%arg0: i32, %arg1: i32) -> (i32, i32, i32) {
    %c0_i32 = arith.constant 0 : i32
    %c0_i32_0 = arith.constant 0 : i32
    %c0_i32_1 = arith.constant 0 : i32
    return %arg1, %c0_i32, %c0_i32_0 : i32, i32, i32
  }
  func.func @transform_15(%arg0: i32, %arg1: i32) -> (i32, i32, i32) {
    %c0_i32 = arith.constant 0 : i32
    %c0_i32_0 = arith.constant 0 : i32
    %c0_i32_1 = arith.constant 0 : i32
    return %arg1, %c0_i32, %c0_i32_0 : i32, i32, i32
  }
  func.func @transform_16(%arg0: i32, %arg1: i32) -> (i32, i32, i32) {
    %c0_i32 = arith.constant 0 : i32
    %c0_i32_0 = arith.constant 0 : i32
    %c0_i32_1 = arith.constant 0 : i32
    return %arg1, %c0_i32, %c0_i32_0 : i32, i32, i32
  }
  func.func @transform_17(%arg0: i32, %arg1: i32) -> (i32, i32, i32) {
    %c0_i32 = arith.constant 0 : i32
    %c0_i32_0 = arith.constant 0 : i32
    %c0_i32_1 = arith.constant 0 : i32
    return %arg1, %c0_i32, %c0_i32_0 : i32, i32, i32
  }
  func.func @transform_18(%arg0: i32, %arg1: i32) -> (i32, i32, i32) {
    %c0_i32 = arith.constant 0 : i32
    %c0_i32_0 = arith.constant 0 : i32
    %c0_i32_1 = arith.constant 0 : i32
    return %arg1, %c0_i32, %c0_i32_0 : i32, i32, i32
  }
  func.func @transform_19(%arg0: i32, %arg1: i32) -> (i32, i32, i32) {
    %c0_i32 = arith.constant 0 : i32
    %c0_i32_0 = arith.constant 0 : i32
    %c0_i32_1 = arith.constant 0 : i32
    return %arg1, %c0_i32, %c0_i32_0 : i32, i32, i32
  }
  func.func @transform_20(%arg0: i32, %arg1: i32) -> (i32, i32, i32) {
    %c0_i32 = arith.constant 0 : i32
    %c0_i32_0 = arith.constant 0 : i32
    %c0_i32_1 = arith.constant 0 : i32
    return %arg1, %c0_i32, %c0_i32_0 : i32, i32, i32
  }
  func.func @transform_21(%arg0: i32, %arg1: i32) -> (i32, i32, i32) {
    %c0_i32 = arith.constant 0 : i32
    %c0_i32_0 = arith.constant 0 : i32
    %c0_i32_1 = arith.constant 0 : i32
    return %arg1, %c0_i32, %c0_i32_0 : i32, i32, i32
  }
  func.func @transform_22(%arg0: i32, %arg1: i32) -> (i32, i32) {
    %c0_i32 = arith.constant 0 : i32
    %c0_i32_0 = arith.constant 0 : i32
    %c0_i32_1 = arith.constant 0 : i32
    return %c0_i32, %c0_i32_0 : i32, i32
  }
  func.func @transform_23(%arg0: i32, %arg1: i32) -> (i32, i32) {
    %c0_i32 = arith.constant 0 : i32
    %c0_i32_0 = arith.constant 0 : i32
    %c0_i32_1 = arith.constant 0 : i32
    return %c0_i32, %c0_i32_0 : i32, i32
  }
  func.func @transform_24(%arg0: i32, %arg1: i32) -> (i32, i32, i32) {
    %c0_i32 = arith.constant 0 : i32
    %c0_i32_0 = arith.constant 0 : i32
    %c0_i32_1 = arith.constant 0 : i32
    return %arg0, %c0_i32, %c0_i32_0 : i32, i32, i32
  }
}

</mosaic_0001>

<bundles_post_ra>
// kernel: tile.14
= control target key start
LH: loop header
LB: loop body
LE: loop exit
PB: predicated region body
PF: predicated region fallthrough
CT: control target
= control target key end

     0   :  { %s166_s0 = inlined_call_operand.vmem [shape: f32[3], index: 0, kind: input, shape index: {}]   ;;  %s167_s1 = inlined_call_operand.vmem [shape: f32[196,3], index: 1, kind: output, shape index: {}]  }
   0x1   :  { %v4_v0 = vld [vmem:[%s166_s0] ss:$0 sm:$0xff] }
   0x2   :  { %5 = vst [vmem:[%s167_s1] sm:$0xff] %v4_v0  ;;  %54 = vst [vmem:[%s167_s1 + $0x8] sm:$0xff] %v4_v0 }
   0x3   :  { %55 = vst [vmem:[%s167_s1 + $0x10] sm:$0xff] %v4_v0  ;;  %56 = vst [vmem:[%s167_s1 + $0x18] sm:$0xff] %v4_v0 }
   0x4   :  { %57 = vst [vmem:[%s167_s1 + $0x20] sm:$0xff] %v4_v0  ;;  %58 = vst [vmem:[%s167_s1 + $0x28] sm:$0xff] %v4_v0 }
   0x5   :  { %59 = vst [vmem:[%s167_s1 + $0x30] sm:$0xff] %v4_v0  ;;  %60 = vst [vmem:[%s167_s1 + $0x38] sm:$0xff] %v4_v0 }
   0x6   :  { %61 = vst [vmem:[%s167_s1 + $0x40] sm:$0xff] %v4_v0  ;;  %62 = vst [vmem:[%s167_s1 + $0x48] sm:$0xff] %v4_v0 }
   0x7   :  { %63 = vst [vmem:[%s167_s1 + $0x50] sm:$0xff] %v4_v0  ;;  %64 = vst [vmem:[%s167_s1 + $0x58] sm:$0xff] %v4_v0 }
   0x8   :  { %65 = vst [vmem:[%s167_s1 + $0x60] sm:$0xff] %v4_v0  ;;  %66 = vst [vmem:[%s167_s1 + $0x68] sm:$0xff] %v4_v0 }
   0x9   :  { %67 = vst [vmem:[%s167_s1 + $0x70] sm:$0xff] %v4_v0  ;;  %68 = vst [vmem:[%s167_s1 + $0x78] sm:$0xff] %v4_v0 }
   0xa   :  { %69 = vst [vmem:[%s167_s1 + $0x80] sm:$0xff] %v4_v0  ;;  %70 = vst [vmem:[%s167_s1 + $0x88] sm:$0xff] %v4_v0 }
   0xb   :  { %71 = vst [vmem:[%s167_s1 + $0x90] sm:$0xff] %v4_v0  ;;  %72 = vst [vmem:[%s167_s1 + $0x98] sm:$0xff] %v4_v0 }
   0xc   :  { %73 = vst [vmem:[%s167_s1 + $0xa0] sm:$0xff] %v4_v0  ;;  %74 = vst [vmem:[%s167_s1 + $0xa8] sm:$0xff] %v4_v0 }
   0xd   :  { %75 = vst [vmem:[%s167_s1 + $0xb0] sm:$0xff] %v4_v0  ;;  %76 = vst [vmem:[%s167_s1 + $0xb8] sm:$0xff] %v4_v0 }
   0xe   :  { %77 = vst [vmem:[%s167_s1 + $0xc0] sm:$0xff] %v4_v0 }

// kernel: tile.19
= control target key start
LH: loop header
LB: loop body
LE: loop exit
PB: predicated region body
PF: predicated region fallthrough
CT: control target
= control target key end

     0   :  { %2 = vsyncpa [#allocation1], 0  ;;  %s114_s6 = smov [#allocation0]   ;;  %s203_s0 = inlined_call_operand.hbm [shape: f32[3], index: 0, kind: input, shape index: {}]   ;;  %s204_s1 = inlined_call_operand.vmem [shape: f32[196,3], index: 1, kind: output, shape index: {}]  }
   0x1   :  { %s9_s7 = sshll.u32 %s114_s6, 4  ;;  %s10_s7 = int_to_ptr.vmem [resolvable:$true] %s9_s7 }
   0x2   :  { %s100_s8 = scalar_lea.vmem %s10_s7, 16  ;;  %s104_s9 = scalar_lea.vmem %s10_s7, 32 }
   0x3   :  { %p101_p0 = scmp.ne.s32.totalorder %s10_s7, %s100_s8  ;;  %p105_p1 = scmp.lt.s32.totalorder %s10_s7, %s10_s7 }
   0x4   :  { %p106_p2 = scmp.lt.s32.totalorder %s104_s9, %s100_s8 }
   0x6   :  { %p107_p3 = por %p106_p2, %p105_p1 }
   0x8   :  { %p108_p4 = pnand %p107_p3, %p101_p0 }
   0xa   :  { %111 = shalt.err (!%p108_p4)
}
   0xb   :  { %12 = dma.hbm_to_vmem [thread:$0]  %s203_s0, 16, %s10_s7, [#allocation1]  }
   0xc   :  { %112 = dma.done.wait [#allocation1], 16  }
   0xd   :  { %113 = vsyncadd [#allocation1], 4294967280  ;;  %v16_v0 = vld [vmem:[#allocation0] ss:$0 sm:$0xff] }
   0xe   :  { %17 = vst [vmem:[%s204_s1] sm:$0xff] %v16_v0  ;;  %67 = vst [vmem:[%s204_s1 + $0x8] sm:$0xff] %v16_v0 }
   0xf   :  { %68 = vst [vmem:[%s204_s1 + $0x10] sm:$0xff] %v16_v0  ;;  %69 = vst [vmem:[%s204_s1 + $0x18] sm:$0xff] %v16_v0 }
  0x10   :  { %70 = vst [vmem:[%s204_s1 + $0x20] sm:$0xff] %v16_v0  ;;  %71 = vst [vmem:[%s204_s1 + $0x28] sm:$0xff] %v16_v0 }
  0x11   :  { %72 = vst [vmem:[%s204_s1 + $0x30] sm:$0xff] %v16_v0  ;;  %73 = vst [vmem:[%s204_s1 + $0x38] sm:$0xff] %v16_v0 }
  0x12   :  { %74 = vst [vmem:[%s204_s1 + $0x40] sm:$0xff] %v16_v0  ;;  %75 = vst [vmem:[%s204_s1 + $0x48] sm:$0xff] %v16_v0 }
  0x13   :  { %76 = vst [vmem:[%s204_s1 + $0x50] sm:$0xff] %v16_v0  ;;  %77 = vst [vmem:[%s204_s1 + $0x58] sm:$0xff] %v16_v0 }
  0x14   :  { %78 = vst [vmem:[%s204_s1 + $0x60] sm:$0xff] %v16_v0  ;;  %79 = vst [vmem:[%s204_s1 + $0x68] sm:$0xff] %v16_v0 }
  0x15   :  { %80 = vst [vmem:[%s204_s1 + $0x70] sm:$0xff] %v16_v0  ;;  %81 = vst [vmem:[%s204_s1 + $0x78] sm:$0xff] %v16_v0 }
  0x16   :  { %82 = vst [vmem:[%s204_s1 + $0x80] sm:$0xff] %v16_v0  ;;  %83 = vst [vmem:[%s204_s1 + $0x88] sm:$0xff] %v16_v0 }
  0x17   :  { %84 = vst [vmem:[%s204_s1 + $0x90] sm:$0xff] %v16_v0  ;;  %85 = vst [vmem:[%s204_s1 + $0x98] sm:$0xff] %v16_v0 }
  0x18   :  { %86 = vst [vmem:[%s204_s1 + $0xa0] sm:$0xff] %v16_v0  ;;  %87 = vst [vmem:[%s204_s1 + $0xa8] sm:$0xff] %v16_v0 }
  0x19   :  { %88 = vst [vmem:[%s204_s1 + $0xb0] sm:$0xff] %v16_v0  ;;  %89 = vst [vmem:[%s204_s1 + $0xb8] sm:$0xff] %v16_v0 }
  0x1a   :  { %90 = vst [vmem:[%s204_s1 + $0xc0] sm:$0xff] %v16_v0 }
  0x1b   :  { %66 = vsyncpa [#allocation1], 1 }

// kernel: mul.6
= control target key start
LH: loop header
LB: loop body
LE: loop exit
PB: predicated region body
PF: predicated region fallthrough
CT: control target
= control target key end

     0   :  { %vm13_vm0 = vcmask 7168   ;;  %vm5_vm1 = vcmask 1041409   ;;  %vm17_vm2 = vcmask 15360   ;;  %s1554_s12 = smov 125   ;;  %s1555_s19 = smov 127   ;;  %vm7_vm3 = vcmask 23552   ;;  %s2751_s0 = inlined_call_operand.vmem [shape: f32[196,3], index: 0, kind: input, shape index: {}]   ;;  %s2752_s1 = inlined_call_operand.vmem [shape: f32[588], index: 1, kind: output, shape index: {}]  }
   0x1   :  { %v1143_v0 = vld [vmem:[%s2751_s0 + $0x55] sm:$0x1]   ;;  %v1152_v2 = vld [vmem:[%s2751_s0 + $0x7f] sm:$0x1]   ;;  %v1147_v4 = vld [vmem:[%s2751_s0 + $0x2a] sm:$0x1]  }
   0x2   :  { %v1144_v1 = vld [vmem:[%s2751_s0 + $0x55] sm:$0x1]   ;;  %46 = vrot.lane.b32.xlu1 %v1152_v2, %s1554_s12  ;;  %v1148_v5 = vld [vmem:[%s2751_s0 + $0xa9] sm:$0x2]   ;;  %v1154_v9 = vld [vmem:[%s2751_s0 + $0x54] sm:$0x1]  }
   0x3   :  { %v14_v3 = vsel %vm13_vm0, %v1144_v1, %v1143_v0  ;;  %v1149_v6 = vld [vmem:[%s2751_s0 + $0x2a] sm:$0x1]   ;;  %v28_v7 = vsel %vm5_vm1, %v1148_v5, %v1147_v4  ;;  %v1156_v12 = vld [vmem:[%s2751_s0 + $0x29] sm:$0x1]   ;;  %s1556_s28 = smov 124   ;;  %s1557_s29 = smov 126  }
   0x4   :  { %15 = vrot.lane.b32.xlu0 %v14_v3, %s1555_s19  ;;  %v1150_v8 = vld [vmem:[%s2751_s0 + $0xa9] sm:$0x2]   ;;  %v1157_v13 = vld [vmem:[%s2751_s0 + $0xa8] sm:$0x2]   ;;  %v1158_v14 = vld [vmem:[%s2751_s0 + $0x7e] sm:$0x1]  }
   0x5   :  { %v34_v10 = vsel %vm5_vm1, %v1150_v8, %v1149_v6  ;;  %v63_v15 = vsel %vm5_vm1, %v1157_v13, %v1156_v12  ;;  %v1162_v16 = vld [vmem:[%s2751_s0 + $0x28] sm:$0x1]   ;;  %s1558_s7 = smov 122   ;;  %s1559_s8 = smov 123   ;;  %v1160_v19 = vld [vmem:[%s2751_s0 + $0x53] sm:$0x1]  }
   0x6   :  { %v36_v11 = vsel %vm17_vm2, %v34_v10, %v28_v7  ;;  %53 = vrot.lane.b32.xlu1 %v1154_v9, %s1556_s28  ;;  %v1163_v17 = vld [vmem:[%s2751_s0 + $0xa7] sm:$0x2]   ;;  %s1560_s11 = smov 120   ;;  %s1561_s12 = smov 121   ;;  %v1166_v20 = vld [vmem:[%s2751_s0 + $0x52] sm:$0x1]  }
   0x7   :  { %v87_v18 = vsel %vm5_vm1, %v1163_v17, %v1162_v16  ;;  %v1164_v21 = vld [vmem:[%s2751_s0 + $0x7d] sm:$0x1]   ;;  %v1168_v22 = vld [vmem:[%s2751_s0 + $0x27] sm:$0x1]   ;;  %s1562_s21 = smov 118   ;;  %s1563_s22 = smov 119  }
   0x8   :  { %37 = vrot.lane.b32.xlu0 %v36_v11, %s1557_s29  ;;  %v1169_v23 = vld [vmem:[%s2751_s0 + $0xa6] sm:$0x2]   ;;  %v1170_v24 = vld [vmem:[%s2751_s0 + $0x7c] sm:$0x1]   ;;  %v1174_v26 = vld [vmem:[%s2751_s0 + $0x26] sm:$0x1]  }
   0x9   :  { %v111_v25 = vsel %vm5_vm1, %v1169_v23, %v1168_v22  ;;  %v1175_v27 = vld [vmem:[%s2751_s0 + $0xa5] sm:$0x2]   ;;  %s1564_s29 = smov 116   ;;  %s1565_s30 = smov 117   ;;  %v1172_v29 = vld [vmem:[%s2751_s0 + $0x51] sm:$0x1]  }
   0xa   :  { %70 = vrot.lane.b32.xlu1 %v1158_v14, %s1558_s7  ;;  %v135_v28 = vsel %vm5_vm1, %v1175_v27, %v1174_v26  ;;  %s1566_s4 = smov 114   ;;  %s1567_s5 = smov 115   ;;  %v1178_v30 = vld [vmem:[%s2751_s0 + $0x50] sm:$0x1]   ;;  %v1176_v31 = vld [vmem:[%s2751_s0 + $0x7b] sm:$0x1]  }
   0xb   :  { %v1180_v32 = vld [vmem:[%s2751_s0 + $0x25] sm:$0x1]   ;;  %s1568_s14 = smov 112   ;;  %s1569_s15 = smov 113   ;;  %v1182_v34 = vld [vmem:[%s2751_s0 + $0x7a] sm:$0x1]  }
   0xc   :  { %64 = vrot.lane.b32.xlu0 %v63_v15, %s1559_s8  ;;  %v1181_v33 = vld [vmem:[%s2751_s0 + $0xa4] sm:$0x2]   ;;  %v1186_v36 = vld [vmem:[%s2751_s0 + $0x24] sm:$0x1]   ;;  %s1571_s23 = smov 111   ;;  %s1572_s26 = smov 108  }
   0xd   :  { %v159_v35 = vsel %vm5_vm1, %v1181_v33, %v1180_v32  ;;  %v1187_v37 = vld [vmem:[%s2751_s0 + $0xa3] sm:$0x2]   ;;  %v1184_v39 = vld [vmem:[%s2751_s0 + $0x4f] sm:$0x1]   ;;  %v1190_v40 = vld [vmem:[%s2751_s0 + $0x4e] sm:$0x1]  }
   0xe   :  { %88 = vrot.lane.b32.xlu1 %v87_v18, %s1560_s11  ;;  %v183_v38 = vsel %vm5_vm1, %v1187_v37, %v1186_v36  ;;  %v2_v41 = vld [vmem:[%s2751_s0] sm:$0x1]   ;;  %v1188_v43 = vld [vmem:[%s2751_s0 + $0x79] sm:$0x1]   ;;  %v1192_v45 = vld [vmem:[%s2751_s0 + $0x23] sm:$0x1]  }
   0xf   :  { %v1142_v42 = vld [vmem:[%s2751_s0 + $0x7f] sm:$0x2]   ;;  %v1193_v46 = vld [vmem:[%s2751_s0 + $0xa2] sm:$0x2]   ;;  %s1574_s13 = smov 106   ;;  %s1578_s25 = smov 102  }
  0x10   :  { %77 = vrot.lane.b32.xlu0 %v1160_v19, %s1561_s12  ;;  %v6_v44 = vsel %vm5_vm1, %v1142_v42, %v2_v41  ;;  %v1194_v47 = vld [vmem:[%s2751_s0 + $0x78] sm:$0x1]   ;;  %v207_v48 = vsel %vm5_vm1, %v1193_v46, %v1192_v45  ;;  %v1198_v49 = vld [vmem:[%s2751_s0 + $0x22] sm:$0x1]   ;;  %v1196_v52 = vld [vmem:[%s2751_s0 + $0x4d] sm:$0x1]  }
  0x11   :  { %8 = vst.msk [vmem:[%s2752_s1] ss:$3 sm:$0x3] %vm7_vm3, %v6_v44   ;;  %v1199_v50 = vld [vmem:[%s2751_s0 + $0xa1] sm:$0x2]   ;;  %s1580_s6 = smov 100  }
  0x12   :  { %101 = vrot.lane.b32.xlu1 %v1166_v20, %s1562_s21  ;;  %s1576_s21 = smov 104   ;;  %v231_v51 = vsel %vm5_vm1, %v1199_v50, %v1198_v49  ;;  %v1202_v53 = vld [vmem:[%s2751_s0 + $0x4c] sm:$0x1]   ;;  %v1200_v54 = vld [vmem:[%s2751_s0 + $0x77] sm:$0x1]   ;;  %s1581_s7 = smov 101  }
  0x13   :  { %v1204_v55 = vld [vmem:[%s2751_s0 + $0x21] sm:$0x1]   ;;  %v1206_v57 = vld [vmem:[%s2751_s0 + $0x76] sm:$0x1]   ;;  %v1210_v59 = vld [vmem:[%s2751_s0 + $0x20] sm:$0x1]  }
  0x14   :  { %94 = vrot.lane.b32.xlu0 %v1164_v21, %s1563_s22  ;;  %s1570_s22 = smov 110   ;;  %v1205_v56 = vld [vmem:[%s2751_s0 + $0xa0] sm:$0x2]   ;;  %v1211_v60 = vld [vmem:[%s2751_s0 + $0x9f] sm:$0x2]   ;;  %s1584_s18 = smov 96  }
  0x15   :  { %v255_v58 = vsel %vm5_vm1, %v1205_v56, %v1204_v55  ;;  %v279_v61 = vsel %vm5_vm1, %v1211_v60, %v1210_v59  ;;  %v1208_v62 = vld [vmem:[%s2751_s0 + $0x4b] sm:$0x1]   ;;  %s1585_s19 = smov 97   ;;  %v1214_v63 = vld [vmem:[%s2751_s0 + $0x4a] sm:$0x1]   ;;  %s1586_s28 = smov 94  }
  0x16   :  { %118 = vrot.lane.b32.xlu1 %v1170_v24, %s1564_s29  ;;  %s1573_s29 = smov 109   ;;  %v1212_v0 = vld [vmem:[%s2751_s0 + $0x75] sm:$0x1]   ;;  %v1216_v1 = vld [vmem:[%s2751_s0 + $0x1f] sm:$0x1]   ;;  %s1589_s8 = smov 93  }
  0x17   :  { %v1217_v2 = vld [vmem:[%s2751_s0 + $0x9e] sm:$0x2]   ;;  %v1218_v3 = vld [vmem:[%s2751_s0 + $0x74] sm:$0x1]   ;;  %v1222_v5 = vld [vmem:[%s2751_s0 + $0x1e] sm:$0x1]  }
  0x18   :  { %112 = vrot.lane.b32.xlu0 %v111_v25, %s1565_s30  ;;  %v303_v4 = vsel %vm5_vm1, %v1217_v2, %v1216_v1  ;;  %v1223_v6 = vld [vmem:[%s2751_s0 + $0x9d] sm:$0x2]   ;;  %v1220_v8 = vld [vmem:[%s2751_s0 + $0x49] sm:$0x1]   ;;  %s1590_s11 = smov 90   ;;  %s1591_s12 = smov 91  }
  0x19   :  { %v327_v7 = vsel %vm5_vm1, %v1223_v6, %v1222_v5  ;;  %v1226_v9 = vld [vmem:[%s2751_s0 + $0x48] sm:$0x1]   ;;  %v1224_v10 = vld [vmem:[%s2751_s0 + $0x73] sm:$0x1]   ;;  %v1228_v11 = vld [vmem:[%s2751_s0 + $0x1d] sm:$0x1]  }
  0x1a   :  { %136 = vrot.lane.b32.xlu1 %v135_v28, %s1566_s4  ;;  %v1229_v12 = vld [vmem:[%s2751_s0 + $0x9c] sm:$0x2]   ;;  %v1230_v13 = vld [vmem:[%s2751_s0 + $0x72] sm:$0x1]   ;;  %v1234_v15 = vld [vmem:[%s2751_s0 + $0x1c] sm:$0x1]  }
  0x1b   :  { %v351_v14 = vsel %vm5_vm1, %v1229_v12, %v1228_v11  ;;  %v1235_v16 = vld [vmem:[%s2751_s0 + $0x9b] sm:$0x2]   ;;  %s1595_s30 = smov 87   ;;  %v1232_v18 = vld [vmem:[%s2751_s0 + $0x47] sm:$0x1]   ;;  %s1596_s4 = smov 84  }
  0x1c   :  { %125 = vrot.lane.b32.xlu0 %v1172_v29, %s1567_s5  ;;  %v375_v17 = vsel %vm5_vm1, %v1235_v16, %v1234_v15  ;;  %s1597_s5 = smov 85   ;;  %v1238_v19 = vld [vmem:[%s2751_s0 + $0x46] sm:$0x1]   ;;  %v1236_v20 = vld [vmem:[%s2751_s0 + $0x71] sm:$0x1]   ;;  %s1603_s27 = smov 79  }
  0x1d   :  { %v1240_v21 = vld [vmem:[%s2751_s0 + $0x1b] sm:$0x1]   ;;  %v1242_v23 = vld [vmem:[%s2751_s0 + $0x70] sm:$0x1]   ;;  %v1246_v25 = vld [vmem:[%s2751_s0 + $0x1a] sm:$0x1]  }
  0x1e   :  { %149 = vrot.lane.b32.xlu1 %v1178_v30, %s1568_s14  ;;  %s1575_s14 = smov 107   ;;  %v1241_v22 = vld [vmem:[%s2751_s0 + $0x9a] sm:$0x2]   ;;  %v1247_v26 = vld [vmem:[%s2751_s0 + $0x99] sm:$0x2]   ;;  %s1607_s20 = smov 75  }
  0x1f   :  { %v399_v24 = vsel %vm5_vm1, %v1241_v22, %v1240_v21  ;;  %v423_v27 = vsel %vm5_vm1, %v1247_v26, %v1246_v25  ;;  %v1244_v28 = vld [vmem:[%s2751_s0 + $0x45] sm:$0x1]   ;;  %v1250_v29 = vld [vmem:[%s2751_s0 + $0x44] sm:$0x1]   ;;  %v1248_v30 = vld [vmem:[%s2751_s0 + $0x6f] sm:$0x1]  }
  0x20   :  { %142 = vrot.lane.b32.xlu0 %v1176_v31, %s1569_s15  ;;  %s1583_s15 = smov 99   ;;  %v1252_v31 = vld [vmem:[%s2751_s0 + $0x19] sm:$0x1]   ;;  %v1254_v33 = vld [vmem:[%s2751_s0 + $0x6e] sm:$0x1]   ;;  %vm20_vm4 = vcmask 1048568  }
  0x21   :  { %v1253_v32 = vld [vmem:[%s2751_s0 + $0x98] sm:$0x2]   ;;  %v1260_v36 = vld [vmem:[%s2751_s0 + $0x97] sm:$0x2]   ;;  %v1256_v37 = vld [vmem:[%s2751_s0 + $0x43] sm:$0x1]  }
  0x22   :  { %166 = vrot.lane.b32.xlu1 %v1182_v34, %s1570_s22  ;;  %s1577_s22 = smov 105   ;;  %v447_v34 = vsel %vm5_vm1, %v1253_v32, %v1252_v31  ;;  %v1263_v41 = vld [vmem:[%s2751_s0 + $0x42] sm:$0x1]   ;;  %v1261_v44 = vld [vmem:[%s2751_s0 + $0x6d] sm:$0x1]   ;;  %vm48_vm5 = vcmask 1048552  }
  0x23   :  { %v1264_v42 = vld [vmem:[%s2751_s0 + $0xc1] sm:$0x2]   ;;  %v1266_v45 = vld [vmem:[%s2751_s0 + $0x17] sm:$0x1]   ;;  %v1273_v50 = vld [vmem:[%s2751_s0 + $0x16] sm:$0x1]  }
  0x24   :  { %160 = vrot.lane.b32.xlu0 %v159_v35, %s1571_s23  ;;  %s1601_s23 = smov 81   ;;  %v1259_v35 = vld [vmem:[%s2751_s0 + $0x18] sm:$0x1]   ;;  %v1267_v46 = vld [vmem:[%s2751_s0 + $0x96] sm:$0x2]   ;;  %vm42_vm6 = vcmask 1048560  }
  0x25   :  { %vm55_vm7 = vcmask 1040352   ;;  %v1278_v59 = vld [vmem:[%s2751_s0 + $0xbf] sm:$0x2]   ;;  %s1614_s3 = smov 66   ;;  %vm72_vm8 = vcmask 1023952   ;;  %vm66_vm9 = vcmask 1032152  }
  0x26   :  { %184 = vrot.lane.b32.xlu1 %v183_v38, %s1572_s26  ;;  %s1579_s26 = smov 103   ;;  %v1257_v38 = vld [vmem:[%s2751_s0 + $0xc2] sm:$0x2]   ;;  %v1280_v1 = vld [vmem:[%s2751_s0 + $0x15] sm:$0x1]   ;;  %s1616_s17 = smov 64  }
  0x27   :  { %v1281_v2 = vld [vmem:[%s2751_s0 + $0x94] sm:$0x2]   ;;  %vm90_vm10 = vcmask 1007552   ;;  %vm79_vm11 = vcmask 1015752   ;;  %v1287_v6 = vld [vmem:[%s2751_s0 + $0x14] sm:$0x1]  }
  0x28   :  { %173 = vrot.lane.b32.xlu0 %v1184_v39, %s1573_s29  ;;  %s1587_s29 = smov 95   ;;  %v475_v39 = vsel %vm5_vm1, %v1260_v36, %v1259_v35  ;;  %vm103_vm12 = vcmask 991152   ;;  %vm96_vm13 = vcmask 999352   ;;  %v1292_v15 = vld [vmem:[%s2751_s0 + $0xbd] sm:$0x2]   ;;  %vm120_vm14 = vcmask 974752  }
  0x29   :  { %vm114_vm15 = vcmask 982952   ;;  %v1294_v21 = vld [vmem:[%s2751_s0 + $0x13] sm:$0x1]   ;;  %v1301_v26 = vld [vmem:[%s2751_s0 + $0x12] sm:$0x1]   ;;  %vm151_vm3 = vcmask 941952  }
  0x2a   :  { %197 = vrot.lane.b32.xlu1 %v1190_v40, %s1574_s13  ;;  %v464_v40 = vsel %vm5_vm1, %v1257_v38, %v1256_v37  ;;  %v1295_v22 = vld [vmem:[%s2751_s0 + $0x92] sm:$0x2]   ;;  %s1624_s13 = smov 56   ;;  %v1306_v35 = vld [vmem:[%s2751_s0 + $0xbb] sm:$0x2]   ;;  %s1627_s24 = smov 55  }
  0x2b   :  { %v1303_v38 = vld [vmem:[%s2751_s0 + $0x67] sm:$0x1]   ;;  %s1635_s16 = smov 47   ;;  %s1636_s2 = smov 44  }
  0x2c   :  { %190 = vrot.lane.b32.xlu0 %v1188_v43, %s1575_s14  ;;  %s1582_s14 = smov 98   ;;  %v492_v43 = vsel %vm5_vm1, %v1264_v42, %v1263_v41  ;;  %v1308_v41 = vld [vmem:[%s2751_s0 + $0x11] sm:$0x1]   ;;  %s1656_s10 = smov 24  }
  0x2d   :  { %v1309_v42 = vld [vmem:[%s2751_s0 + $0x90] sm:$0x2]   ;;  %s1660_s9 = smov 20  }
  0x2e   :  { %214 = vrot.lane.b32.xlu1 %v1194_v47, %s1576_s21  ;;  %s1592_s21 = smov 88   ;;  %v1268_v47 = vld [vmem:[%s2751_s0 + $0x6c] sm:$0x1]  }
  0x30   :  { %208 = vrot.lane.b32.xlu0 %v207_v48, %s1577_s22  ;;  %s1593_s22 = smov 89   ;;  %v503_v48 = vsel %vm5_vm1, %v1267_v46, %v1266_v45  ;;  %v1315_v46 = vld [vmem:[%s2751_s0 + $0x10] sm:$0x1]  }
  0x32   :  { %232 = vrot.lane.b32.xlu1 %v231_v51, %s1578_s25  ;;  %s1608_s25 = smov 72   ;;  %v1274_v51 = vld [vmem:[%s2751_s0 + $0x95] sm:$0x2]  }
  0x33   :  { %v531_v55 = vsel %vm5_vm1, %v1274_v51, %v1273_v50  ;;  %v1313_v50 = vld [vmem:[%s2751_s0 + $0xba] sm:$0x2]  }
  0x34   :  { %221 = vrot.lane.b32.xlu0 %v1196_v52, %s1579_s26  ;;  %s1602_s26 = smov 78  }
  0x36   :  { %245 = vrot.lane.b32.xlu1 %v1202_v53, %s1580_s6  ;;  %v1270_v53 = vld [vmem:[%s2751_s0 + $0x41] sm:$0x1]   ;;  %s1628_s6 = smov 52  }
  0x38   :  { %238 = vrot.lane.b32.xlu0 %v1200_v54, %s1581_s7  ;;  %s1588_s7 = smov 92   ;;  %v1271_v54 = vld [vmem:[%s2751_s0 + $0xc0] sm:$0x2]  }
  0x39   :  { %v520_v56 = vsel %vm5_vm1, %v1271_v54, %v1270_v53  ;;  %v1319_v54 = vld [vmem:[%s2751_s0 + $0x3a] sm:$0x1]  }
  0x3a   :  { %262 = vrot.lane.b32.xlu1 %v1206_v57, %s1582_s14  ;;  %s1598_s14 = smov 82  }
  0x3c   :  { %256 = vrot.lane.b32.xlu0 %v255_v58, %s1583_s15  ;;  %s1599_s15 = smov 83   ;;  %v1277_v58 = vld [vmem:[%s2751_s0 + $0x40] sm:$0x1]  }
  0x3e   :  { %280 = vrot.lane.b32.xlu1 %v279_v61, %s1584_s18  ;;  %v548_v61 = vsel %vm5_vm1, %v1278_v59, %v1277_v58  ;;  %s1617_s18 = smov 65   ;;  %v1317_v58 = vld [vmem:[%s2751_s0 + $0x65] sm:$0x1]  }
  0x40   :  { %269 = vrot.lane.b32.xlu0 %v1208_v62, %s1585_s19  ;;  %s1606_s19 = smov 74   ;;  %v1275_v62 = vld [vmem:[%s2751_s0 + $0x6b] sm:$0x1]  }
  0x42   :  { %293 = vrot.lane.b32.xlu1 %v1214_v63, %s1586_s28  ;;  %s1668_s28 = smov 12  }
  0x44   :  { %286 = vrot.lane.b32.xlu0 %v1212_v0, %s1587_s29  ;;  %s1594_s29 = smov 86  }
  0x46   :  { %310 = vrot.lane.b32.xlu1 %v1218_v3, %s1588_s7  ;;  %s1604_s7 = smov 76   ;;  %v1282_v3 = vld [vmem:[%s2751_s0 + $0x6a] sm:$0x1]  }
  0x48   :  { %304 = vrot.lane.b32.xlu0 %v303_v4, %s1589_s8  ;;  %s1605_s8 = smov 77   ;;  %v559_v4 = vsel %vm5_vm1, %v1281_v2, %v1280_v1  ;;  %v1329_v2 = vld [vmem:[%s2751_s0 + $0xe] sm:$0x1]  }
  0x4a   :  { %328 = vrot.lane.b32.xlu1 %v327_v7, %s1590_s11  ;;  %v1288_v7 = vld [vmem:[%s2751_s0 + $0x93] sm:$0x2]   ;;  %s1642_s11 = smov 38  }
  0x4b   :  { %v587_v11 = vsel %vm5_vm1, %v1288_v7, %v1287_v6  ;;  %v1327_v6 = vld [vmem:[%s2751_s0 + $0xb8] sm:$0x2]  }
  0x4c   :  { %317 = vrot.lane.b32.xlu0 %v1220_v8, %s1591_s12  ;;  %s1638_s12 = smov 42  }
  0x4e   :  { %341 = vrot.lane.b32.xlu1 %v1226_v9, %s1592_s21  ;;  %s1613_s21 = smov 69   ;;  %v1284_v9 = vld [vmem:[%s2751_s0 + $0x3f] sm:$0x1]  }
  0x50   :  { %334 = vrot.lane.b32.xlu0 %v1224_v10, %s1593_s22  ;;  %s1600_s22 = smov 80   ;;  %v1285_v10 = vld [vmem:[%s2751_s0 + $0xbe] sm:$0x2]  }
  0x51   :  { %v576_v12 = vsel %vm5_vm1, %v1285_v10, %v1284_v9  ;;  %v1333_v10 = vld [vmem:[%s2751_s0 + $0x38] sm:$0x1]  }
  0x52   :  { %358 = vrot.lane.b32.xlu1 %v1230_v13, %s1594_s29  ;;  %s1654_s29 = smov 26  }
  0x54   :  { %352 = vrot.lane.b32.xlu0 %v351_v14, %s1595_s30  ;;  %v1291_v14 = vld [vmem:[%s2751_s0 + $0x3e] sm:$0x1]   ;;  %s1650_s30 = smov 30  }
  0x56   :  { %376 = vrot.lane.b32.xlu1 %v375_v17, %s1596_s4  ;;  %s1610_s4 = smov 70   ;;  %v604_v17 = vsel %vm5_vm1, %v1292_v15, %v1291_v14  ;;  %v1331_v14 = vld [vmem:[%s2751_s0 + $0x63] sm:$0x1]  }
  0x58   :  { %365 = vrot.lane.b32.xlu0 %v1232_v18, %s1597_s5  ;;  %s1611_s5 = smov 71   ;;  %v1289_v18 = vld [vmem:[%s2751_s0 + $0x69] sm:$0x1]  }
  0x5a   :  { %389 = vrot.lane.b32.xlu1 %v1238_v19, %s1598_s14  ;;  %s1620_s14 = smov 60  }
  0x5c   :  { %382 = vrot.lane.b32.xlu0 %v1236_v20, %s1599_s15  ;;  %s1621_s15 = smov 61  }
  0x5e   :  { %406 = vrot.lane.b32.xlu1 %v1242_v23, %s1600_s22  ;;  %v1296_v23 = vld [vmem:[%s2751_s0 + $0x68] sm:$0x1]   ;;  %s1630_s22 = smov 50  }
  0x60   :  { %400 = vrot.lane.b32.xlu0 %v399_v24, %s1601_s23  ;;  %v615_v24 = vsel %vm5_vm1, %v1295_v22, %v1294_v21  ;;  %s1626_s23 = smov 54   ;;  %v1343_v22 = vld [vmem:[%s2751_s0 + $0xc] sm:$0x1]  }
  0x62   :  { %424 = vrot.lane.b32.xlu1 %v423_v27, %s1602_s26  ;;  %s1609_s26 = smov 73   ;;  %v1302_v27 = vld [vmem:[%s2751_s0 + $0x91] sm:$0x2]  }
  0x63   :  { %v643_v31 = vsel %vm5_vm1, %v1302_v27, %v1301_v26  ;;  %v1341_v26 = vld [vmem:[%s2751_s0 + $0xb6] sm:$0x2]  }
  0x64   :  { %413 = vrot.lane.b32.xlu0 %v1244_v28, %s1603_s27  ;;  %s1623_s27 = smov 59  }
  0x66   :  { %437 = vrot.lane.b32.xlu1 %v1250_v29, %s1604_s7  ;;  %v1298_v29 = vld [vmem:[%s2751_s0 + $0x3d] sm:$0x1]   ;;  %s1629_s7 = smov 53  }
  0x68   :  { %430 = vrot.lane.b32.xlu0 %v1248_v30, %s1605_s8  ;;  %v1299_v30 = vld [vmem:[%s2751_s0 + $0xbc] sm:$0x2]   ;;  %s1674_s8 = smov 6  }
  0x69   :  { %v632_v32 = vsel %vm5_vm1, %v1299_v30, %v1298_v29  ;;  %v1347_v30 = vld [vmem:[%s2751_s0 + $0x36] sm:$0x1]  }
  0x6a   :  { %454 = vrot.lane.b32.xlu1 %v1254_v33, %s1606_s19  ;;  %s1662_s19 = smov 18  }
  0x6c   :  { %448 = vrot.lane.b32.xlu0 %v447_v34, %s1607_s20  ;;  %s1612_s20 = smov 68   ;;  %v1305_v34 = vld [vmem:[%s2751_s0 + $0x3c] sm:$0x1]  }
  0x6d   :  { %v660_v37 = vsel %vm5_vm1, %v1306_v35, %v1305_v34  ;;  %v1345_v34 = vld [vmem:[%s2751_s0 + $0x61] sm:$0x1]  }
  0x6e   :  { %476 = vrot.lane.b32.xlu1 %v475_v39, %s1608_s25  ;;  %s1641_s25 = smov 41  }
  0x70   :  { %465 = vrot.lane.b32.xlu0 %v464_v40, %s1609_s26  ;;  %s1622_s26 = smov 58  }
  0x72   :  { %493 = vrot.lane.b32.xlu1 %v492_v43, %s1610_s4  ;;  %s1615_s4 = smov 67   ;;  %v1310_v43 = vld [vmem:[%s2751_s0 + $0x66] sm:$0x1]  }
  0x74   :  { %482 = vrot.lane.b32.xlu0 %v1261_v44, %s1611_s5  ;;  %v47_v49 = vpop.permute.xlu1 %46   ;;  %s1619_s5 = smov 63   ;;  %v671_v44 = vsel %vm5_vm1, %v1309_v42, %v1308_v41  ;;  %v1357_v42 = vld [vmem:[%s2751_s0 + $0xa] sm:$0x1]  }
  0x76   :  { %v16_v52 = vpop.permute.xlu0 %15   ;;  %510 = vrot.lane.b32.xlu1 %v1268_v47, %s1612_s20  ;;  %v1316_v47 = vld [vmem:[%s2751_s0 + $0x8f] sm:$0x2]   ;;  %s1648_s20 = smov 32  }
  0x77   :  { %1145 = vst.msk [vmem:[%s2752_s1 + $0x2] sm:$0x1] %vm17_vm2, %v16_v52   ;;  %vm127_vm2 = vcmask 966552   ;;  %v699_v51 = vsel %vm5_vm1, %v1316_v47, %v1315_v46  ;;  %v1355_v46 = vld [vmem:[%s2751_s0 + $0xb4] sm:$0x2]  }
  0x78   :  { %1146 = vst.msk [vmem:[%s2752_s1 + $0x1] sm:$0x1] %vm20_vm4, %v16_v52   ;;  %504 = vrot.lane.b32.xlu0 %v503_v48, %s1613_s21  ;;  %v54_v57 = vpop.permute.xlu1 %53   ;;  %vm144_vm4 = vcmask 950152   ;;  %s1644_s21 = smov 36  }
  0x79   :  { %1153 = vst.msk [vmem:[%s2752_s1 + $0x2] sm:$0x1] %vm48_vm5, %v47_v49   ;;  %vm168_vm5 = vcmask 925552   ;;  %v1312_v49 = vld [vmem:[%s2751_s0 + $0x3b] sm:$0x1]  }
  0x7a   :  { %v38_v60 = vpop.permute.xlu0 %37   ;;  %532 = vrot.lane.b32.xlu1 %v531_v55, %s1614_s3  ;;  %v688_v52 = vsel %vm5_vm1, %v1313_v50, %v1312_v49  ;;  %v1320_v55 = vld [vmem:[%s2751_s0 + $0xb9] sm:$0x2]   ;;  %s1632_s3 = smov 48   ;;  %v1361_v50 = vld [vmem:[%s2751_s0 + $0x34] sm:$0x1]  }
  0x7b   :  { %1151 = vst.msk [vmem:[%s2752_s1 + $0x1] ss:$3 sm:$0x3] %vm13_vm0, %v38_v60   ;;  %vm138_vm0 = vcmask 958352  }
  0x7c   :  { %43 = vst.msk [vmem:[%s2752_s1] ss:$3 sm:$0x3] %vm42_vm6, %v38_v60   ;;  %521 = vrot.lane.b32.xlu0 %v520_v56, %s1615_s4  ;;  %v71_v63 = vpop.permute.xlu1 %70   ;;  %s1618_s4 = smov 62   ;;  %vm162_vm6 = vcmask 933752  }
  0x7d   :  { %1155 = vst.msk [vmem:[%s2752_s1 + $0x1] sm:$0x1] %vm55_vm7, %v54_v57   ;;  %vm186_vm7 = vcmask 909152   ;;  %v716_v57 = vsel %vm5_vm1, %v1320_v55, %v1319_v54  ;;  %v1359_v54 = vld [vmem:[%s2751_s0 + $0x5f] sm:$0x1]  }
  0x7e   :  { %v65_v0 = vpop.permute.xlu0 %64   ;;  %1159 = vst.msk [vmem:[%s2752_s1 + $0x2] sm:$0x1] %vm72_vm8, %v71_v63   ;;  %549 = vrot.lane.b32.xlu1 %v548_v61, %s1616_s17  ;;  %vm175_vm8 = vcmask 917352   ;;  %v1322_v61 = vld [vmem:[%s2751_s0 + $0xf] sm:$0x1]  }
  0x7f   :  { %67 = vst.msk [vmem:[%s2752_s1] ss:$3 sm:$0x3] %vm66_vm9, %v65_v0   ;;  %vm199_vm9 = vcmask 892752   ;;  %v1324_v63 = vld [vmem:[%s2751_s0 + $0x64] sm:$0x1]  }
  0x80   :  { %538 = vrot.lane.b32.xlu0 %v1275_v62, %s1617_s18  ;;  %v89_v5 = vpop.permute.xlu1 %88   ;;  %v1323_v62 = vld [vmem:[%s2751_s0 + $0x8e] sm:$0x2]   ;;  %s1666_s18 = smov 14  }
  0x81   :  { %91 = vst.msk [vmem:[%s2752_s1] ss:$3 sm:$0x3] %vm90_vm10, %v89_v5   ;;  %vm192_vm10 = vcmask 900952   ;;  %v727_v0 = vsel %vm5_vm1, %v1323_v62, %v1322_v61  ;;  %v1326_v5 = vld [vmem:[%s2751_s0 + $0x39] sm:$0x1]  }
  0x82   :  { %v78_v8 = vpop.permute.xlu0 %77   ;;  %566 = vrot.lane.b32.xlu1 %v1282_v3, %s1618_s4  ;;  %s1633_s4 = smov 49   ;;  %v1330_v3 = vld [vmem:[%s2751_s0 + $0x8d] sm:$0x2]   ;;  %v1371_v62 = vld [vmem:[%s2751_s0 + $0x8] sm:$0x1]  }
  0x83   :  { %1161 = vst.msk [vmem:[%s2752_s1 + $0x1] sm:$0x1] %vm79_vm11, %v78_v8   ;;  %vm216_vm11 = vcmask 876352   ;;  %v755_v7 = vsel %vm5_vm1, %v1330_v3, %v1329_v2  ;;  %v744_v8 = vsel %vm5_vm1, %v1327_v6, %v1326_v5  ;;  %v1369_v2 = vld [vmem:[%s2751_s0 + $0xb2] sm:$0x2]  }
  0x84   :  { %560 = vrot.lane.b32.xlu0 %v559_v4, %s1619_s5  ;;  %v102_v13 = vpop.permute.xlu1 %101   ;;  %s1647_s5 = smov 35   ;;  %v1375_v6 = vld [vmem:[%s2751_s0 + $0x32] sm:$0x1]  }
  0x85   :  { %1167 = vst.msk [vmem:[%s2752_s1 + $0x1] sm:$0x1] %vm103_vm12, %v102_v13   ;;  %vm210_vm12 = vcmask 884552  }
  0x86   :  { %v95_v16 = vpop.permute.xlu0 %94   ;;  %588 = vrot.lane.b32.xlu1 %v587_v11, %s1620_s14  ;;  %s1625_s14 = smov 57   ;;  %v1334_v11 = vld [vmem:[%s2751_s0 + $0xb7] sm:$0x2]  }
  0x87   :  { %1165 = vst.msk [vmem:[%s2752_s1 + $0x2] sm:$0x1] %vm96_vm13, %v95_v16   ;;  %vm234_vm13 = vcmask 859952   ;;  %v772_v13 = vsel %vm5_vm1, %v1334_v11, %v1333_v10  ;;  %v1373_v10 = vld [vmem:[%s2751_s0 + $0x5d] sm:$0x1]  }
  0x88   :  { %577 = vrot.lane.b32.xlu0 %v576_v12, %s1621_s15  ;;  %v119_v19 = vpop.permute.xlu1 %118   ;;  %s1634_s15 = smov 46  }
  0x89   :  { %1171 = vst.msk [vmem:[%s2752_s1 + $0x2] sm:$0x1] %vm120_vm14, %v119_v19   ;;  %vm223_vm14 = vcmask 868152   ;;  %v1338_v19 = vld [vmem:[%s2751_s0 + $0x62] sm:$0x1]  }
  0x8a   :  { %v113_v20 = vpop.permute.xlu0 %112   ;;  %605 = vrot.lane.b32.xlu1 %v604_v17, %s1622_s26  ;;  %v1336_v17 = vld [vmem:[%s2751_s0 + $0xd] sm:$0x1]  }
  0x8b   :  { %115 = vst.msk [vmem:[%s2752_s1] ss:$3 sm:$0x3] %vm114_vm15, %v113_v20   ;;  %vm247_vm15 = vcmask 843552  }
  0x8c   :  { %594 = vrot.lane.b32.xlu0 %v1289_v18, %s1623_s27  ;;  %v137_v25 = vpop.permute.xlu1 %136   ;;  %v1337_v18 = vld [vmem:[%s2751_s0 + $0x8c] sm:$0x2]   ;;  %s1672_s27 = smov 8  }
  0x8d   :  { %139 = vst.msk [vmem:[%s2752_s1] ss:$3 sm:$0x3] %vm138_vm0, %v137_v25   ;;  %vm240_vm0 = vcmask 851752   ;;  %v783_v20 = vsel %vm5_vm1, %v1337_v18, %v1336_v17  ;;  %v1340_v25 = vld [vmem:[%s2751_s0 + $0x37] sm:$0x1]  }
  0x8e   :  { %v126_v28 = vpop.permute.xlu0 %125   ;;  %622 = vrot.lane.b32.xlu1 %v1296_v23, %s1624_s13  ;;  %s1639_s13 = smov 43   ;;  %v1344_v23 = vld [vmem:[%s2751_s0 + $0x8b] sm:$0x2]   ;;  %v1385_v18 = vld [vmem:[%s2751_s0 + $0x6] sm:$0x1]  }
  0x8f   :  { %1173 = vst.msk [vmem:[%s2752_s1 + $0x1] sm:$0x1] %vm127_vm2, %v126_v28   ;;  %vm264_vm2 = vcmask 827152   ;;  %v811_v27 = vsel %vm5_vm1, %v1344_v23, %v1343_v22  ;;  %v800_v28 = vsel %vm5_vm1, %v1341_v26, %v1340_v25  ;;  %v1383_v22 = vld [vmem:[%s2751_s0 + $0xb0] sm:$0x2]  }
  0x90   :  { %616 = vrot.lane.b32.xlu0 %v615_v24, %s1625_s14  ;;  %v150_v33 = vpop.permute.xlu1 %149   ;;  %s1653_s14 = smov 29   ;;  %v1389_v26 = vld [vmem:[%s2751_s0 + $0x30] sm:$0x1]  }
  0x91   :  { %1179 = vst.msk [vmem:[%s2752_s1 + $0x1] sm:$0x1] %vm151_vm3, %v150_v33   ;;  %vm258_vm3 = vcmask 835352  }
  0x92   :  { %v143_v36 = vpop.permute.xlu0 %142   ;;  %644 = vrot.lane.b32.xlu1 %v643_v31, %s1626_s23  ;;  %s1631_s23 = smov 51   ;;  %v1348_v31 = vld [vmem:[%s2751_s0 + $0xb5] sm:$0x2]  }
  0x93   :  { %1177 = vst.msk [vmem:[%s2752_s1 + $0x2] sm:$0x1] %vm144_vm4, %v143_v36   ;;  %vm282_vm4 = vcmask 810752   ;;  %v828_v33 = vsel %vm5_vm1, %v1348_v31, %v1347_v30  ;;  %v1387_v30 = vld [vmem:[%s2751_s0 + $0x5b] sm:$0x1]  }
  0x94   :  { %633 = vrot.lane.b32.xlu0 %v632_v32, %s1627_s24  ;;  %v167_v39 = vpop.permute.xlu1 %166   ;;  %s1640_s24 = smov 40  }
  0x95   :  { %1183 = vst.msk [vmem:[%s2752_s1 + $0x2] sm:$0x1] %vm168_vm5, %v167_v39   ;;  %vm271_vm5 = vcmask 818952   ;;  %v1352_v39 = vld [vmem:[%s2751_s0 + $0x60] sm:$0x1]  }
  0x96   :  { %v161_v40 = vpop.permute.xlu0 %160   ;;  %661 = vrot.lane.b32.xlu1 %v660_v37, %s1628_s6  ;;  %v1350_v37 = vld [vmem:[%s2751_s0 + $0xb] sm:$0x1]  }
  0x97   :  { %163 = vst.msk [vmem:[%s2752_s1] ss:$3 sm:$0x3] %vm162_vm6, %v161_v40   ;;  %vm295_vm6 = vcmask 794352  }
  0x98   :  { %650 = vrot.lane.b32.xlu0 %v1303_v38, %s1629_s7  ;;  %v185_v45 = vpop.permute.xlu1 %184   ;;  %v1351_v38 = vld [vmem:[%s2751_s0 + $0x8a] sm:$0x2]  }
  0x99   :  { %187 = vst.msk [vmem:[%s2752_s1] ss:$3 sm:$0x3] %vm186_vm7, %v185_v45   ;;  %vm288_vm7 = vcmask 802552   ;;  %v839_v40 = vsel %vm5_vm1, %v1351_v38, %v1350_v37  ;;  %v1354_v45 = vld [vmem:[%s2751_s0 + $0x35] sm:$0x1]  }
  0x9a   :  { %v174_v48 = vpop.permute.xlu0 %173   ;;  %678 = vrot.lane.b32.xlu1 %v1310_v43, %s1630_s22  ;;  %s1645_s22 = smov 37   ;;  %v1358_v43 = vld [vmem:[%s2751_s0 + $0x89] sm:$0x2]   ;;  %v1399_v38 = vld [vmem:[%s2751_s0 + $0x4] sm:$0x1]  }
  0x9b   :  { %1185 = vst.msk [vmem:[%s2752_s1 + $0x1] sm:$0x1] %vm175_vm8, %v174_v48   ;;  %vm312_vm8 = vcmask 777952   ;;  %v867_v47 = vsel %vm5_vm1, %v1358_v43, %v1357_v42  ;;  %v856_v48 = vsel %vm5_vm1, %v1355_v46, %v1354_v45  ;;  %v1397_v42 = vld [vmem:[%s2751_s0 + $0xae] sm:$0x2]  }
  0x9c   :  { %672 = vrot.lane.b32.xlu0 %v671_v44, %s1631_s23  ;;  %v198_v53 = vpop.permute.xlu1 %197   ;;  %s1659_s23 = smov 23   ;;  %v1403_v46 = vld [vmem:[%s2751_s0 + $0x2e] sm:$0x1]  }
  0x9d   :  { %1191 = vst.msk [vmem:[%s2752_s1 + $0x1] sm:$0x1] %vm199_vm9, %v198_v53   ;;  %vm306_vm9 = vcmask 786152  }
  0x9e   :  { %v191_v56 = vpop.permute.xlu0 %190   ;;  %700 = vrot.lane.b32.xlu1 %v699_v51, %s1632_s3  ;;  %s1637_s3 = smov 45   ;;  %v1362_v51 = vld [vmem:[%s2751_s0 + $0xb3] sm:$0x2]  }
  0x9f   :  { %1189 = vst.msk [vmem:[%s2752_s1 + $0x2] sm:$0x1] %vm192_vm10, %v191_v56   ;;  %vm330_vm10 = vcmask 761552   ;;  %v884_v53 = vsel %vm5_vm1, %v1362_v51, %v1361_v50  ;;  %v1401_v50 = vld [vmem:[%s2751_s0 + $0x59] sm:$0x1]  }
  0xa0   :  { %689 = vrot.lane.b32.xlu0 %v688_v52, %s1633_s4  ;;  %v215_v59 = vpop.permute.xlu1 %214   ;;  %s1646_s4 = smov 34  }
  0xa1   :  { %1195 = vst.msk [vmem:[%s2752_s1 + $0x2] sm:$0x1] %vm216_vm11, %v215_v59   ;;  %vm319_vm11 = vcmask 769752   ;;  %v1366_v59 = vld [vmem:[%s2751_s0 + $0x5e] sm:$0x1]  }
  0xa2   :  { %v209_v60 = vpop.permute.xlu0 %208   ;;  %717 = vrot.lane.b32.xlu1 %v716_v57, %s1634_s15  ;;  %v1364_v57 = vld [vmem:[%s2751_s0 + $0x9] sm:$0x1]  }
  0xa3   :  { %211 = vst.msk [vmem:[%s2752_s1] ss:$3 sm:$0x3] %vm210_vm12, %v209_v60   ;;  %vm343_vm12 = vcmask 745152  }
  0xa4   :  { %706 = vrot.lane.b32.xlu0 %v1317_v58, %s1635_s16  ;;  %v233_v1 = vpop.permute.xlu1 %232   ;;  %v1365_v58 = vld [vmem:[%s2751_s0 + $0x88] sm:$0x2]  }
  0xa5   :  { %235 = vst.msk [vmem:[%s2752_s1] ss:$3 sm:$0x3] %vm234_vm13, %v233_v1   ;;  %vm336_vm13 = vcmask 753352   ;;  %v895_v60 = vsel %vm5_vm1, %v1365_v58, %v1364_v57  ;;  %v1368_v1 = vld [vmem:[%s2751_s0 + $0x33] sm:$0x1]  }
  0xa6   :  { %v222_v4 = vpop.permute.xlu0 %221   ;;  %734 = vrot.lane.b32.xlu1 %v1324_v63, %s1636_s2  ;;  %s1651_s2 = smov 31   ;;  %v1372_v63 = vld [vmem:[%s2751_s0 + $0x87] sm:$0x2]   ;;  %v1413_v58 = vld [vmem:[%s2751_s0 + $0x2] sm:$0x1]  }
  0xa7   :  { %1197 = vst.msk [vmem:[%s2752_s1 + $0x1] sm:$0x1] %vm223_vm14, %v222_v4   ;;  %vm360_vm14 = vcmask 728752   ;;  %v923_v3 = vsel %vm5_vm1, %v1372_v63, %v1371_v62  ;;  %v912_v4 = vsel %vm5_vm1, %v1369_v2, %v1368_v1  ;;  %v1411_v62 = vld [vmem:[%s2751_s0 + $0xac] sm:$0x2]  }
  0xa8   :  { %728 = vrot.lane.b32.xlu0 %v727_v0, %s1637_s3  ;;  %v246_v9 = vpop.permute.xlu1 %245   ;;  %s1665_s3 = smov 17   ;;  %v1417_v2 = vld [vmem:[%s2751_s0 + $0x2c] sm:$0x1]  }
  0xa9   :  { %1203 = vst.msk [vmem:[%s2752_s1 + $0x1] sm:$0x1] %vm247_vm15, %v246_v9   ;;  %vm354_vm15 = vcmask 736952  }
  0xaa   :  { %v239_v12 = vpop.permute.xlu0 %238   ;;  %756 = vrot.lane.b32.xlu1 %v755_v7, %s1638_s12  ;;  %s1643_s12 = smov 39   ;;  %v1376_v7 = vld [vmem:[%s2751_s0 + $0xb1] sm:$0x2]  }
  0xab   :  { %1201 = vst.msk [vmem:[%s2752_s1 + $0x2] sm:$0x1] %vm240_vm0, %v239_v12   ;;  %vm378_vm0 = vcmask 712352   ;;  %v940_v9 = vsel %vm5_vm1, %v1376_v7, %v1375_v6  ;;  %v1415_v6 = vld [vmem:[%s2751_s0 + $0x57] sm:$0x1]  }
  0xac   :  { %745 = vrot.lane.b32.xlu0 %v744_v8, %s1639_s13  ;;  %v263_v15 = vpop.permute.xlu1 %262   ;;  %s1652_s13 = smov 28  }
  0xad   :  { %1207 = vst.msk [vmem:[%s2752_s1 + $0x2] sm:$0x1] %vm264_vm2, %v263_v15   ;;  %vm367_vm2 = vcmask 720552   ;;  %v1380_v15 = vld [vmem:[%s2751_s0 + $0x5c] sm:$0x1]  }
  0xae   :  { %v257_v16 = vpop.permute.xlu0 %256   ;;  %773 = vrot.lane.b32.xlu1 %v772_v13, %s1640_s24  ;;  %v1378_v13 = vld [vmem:[%s2751_s0 + $0x7] sm:$0x1]  }
  0xaf   :  { %259 = vst.msk [vmem:[%s2752_s1] ss:$3 sm:$0x3] %vm258_vm3, %v257_v16   ;;  %vm391_vm3 = vcmask 695952  }
  0xb0   :  { %762 = vrot.lane.b32.xlu0 %v1331_v14, %s1641_s25  ;;  %v281_v21 = vpop.permute.xlu1 %280   ;;  %v1379_v14 = vld [vmem:[%s2751_s0 + $0x86] sm:$0x2]  }
  0xb1   :  { %283 = vst.msk [vmem:[%s2752_s1] ss:$3 sm:$0x3] %vm282_vm4, %v281_v21   ;;  %vm384_vm4 = vcmask 704152   ;;  %v951_v16 = vsel %vm5_vm1, %v1379_v14, %v1378_v13  ;;  %v1382_v21 = vld [vmem:[%s2751_s0 + $0x31] sm:$0x1]  }
  0xb2   :  { %v270_v24 = vpop.permute.xlu0 %269   ;;  %790 = vrot.lane.b32.xlu1 %v1338_v19, %s1642_s11  ;;  %s1657_s11 = smov 25   ;;  %v1386_v19 = vld [vmem:[%s2751_s0 + $0x85] sm:$0x2]  }
  0xb3   :  { %1209 = vst.msk [vmem:[%s2752_s1 + $0x1] sm:$0x1] %vm271_vm5, %v270_v24   ;;  %vm408_vm5 = vcmask 679552   ;;  %v979_v23 = vsel %vm5_vm1, %v1386_v19, %v1385_v18  ;;  %v968_v24 = vsel %vm5_vm1, %v1383_v22, %v1382_v21 }
  0xb4   :  { %784 = vrot.lane.b32.xlu0 %v783_v20, %s1643_s12  ;;  %v294_v29 = vpop.permute.xlu1 %293   ;;  %s1671_s12 = smov 11  }
  0xb5   :  { %1215 = vst.msk [vmem:[%s2752_s1 + $0x1] sm:$0x1] %vm295_vm6, %v294_v29   ;;  %vm402_vm6 = vcmask 687752  }
  0xb6   :  { %v287_v32 = vpop.permute.xlu0 %286   ;;  %812 = vrot.lane.b32.xlu1 %v811_v27, %s1644_s21  ;;  %s1649_s21 = smov 33   ;;  %v1390_v27 = vld [vmem:[%s2751_s0 + $0xaf] sm:$0x2]  }
  0xb7   :  { %1213 = vst.msk [vmem:[%s2752_s1 + $0x2] sm:$0x1] %vm288_vm7, %v287_v32   ;;  %vm426_vm7 = vcmask 663152   ;;  %v996_v29 = vsel %vm5_vm1, %v1390_v27, %v1389_v26 }
  0xb8   :  { %801 = vrot.lane.b32.xlu0 %v800_v28, %s1645_s22  ;;  %v311_v35 = vpop.permute.xlu1 %310   ;;  %s1658_s22 = smov 22  }
  0xb9   :  { %1219 = vst.msk [vmem:[%s2752_s1 + $0x2] sm:$0x1] %vm312_vm8, %v311_v35   ;;  %vm415_vm8 = vcmask 671352   ;;  %v1394_v35 = vld [vmem:[%s2751_s0 + $0x5a] sm:$0x1]  }
  0xba   :  { %v305_v36 = vpop.permute.xlu0 %304   ;;  %829 = vrot.lane.b32.xlu1 %v828_v33, %s1646_s4  ;;  %v1392_v33 = vld [vmem:[%s2751_s0 + $0x5] sm:$0x1]  }
  0xbb   :  { %307 = vst.msk [vmem:[%s2752_s1] ss:$3 sm:$0x3] %vm306_vm9, %v305_v36   ;;  %vm439_vm9 = vcmask 646752  }
  0xbc   :  { %818 = vrot.lane.b32.xlu0 %v1345_v34, %s1647_s5  ;;  %v329_v41 = vpop.permute.xlu1 %328   ;;  %v1393_v34 = vld [vmem:[%s2751_s0 + $0x84] sm:$0x2]  }
  0xbd   :  { %331 = vst.msk [vmem:[%s2752_s1] ss:$3 sm:$0x3] %vm330_vm10, %v329_v41   ;;  %vm432_vm10 = vcmask 654952   ;;  %v1007_v36 = vsel %vm5_vm1, %v1393_v34, %v1392_v33  ;;  %v1396_v41 = vld [vmem:[%s2751_s0 + $0x2f] sm:$0x1]  }
  0xbe   :  { %v318_v44 = vpop.permute.xlu0 %317   ;;  %846 = vrot.lane.b32.xlu1 %v1352_v39, %s1648_s20  ;;  %s1663_s20 = smov 19   ;;  %v1400_v39 = vld [vmem:[%s2751_s0 + $0x83] sm:$0x2]  }
  0xbf   :  { %1221 = vst.msk [vmem:[%s2752_s1 + $0x1] sm:$0x1] %vm319_vm11, %v318_v44   ;;  %vm456_vm11 = vcmask 630352   ;;  %v1035_v43 = vsel %vm5_vm1, %v1400_v39, %v1399_v38  ;;  %v1024_v44 = vsel %vm5_vm1, %v1397_v42, %v1396_v41 }
  0xc0   :  { %840 = vrot.lane.b32.xlu0 %v839_v40, %s1649_s21  ;;  %v342_v49 = vpop.permute.xlu1 %341   ;;  %s1677_s21 = smov 5  }
  0xc1   :  { %1227 = vst.msk [vmem:[%s2752_s1 + $0x1] sm:$0x1] %vm343_vm12, %v342_v49   ;;  %vm450_vm12 = vcmask 638552  }
  0xc2   :  { %v335_v52 = vpop.permute.xlu0 %334   ;;  %868 = vrot.lane.b32.xlu1 %v867_v47, %s1650_s30  ;;  %s1655_s30 = smov 27   ;;  %v1404_v47 = vld [vmem:[%s2751_s0 + $0xad] sm:$0x2]  }
  0xc3   :  { %1225 = vst.msk [vmem:[%s2752_s1 + $0x2] sm:$0x1] %vm336_vm13, %v335_v52   ;;  %vm478_vm13 = vcmask 613952   ;;  %v1052_v49 = vsel %vm5_vm1, %v1404_v47, %v1403_v46 }
  0xc4   :  { %857 = vrot.lane.b32.xlu0 %v856_v48, %s1651_s2  ;;  %v359_v55 = vpop.permute.xlu1 %358   ;;  %s1664_s2 = smov 16  }
  0xc5   :  { %1231 = vst.msk [vmem:[%s2752_s1 + $0x2] sm:$0x1] %vm360_vm14, %v359_v55   ;;  %vm467_vm14 = vcmask 622152   ;;  %v1408_v55 = vld [vmem:[%s2751_s0 + $0x58] sm:$0x1]  }
  0xc6   :  { %v353_v56 = vpop.permute.xlu0 %352   ;;  %885 = vrot.lane.b32.xlu1 %v884_v53, %s1652_s13  ;;  %v1406_v53 = vld [vmem:[%s2751_s0 + $0x3] sm:$0x1]  }
  0xc7   :  { %355 = vst.msk [vmem:[%s2752_s1] ss:$3 sm:$0x3] %vm354_vm15, %v353_v56   ;;  %vm495_vm15 = vcmask 597552  }
  0xc8   :  { %874 = vrot.lane.b32.xlu0 %v1359_v54, %s1653_s14  ;;  %v377_v61 = vpop.permute.xlu1 %376   ;;  %v1407_v54 = vld [vmem:[%s2751_s0 + $0x82] sm:$0x2]  }
  0xc9   :  { %379 = vst.msk [vmem:[%s2752_s1] ss:$3 sm:$0x3] %vm378_vm0, %v377_v61   ;;  %vm484_vm0 = vcmask 605752   ;;  %v1063_v56 = vsel %vm5_vm1, %v1407_v54, %v1406_v53  ;;  %v1410_v61 = vld [vmem:[%s2751_s0 + $0x2d] sm:$0x1]  }
  0xca   :  { %v366_v0 = vpop.permute.xlu0 %365   ;;  %902 = vrot.lane.b32.xlu1 %v1366_v59, %s1654_s29  ;;  %s1669_s29 = smov 13   ;;  %v1414_v59 = vld [vmem:[%s2751_s0 + $0x81] sm:$0x2]  }
  0xcb   :  { %1233 = vst.msk [vmem:[%s2752_s1 + $0x1] sm:$0x1] %vm367_vm2, %v366_v0   ;;  %vm512_vm2 = vcmask 581152   ;;  %v1091_v63 = vsel %vm5_vm1, %v1414_v59, %v1413_v58  ;;  %v1080_v0 = vsel %vm5_vm1, %v1411_v62, %v1410_v61 }
  0xcc   :  { %896 = vrot.lane.b32.xlu0 %v895_v60, %s1655_s30  ;;  %v390_v5 = vpop.permute.xlu1 %389  }
  0xcd   :  { %1239 = vst.msk [vmem:[%s2752_s1 + $0x1] sm:$0x1] %vm391_vm3, %v390_v5   ;;  %vm506_vm3 = vcmask 589352  }
  0xce   :  { %v383_v8 = vpop.permute.xlu0 %382   ;;  %924 = vrot.lane.b32.xlu1 %v923_v3, %s1656_s10  ;;  %s1661_s10 = smov 21   ;;  %v1418_v3 = vld [vmem:[%s2751_s0 + $0xab] sm:$0x2]  }
  0xcf   :  { %1237 = vst.msk [vmem:[%s2752_s1 + $0x2] sm:$0x1] %vm384_vm4, %v383_v8   ;;  %vm534_vm4 = vcmask 564752   ;;  %v1108_v5 = vsel %vm5_vm1, %v1418_v3, %v1417_v2 }
  0xd0   :  { %913 = vrot.lane.b32.xlu0 %v912_v4, %s1657_s11  ;;  %v407_v11 = vpop.permute.xlu1 %406   ;;  %s1670_s11 = smov 10  }
  0xd1   :  { %1243 = vst.msk [vmem:[%s2752_s1 + $0x2] sm:$0x1] %vm408_vm5, %v407_v11   ;;  %vm523_vm5 = vcmask 572952   ;;  %v1422_v11 = vld [vmem:[%s2751_s0 + $0x56] sm:$0x1]  }
  0xd2   :  { %v401_v12 = vpop.permute.xlu0 %400   ;;  %941 = vrot.lane.b32.xlu1 %v940_v9, %s1658_s22  ;;  %v1420_v9 = vld [vmem:[%s2751_s0 + $0x1] sm:$0x1]  }
  0xd3   :  { %403 = vst.msk [vmem:[%s2752_s1] ss:$3 sm:$0x3] %vm402_vm6, %v401_v12   ;;  %vm551_vm6 = vcmask 548352  }
  0xd4   :  { %930 = vrot.lane.b32.xlu0 %v1373_v10, %s1659_s23  ;;  %v425_v17 = vpop.permute.xlu1 %424   ;;  %v1421_v10 = vld [vmem:[%s2751_s0 + $0x80] sm:$0x2]  }
  0xd5   :  { %427 = vst.msk [vmem:[%s2752_s1] ss:$3 sm:$0x3] %vm426_vm7, %v425_v17   ;;  %vm540_vm7 = vcmask 556552   ;;  %v1119_v12 = vsel %vm5_vm1, %v1421_v10, %v1420_v9 }
  0xd6   :  { %v414_v20 = vpop.permute.xlu0 %413   ;;  %958 = vrot.lane.b32.xlu1 %v1380_v15, %s1660_s9  ;;  %s1675_s9 = smov 7   ;;  %v1424_v15 = vld [vmem:[%s2751_s0 + $0x2b] sm:$0x1]  }
  0xd7   :  { %1245 = vst.msk [vmem:[%s2752_s1 + $0x1] sm:$0x1] %vm415_vm8, %v414_v20   ;;  %vm568_vm8 = vcmask 531952  }
  0xd8   :  { %952 = vrot.lane.b32.xlu0 %v951_v16, %s1661_s10  ;;  %v438_v25 = vpop.permute.xlu1 %437   ;;  %v1425_v16 = vld [vmem:[%s2751_s0 + $0xaa] sm:$0x2]  }
  0xd9   :  { %1251 = vst.msk [vmem:[%s2752_s1 + $0x1] sm:$0x1] %vm439_vm9, %v438_v25   ;;  %vm562_vm9 = vcmask 540152   ;;  %v1136_v17 = vsel %vm5_vm1, %v1425_v16, %v1424_v15  ;;  %vm624_vm1 = vcmask 482752  }
  0xda   :  { %v431_v28 = vpop.permute.xlu0 %430   ;;  %980 = vrot.lane.b32.xlu1 %v979_v23, %s1662_s19  ;;  %s1667_s19 = smov 15  }
  0xdb   :  { %1249 = vst.msk [vmem:[%s2752_s1 + $0x2] sm:$0x1] %vm432_vm10, %v431_v28   ;;  %vm590_vm10 = vcmask 515552  }
  0xdc   :  { %969 = vrot.lane.b32.xlu0 %v968_v24, %s1663_s20  ;;  %v455_v31 = vpop.permute.xlu1 %454   ;;  %s1676_s20 = smov 4  }
  0xdd   :  { %1255 = vst.msk [vmem:[%s2752_s1 + $0x2] sm:$0x1] %vm456_vm11, %v455_v31   ;;  %vm579_vm11 = vcmask 523752  }
  0xde   :  { %v449_v32 = vpop.permute.xlu0 %448   ;;  %997 = vrot.lane.b32.xlu1 %v996_v29, %s1664_s2  ;;  %s1678_s2 = smov 2  }
  0xdf   :  { %451 = vst.msk [vmem:[%s2752_s1] ss:$3 sm:$0x3] %vm450_vm12, %v449_v32   ;;  %vm607_vm12 = vcmask 499152  }
  0xe0   :  { %986 = vrot.lane.b32.xlu0 %v1387_v30, %s1665_s3  ;;  %v477_v37 = vpop.permute.xlu1 %476   ;;  %s1679_s3 = smov 3  }
  0xe1   :  { %479 = vst.msk [vmem:[%s2752_s1] ss:$3 sm:$0x3] %vm478_vm13, %v477_v37   ;;  %vm596_vm13 = vcmask 507352  }
  0xe2   :  { %v466_v40 = vpop.permute.xlu0 %465   ;;  %1014 = vrot.lane.b32.xlu1 %v1394_v35, %s1666_s18 }
  0xe3   :  { %1258 = vst.msk [vmem:[%s2752_s1 + $0x1] ss:$3 sm:$0x3] %vm467_vm14, %v466_v40   ;;  %vm618_vm14 = vcmask 490952  }
  0xe4   :  { %1008 = vrot.lane.b32.xlu0 %v1007_v36, %s1667_s19  ;;  %v494_v45 = vpop.permute.xlu1 %493  }
  0xe5   :  { %1265 = vst.msk [vmem:[%s2752_s1 + $0x1] ss:$3 sm:$0x3] %vm495_vm15, %v494_v45   ;;  %vm646_vm15 = vcmask 466352  }
  0xe6   :  { %v483_v48 = vpop.permute.xlu0 %482   ;;  %1036 = vrot.lane.b32.xlu1 %v1035_v43, %s1668_s28  ;;  %s1673_s28 = smov 9  }
  0xe7   :  { %1262 = vst.msk [vmem:[%s2752_s1 + $0x2] sm:$0x1] %vm484_vm0, %v483_v48   ;;  %vm635_vm0 = vcmask 474552  }
  0xe8   :  { %1025 = vrot.lane.b32.xlu0 %v1024_v44, %s1669_s29  ;;  %v511_v51 = vpop.permute.xlu1 %510  }
  0xe9   :  { %1269 = vst.msk [vmem:[%s2752_s1 + $0x2] sm:$0x1] %vm512_vm2, %v511_v51   ;;  %vm663_vm2 = vcmask 449952  }
  0xea   :  { %v505_v52 = vpop.permute.xlu0 %504   ;;  %1053 = vrot.lane.b32.xlu1 %v1052_v49, %s1670_s11 }
  0xeb   :  { %507 = vst.msk [vmem:[%s2752_s1] ss:$3 sm:$0x3] %vm506_vm3, %v505_v52   ;;  %vm652_vm3 = vcmask 458152  }
  0xec   :  { %1042 = vrot.lane.b32.xlu0 %v1401_v50, %s1671_s12  ;;  %v533_v57 = vpop.permute.xlu1 %532  }
  0xed   :  { %535 = vst.msk [vmem:[%s2752_s1] ss:$3 sm:$0x3] %vm534_vm4, %v533_v57   ;;  %vm680_vm4 = vcmask 433552  }
  0xee   :  { %v522_v60 = vpop.permute.xlu0 %521   ;;  %1070 = vrot.lane.b32.xlu1 %v1408_v55, %s1672_s27 }
  0xef   :  { %1272 = vst.msk [vmem:[%s2752_s1 + $0x1] ss:$3 sm:$0x3] %vm523_vm5, %v522_v60   ;;  %vm674_vm5 = vcmask 441752  }
  0xf0   :  { %1064 = vrot.lane.b32.xlu0 %v1063_v56, %s1673_s28  ;;  %v550_v1 = vpop.permute.xlu1 %549  }
  0xf1   :  { %1279 = vst.msk [vmem:[%s2752_s1 + $0x1] ss:$3 sm:$0x3] %vm551_vm6, %v550_v1   ;;  %vm702_vm6 = vcmask 417152  }
  0xf2   :  { %v539_v4 = vpop.permute.xlu0 %538   ;;  %1092 = vrot.lane.b32.xlu1 %v1091_v63, %s1674_s8  ;;  %s1680_s8 = smov 1  }
  0xf3   :  { %1276 = vst.msk [vmem:[%s2752_s1 + $0x2] sm:$0x1] %vm540_vm7, %v539_v4   ;;  %vm691_vm7 = vcmask 425352  }
  0xf4   :  { %1081 = vrot.lane.b32.xlu0 %v1080_v0, %s1675_s9  ;;  %v567_v7 = vpop.permute.xlu1 %566  }
  0xf5   :  { %1283 = vst.msk [vmem:[%s2752_s1 + $0x2] sm:$0x1] %vm568_vm8, %v567_v7   ;;  %vm719_vm8 = vcmask 400752  }
  0xf6   :  { %v561_v8 = vpop.permute.xlu0 %560   ;;  %1109 = vrot.lane.b32.xlu1 %v1108_v5, %s1676_s20 }
  0xf7   :  { %563 = vst.msk [vmem:[%s2752_s1] ss:$3 sm:$0x3] %vm562_vm9, %v561_v8   ;;  %vm708_vm9 = vcmask 408952  }
  0xf8   :  { %1098 = vrot.lane.b32.xlu0 %v1415_v6, %s1677_s21  ;;  %v589_v13 = vpop.permute.xlu1 %588  }
  0xf9   :  { %591 = vst.msk [vmem:[%s2752_s1] ss:$3 sm:$0x3] %vm590_vm10, %v589_v13   ;;  %vm736_vm10 = vcmask 384352  }
  0xfa   :  { %v578_v14 = vpop.permute.xlu0 %577   ;;  %1126 = vrot.lane.b32.xlu1 %v1422_v11, %s1678_s2 }
  0xfb   :  { %1286 = vst.msk [vmem:[%s2752_s1 + $0x1] ss:$3 sm:$0x3] %vm579_vm11, %v578_v14   ;;  %vm730_vm11 = vcmask 392552  }
  0xfc   :  { %1120 = vrot.lane.b32.xlu0 %v1119_v12, %s1679_s3  ;;  %v606_v18 = vpop.permute.xlu1 %605  }
  0xfd   :  { %1293 = vst.msk [vmem:[%s2752_s1 + $0x1] ss:$3 sm:$0x3] %vm607_vm12, %v606_v18   ;;  %vm758_vm12 = vcmask 367952  }
  0xfe   :  { %v595_v19 = vpop.permute.xlu0 %594  }
  0xff   :  { %1290 = vst.msk [vmem:[%s2752_s1 + $0x2] sm:$0x1] %vm596_vm13, %v595_v19   ;;  %vm747_vm13 = vcmask 376152  }
 0x100   :  { %1137 = vrot.lane.b32.xlu0 %v1136_v17, %s1680_s8  ;;  %v623_v20 = vpop.permute.xlu1 %622  }
 0x101   :  { %1297 = vst.msk [vmem:[%s2752_s1 + $0x2] sm:$0x1] %vm624_vm1, %v623_v20   ;;  %vm775_vm1 = vcmask 351552  }
 0x102   :  { %v617_v21 = vpop.permute.xlu0 %616  }
 0x103   :  { %619 = vst.msk [vmem:[%s2752_s1] ss:$3 sm:$0x3] %vm618_vm14, %v617_v21   ;;  %vm764_vm14 = vcmask 359752  }
 0x104   :  { %v645_v22 = vpop.permute.xlu1 %644  }
 0x105   :  { %647 = vst.msk [vmem:[%s2752_s1] ss:$3 sm:$0x3] %vm646_vm15, %v645_v22   ;;  %vm792_vm15 = vcmask 335152  }
 0x106   :  { %v634_v23 = vpop.permute.xlu0 %633  }
 0x107   :  { %1300 = vst.msk [vmem:[%s2752_s1 + $0x1] ss:$3 sm:$0x3] %vm635_vm0, %v634_v23   ;;  %vm786_vm0 = vcmask 343352  }
 0x108   :  { %v662_v24 = vpop.permute.xlu1 %661  }
 0x109   :  { %1307 = vst.msk [vmem:[%s2752_s1 + $0x1] ss:$3 sm:$0x3] %vm663_vm2, %v662_v24   ;;  %vm814_vm2 = vcmask 318752  }
 0x10a   :  { %v651_v25 = vpop.permute.xlu0 %650  }
 0x10b   :  { %1304 = vst.msk [vmem:[%s2752_s1 + $0x2] sm:$0x1] %vm652_vm3, %v651_v25   ;;  %vm803_vm3 = vcmask 326952  }
 0x10c   :  { %v679_v26 = vpop.permute.xlu1 %678  }
 0x10d   :  { %1311 = vst.msk [vmem:[%s2752_s1 + $0x2] sm:$0x1] %vm680_vm4, %v679_v26   ;;  %vm831_vm4 = vcmask 302352  }
 0x10e   :  { %v673_v27 = vpop.permute.xlu0 %672  }
 0x10f   :  { %675 = vst.msk [vmem:[%s2752_s1] ss:$3 sm:$0x3] %vm674_vm5, %v673_v27   ;;  %vm820_vm5 = vcmask 310552  }
 0x110   :  { %v701_v28 = vpop.permute.xlu1 %700  }
 0x111   :  { %703 = vst.msk [vmem:[%s2752_s1] ss:$3 sm:$0x3] %vm702_vm6, %v701_v28   ;;  %vm848_vm6 = vcmask 285952  }
 0x112   :  { %v690_v29 = vpop.permute.xlu0 %689  }
 0x113   :  { %1314 = vst.msk [vmem:[%s2752_s1 + $0x1] ss:$3 sm:$0x3] %vm691_vm7, %v690_v29   ;;  %vm842_vm7 = vcmask 294152  }
 0x114   :  { %v718_v30 = vpop.permute.xlu1 %717  }
 0x115   :  { %1321 = vst.msk [vmem:[%s2752_s1 + $0x1] ss:$3 sm:$0x3] %vm719_vm8, %v718_v30   ;;  %vm870_vm8 = vcmask 269552  }
 0x116   :  { %v707_v31 = vpop.permute.xlu0 %706  }
 0x117   :  { %1318 = vst.msk [vmem:[%s2752_s1 + $0x2] sm:$0x1] %vm708_vm9, %v707_v31   ;;  %vm859_vm9 = vcmask 277752  }
 0x118   :  { %v735_v32 = vpop.permute.xlu1 %734  }
 0x119   :  { %1325 = vst.msk [vmem:[%s2752_s1 + $0x2] sm:$0x1] %vm736_vm10, %v735_v32   ;;  %vm887_vm10 = vcmask 253152  }
 0x11a   :  { %v729_v33 = vpop.permute.xlu0 %728  }
 0x11b   :  { %731 = vst.msk [vmem:[%s2752_s1] ss:$3 sm:$0x3] %vm730_vm11, %v729_v33   ;;  %vm876_vm11 = vcmask 261352  }
 0x11c   :  { %v757_v34 = vpop.permute.xlu1 %756  }
 0x11d   :  { %759 = vst.msk [vmem:[%s2752_s1] ss:$3 sm:$0x3] %vm758_vm12, %v757_v34   ;;  %vm904_vm12 = vcmask 236752  }
 0x11e   :  { %v746_v35 = vpop.permute.xlu0 %745  }
 0x11f   :  { %1328 = vst.msk [vmem:[%s2752_s1 + $0x1] ss:$3 sm:$0x3] %vm747_vm13, %v746_v35   ;;  %vm898_vm13 = vcmask 244952  }
 0x120   :  { %v774_v36 = vpop.permute.xlu1 %773  }
 0x121   :  { %1335 = vst.msk [vmem:[%s2752_s1 + $0x1] ss:$3 sm:$0x3] %vm775_vm1, %v774_v36   ;;  %vm926_vm1 = vcmask 220352  }
 0x122   :  { %v763_v37 = vpop.permute.xlu0 %762  }
 0x123   :  { %1332 = vst.msk [vmem:[%s2752_s1 + $0x2] sm:$0x1] %vm764_vm14, %v763_v37   ;;  %vm915_vm14 = vcmask 228552  }
 0x124   :  { %v791_v38 = vpop.permute.xlu1 %790  }
 0x125   :  { %1339 = vst.msk [vmem:[%s2752_s1 + $0x2] sm:$0x1] %vm792_vm15, %v791_v38   ;;  %vm943_vm15 = vcmask 203952  }
 0x126   :  { %v785_v39 = vpop.permute.xlu0 %784  }
 0x127   :  { %787 = vst.msk [vmem:[%s2752_s1] ss:$3 sm:$0x3] %vm786_vm0, %v785_v39   ;;  %vm932_vm0 = vcmask 212152  }
 0x128   :  { %v813_v40 = vpop.permute.xlu1 %812  }
 0x129   :  { %815 = vst.msk [vmem:[%s2752_s1] ss:$3 sm:$0x3] %vm814_vm2, %v813_v40   ;;  %vm960_vm2 = vcmask 187552  }
 0x12a   :  { %v802_v41 = vpop.permute.xlu0 %801  }
 0x12b   :  { %1342 = vst.msk [vmem:[%s2752_s1 + $0x1] ss:$3 sm:$0x3] %vm803_vm3, %v802_v41   ;;  %vm954_vm3 = vcmask 195752  }
 0x12c   :  { %v830_v42 = vpop.permute.xlu1 %829  }
 0x12d   :  { %1349 = vst.msk [vmem:[%s2752_s1 + $0x1] ss:$3 sm:$0x3] %vm831_vm4, %v830_v42   ;;  %vm982_vm4 = vcmask 171152  }
 0x12e   :  { %v819_v43 = vpop.permute.xlu0 %818  }
 0x12f   :  { %1346 = vst.msk [vmem:[%s2752_s1 + $0x2] sm:$0x1] %vm820_vm5, %v819_v43   ;;  %vm971_vm5 = vcmask 179352  }
 0x130   :  { %v847_v44 = vpop.permute.xlu1 %846  }
 0x131   :  { %1353 = vst.msk [vmem:[%s2752_s1 + $0x2] sm:$0x1] %vm848_vm6, %v847_v44   ;;  %vm999_vm6 = vcmask 154752  }
 0x132   :  { %v841_v45 = vpop.permute.xlu0 %840  }
 0x133   :  { %843 = vst.msk [vmem:[%s2752_s1] ss:$3 sm:$0x3] %vm842_vm7, %v841_v45   ;;  %vm988_vm7 = vcmask 162952  }
 0x134   :  { %v869_v46 = vpop.permute.xlu1 %868  }
 0x135   :  { %871 = vst.msk [vmem:[%s2752_s1] ss:$3 sm:$0x3] %vm870_vm8, %v869_v46   ;;  %vm1016_vm8 = vcmask 138352  }
 0x136   :  { %v858_v47 = vpop.permute.xlu0 %857  }
 0x137   :  { %1356 = vst.msk [vmem:[%s2752_s1 + $0x1] ss:$3 sm:$0x3] %vm859_vm9, %v858_v47   ;;  %vm1010_vm9 = vcmask 146552  }
 0x138   :  { %v886_v48 = vpop.permute.xlu1 %885  }
 0x139   :  { %1363 = vst.msk [vmem:[%s2752_s1 + $0x1] ss:$3 sm:$0x3] %vm887_vm10, %v886_v48   ;;  %vm1038_vm10 = vcmask 121952  }
 0x13a   :  { %v875_v49 = vpop.permute.xlu0 %874  }
 0x13b   :  { %1360 = vst.msk [vmem:[%s2752_s1 + $0x2] sm:$0x1] %vm876_vm11, %v875_v49   ;;  %vm1027_vm11 = vcmask 130152  }
 0x13c   :  { %v903_v50 = vpop.permute.xlu1 %902  }
 0x13d   :  { %1367 = vst.msk [vmem:[%s2752_s1 + $0x2] sm:$0x1] %vm904_vm12, %v903_v50   ;;  %vm1055_vm12 = vcmask 105552  }
 0x13e   :  { %v897_v51 = vpop.permute.xlu0 %896  }
 0x13f   :  { %899 = vst.msk [vmem:[%s2752_s1] ss:$3 sm:$0x3] %vm898_vm13, %v897_v51   ;;  %vm1044_vm13 = vcmask 113752  }
 0x140   :  { %v925_v52 = vpop.permute.xlu1 %924  }
 0x141   :  { %927 = vst.msk [vmem:[%s2752_s1] ss:$3 sm:$0x3] %vm926_vm1, %v925_v52   ;;  %vm1072_vm1 = vcmask 89152  }
 0x142   :  { %v914_v53 = vpop.permute.xlu0 %913  }
 0x143   :  { %1370 = vst.msk [vmem:[%s2752_s1 + $0x1] ss:$3 sm:$0x3] %vm915_vm14, %v914_v53   ;;  %vm1066_vm14 = vcmask 97352  }
 0x144   :  { %v942_v54 = vpop.permute.xlu1 %941  }
 0x145   :  { %1377 = vst.msk [vmem:[%s2752_s1 + $0x1] ss:$3 sm:$0x3] %vm943_vm15, %v942_v54   ;;  %vm1094_vm15 = vcmask 72752  }
 0x146   :  { %v931_v55 = vpop.permute.xlu0 %930  }
 0x147   :  { %1374 = vst.msk [vmem:[%s2752_s1 + $0x2] sm:$0x1] %vm932_vm0, %v931_v55   ;;  %vm1083_vm0 = vcmask 80952  }
 0x148   :  { %v959_v56 = vpop.permute.xlu1 %958  }
 0x149   :  { %1381 = vst.msk [vmem:[%s2752_s1 + $0x2] sm:$0x1] %vm960_vm2, %v959_v56   ;;  %vm1111_vm2 = vcmask 56352  }
 0x14a   :  { %v953_v57 = vpop.permute.xlu0 %952  }
 0x14b   :  { %955 = vst.msk [vmem:[%s2752_s1] ss:$3 sm:$0x3] %vm954_vm3, %v953_v57   ;;  %vm1100_vm3 = vcmask 64552  }
 0x14c   :  { %v981_v58 = vpop.permute.xlu1 %980  }
 0x14d   :  { %983 = vst.msk [vmem:[%s2752_s1] ss:$3 sm:$0x3] %vm982_vm4, %v981_v58   ;;  %vm1128_vm4 = vcmask 39952  }
 0x14e   :  { %v970_v59 = vpop.permute.xlu0 %969  }
 0x14f   :  { %1384 = vst.msk [vmem:[%s2752_s1 + $0x1] ss:$3 sm:$0x3] %vm971_vm5, %v970_v59   ;;  %vm1122_vm5 = vcmask 48152  }
 0x150   :  { %v998_v60 = vpop.permute.xlu1 %997  }
 0x151   :  { %1391 = vst.msk [vmem:[%s2752_s1 + $0x1] ss:$3 sm:$0x3] %vm999_vm6, %v998_v60   ;;  %vm1139_vm6 = vcmask 31752  }
 0x152   :  { %v987_v61 = vpop.permute.xlu0 %986  }
 0x153   :  { %1388 = vst.msk [vmem:[%s2752_s1 + $0x2] sm:$0x1] %vm988_vm7, %v987_v61  }
 0x154   :  { %v1015_v62 = vpop.permute.xlu1 %1014  }
 0x155   :  { %1395 = vst.msk [vmem:[%s2752_s1 + $0x2] sm:$0x1] %vm1016_vm8, %v1015_v62  }
 0x156   :  { %v1009_v63 = vpop.permute.xlu0 %1008  }
 0x157   :  { %1011 = vst.msk [vmem:[%s2752_s1] ss:$3 sm:$0x3] %vm1010_vm9, %v1009_v63  }
 0x158   :  { %v1037_v0 = vpop.permute.xlu1 %1036  }
 0x159   :  { %1039 = vst.msk [vmem:[%s2752_s1] ss:$3 sm:$0x3] %vm1038_vm10, %v1037_v0  }
 0x15a   :  { %v1026_v1 = vpop.permute.xlu0 %1025  }
 0x15b   :  { %1398 = vst.msk [vmem:[%s2752_s1 + $0x1] ss:$3 sm:$0x3] %vm1027_vm11, %v1026_v1  }
 0x15c   :  { %v1054_v2 = vpop.permute.xlu1 %1053  }
 0x15d   :  { %1405 = vst.msk [vmem:[%s2752_s1 + $0x1] ss:$3 sm:$0x3] %vm1055_vm12, %v1054_v2  }
 0x15e   :  { %v1043_v3 = vpop.permute.xlu0 %1042  }
 0x15f   :  { %1402 = vst.msk [vmem:[%s2752_s1 + $0x2] sm:$0x1] %vm1044_vm13, %v1043_v3  }
 0x160   :  { %v1071_v4 = vpop.permute.xlu1 %1070  }
 0x161   :  { %1409 = vst.msk [vmem:[%s2752_s1 + $0x2] sm:$0x1] %vm1072_vm1, %v1071_v4  }
 0x162   :  { %v1065_v5 = vpop.permute.xlu0 %1064  }
 0x163   :  { %1067 = vst.msk [vmem:[%s2752_s1] ss:$3 sm:$0x3] %vm1066_vm14, %v1065_v5  }
 0x164   :  { %v1093_v6 = vpop.permute.xlu1 %1092  }
 0x165   :  { %1095 = vst.msk [vmem:[%s2752_s1] ss:$3 sm:$0x3] %vm1094_vm15, %v1093_v6  }
 0x166   :  { %v1082_v7 = vpop.permute.xlu0 %1081  }
 0x167   :  { %1412 = vst.msk [vmem:[%s2752_s1 + $0x1] ss:$3 sm:$0x3] %vm1083_vm0, %v1082_v7  }
 0x168   :  { %v1110_v8 = vpop.permute.xlu1 %1109  }
 0x169   :  { %1419 = vst.msk [vmem:[%s2752_s1 + $0x1] ss:$3 sm:$0x3] %vm1111_vm2, %v1110_v8  }
 0x16a   :  { %v1099_v9 = vpop.permute.xlu0 %1098  }
 0x16b   :  { %1416 = vst.msk [vmem:[%s2752_s1 + $0x2] sm:$0x1] %vm1100_vm3, %v1099_v9  }
 0x16c   :  { %v1127_v10 = vpop.permute.xlu1 %1126  }
 0x16d   :  { %1423 = vst.msk [vmem:[%s2752_s1 + $0x2] sm:$0x1] %vm1128_vm4, %v1127_v10  }
 0x16e   :  { %v1121_v11 = vpop.permute.xlu0 %1120  }
 0x16f   :  { %1123 = vst.msk [vmem:[%s2752_s1] ss:$3 sm:$0x3] %vm1122_vm5, %v1121_v11  }
 0x172   :  { %v1138_v12 = vpop.permute.xlu0 %1137  }
 0x173   :  { %1426 = vst.msk [vmem:[%s2752_s1 + $0x1] ss:$3 sm:$0x3] %vm1139_vm6, %v1138_v12  }

// kernel: mul.9
= control target key start
LH: loop header
LB: loop body
LE: loop exit
PB: predicated region body
PF: predicated region fallthrough
CT: control target
= control target key end

     0   :  { %s34_s0 = inlined_call_operand.vmem [shape: f32[588], index: 0, kind: input, shape index: {}]   ;;  %s35_s1 = inlined_call_operand.vmem [shape: f32[588], index: 1, kind: input, shape index: {}]   ;;  %s36_s2 = inlined_call_operand.vmem [shape: f32[588], index: 2, kind: output, shape index: {}]  }
   0x1   :  { %v3_v0 = vld [vmem:[%s34_s0] sm:$0x1f] }
   0x2   :  { %v4_v1 = vld [vmem:[%s35_s1] sm:$0x1f] }
   0x3   :  { %v7_v2 = vmul.f32 %v4_v1, %v3_v0 }
   0x5   :  { %9 = vst [vmem:[%s36_s2] sm:$0xff] %v7_v2 }

// kernel: navdp_rgbd_backbone_forward.2
= control target key start
LH: loop header
LB: loop body
LE: loop exit
PB: predicated region body
PF: predicated region fallthrough
CT: control target
= control target key end

     0   :  { %s5152_s22 = smov 0   ;;  %s5154_s23 = smov 0   ;;  %s5874_s0 = inlined_call_operand.vmem [shape: bf16[2,20,588], index: 0, kind: input, shape index: {}]   ;;  %s5875_s1 = inlined_call_operand.vmem [shape: bf16[2,588,128], index: 1, kind: input, shape index: {}]   ;;  %s5876_s2 = inlined_call_operand.vmem [shape: f32[2,5,128], index: 2, kind: input, shape index: {}]   ;;  %s5877_s3 = inlined_call_operand.vmem [shape: f32[20,5], index: 3, kind: input, shape index: {}]   ;;  %s5878_s4 = inlined_call_operand.vmem [shape: f32[20,1], index: 4, kind: input, shape index: {}]   ;;  %s5879_s5 = inlined_call_operand.vmem [shape: f32[1,20], index: 5, kind: input, shape index: {}]   ;;  %s5880_s6 = inlined_call_operand.vmem [shape: f32[2,2,1,128], index: 6, kind: input, shape index: {}]   ;;  %s5881_s7 = inlined_call_operand.vmem [shape: f32[2,2,1,128], index: 7, kind: input, shape index: {}]   ;;  %s5882_s8 = inlined_call_operand.vmem [shape: bf16[2,2,128,384], index: 8, kind: input, shape index: {}]   ;;  %s5883_s9 = inlined_call_operand.vmem [shape: f32[2,2,1,384], index: 9, kind: input, shape index: {}]   ;;  %s5884_s10 = inlined_call_operand.vmem [shape: bf16[2,2,128,128], index: 10, kind: input, shape index: {}]   ;;  %s5885_s11 = inlined_call_operand.vmem [shape: f32[2,2,1,128], index: 11, kind: input, shape index: {}]   ;;  %s5886_s12 = inlined_call_operand.vmem [shape: f32[2,2,1,128], index: 12, kind: input, shape index: {}]   ;;  %s5887_s13 = inlined_call_operand.vmem [shape: f32[2,2,1,128], index: 13, kind: input, shape index: {}]   ;;  %s5888_s14 = inlined_call_operand.vmem [shape: bf16[2,2,128,512], index: 14, kind: input, shape index: {}]   ;;  %s5889_s15 = inlined_call_operand.vmem [shape: f32[2,2,1,512], index: 15, kind: input, shape index: {}]   ;;  %s5890_s16 = inlined_call_operand.vmem [shape: bf16[2,2,512,128], index: 16, kind: input, shape index: {}]   ;;  %s5891_s17 = inlined_call_operand.vmem [shape: f32[2,2,1,128], index: 17, kind: input, shape index: {}]   ;;  %s5892_s18 = inlined_call_operand.vmem [shape: f32[2,1,128], index: 18, kind: input, shape index: {}]   ;;  %s5893_s19 = inlined_call_operand.vmem [shape: f32[2,1,128], index: 19, kind: input, shape index: {}]   ;;  %s5894_s20 = inlined_call_operand.vmem [shape: f32[2,20,128], index: 20, kind: output, shape index: {}]  }
   0x1   :  { %5904 = sst [smem:[#allocation12_spill]] %s5874_s0  ;;  %s5156_s24 = smov 0  }
   0x2   :  { %5905 = sst [smem:[#allocation13_spill]] %s5875_s1  ;;  %s5150_s1 = smov 0  }
   0x3   :  { %5906 = sst [smem:[#allocation14_spill]] %s5876_s2  ;;  %s5158_s2 = smov 0  }
   0x4   :  { %5907 = sst [smem:[#allocation15_spill]] %s5877_s3 }
   0x5   :  { %5908 = sst [smem:[#allocation16_spill]] %s5878_s4 }
   0x6   :  { %5909 = sst [smem:[#allocation17_spill]] %s5879_s5 }
   0x7   :  { %5910 = sst [smem:[#allocation18_spill]] %s5880_s6 }
   0x8   :  { %5911 = sst [smem:[#allocation19_spill]] %s5881_s7 }
   0x9   :  { %5912 = sst [smem:[#allocation20_spill]] %s5882_s8 }
   0xa   :  { %5913 = sst [smem:[#allocation21_spill]] %s5884_s10 }
   0xb   :  { %5914 = sst [smem:[#allocation22_spill]] %s5885_s11 }
   0xc   :  { %5915 = sst [smem:[#allocation23_spill]] %s5886_s12 }
   0xd   :  { %5916 = sst [smem:[#allocation24_spill]] %s5887_s13 }
   0xe   :  { %5917 = sst [smem:[#allocation25_spill]] %s5888_s14 }
   0xf   :  { %5918 = sst [smem:[#allocation26_spill]] %s5889_s15 }
  0x10   :  { %5919 = sst [smem:[#allocation27_spill]] %s5890_s16 }
  0x11   :  { %5920 = sst [smem:[#allocation28_spill]] %s5891_s17 }
  0x12   :  { %5921 = sst [smem:[#allocation29_spill]] %s5892_s18 }
  0x13   :  { %5922 = sst [smem:[#allocation30_spill]] %s5893_s19 }
  0x14   :  { %5923 = sst [smem:[#allocation31_spill]] %s5894_s20 }
  0x15 LB: > { %5924 = sst [smem:[#allocation4_spill]] %s5020_s1  ;;  %s39_s25 = sadd.s32 1, %s5028_s23  ;;  %s5036_s2 = sphi %s5158_s2, %s30_s2   ;;  %s5032_s24 = sphi %s5156_s24, %s5978_s24   ;;  %s5028_s23 = sphi %s5154_s23, %s5977_s23   ;;  %s5024_s22 = sphi %s5152_s22, %s5976_s22   ;;  %s5020_s1 = sphi %s5150_s1, %s5975_s1  }
  0x16   : > { %5925 = sst [smem:[#allocation5_spill]] %s5028_s23  ;;  %s42_s3 = sadd.s32 1, %s5032_s24 }
  0x17   : > { %5926 = sst [smem:[#allocation6_spill]] %s5032_s24  ;;  %p40_p0 = scmp.ge.s32.totalorder %s39_s25, 2 }
  0x18   : > { %5927 = sst [smem:[#allocation7_spill]] %s5036_s2  ;;  %p4162_p1 = scmp.ge.s32.totalorder %s5036_s2, 1 }
  0x19   : > { %p787_p2 = scmp.lt.s32.totalorder %s5036_s2, 5  ;;  %s5980_s25 = smov (%p40_p0, %s39_s25), 0 }
  0x1a   : > { %5928 = sst [smem:[#allocation8_spill]] %s5980_s25  ;;  %s5982_s3 = smov (!%p40_p0, %s42_s3), %s5032_s24 }
  0x1b   : > { %p788_p3 = pnand %p4162_p1, %p787_p2  ;;  %p44_p4 = scmp.ge.s32.totalorder %s5982_s3, 2 }
  0x1d   : > { %s5984_s3 = smov (%p44_p4, %s5982_s3), 0  ;;  %791 = sbr.rel (%p788_p3) target bundleno = 4090 (0xffa), region = 100 }
  0x1e   : > { %5929 = sst [smem:[#allocation9_spill]] %s5984_s3 }
  0x22   : > { %p954_p5 = scmp.lt.s32.totalorder %s5024_s22, 1  ;;  %p970_p6 = scmp.lt.s32.totalorder %s5020_s1, 1 }
  0x23   : > { %s5930_s0 = sld [smem:[#allocation14_spill]] }
  0x24   : > { %s5986_s22 = smov (!%p954_p5, %s5024_s22), 1  ;;  %s5931_s24 = sld [smem:[#allocation12_spill]] }
  0x25   : > { %s5186_s26 = scalar_select %p970_p6, %s5020_s1, 1 }
  0x26   : > { %s4680_s27 = smul.u32 60, %s5986_s22  ;;  %s5901_s28 = sshll.u32 %s5986_s22, 3 }
  0x27   : > { %s4681_s4 = smul.u32 296, %s5986_s22  ;;  %s4166_s2 = sshll.u32 %s5986_s22, 1 }
  0x28   : > { %s5932_s20 = sld [smem:[#allocation13_spill]]  ;;  %s5210_s18 = sadd.s32 %s4166_s2, %s5186_s26 }
  0x29   : > { %s5196_s21 = scalar_lea.vmem %s5930_s0, %s5901_s28  ;;  %s4682_s25 = smul.u32 48, %s5186_s26 }
  0x2a   : > { %s5201_s23 = scalar_lea.vmem %s5931_s24, %s4680_s27  ;;  %s4169_s3 = sshll.u32 %s5186_s26, 4 }
  0x2b   : > { %s4683_s5 = smul.u32 96, %s5986_s22  ;;  %s5935_s8 = sld [smem:[#allocation20_spill]] }
  0x2c   : > { %s4684_s1 = smul.u32 3, %s5186_s26  ;;  %s5936_s10 = sld [smem:[#allocation21_spill]] }
  0x2d   : > { %s988_s16 = sadd.s32 %s4683_s5, %s4682_s25  ;;  %s4685_s17 = smul.u32 6, %s5986_s22 }
  0x2e   : > { %s5207_s19 = scalar_lea.vmem %s5932_s20, %s4681_s4  ;;  %s4170_s20 = sshll.u32 %s5986_s22, 5 }
  0x2f   : > { %s1005_s2 = sadd.s32 %s4170_s20, %s4169_s3  ;;  %s4168_s27 = sshll.u32 %s988_s16, 2 }
  0x30   : > { %s4171_s4 = sshll.u32 %s1005_s2, 2  ;;  %s5231_s24 = sadd.s32 %s4685_s17, %s4684_s1 }
  0x31   : > { %s5229_s0 = scalar_lea.vmem %s5935_s8, %s4168_s27  ;;  %s4175_s28 = sshll.u32 %s5186_s26, 6 }
  0x32   : > { %s5240_s25 = scalar_lea.vmem %s5936_s10, %s4171_s4  ;;  %s4176_s6 = sshll.u32 %s5986_s22, 7 }
  0x33   : > { %s4178_s8 = sshll.u32 %s5186_s26, 2  ;;  %s1035_s3 = sadd.s32 %s4176_s6, %s4175_s28 }
  0x34   : > { %s5940_s20 = sshll.u32 %s5986_s22, 3  ;;  %s4177_s10 = sshll.u32 %s1035_s3, 2 }
  0x35   : > { %s5259_s4 = sadd.s32 %s4178_s8, %s5940_s20  ;;  %s5943_s14 = sld [smem:[#allocation25_spill]] }
  0x36   : > { %5941 = sst [smem:[#allocation10_spill]] %s5259_s4  ;;  %s4686_s11 = smul.u32 24, %s5986_s22 }
  0x37   : > { %s5945_s7 = sld [smem:[#allocation27_spill]] }
  0x38   : > { %s5946_s8 = sld [smem:[#allocation28_spill]] }
  0x39   : > { %s5947_s13 = sld [smem:[#allocation29_spill]] }
  0x3a   : > { %s5948_s29 = sld [smem:[#allocation30_spill]] }
  0x3b   : > { %s5268_s1 = scalar_lea.vmem %s5943_s14, %s4177_s10  ;;  %s5949_s4 = sld [smem:[#allocation31_spill]] }
  0x3c   : > { %5944 = sst [smem:[#allocation11_spill]] %s5268_s1 }
  0x3d   : > { %s5273_s17 = scalar_lea.vmem %s5945_s7, %s4177_s10  ;;  %s5950_s10 = sld [smem:[#allocation4_spill]] }
  0x3e   : > { %s1061_s28 = scalar_lea.vmem %s5946_s8, %s5210_s18 }
  0x3f   : > { %s1064_s12 = scalar_lea.vmem %s5947_s13, %s5986_s22 }
  0x40   : > { %s1067_s15 = scalar_lea.vmem %s5948_s29, %s5986_s22 }
  0x41   : > { %s5291_s1 = scalar_lea.vmem %s5949_s4, %s4686_s11 }
  0x43   : > { %p4185_p7 = scmp.ne.s32.totalorder %s5950_s10, 0 }
  0x44   : > { %s5951_s29 = sld [smem:[#allocation15_spill]] (!%p4185_p7) }
  0x45   : > { %1077 = sbr.rel (%p4185_p7) target bundleno = 329 (0x149), region = 104 }
  0x4a   : > { %v4734_v0 = vld [vmem:[%s5207_s19 + $0x78] sm:$0xff]   ;;  %v5038_v1 = vmov 0.0   ;;  %v1164_v2 = vld [vmem:[%s5196_s21] sm:$0x1f]  ;;  %vm1175_vm0 = vcmask 1044480   ;;  %vm5039_vm1 = vmmov 0  }
  0x4b   : > { %4538 = vmatprep.subr.mxu0 %v5038_v1  ;;  %v4735_v3 = vld [vmem:[%s5207_s19 + $0x38] sm:$0xff]   ;;  %4367 = vmatprep.subr.bf16.mxu1 %v4734_v0  ;;  %v1161_v5 = vld [vmem:[%s5951_s29] sm:$0xff]  ;;  %vm1165_vm2 = vcmask 39936   ;;  %v4738_v7 = vld [vmem:[%s5207_s19 + $0x70] sm:$0xff]   ;;  %vm1529_vm3 = vcmask 1045504   ;;  %vm1522_vm4 = vcmask 621568  }
  0x4c   : > { %4539 = vmatpush3.msk.msra.mxu0 %vm1175_vm0, %v1164_v2  ;;  %v4736_v4 = vld [vmem:[%s5207_s19 + $0xf8] sm:$0xff]   ;;  %4368 = vmatpush3.bf16.msra.mxu1 %v4735_v3  ;;  %v4739_v8 = vld [vmem:[%s5207_s19 + $0x30] sm:$0xff]   ;;  %v4742_v11 = vld [vmem:[%s5207_s19 + $0x68] sm:$0xff]  }
  0x4d   : > { %4540 = vmatprep.mubr.msk.f32.mxu0 %vm5039_vm1, %v5038_v1  ;;  %4395 = vmatprep.subr.bf16.mxu0 %v4736_v4  ;;  %v4737_v6 = vld [vmem:[%s5207_s19 + $0xb8] sm:$0xff]   ;;  %v4740_v9 = vld [vmem:[%s5207_s19 + $0xf0] sm:$0xff]   ;;  %v4743_v12 = vld [vmem:[%s5207_s19 + $0x28] sm:$0xff]  }
  0x4e   : > { %4541 = vmatmul.mubr.msk.f32.vlgmr.msra.gmra.mxu0 %vm1165_vm2, %v1161_v5  ;;  %4369 = vmatprep.subr.bf16.mxu1 %v4738_v7  ;;  %v4741_v10 = vld [vmem:[%s5207_s19 + $0xb0] sm:$0xff]   ;;  %v4744_v13 = vld [vmem:[%s5207_s19 + $0xe8] sm:$0xff]   ;;  %v4746_v15 = vld [vmem:[%s5207_s19 + $0x60] sm:$0xff]  }
  0x4f   : > { %4543 = vmatprep.mubr.msk.f32.mxu0 %vm5039_vm1, %v5038_v1  ;;  %4396 = vmatpush3.bf16.msra.mxu0 %v4737_v6  ;;  %v4745_v14 = vld [vmem:[%s5207_s19 + $0xa8] sm:$0xff]   ;;  %v4747_v16 = vld [vmem:[%s5207_s19 + $0x20] sm:$0xff]   ;;  %v4750_v19 = vld [vmem:[%s5207_s19 + $0x58] sm:$0xff]  }
  0x50   : > { %4370 = vmatpush3.bf16.msra.mxu1 %v4739_v8  ;;  %4397 = vmatprep.subr.bf16.mxu0 %v4740_v9  ;;  %v4748_v17 = vld [vmem:[%s5207_s19 + $0xe0] sm:$0xff]   ;;  %v4751_v20 = vld [vmem:[%s5207_s19 + $0x18] sm:$0xff]   ;;  %v4754_v23 = vld [vmem:[%s5207_s19 + $0x50] sm:$0xff]  }
  0x51   : > { %4371 = vmatprep.subr.bf16.mxu1 %v4742_v11  ;;  %v4749_v18 = vld [vmem:[%s5207_s19 + $0xa0] sm:$0xff]   ;;  %v4752_v21 = vld [vmem:[%s5207_s19 + $0xd8] sm:$0xff]   ;;  %v4755_v24 = vld [vmem:[%s5207_s19 + $0x10] sm:$0xff]  }
  0x52   : > { %v4753_v22 = vld [vmem:[%s5207_s19 + $0x98] sm:$0xff]   ;;  %v4756_v25 = vld [vmem:[%s5207_s19 + $0xd0] sm:$0xff]   ;;  %v4758_v27 = vld [vmem:[%s5207_s19 + $0x48] sm:$0xff]  }
  0x53   : > { %4398 = vmatpush3.bf16.msra.mxu0 %v4741_v10  ;;  %v4757_v26 = vld [vmem:[%s5207_s19 + $0x90] sm:$0xff]   ;;  %v4759_v28 = vld [vmem:[%s5207_s19 + $0x8] sm:$0xff]   ;;  %v4762_v32 = vld [vmem:[%s5207_s19 + $0x40] sm:$0xff]  }
  0x54   : > { %4372 = vmatpush3.bf16.msra.mxu1 %v4743_v12  ;;  %4399 = vmatprep.subr.bf16.mxu0 %v4744_v13  ;;  %v1162_v29 = vld [vmem:[%s5951_s29 + $0x8] sm:$0xff]  ;;  %v4763_v33 = vld [vmem:[%s5207_s19] sm:$0xff]   ;;  %v1163_v34 = vld [vmem:[%s5951_s29 + $0x10] sm:$0xf] }
  0x55   : > { %4373 = vmatprep.subr.bf16.mxu1 %v4746_v15  ;;  %4544 = vmatmul.mubr.msk.f32.gmra.mxu0 %vm1165_vm2, %v1162_v29  ;;  %v4760_v30 = vld [vmem:[%s5207_s19 + $0xc8] sm:$0xff]   ;;  %v4764_v35 = vld [vmem:[%s5207_s19 + $0xc0] sm:$0xff]   ;;  %v4773_v43 = vld [vmem:[%s5207_s19 + $0x118] sm:$0xff]  }
  0x56   : > { %v4761_v31 = vld [vmem:[%s5207_s19 + $0x88] sm:$0xff]   ;;  %4546 = vmatprep.mubr.msk.f32.mxu0 %vm5039_vm1, %v5038_v1  ;;  %v4765_v36 = vld [vmem:[%s5201_s23] ss:$20 sps:$4 sm:$0xff]   ;;  %v4767_v37 = vld [vmem:[%s5201_s23 + $0x4] ss:$20 sps:$4 sm:$0xff]  }
  0x57   : > { %4400 = vmatpush3.bf16.msra.mxu0 %v4745_v14  ;;  %v4768_v38 = vld [vmem:[%s5207_s19 + $0x80] sm:$0xff]   ;;  %1565 = vmatprep.mubr.bf16.mxu1 %v4767_v37  ;;  %v4770_v40 = vld [vmem:[%s5201_s23 + $0x8] ss:$20 sps:$4 sm:$0xff]   ;;  %v4776_v46 = vld [vmem:[%s5207_s19 + $0x110] sm:$0xff]  }
  0x58   : > { %4374 = vmatpush3.bf16.msra.mxu1 %v4747_v16  ;;  %4401 = vmatprep.subr.bf16.mxu0 %v4748_v17  ;;  %v4769_v39 = vld [vmem:[%s5207_s19 + $0x120] sm:$0x3f]   ;;  %v1084_v44 = vld [vmem:[%s5201_s23 + $0x28] sm:$0x33]  ;;  %v1085_v47 = vld [vmem:[%s5201_s23 + $0x30] sm:$0x33] }
  0x59   : > { %4375 = vmatprep.subr.bf16.mxu1 %v4750_v19  ;;  %4547 = vmatmul.mubr.msk.f32.gmra.mxu0 %vm1165_vm2, %v1163_v34  ;;  %v4772_v41 = vld [vmem:[%s5201_s23 + $0xc] ss:$20 sps:$4 sm:$0xff]   ;;  %v1531_v42 = vsel %vm1529_vm3, %v4769_v39, 0  ;;  %v4196_v45 = vcombine.high %v1084_v44, %v1084_v44  ;;  %v4195_v48 = vcombine.low %v1084_v44, %v1084_v44  ;;  %v4198_v49 = vcombine.high %v1085_v47, %v1085_v47  ;;  %v4781_v50 = vld [vmem:[%s5201_s23 + $0x10] ss:$20 sps:$4 sm:$0xff]  }
  0x5a   : > { %1613 = vmatprep.mubr.bf16.mxu0 %v4772_v41  ;;  %v4197_v51 = vcombine.low %v1085_v47, %v1085_v47  ;;  %v4779_v52 = vld [vmem:[%s5207_s19 + $0x108] sm:$0xff]   ;;  %v4780_v53 = vld [vmem:[%s5207_s19 + $0x100] sm:$0xff]   ;;  %v4782_v54 = vld [vmem:[%s5201_s23 + $0x38] ss:$0 sps:$4 sm:$0x33]  }
  0x5b   : > { %4402 = vmatpush3.bf16.msra.mxu0 %v4749_v18 }
  0x5c   : > { %4376 = vmatpush3.bf16.msra.mxu1 %v4751_v20  ;;  %4403 = vmatprep.subr.bf16.mxu0 %v4752_v21 }
  0x5d   : > { %4377 = vmatprep.subr.bf16.mxu1 %v4754_v23 }
  0x5f   : > { %4404 = vmatpush3.bf16.msra.mxu0 %v4753_v22 }
  0x60   : > { %4378 = vmatpush3.bf16.msra.mxu1 %v4755_v24  ;;  %4405 = vmatprep.subr.bf16.mxu0 %v4756_v25 }
  0x61   : > { %4379 = vmatprep.subr.bf16.mxu1 %v4758_v27 }
  0x63   : > { %4406 = vmatpush3.bf16.msra.mxu0 %v4757_v26 }
  0x64   : > { %4380 = vmatpush3.bf16.msra.mxu1 %v4759_v28  ;;  %4407 = vmatprep.subr.bf16.mxu0 %v4760_v30 }
  0x65   : > { %4381 = vmatprep.subr.bf16.mxu1 %v4762_v32 }
  0x67   : > { %4408 = vmatpush3.bf16.msra.mxu0 %v4761_v31 }
  0x68   : > { %4382 = vmatpush3.bf16.msra.mxu1 %v4763_v33  ;;  %4409 = vmatprep.subr.bf16.mxu0 %v4764_v35 }
  0x69   : > { %4667 = vmatprep.subr.msk.bf16.mxu1 %vm1529_vm3, %v4769_v39 }
  0x6b   : > { %4410 = vmatpush3.bf16.msra.mxu0 %v4768_v38  ;;  %1566 = vmatmul.mubr.bf16.vlgmr.msra.gmra.mxu1 %v4765_v36 }
  0x6c   : > { %4550 = vmatpush3.bf16.msra.mxu1 %v1531_v42  ;;  %1573 = vmatprep.mubr.bf16.mxu1 %v4196_v45 }
  0x6d   : > { %4551 = vmatprep.subr.bf16.mxu1 %v4773_v43 }
  0x6e   : > { %1614 = vmatmul.mubr.bf16.vlgmr.msra.gmra.mxu0 %v4770_v40 }
  0x6f   : > { %1621 = vmatprep.mubr.bf16.mxu0 %v4198_v49 }
  0x70   : > { %4552 = vmatpush3.bf16.msra.mxu1 %v4773_v43 }
  0x71   : > { %4553 = vmatprep.subr.bf16.mxu1 %v4776_v46 }
  0x73   : > { %1574 = vmatmul.mubr.bf16.gmra.mxu1 %v4195_v48 }
  0x74   : > { %4559 = vmatprep.mubr.msk.bf16.mxu1 %vm1522_vm4, %v4781_v50  ;;  %4554 = vmatpush3.bf16.msra.mxu1 %v4776_v46 }
  0x75   : > { %4555 = vmatprep.subr.bf16.mxu1 %v4779_v52 }
  0x76   : > { %1622 = vmatmul.mubr.bf16.gmra.mxu0 %v4197_v51 }
  0x78   : > { %4556 = vmatpush3.bf16.msra.mxu1 %v4779_v52 }
  0x79   : > { %4557 = vmatprep.subr.bf16.mxu1 %v4780_v53 }
  0x7c   : > { %4558 = vmatpush3.bf16.msra.mxu1 %v4780_v53 }
  0x7f   : > { %4560 = vmatmul.mubr.msk.bf16.vlgmr.msra.gmra.mxu1 %vm1522_vm4, %v4782_v54 }
 0x10e   : > { %v1245_v55 = vpop.f32.mrf.mxu0 }
 0x110   : > { %v4542_v56 = vpop.f32.mrf.mxu0 }
 0x115   : > { %v1250_v57 = vpop.f32.mrf.mxu0 }
 0x117   : > { %v4545_v58 = vpop.f32.mrf.mxu0 }
 0x119   : > { %v1255_v59 = vpop.f32.mrf.mxu0 }
 0x11b   : > { %v4548_v60 = vpop.f32.mrf.mxu0 }
 0x12b   : > { %v4383_v61 = vpop.f32.mrf.mxu1 }
 0x12d   : > { %v4384_v62 = vpop.f32.mrf.mxu1 }
 0x12e   : > { %v4411_v63 = vpop.f32.mrf.mxu0  ;;  %v4385_v11 = vadd.f32 %v4384_v62, %v4383_v61 }
 0x12f   : > { %v4386_v0 = vpop.f32.mrf.mxu1 }
 0x130   : > { %v4412_v1 = vpop.f32.mrf.mxu0  ;;  %v1568_v17 = vadd.f32 %v4385_v11, %v1245_v55 }
 0x131   : > { %v4387_v2 = vpop.f32.mrf.mxu1  ;;  %v4413_v18 = vadd.f32 %v4412_v1, %v4411_v63 }
 0x132   : > { %v4414_v3 = vpop.f32.mrf.mxu0  ;;  %v4388_v19 = vadd.f32 %v4387_v2, %v4386_v0 }
 0x133   : > { %v4389_v4 = vpop.f32.mrf.mxu1  ;;  %v1616_v25 = vadd.f32 %v4413_v18, %v1568_v17 }
 0x134   : > { %v4415_v5 = vpop.f32.mrf.mxu0  ;;  %v1571_v22 = vadd.f32 %v4388_v19, %v1250_v57 }
 0x135   : > { %v4390_v6 = vpop.f32.mrf.mxu1  ;;  %v4416_v23 = vadd.f32 %v4415_v5, %v4414_v3 }
 0x136   : > { %v4417_v7 = vpop.f32.mrf.mxu0  ;;  %v4391_v8 = vadd.f32 %v4390_v6, %v4389_v4 }
 0x137   : > { %v4392_v9 = vpop.f32.mrf.mxu1  ;;  %v1619_v29 = vadd.f32 %v4416_v23, %v1571_v22 }
 0x138   : > { %v4418_v10 = vpop.f32.mrf.mxu0  ;;  %v1576_v14 = vadd.f32 %v4391_v8, %v1255_v59 }
 0x139   : > { %v4393_v12 = vpop.f32.mrf.mxu1  ;;  %v4419_v15 = vadd.f32 %v4418_v10, %v4417_v7 }
 0x13a   : > { %v4420_v13 = vpop.f32.mrf.mxu0 }
 0x13b   : > { %v1624_v20 = vadd.f32 %v4419_v15, %v1576_v14 }
 0x13c   : > { %v4421_v16 = vpop.f32.mrf.mxu0 }
 0x13f   : > { %v4561_v21 = vpop.f32.mrf.mxu1 }
 0x140   : > { %v1672_v24 = vadd.f32 %v4561_v21, %v1624_v20 }
 0x141   : > { %v1663_v26 = vpop.f32.mrf.mxu1 }
 0x142   : > { %1679 = vst [vmem:[#allocation2 + $0x8] sm:$0xf] %v1672_v24  ;;  %v1664_v27 = vadd.f32 %v1663_v26, %v1616_v25 }
 0x143   : > { %v4562_v28 = vpop.f32.mrf.mxu1 }
 0x144   : > { %1677 = vst [vmem:[#allocation2 + $0x10] sm:$0xff] %v1664_v27 }
 0x145   : > { %v1666_v30 = vpop.f32.mrf.mxu1 }
 0x146   : > { %v1667_v31 = vadd.f32 %v1666_v30, %v1619_v29 }
 0x148   : > { %1678 = vst [vmem:[#allocation2] sm:$0xff] %v1667_v31 }
 0x149 PF: > { %v1713_v33 = vld [vmem:[#allocation2 + $0x8] sm:$0xf]  ;;  %vm1720_vm5 = vcmask 1043456   ;;  %v4785_v36 = vld [vmem:[%s5229_s0 + $0xac] ss:$12 sps:$4 sm:$0xff]   ;;  %v5040_v2 = vmov 0   ;;  %s5958_s4 = scalar_lea.vmem %s5883_s9, %s5231_s24 }
 0x14a   : > { %v1721_v35 = vsel %vm1720_vm5, %v1713_v33, 0.0  ;;  %v4787_v37 = vld [vmem:[%s5229_s0 + $0xa8] ss:$12 sps:$4 sm:$0xff]   ;;  %v4788_v38 = vld [vmem:[%s5229_s0 + $0xb0] ss:$12 sps:$4 sm:$0xff]   ;;  %1950 = vmatprep.subr.bf16.mxu0 %v4785_v36  ;;  %1982 = vmatprep.mubr.bf16.mxu0 %v5040_v2  ;;  %s5954_s8 = sld [smem:[#allocation19_spill]] }
 0x14b   : > { %v1711_v32 = vld [vmem:[#allocation2 + $0x10] sm:$0xff]  ;;  %1722 = vadd.xlane.f32.xlu1 %v1721_v35  ;;  %4563 = vmatprep.subr.bf16.mxu1 %v4788_v38  ;;  %v4792_v54 = vld [vmem:[%s5229_s0 + $0x98] ss:$12 sps:$4 sm:$0xff]   ;;  %v4793_v55 = vld [vmem:[%s5229_s0 + $0x7c] ss:$12 sps:$4 sm:$0xff]   ;;  %s5956_s2 = sld [smem:[#allocation16_spill]] }
 0x14c   : > { %1716 = vadd.xlane.f32.xlu0 %v1711_v32  ;;  %1951 = vmatpush1.bf16.msra.mxu0 %v4787_v37  ;;  %v4789_v52 = vld [vmem:[%s5229_s0 + $0x94] ss:$12 sps:$4 sm:$0xff]   ;;  %v4791_v53 = vld [vmem:[%s5229_s0 + $0x90] ss:$12 sps:$4 sm:$0xff]   ;;  %v4795_v56 = vld [vmem:[%s5229_s0 + $0x78] ss:$12 sps:$4 sm:$0xff]  }
 0x14d   : > { %4564 = vmatpush3.bf16.msra.mxu1 %v4788_v38  ;;  %1952 = vmatprep.subr.bf16.mxu0 %v4789_v52  ;;  %v4796_v57 = vld [vmem:[%s5229_s0 + $0x80] ss:$12 sps:$4 sm:$0xff]   ;;  %v4797_v58 = vld [vmem:[%s5229_s0 + $0x64] ss:$12 sps:$4 sm:$0xff]   ;;  %v4800_v60 = vld [vmem:[%s5229_s0 + $0x68] ss:$12 sps:$4 sm:$0xff]   ;;  %v1807_v38 = vlaneseq }
 0x14e   : > { %4565 = vmatprep.subr.bf16.mxu1 %v4792_v54  ;;  %v4799_v59 = vld [vmem:[%s5229_s0 + $0x60] ss:$12 sps:$4 sm:$0xff]   ;;  %v4804_v62 = vld [vmem:[%s5229_s0 + $0x50] ss:$12 sps:$4 sm:$0xff]   ;;  %v4803_v63 = vld [vmem:[%s5229_s0 + $0x48] ss:$12 sps:$4 sm:$0xff]   ;;  %4784 = vset.pattern.permute.xlu1 %v5040_v2 }
 0x14f   : > { %v1712_v34 = vld [vmem:[#allocation2] sm:$0xff]  ;;  %v4801_v61 = vld [vmem:[%s5229_s0 + $0x4c] ss:$12 sps:$4 sm:$0xff]   ;;  %v4807_v3 = vld [vmem:[%s5229_s0 + $0x30] ss:$12 sps:$4 sm:$0xff]   ;;  %4783 = vset.pattern.permute.xlu0 %v5040_v2  ;;  %vm2181_vm6 = vcmask 1041408  }
 0x150   : > { %1718 = vadd.xlane.f32.xlu0 %v1712_v34  ;;  %1953 = vmatpush1.bf16.msra.mxu0 %v4791_v53  ;;  %v4805_v0 = vld [vmem:[%s5229_s0 + $0x34] ss:$12 sps:$4 sm:$0xff]   ;;  %v4808_v1 = vld [vmem:[%s5229_s0 + $0x38] ss:$12 sps:$4 sm:$0xff]   ;;  %v4809_v4 = vld [vmem:[%s5229_s0 + $0x1c] ss:$12 sps:$4 sm:$0xff]   ;;  %s5955_s20 = scalar_lea.vmem %s5954_s8, %s5210_s18 }
 0x151   : > { %4566 = vmatpush3.bf16.msra.mxu1 %v4792_v54  ;;  %1954 = vmatprep.subr.bf16.mxu0 %v4793_v55  ;;  %v4812_v5 = vld [vmem:[%s5229_s0 + $0x20] ss:$12 sps:$4 sm:$0xff]   ;;  %v4811_v6 = vld [vmem:[%s5229_s0 + $0x18] ss:$12 sps:$4 sm:$0xff]   ;;  %v4816_v8 = vld [vmem:[%s5229_s0 + $0x8] ss:$12 sps:$4 sm:$0xff]   ;;  %s5957_s11 = smov %s5956_s2 }
 0x152   : > { %4567 = vmatprep.subr.bf16.mxu1 %v4796_v57  ;;  %v4813_v7 = vld [vmem:[%s5229_s0 + $0x4] ss:$12 sps:$4 sm:$0xff]   ;;  %v4815_v9 = vld [vmem:[%s5229_s0] ss:$12 sps:$4 sm:$0xff]   ;;  %s5952_s0 = sld [smem:[#allocation18_spill]]  ;;  %vm2071_vm7 = vcmask 261120  }
 0x153   : > { %v4241_v27 = vld [vmem:[%s5955_s20] ss:$0 sm:$0xff]  ;;  %v1681_v35 = vld [vmem:[%s5956_s2 + $0x8] sm:$0xff]  ;;  %v1682_v37 = vld [vmem:[%s5957_s11 + $0x10] sm:$0xf]  ;;  %s5959_s19 = sld [smem:[#allocation17_spill]] }
 0x154   : > { %1955 = vmatpush1.bf16.msra.mxu0 %v4795_v56  ;;  %v1680_v36 = vld [vmem:[%s5957_s11] sm:$0xff]  ;;  %vm2138_vm10 = vcmask 162816   ;;  %vm2145_vm12 = vcmask 158720   ;;  %s5042_s23 = smov 96   ;;  %vm2235_vm13 = vcmask 257024   ;;  %vm2426_vm14 = vcmask 523520  }
 0x155   : > { %4568 = vmatpush3.bf16.msra.mxu1 %v4796_v57  ;;  %1956 = vmatprep.subr.bf16.mxu0 %v4797_v58  ;;  %vm2429_vm15 = vcmask 519424   ;;  %vm2614_vm0 = vcmask 785920   ;;  %vm2802_vm1 = vcmask 1048320   ;;  %vm2617_vm2 = vcmask 781824   ;;  %s5961_s8 = sld [smem:[#allocation22_spill]] }
 0x156   : > { %4569 = vmatprep.subr.bf16.mxu1 %v4800_v60  ;;  %vm2805_vm3 = vcmask 1044224   ;;  %s5963_s2 = sld [smem:[#allocation23_spill]] }
 0x157   : > { %s5965_s14 = sld [smem:[#allocation24_spill]] }
 0x158   : > { %1957 = vmatpush1.bf16.msra.mxu0 %v4799_v59  ;;  %s5953_s30 = scalar_lea.vmem %s5952_s0, %s5210_s18  ;;  %s5043_s0 = smov 64  }
 0x159   : > { %4570 = vmatpush3.bf16.msra.mxu1 %v4800_v60  ;;  %1958 = vmatprep.subr.bf16.mxu0 %v4801_v61  ;;  %v4240_v21 = vld [vmem:[%s5953_s30] ss:$0 sm:$0xff]  ;;  %s5044_s30 = smov 32   ;;  %s5967_s7 = sld [smem:[#allocation10_spill]] }
 0x15a   : > { %4571 = vmatprep.subr.bf16.mxu1 %v4804_v62  ;;  %s5968_s27 = sld [smem:[#allocation26_spill]] }
 0x15b   : > { %s5962_s20 = scalar_lea.vmem %s5961_s8, %s5210_s18 }
 0x15c   : > { %1959 = vmatpush1.bf16.msra.mxu0 %v4803_v63  ;;  %s5964_s16 = scalar_lea.vmem %s5963_s2, %s5210_s18 }
 0x15d   : > { %4572 = vmatpush3.bf16.msra.mxu1 %v4804_v62  ;;  %1960 = vmatprep.subr.bf16.mxu0 %v4805_v0  ;;  %s5966_s21 = scalar_lea.vmem %s5965_s14, %s5210_s18  ;;  %s5971_s18 = sld [smem:[#allocation4_spill]] }
 0x15e   : > { %4573 = vmatprep.subr.bf16.mxu1 %v4808_v1 }
 0x160   : > { %1961 = vmatpush1.bf16.msra.mxu0 %v4807_v3 }
 0x161   : > { %4574 = vmatpush3.bf16.msra.mxu1 %v4808_v1  ;;  %1962 = vmatprep.subr.bf16.mxu0 %v4809_v4 }
 0x162   : > { %4575 = vmatprep.subr.bf16.mxu1 %v4812_v5 }
 0x163   : > { %p4358_p8 = scmp.ne.s32.totalorder %s5971_s18, 1 }
 0x164   : > { %1963 = vmatpush1.bf16.msra.mxu0 %v4811_v6 }
 0x165   : > { %4576 = vmatpush3.bf16.msra.mxu1 %v4812_v5  ;;  %1964 = vmatprep.subr.bf16.mxu0 %v4813_v7 }
 0x166   : > { %4577 = vmatprep.subr.bf16.mxu1 %v4816_v8 }
 0x168   : > { %1965 = vmatpush1.bf16.msra.mxu0 %v4815_v9 }
 0x169   : > { %4578 = vmatpush3.bf16.msra.mxu1 %v4816_v8 }
 0x1d4   : > { %v1723_v41 = vpop.xlane.xlu1 %1722 }
 0x1d5   : > { %v1717_v39 = vpop.xlane.xlu0 %1716  ;;  %v1727_v42 = vmul.f32 0.0078125, %v1723_v41  ;;  %v1805_v41 = vld [vmem:[%s5958_s4] sm:$0x7] }
 0x1d6   : > { %v1725_v40 = vmul.f32 0.0078125, %v1717_v39  ;;  %v5425_v39 = vshrl.u32 %v1807_v38, 7 }
 0x1d7   : > { %v5367_v44 = vsub.f32 %v1713_v33, %v1727_v42 }
 0x1d8   : > { %v5365_v43 = vsub.f32 %v1711_v32, %v1725_v40  ;;  %v1817_v40 = vsub.s32 2, %v5425_v39  ;;  %v1809_v42 = vsub.s32 0, %v5425_v39  ;;  %v1813_v53 = vsub.s32 1, %v5425_v39 }
 0x1d9   : > { %v1719_v45 = vpop.xlane.xlu0 %1718  ;;  %v1733_v48 = vmul.f32 %v5367_v44, %v5367_v44 }
 0x1da   : > { %v1726_v46 = vmul.f32 0.0078125, %v1719_v45  ;;  %v1731_v47 = vmul.f32 %v5365_v43, %v5365_v43  ;;  %v1810_v45 = vrot.slane %v1805_v41, %v1809_v42  ;;  %v1814_v63 = vrot.slane %v1805_v41, %v1813_v53 }
 0x1db   : > { %v1738_v50 = vsel %vm1720_vm5, %v1733_v48, 0.0 }
 0x1dc   : > { %v5373_v49 = vsub.f32 %v1712_v34, %v1726_v46  ;;  %1734 = vadd.xlane.f32.xlu1 %v1731_v47 }
 0x1de   : > { %v1732_v51 = vmul.f32 %v5373_v49, %v5373_v49 }
 0x1e0   : > { %1739 = vadd.xlane.f32.xlu1 %v1738_v50  ;;  %1736 = vadd.xlane.f32.xlu0 %v1732_v51 }
 0x1f1   : > { %1691 = vperm.xlu1 %4784, %v1681_v35  }
 0x1f5   : > { %1696 = vperm.xlu1 %4784, %v1682_v37  }
 0x1f6   : > { %1686 = vperm.xlu0 %4783, %v1680_v36  }
 0x265   : > { %v1735_v10 = vpop.xlane.xlu1 %1734 }
 0x266   : > { %v1741_v11 = vmul.f32 0.0078125, %v1735_v10 }
 0x268   : > { %v1744_v12 = vadd.f32 1e-05, %v1741_v11 }
 0x269   : > { %v1740_v13 = vpop.xlane.xlu1 %1739  ;;  %v1737_v14 = vpop.xlane.xlu0 %1736 }
 0x26a   : > { %4905 = vrsqrt.f32 %v1744_v12  ;;  %v1743_v15 = vmul.f32 0.0078125, %v1740_v13  ;;  %v1742_v16 = vmul.f32 0.0078125, %v1737_v14 }
 0x26c   : > { %v1746_v17 = vadd.f32 1e-05, %v1743_v15  ;;  %v1745_v18 = vadd.f32 1e-05, %v1742_v16  ;;  %v4239_v16 = vld [vmem:[%s5959_s19] ss:$0 sm:$0xff]  ;;  %s5969_s19 = scalar_lea.vmem %s5968_s27, %s5967_s7 }
 0x26d   : > { %v1692_v14 = vpop.permute.xlu1 %1691 }
 0x26e   : > { %4907 = vrsqrt.f32 %v1746_v17  ;;  %vm1706_vm11 = vcmp.eq.f32.partialorder %v1692_v14, %v4239_v16 }
 0x26f   : > { %4909 = vrsqrt.f32 %v1745_v18 }
 0x271   : > { %v1687_v15 = vpop.permute.xlu0 %1686  ;;  %v1697_v17 = vpop.permute.xlu1 %1696 }
 0x272   : > { %vm1705_vm8 = vcmp.eq.f32.partialorder %v1687_v15, %v4239_v16  ;;  %vm1707_vm9 = vcmp.eq.f32.partialorder %v1697_v17, %v4239_v16 }
 0x277   : > { %v4906_v19 = vpop.eup %4905 }
 0x278   : > { %v1750_v20 = vmul.f32 %v4906_v19, %v5365_v43  ;;  %v1818_v43 = vrot.slane %v1805_v41, %v1817_v40 }
 0x27a   : > { %v1759_v26 = vmul.f32 %v4240_v21, %v1750_v20  ;;  %v5041_v20 = vmov -1e+09  }
 0x27b   : > { %v4908_v22 = vpop.eup %4907 }
 0x27c   : > { %v4910_v23 = vpop.eup %4909  ;;  %v1752_v24 = vmul.f32 %v4908_v22, %v5367_v44  ;;  %v1768_v31 = vadd.f32 %v4241_v27, %v1759_v26 }
 0x27d   : > { %v1751_v25 = vmul.f32 %v4910_v23, %v5373_v49 }
 0x27e   : > { %v1761_v28 = vmul.f32 %v4240_v21, %v1752_v24  ;;  %v5476_v24 = vsel %vm1707_vm9, 0.0, %v5041_v20 }
 0x27f   : > { %v1760_v29 = vmul.f32 %v4240_v21, %v1751_v25  ;;  %v5474_v21 = vsel %vm1705_vm8, 0.0, %v5041_v20 }
 0x280   : > { %v1770_v30 = vadd.f32 %v4241_v27, %v1761_v28 }
 0x281   : > { %v1769_v32 = vadd.f32 %v4241_v27, %v1760_v29 }
 0x282   : > { %v1804_v33 = vpack.c.bf16 %v1770_v30, %v1770_v30 }
 0x283   : > { %v1803_v34 = vpack.c.bf16 %v1769_v32, %v1768_v31  ;;  %v5481_v31 = vsel %vm1706_vm11, 0.0, %v5041_v20 }
 0x285   : > { %1983 = vmatmul.mubr.bf16.vlgmr.msra.gmra.mxu0 %v1803_v34  ;;  %4579 = vmatprep.mubr.bf16.mxu1 %v1803_v34 }
 0x286   : > { %4580 = vmatmul.mubr.bf16.vlgmr.msra.gmra.mxu1 %v1804_v33  ;;  %1992 = vmatprep.mubr.bf16.mxu0 %v5040_v2 }
 0x28d   : > { %1993 = vmatmul.mubr.bf16.gmra.mxu0 %v1804_v33 }
 0x345   : > { %v1984_v44 = vpop.f32.mrf.mxu0 }
 0x346   : > { %v4581_v46 = vpop.f32.mrf.mxu1  ;;  %v1985_v52 = vadd.f32 %v1984_v44, %v1810_v45 }
 0x347   : > { %v2044_v47 = vadd.f32 %v4581_v46, %v1818_v43  ;;  %v1986_v48 = vpop.f32.mrf.mxu0 }
 0x348   : > { %v2035_v49 = vpop.f32.mrf.mxu1  ;;  %v1987_v6 = vadd.f32 %v1986_v48, %v1814_v63 }
 0x349   : > { %v5438_v50 = vpack.c.bf16 %v2044_v47, %v2044_v47  ;;  %v1988_v51 = vpop.f32.mrf.mxu0  ;;  %v2036_v60 = vadd.f32 %v2035_v49, %v1818_v43 }
 0x34a   : > { %v1989_v54 = vadd.f32 %v1988_v51, %v1810_v45  ;;  %v4582_v55 = vpop.f32.mrf.mxu1 }
 0x34b   : > { %v1990_v56 = vpop.f32.mrf.mxu0  ;;  %4670 = vmatprep.subr.msk.bf16.mxu1 %vm2181_vm6, %v5438_v50  ;;  %v2183_v57 = vsel %vm2181_vm6, %v5438_v50, 0 }
 0x34c   : > { %v5445_v58 = vpack.c.bf16 %v1989_v54, %v1985_v52  ;;  %v2038_v59 = vpop.f32.mrf.mxu1  ;;  %4592 = vmatpush3.bf16.msra.mxu1 %v2183_v57  ;;  %v1991_v3 = vadd.f32 %v1990_v56, %v1814_v63 }
 0x34d   : > { %v2039_v61 = vadd.f32 %v2038_v59, %v1818_v43  ;;  %v1994_v62 = vpop.f32.mrf.mxu0 }
 0x34e   : > { %4587 = vmatprep.mubr.msk.bf16.mxu0 %vm2071_vm7, %v5445_v58  ;;  %v5457_v9 = vpack.c.bf16 %v1991_v3, %v1987_v6  ;;  %v1995_v12 = vadd.f32 %v1994_v62, %v1810_v45 }
 0x34f   : > { %v5451_v0 = vpack.c.bf16 %v2039_v61, %v2036_v60  ;;  %v1996_v1 = vpop.f32.mrf.mxu0 }
 0x350   : > { %v1997_v4 = vadd.f32 %v1996_v1, %v1814_v63  ;;  %v2079_v11 = vsel %vm2071_vm7, %v5457_v9, 0  ;;  %v5467_v13 = vpack.c.bf16 %v1995_v12, %v1995_v12 }
 0x351   : > { %v1998_v5 = vpop.f32.mrf.mxu0  ;;  %4593 = vmatprep.subr.bf16.mxu1 %v5451_v0 }
 0x352   : > { %v5454_v7 = vpack.c.bf16 %v1997_v4, %v1997_v4  ;;  %4594 = vmatpush3.bf16.msra.mxu1 %v5451_v0 }
 0x353   : > { %v1999_v8 = vpop.f32.mrf.mxu0 }
 0x354   : > { %4668 = vmatprep.subr.msk.bf16.mxu0 %vm2071_vm7, %v5454_v7  ;;  %v2082_v10 = vsel %vm2071_vm7, %v5454_v7, 0 }
 0x355   : > { %4584 = vmatpush3.bf16.xpose.msra.mxu0 %v2082_v10 }
 0x356   : > { %4669 = vmatprep.subr.msk.bf16.mxu0 %vm2071_vm7, %v5457_v9 }
 0x35d   : > { %4586 = vmatpush3.bf16.xpose.msra.mxu0 %v2079_v11 }
 0x364   : > { %4588 = vmatmul.mubr.msk.bf16.vlgmr.msra.gmra.mxu0 %vm2071_vm7, %v5467_v13 }
 0x424   : > { %v4589_v18 = vpop.f32.mrf.mxu0 }
 0x425   : > { %v2134_v22 = vmul.f32 0.17677669, %v4589_v18 }
 0x426   : > { %v2118_v19 = vpop.f32.mrf.mxu0 }
 0x427   : > { %v2132_v23 = vmul.f32 0.17677669, %v2118_v19  ;;  %v2137_v30 = vadd.f32 %v2134_v22, %v5476_v24 }
 0x428   : > { %v4590_v25 = vpop.f32.mrf.mxu0 }
 0x429   : > { %v2135_v26 = vadd.f32 %v2132_v23, %v5474_v21  ;;  %v2146_v34 = vsel %vm2145_vm12, %v2137_v30, -inf }
 0x42a   : > { %v2121_v27 = vpop.f32.mrf.mxu0 }
 0x42b   : > { %v2133_v28 = vmul.f32 0.17677669, %v2121_v27  ;;  %v2139_v29 = vsel %vm2138_vm10, %v2135_v26, -inf }
 0x42c   : > { %2140 = vmax.xlane.f32.xlu1 %v2139_v29 }
 0x42d   : > { %v2136_v32 = vadd.f32 %v2133_v28, %v5481_v31 }
 0x42f   : > { %v2142_v33 = vsel %vm2138_vm10, %v2136_v32, -inf }
 0x430   : > { %2143 = vmax.xlane.f32.xlu0 %v2142_v33  ;;  %2147 = vmax.xlane.f32.xlu1 %v2146_v34 }
 0x446   : > { %2245 = vrot.lane.b32.xlu0 %v5457_v9, %s5042_s23 }
 0x44a   : > { %2241 = vrot.lane.b32.xlu0 %v5467_v13, %s5042_s23 }
 0x44e   : > { %2431 = vrot.lane.b32.xlu0 %v5445_v58, %s5043_s0 }
 0x4b5   : > { %v2141_v35 = vpop.xlane.xlu1 %2140 }
 0x4b6   : > { %v2149_v36 = vsub.f32 %v2135_v26, %v2141_v35 }
 0x4b8   : > { %v2152_v43 = vmul.f32 1.442695, %v2149_v36 }
 0x4b9   : > { %v2148_v37 = vpop.xlane.xlu1 %2147  ;;  %v2144_v38 = vpop.xlane.xlu0 %2143 }
 0x4ba   : > { %v2151_v41 = vsub.f32 %v2137_v30, %v2148_v37  ;;  %v2150_v45 = vsub.f32 %v2136_v32, %v2144_v38 }
 0x4bc   : > { %v2156_v44 = vmul.f32 1.442695, %v2151_v41  ;;  %v2154_v46 = vmul.f32 1.442695, %v2150_v45 }
 0x4bd   : > { %v2246_v10 = vpop.permute.xlu0 %2245 }
 0x4be   : > { %4911 = vpow2.f32 %v2156_v44  ;;  %v2256_v11 = vsel %vm2071_vm7, %v2246_v10, 0 }
 0x4bf   : > { %4913 = vpow2.f32 %v2152_v43 }
 0x4c0   : > { %4915 = vpow2.f32 %v2154_v46 }
 0x4c1   : > { %v2242_v14 = vpop.permute.xlu0 %2241 }
 0x4c5   : > { %v2432_v15 = vpop.permute.xlu0 %2431 }
 0x4cb   : > { %v4912_v47 = vpop.eup %4911 }
 0x4cc   : > { %v2164_v48 = vsel %vm2145_vm12, %v4912_v47, 0.0  ;;  %v4914_v49 = vpop.eup %4913 }
 0x4cd   : > { %2165 = vadd.xlane.f32.xlu1 %v2164_v48  ;;  %v2158_v51 = vsel %vm2138_vm10, %v4914_v49, 0.0  ;;  %v4916_v52 = vpop.eup %4915 }
 0x4ce   : > { %v2161_v54 = vsel %vm2138_vm10, %v4916_v52, 0.0 }
 0x4d1   : > { %2159 = vadd.xlane.f32.xlu1 %v2158_v51 }
 0x4d5   : > { %2162 = vadd.xlane.f32.xlu1 %v2161_v54 }
 0x4e6   : > { %2247 = vrot.lane.b32.xlu1 %v5454_v7, %s5042_s23 }
 0x4ea   : > { %2239 = vrot.lane.b32.xlu1 %v5445_v58, %s5042_s23 }
 0x4ee   : > { %2437 = vrot.lane.b32.xlu1 %v5454_v7, %s5043_s0 }
 0x4f2   : > { %2435 = vrot.lane.b32.xlu1 %v5457_v9, %s5043_s0 }
 0x4f6   : > { %2433 = vrot.lane.b32.xlu1 %v5467_v13, %s5043_s0 }
 0x556   : > { %v2166_v55 = vpop.xlane.xlu1 %2165 }
 0x557   : > { %4917 = vrcp.f32 %v2166_v55 }
 0x55a   : > { %v2160_v56 = vpop.xlane.xlu1 %2159 }
 0x55b   : > { %4919 = vrcp.f32 %v2160_v56 }
 0x55e   : > { %v2163_v57 = vpop.xlane.xlu1 %2162 }
 0x55f   : > { %4921 = vrcp.f32 %v2163_v57 }
 0x562   : > { %v2248_v59 = vpop.permute.xlu1 %2247 }
 0x563   : > { %4671 = vmatprep.subr.msk.bf16.mxu1 %vm2071_vm7, %v2248_v59  ;;  %v2259_v6 = vsel %vm2071_vm7, %v2248_v59, 0 }
 0x564   : > { %v4918_v60 = vpop.eup %4917 }
 0x565   : > { %v2172_v63 = vmul.f32 %v4918_v60, %v4912_v47 }
 0x566   : > { %v2240_v8 = vpop.permute.xlu1 %2239 }
 0x567   : > { %v2174_v5 = vpack.c.bf16 %v2172_v63, %v2172_v63 }
 0x568   : > { %v4920_v61 = vpop.eup %4919 }
 0x569   : > { %v2170_v1 = vmul.f32 %v4920_v61, %v4914_v49 }
 0x56a   : > { %v2438_v12 = vpop.permute.xlu1 %2437 }
 0x56b   : > { %v2449_v16 = vsel %vm2071_vm7, %v2438_v12, 0 }
 0x56c   : > { %v4922_v62 = vpop.eup %4921 }
 0x56d   : > { %v2171_v3 = vmul.f32 %v4922_v62, %v4916_v52 }
 0x56e   : > { %v2436_v17 = vpop.permute.xlu1 %2435 }
 0x56f   : > { %v2173_v4 = vpack.c.bf16 %v2171_v3, %v2170_v1  ;;  %v2446_v18 = vsel %vm2071_vm7, %v2436_v17, 0 }
 0x571   : > { %4595 = vmatprep.mubr.msk.bf16.mxu1 %vm2138_vm10, %v2173_v4 }
 0x572   : > { %4596 = vmatmul.mubr.msk.bf16.vlgmr.msra.gmra.mxu1 %vm2138_vm10, %v2174_v5  ;;  %v2434_v19 = vpop.permute.xlu1 %2433 }
 0x573   : > { %4600 = vmatpush3.bf16.xpose.msra.mxu1 %v2259_v6  ;;  %4603 = vmatprep.mubr.msk.bf16.mxu1 %vm2071_vm7, %v2240_v8 }
 0x574   : > { %4672 = vmatprep.subr.msk.bf16.mxu1 %vm2071_vm7, %v2246_v10 }
 0x57b   : > { %4602 = vmatpush3.bf16.xpose.msra.mxu1 %v2256_v11 }
 0x57c   : > { %4674 = vmatprep.subr.msk.bf16.mxu1 %vm2071_vm7, %v2438_v12 }
 0x582   : > { %4604 = vmatmul.mubr.msk.bf16.vlgmr.msra.gmra.mxu1 %vm2071_vm7, %v2242_v14 }
 0x583   : > { %4616 = vmatpush3.bf16.xpose.msra.mxu1 %v2449_v16  ;;  %4619 = vmatprep.mubr.msk.bf16.mxu1 %vm2071_vm7, %v2432_v15 }
 0x584   : > { %4675 = vmatprep.subr.msk.bf16.mxu1 %vm2071_vm7, %v2436_v17 }
 0x58b   : > { %4618 = vmatpush3.bf16.xpose.msra.mxu1 %v2446_v18 }
 0x592   : > { %4620 = vmatmul.mubr.msk.bf16.vlgmr.msra.gmra.mxu1 %vm2071_vm7, %v2434_v19 }
 0x632   : > { %v4597_v20 = vpop.f32.mrf.mxu1 }
 0x633   : > { %2236 = vst.msk [vmem:[#allocation3 + $0x10] sm:$0xf] %vm2235_vm13, %v4597_v20 }
 0x634   : > { %v2219_v22 = vpop.f32.mrf.mxu1 }
 0x635   : > { %2233 = vst.msk [vmem:[#allocation3] sm:$0xff] %vm2071_vm7, %v2219_v22 }
 0x636   : > { %v4598_v23 = vpop.f32.mrf.mxu1 }
 0x638   : > { %v2222_v25 = vpop.f32.mrf.mxu1 }
 0x639   : > { %2234 = vst.msk [vmem:[#allocation3 + $0x8] sm:$0xff] %vm2071_vm7, %v2222_v25 }
 0x642   : > { %v4605_v26 = vpop.f32.mrf.mxu1 }
 0x643   : > { %v2311_v8 = vmul.f32 0.17677669, %v4605_v26 }
 0x644   : > { %v2295_v27 = vpop.f32.mrf.mxu1 }
 0x645   : > { %v2309_v5 = vmul.f32 0.17677669, %v2295_v27 }
 0x646   : > { %v4606_v28 = vpop.f32.mrf.mxu1 }
 0x647   : > { %v2312_v10 = vadd.f32 %v2309_v5, %v5474_v21 }
 0x648   : > { %v2298_v29 = vpop.f32.mrf.mxu1 }
 0x649   : > { %v2310_v6 = vmul.f32 0.17677669, %v2298_v29 }
 0x64b   : > { %v2313_v11 = vadd.f32 %v2310_v6, %v5481_v31 }
 0x652   : > { %v4621_v30 = vpop.f32.mrf.mxu1 }
 0x653   : > { %v2501_v33 = vmul.f32 0.17677669, %v4621_v30 }
 0x654   : > { %v2485_v32 = vpop.f32.mrf.mxu1 }
 0x655   : > { %v2499_v34 = vmul.f32 0.17677669, %v2485_v32  ;;  %v2504_v43 = vadd.f32 %v2501_v33, %v5476_v24 }
 0x656   : > { %v4622_v35 = vpop.f32.mrf.mxu1 }
 0x657   : > { %v2502_v36 = vadd.f32 %v2499_v34, %v5474_v21  ;;  %v2511_v45 = vsel %vm2145_vm12, %v2504_v43, -inf }
 0x658   : > { %v2488_v37 = vpop.f32.mrf.mxu1 }
 0x659   : > { %v2500_v38 = vmul.f32 0.17677669, %v2488_v37  ;;  %v2505_v41 = vsel %vm2138_vm10, %v2502_v36, -inf }
 0x65a   : > { %2506 = vmax.xlane.f32.xlu0 %v2505_v41 }
 0x65b   : > { %v2503_v44 = vadd.f32 %v2500_v38, %v5481_v31 }
 0x65d   : > { %v2508_v46 = vsel %vm2138_vm10, %v2503_v44, -inf }
 0x65e   : > { %2512 = vmax.xlane.f32.xlu0 %v2511_v45  ;;  %2509 = vmax.xlane.f32.xlu1 %v2508_v46 }
 0x66f   : > { %2542 = vrot.lane.b32.xlu1 %v5438_v50, %s5043_s0 }
 0x6e3   : > { %v2507_v47 = vpop.xlane.xlu0 %2506 }
 0x6e4   : > { %v2514_v48 = vsub.f32 %v2502_v36, %v2507_v47 }
 0x6e6   : > { %v2517_v55 = vmul.f32 1.442695, %v2514_v48 }
 0x6e7   : > { %v2513_v49 = vpop.xlane.xlu0 %2512  ;;  %v2510_v51 = vpop.xlane.xlu1 %2509 }
 0x6e8   : > { %v2516_v52 = vsub.f32 %v2504_v43, %v2513_v49  ;;  %v2515_v54 = vsub.f32 %v2503_v44, %v2510_v51 }
 0x6ea   : > { %v2521_v56 = vmul.f32 1.442695, %v2516_v52  ;;  %v2519_v57 = vmul.f32 1.442695, %v2515_v54 }
 0x6eb   : > { %v2543_v59 = vpop.permute.xlu1 %2542 }
 0x6ec   : > { %4923 = vpow2.f32 %v2521_v56  ;;  %v2552_v60 = vsel %vm2181_vm6, %v2543_v59, 0  ;;  %4676 = vmatprep.subr.msk.bf16.mxu1 %vm2181_vm6, %v2543_v59 }
 0x6ed   : > { %4925 = vpow2.f32 %v2519_v57  ;;  %4624 = vmatpush3.bf16.msra.mxu1 %v2552_v60 }
 0x6ee   : > { %4927 = vpow2.f32 %v2517_v55 }
 0x6f9   : > { %v4924_v61 = vpop.eup %4923 }
 0x6fa   : > { %v4926_v62 = vpop.eup %4925  ;;  %v2529_v63 = vsel %vm2145_vm12, %v4924_v61, 0.0 }
 0x6fb   : > { %v4928_v1 = vpop.eup %4927  ;;  %2530 = vadd.xlane.f32.xlu0 %v2529_v63  ;;  %v2526_v3 = vsel %vm2138_vm10, %v4926_v62, 0.0 }
 0x6fc   : > { %2527 = vadd.xlane.f32.xlu1 %v2526_v3  ;;  %v2523_v4 = vsel %vm2138_vm10, %v4928_v1, 0.0 }
 0x6ff   : > { %2524 = vadd.xlane.f32.xlu0 %v2523_v4 }
 0x70d   : > { %2625 = vrot.lane.b32.xlu1 %v5454_v7, %s5044_s30  ;;  %v2315_v7 = vsel %vm2138_vm10, %v2312_v10, -inf }
 0x711   : > { %2623 = vrot.lane.b32.xlu1 %v5457_v9, %s5044_s30  ;;  %v2314_v9 = vadd.f32 %v2311_v8, %v5476_v24 }
 0x713   : > { %v2321_v12 = vsel %vm2145_vm12, %v2314_v9, -inf }
 0x715   : > { %2621 = vrot.lane.b32.xlu1 %v5467_v13, %s5044_s30  ;;  %2540 = vrot.lane.b32.xlu0 %v5451_v0, %s5043_s0  ;;  %v2318_v13 = vsel %vm2138_vm10, %v2313_v11, -inf }
 0x719   : > { %2619 = vrot.lane.b32.xlu0 %v5445_v58, %s5044_s30 }
 0x738   : > { %2316 = vmax.xlane.f32.xlu0 %v2315_v7 }
 0x739   : > { %2319 = vmax.xlane.f32.xlu1 %v2318_v13 }
 0x73c   : > { %2322 = vmax.xlane.f32.xlu0 %v2321_v12 }
 0x784   : > { %v2531_v14 = vpop.xlane.xlu0 %2530 }
 0x785   : > { %v2528_v58 = vpop.xlane.xlu1 %2527  ;;  %4929 = vrcp.f32 %v2531_v14 }
 0x786   : > { %4931 = vrcp.f32 %v2528_v58 }
 0x788   : > { %v2525_v15 = vpop.xlane.xlu0 %2524 }
 0x789   : > { %4933 = vrcp.f32 %v2525_v15  ;;  %v2626_v17 = vpop.permute.xlu1 %2625 }
 0x78a   : > { %v2637_v28 = vsel %vm2071_vm7, %v2626_v17, 0 }
 0x78c   : > { %v2541_v16 = vpop.permute.xlu0 %2540 }
 0x78d   : > { %4625 = vmatprep.subr.bf16.mxu1 %v2541_v16  ;;  %v2624_v30 = vpop.permute.xlu1 %2623 }
 0x78e   : > { %4626 = vmatpush3.bf16.msra.mxu1 %v2541_v16  ;;  %v2634_v32 = vsel %vm2071_vm7, %v2624_v30, 0 }
 0x78f   : > { %4677 = vmatprep.subr.msk.bf16.mxu1 %vm2071_vm7, %v2626_v17 }
 0x790   : > { %v2620_v29 = vpop.permute.xlu0 %2619 }
 0x791   : > { %v2622_v33 = vpop.permute.xlu1 %2621 }
 0x792   : > { %v4930_v18 = vpop.eup %4929 }
 0x793   : > { %v4932_v19 = vpop.eup %4931  ;;  %v2537_v22 = vmul.f32 %v4930_v18, %v4924_v61 }
 0x794   : > { %v2536_v25 = vmul.f32 %v4932_v19, %v4926_v62 }
 0x795   : > { %v2539_v27 = vpack.c.bf16 %v2537_v22, %v2537_v22 }
 0x796   : > { %v4934_v20 = vpop.eup %4933 }
 0x797   : > { %v2535_v23 = vmul.f32 %v4934_v20, %v4928_v1 }
 0x799   : > { %v2538_v26 = vpack.c.bf16 %v2536_v25, %v2535_v23 }
 0x79b   : > { %4627 = vmatprep.mubr.msk.bf16.mxu1 %vm2138_vm10, %v2538_v26 }
 0x79c   : > { %4628 = vmatmul.mubr.msk.bf16.vlgmr.msra.gmra.mxu1 %vm2138_vm10, %v2539_v27 }
 0x79d   : > { %4632 = vmatpush3.bf16.xpose.msra.mxu1 %v2637_v28  ;;  %4635 = vmatprep.mubr.msk.bf16.mxu1 %vm2071_vm7, %v2620_v29 }
 0x79e   : > { %4678 = vmatprep.subr.msk.bf16.mxu1 %vm2071_vm7, %v2624_v30 }
 0x7a5   : > { %4634 = vmatpush3.bf16.xpose.msra.mxu1 %v2634_v32 }
 0x7ac   : > { %4636 = vmatmul.mubr.msk.bf16.vlgmr.msra.gmra.mxu1 %vm2071_vm7, %v2622_v33 }
 0x7ad   : > { %3224 = vmatprep.mubr.bf16.mxu1 %v5040_v2 }
 0x7c1   : > { %v2317_v35 = vpop.xlane.xlu0 %2316 }
 0x7c2   : > { %v2320_v37 = vpop.xlane.xlu1 %2319  ;;  %v2324_v41 = vsub.f32 %v2312_v10, %v2317_v35 }
 0x7c3   : > { %v2325_v43 = vsub.f32 %v2313_v11, %v2320_v37 }
 0x7c4   : > { %v2327_v45 = vmul.f32 1.442695, %v2324_v41 }
 0x7c5   : > { %v2323_v44 = vpop.xlane.xlu0 %2322  ;;  %v2329_v46 = vmul.f32 1.442695, %v2325_v43 }
 0x7c6   : > { %v2326_v47 = vsub.f32 %v2314_v9, %v2323_v44  ;;  %4935 = vpow2.f32 %v2327_v45 }
 0x7c7   : > { %4937 = vpow2.f32 %v2329_v46 }
 0x7c8   : > { %v2331_v49 = vmul.f32 1.442695, %v2326_v47 }
 0x7ca   : > { %4939 = vpow2.f32 %v2331_v49 }
 0x7d3   : > { %v4936_v1 = vpop.eup %4935 }
 0x7d4   : > { %v4938_v5 = vpop.eup %4937  ;;  %v2333_v6 = vsel %vm2138_vm10, %v4936_v1, 0.0 }
 0x7d7   : > { %v4940_v8 = vpop.eup %4939 }
 0x85c   : > { %v5559_v34 = vpop.f32.mrf.mxu1 }
 0x85e   : > { %v5561_v36 = vpop.f32.mrf.mxu1 }
 0x860   : > { %v4630_v38 = vpop.f32.mrf.mxu1 }
 0x862   : > { %v5563_v48 = vpop.f32.mrf.mxu1 }
 0x86c   : > { %v4637_v51 = vpop.f32.mrf.mxu1 }
 0x86d   : > { %v2689_v54 = vmul.f32 0.17677669, %v4637_v51 }
 0x86e   : > { %v2673_v52 = vpop.f32.mrf.mxu1 }
 0x86f   : > { %v2687_v55 = vmul.f32 0.17677669, %v2673_v52  ;;  %v2692_v62 = vadd.f32 %v2689_v54, %v5476_v24  ;;  %v2339_v24 = vsel %vm2145_vm12, %v4940_v8, 0.0 }
 0x870   : > { %v4638_v56 = vpop.f32.mrf.mxu1 }
 0x871   : > { %v2690_v57 = vadd.f32 %v2687_v55, %v5474_v21  ;;  %v2699_v3 = vsel %vm2145_vm12, %v2692_v62, -inf  ;;  %v2336_v21 = vsel %vm2138_vm10, %v4938_v5, 0.0 }
 0x872   : > { %v2676_v59 = vpop.f32.mrf.mxu1 }
 0x873   : > { %v2688_v60 = vmul.f32 0.17677669, %v2676_v59  ;;  %v2693_v61 = vsel %vm2138_vm10, %v2690_v57, -inf  ;;  %v4817_v59 = vld [vmem:[%s5240_s25 + $0x38] sm:$0xff]  }
 0x874   : > { %2694 = vmax.xlane.f32.xlu0 %v2693_v61  ;;  %v4819_v61 = vld [vmem:[%s5240_s25 + $0x28] sm:$0xff]  }
 0x875   : > { %v2691_v63 = vadd.f32 %v2688_v60, %v5481_v31  ;;  %v4818_v60 = vld [vmem:[%s5240_s25 + $0x30] sm:$0xff]  }
 0x877   : > { %v2696_v4 = vsel %vm2138_vm10, %v2691_v63, -inf }
 0x878   : > { %2700 = vmax.xlane.f32.xlu0 %v2699_v3  ;;  %2697 = vmax.xlane.f32.xlu1 %v2696_v4  ;;  %v4822_v4 = vld [vmem:[%s5240_s25 + $0x10] sm:$0xff]  }
 0x87c   : > { %2334 = vadd.xlane.f32.xlu1 %v2333_v6  ;;  %2337 = vadd.xlane.f32.xlu0 %v2336_v21  ;;  %v4823_v21 = vld [vmem:[%s5240_s25 + $0x8] sm:$0xff]  }
 0x880   : > { %2340 = vadd.xlane.f32.xlu1 %v2339_v24 }
 0x891   : > { %2354 = vrot.lane.b32.xlu1 %v5438_v50, %s5042_s23 }
 0x895   : > { %2730 = vrot.lane.b32.xlu1 %v5438_v50, %s5044_s30 }
 0x8fd   : > { %v2695_v31 = vpop.xlane.xlu0 %2694 }
 0x8fe   : > { %v2702_v10 = vsub.f32 %v2690_v57, %v2695_v31 }
 0x900   : > { %v2705_v11 = vmul.f32 1.442695, %v2702_v10 }
 0x901   : > { %v2701_v7 = vpop.xlane.xlu0 %2700  ;;  %v2698_v9 = vpop.xlane.xlu1 %2697 }
 0x902   : > { %v2704_v13 = vsub.f32 %v2692_v62, %v2701_v7  ;;  %v2703_v12 = vsub.f32 %v2691_v63, %v2698_v9  ;;  %4941 = vpow2.f32 %v2705_v11  ;;  %v4820_v62 = vld [vmem:[%s5240_s25 + $0x20] sm:$0xff]   ;;  %v4821_v63 = vld [vmem:[%s5240_s25 + $0x18] sm:$0xff]  }
 0x904   : > { %v2709_v14 = vmul.f32 1.442695, %v2704_v13  ;;  %v2707_v58 = vmul.f32 1.442695, %v2703_v12 }
 0x905   : > { %v2338_v15 = vpop.xlane.xlu0 %2337  ;;  %v2335_v16 = vpop.xlane.xlu1 %2334 }
 0x906   : > { %4943 = vpow2.f32 %v2709_v14 }
 0x907   : > { %4945 = vpow2.f32 %v2707_v58 }
 0x908   : > { %4947 = vrcp.f32 %v2338_v15 }
 0x909   : > { %4949 = vrcp.f32 %v2335_v16  ;;  %v2341_v17 = vpop.xlane.xlu1 %2340 }
 0x90a   : > { %4951 = vrcp.f32 %v2341_v17 }
 0x90d   : > { %v2355_v18 = vpop.permute.xlu1 %2354 }
 0x90e   : > { %v2364_v50 = vsel %vm2181_vm6, %v2355_v18, 0  ;;  %4673 = vmatprep.subr.msk.bf16.mxu0 %vm2181_vm6, %v2355_v18 }
 0x90f   : > { %4608 = vmatpush3.bf16.msra.mxu0 %v2364_v50  ;;  %v4942_v19 = vpop.eup %4941 }
 0x910   : > { %v2711_v30 = vsel %vm2138_vm10, %v4942_v19, 0.0 }
 0x911   : > { %v2731_v33 = vpop.permute.xlu1 %2730 }
 0x912   : > { %v2740_v46 = vsel %vm2181_vm6, %v2731_v33, 0 }
 0x913   : > { %v4944_v20 = vpop.eup %4943 }
 0x914   : > { %v4946_v22 = vpop.eup %4945  ;;  %v2717_v23 = vsel %vm2145_vm12, %v4944_v20, 0.0 }
 0x915   : > { %v4948_v25 = vpop.eup %4947  ;;  %2718 = vadd.xlane.f32.xlu0 %v2717_v23  ;;  %v2714_v26 = vsel %vm2138_vm10, %v4946_v22, 0.0 }
 0x916   : > { %v4950_v27 = vpop.eup %4949  ;;  %2715 = vadd.xlane.f32.xlu1 %v2714_v26  ;;  %v2346_v28 = vmul.f32 %v4948_v25, %v4938_v5  ;;  %v4290_v25 = vld [vmem:[%s5962_s20] ss:$0 sm:$0xff] }
 0x917   : > { %v2345_v29 = vmul.f32 %v4950_v27, %v4936_v1  ;;  %v4952_v38 = vpop.eup %4951 }
 0x918   : > { %v2347_v43 = vmul.f32 %v4952_v38, %v4940_v8  ;;  %v4824_v8 = vld [vmem:[%s5240_s25] sm:$0xff]   ;;  %s5960_s25 = sld [smem:[#allocation11_spill]] }
 0x919   : > { %v2348_v32 = vpack.c.bf16 %v2346_v28, %v2345_v29  ;;  %2712 = vadd.xlane.f32.xlu0 %v2711_v30  ;;  %v4990_v28 = vld [vmem:[#allocation2 + $0x8] sm:$0xf] }
 0x91a   : > { %v2349_v45 = vpack.c.bf16 %v2347_v43, %v2347_v43 }
 0x91b   : > { %4611 = vmatprep.mubr.msk.bf16.mxu0 %vm2138_vm10, %v2348_v32  ;;  %v4991_v32 = vld [vmem:[#allocation2] sm:$0xff] }
 0x91e   : > { %v4827_v43 = vld [vmem:[%s5960_s25 + $0xe4] ss:$16 sps:$4 sm:$0xff]  }
 0x91f   : > { %3192 = vmatprep.subr.bf16.mxu1 %v4827_v43 }
 0x927   : > { %2728 = vrot.lane.b32.xlu1 %v5451_v0, %s5044_s30 }
 0x92f   : > { %2352 = vrot.lane.b32.xlu0 %v5451_v0, %s5042_s23 }
 0x99e   : > { %v2719_v35 = vpop.xlane.xlu0 %2718 }
 0x99f   : > { %v2716_v37 = vpop.xlane.xlu1 %2715  ;;  %4953 = vrcp.f32 %v2719_v35 }
 0x9a0   : > { %4955 = vrcp.f32 %v2716_v37 }
 0x9a2   : > { %v2713_v41 = vpop.xlane.xlu0 %2712 }
 0x9a3   : > { %4957 = vrcp.f32 %v2713_v41  ;;  %v2729_v0 = vpop.permute.xlu1 %2728  ;;  %v4825_v41 = vld [vmem:[%s5960_s25 + $0xe0] ss:$16 sps:$4 sm:$0xff]  }
 0x9a4   : > { %3193 = vmatpush1.bf16.msra.mxu1 %v4825_v41  ;;  %v4291_v41 = vld [vmem:[%s5964_s16] ss:$0 sm:$0xff] }
 0x9a6   : > { %v2353_v44 = vpop.permute.xlu0 %2352 }
 0x9a7   : > { %4609 = vmatprep.subr.bf16.mxu0 %v2353_v44 }
 0x9a8   : > { %4610 = vmatpush3.bf16.msra.mxu0 %v2353_v44  ;;  %v4828_v44 = vld [vmem:[%s5960_s25 + $0xe8] ss:$16 sps:$4 sm:$0xff]  }
 0x9a9   : > { %4679 = vmatprep.subr.msk.bf16.mxu0 %vm2181_vm6, %v2731_v33 }
 0x9ab   : > { %4612 = vmatmul.mubr.msk.bf16.vlgmr.msra.gmra.mxu0 %vm2138_vm10, %v2349_v45  ;;  %v4830_v45 = vld [vmem:[%s5960_s25 + $0xec] ss:$16 sps:$4 sm:$0xff]  }
 0x9ac   : > { %4640 = vmatpush3.bf16.msra.mxu0 %v2740_v46  ;;  %v4954_v47 = vpop.eup %4953 }
 0x9ad   : > { %4641 = vmatprep.subr.bf16.mxu0 %v2729_v0  ;;  %v4956_v49 = vpop.eup %4955  ;;  %v2725_v52 = vmul.f32 %v4954_v47, %v4944_v20 }
 0x9ae   : > { %v2724_v55 = vmul.f32 %v4956_v49, %v4946_v22  ;;  %v4989_v22 = vld [vmem:[#allocation2 + $0x10] sm:$0xff] }
 0x9af   : > { %v2727_v57 = vpack.c.bf16 %v2725_v52, %v2725_v52 }
 0x9b0   : > { %v4958_v51 = vpop.eup %4957  ;;  %4642 = vmatpush3.bf16.msra.mxu0 %v2729_v0 }
 0x9b1   : > { %v2723_v54 = vmul.f32 %v4958_v51, %v4942_v19  ;;  %4647 = vmatprep.subr.bf16.mxu0 %v4817_v59 }
 0x9b3   : > { %v2726_v56 = vpack.c.bf16 %v2724_v55, %v2723_v54 }
 0x9b5   : > { %4643 = vmatprep.mubr.msk.bf16.mxu0 %vm2138_vm10, %v2726_v56 }
 0x9b6   : > { %4644 = vmatmul.mubr.msk.bf16.vlgmr.msra.gmra.mxu0 %vm2138_vm10, %v2727_v57 }
 0x9b7   : > { %4648 = vmatpush3.bf16.msra.mxu0 %v4817_v59 }
 0x9b8   : > { %4649 = vmatprep.subr.bf16.mxu0 %v4818_v60 }
 0x9bb   : > { %4650 = vmatpush3.bf16.msra.mxu0 %v4818_v60 }
 0x9bc   : > { %4651 = vmatprep.subr.bf16.mxu0 %v4819_v61 }
 0x9bf   : > { %4652 = vmatpush3.bf16.msra.mxu0 %v4819_v61 }
 0x9c0   : > { %4653 = vmatprep.subr.bf16.mxu0 %v4820_v62 }
 0x9c3   : > { %4654 = vmatpush3.bf16.msra.mxu0 %v4820_v62  ;;  %v4833_v62 = vld [vmem:[%s5960_s25 + $0xc4] ss:$16 sps:$4 sm:$0xff]  }
 0x9c4   : > { %4655 = vmatprep.subr.bf16.mxu0 %v4821_v63  ;;  %3194 = vmatprep.subr.bf16.mxu1 %v4833_v62  ;;  %v4876_v62 = vld [vmem:[%s5273_s17 + $0xb8] sm:$0xff]  }
 0x9c7   : > { %4656 = vmatpush3.bf16.msra.mxu0 %v4821_v63  ;;  %v4836_v63 = vld [vmem:[%s5960_s25 + $0xcc] ss:$16 sps:$4 sm:$0xff]  }
 0x9c8   : > { %4657 = vmatprep.subr.bf16.mxu0 %v4822_v4 }
 0x9cb   : > { %4658 = vmatpush3.bf16.msra.mxu0 %v4822_v4  ;;  %v4839_v4 = vld [vmem:[%s5960_s25 + $0xa4] ss:$16 sps:$4 sm:$0xff]  }
 0x9cc   : > { %4659 = vmatprep.subr.bf16.mxu0 %v4823_v21 }
 0x9cf   : > { %4660 = vmatpush3.bf16.msra.mxu0 %v4823_v21  ;;  %v4840_v21 = vld [vmem:[%s5960_s25 + $0xa8] ss:$16 sps:$4 sm:$0xff]  }
 0x9d0   : > { %4661 = vmatprep.subr.bf16.mxu0 %v4824_v8 }
 0x9d3   : > { %4662 = vmatpush3.bf16.msra.mxu0 %v4824_v8  ;;  %v4845_v8 = vld [vmem:[%s5960_s25 + $0x84] ss:$16 sps:$4 sm:$0xff]  }
 0x9d4   : > { %3243 = vmatprep.subr.bf16.mxu0 %v4830_v45 }
 0xa6b   : > { %v4613_v1 = vpop.f32.mrf.mxu0 }
 0xa6d   : > { %v2400_v3 = vpop.f32.mrf.mxu0 }
 0xa6e   : > { %2417 = vrot.lane.b32.xlu0 %v2400_v3, %s5044_s30  ;;  %v4834_v3 = vld [vmem:[%s5960_s25 + $0xc8] ss:$16 sps:$4 sm:$0xff]  }
 0xa6f   : > { %v4614_v5 = vpop.f32.mrf.mxu0 }
 0xa70   : > { %v4842_v5 = vld [vmem:[%s5960_s25 + $0xac] ss:$16 sps:$4 sm:$0xff]  }
 0xa71   : > { %v2403_v6 = vpop.f32.mrf.mxu0 }
 0xa72   : > { %2421 = vrot.lane.b32.xlu0 %v4613_v1, %s5044_s30  ;;  %2419 = vrot.lane.b32.xlu1 %v2403_v6, %s5044_s30  ;;  %v4831_v1 = vld [vmem:[%s5960_s25 + $0xc0] ss:$16 sps:$4 sm:$0xff]  }
 0xa73   : > { %3195 = vmatpush1.bf16.msra.mxu1 %v4831_v1  ;;  %v4837_v6 = vld [vmem:[%s5960_s25 + $0xa0] ss:$16 sps:$4 sm:$0xff]  }
 0xa74   : > { %3196 = vmatprep.subr.bf16.mxu1 %v4839_v4  ;;  %v4879_v1 = vld [vmem:[%s5273_s17 + $0x30] sm:$0xff]   ;;  %v4881_v4 = vld [vmem:[%s5273_s17 + $0x68] sm:$0xff]  }
 0xa76   : > { %2607 = vrot.lane.b32.xlu0 %v5563_v48, %s5043_s0  ;;  %2605 = vrot.lane.b32.xlu1 %v5561_v36, %s5043_s0  ;;  %v4645_v24 = vpop.f32.mrf.mxu0 }
 0xa77   : > { %3197 = vmatpush1.bf16.msra.mxu1 %v4837_v6  ;;  %v4883_v6 = vld [vmem:[%s5273_s17 + $0x28] sm:$0xff]  }
 0xa78   : > { %v2776_v31 = vpop.f32.mrf.mxu0  ;;  %3198 = vmatprep.subr.bf16.mxu1 %v4845_v8  ;;  %v4885_v8 = vld [vmem:[%s5273_s17 + $0x60] sm:$0xff]  }
 0xa7a   : > { %2609 = vrot.lane.b32.xlu1 %v5559_v34, %s5043_s0  ;;  %2793 = vrot.lane.b32.xlu0 %v2776_v31, %s5042_s23  ;;  %v4646_v10 = vpop.f32.mrf.mxu0  ;;  %v4843_v31 = vld [vmem:[%s5960_s25 + $0x80] ss:$16 sps:$4 sm:$0xff]  }
 0xa7b   : > { %v4846_v10 = vld [vmem:[%s5960_s25 + $0x88] ss:$16 sps:$4 sm:$0xff]   ;;  %3199 = vmatpush1.bf16.msra.mxu1 %v4843_v31  ;;  %v4887_v31 = vld [vmem:[%s5273_s17 + $0x20] sm:$0xff]  }
 0xa7c   : > { %v2779_v11 = vpop.f32.mrf.mxu0 }
 0xa7e   : > { %2797 = vrot.lane.b32.xlu0 %v4645_v24, %s5042_s23  ;;  %2795 = vrot.lane.b32.xlu1 %v2779_v11, %s5042_s23  ;;  %v4848_v24 = vld [vmem:[%s5960_s25 + $0x8c] ss:$16 sps:$4 sm:$0xff]   ;;  %v4851_v11 = vld [vmem:[%s5960_s25 + $0x64] ss:$16 sps:$4 sm:$0xff]  }
 0xa7f   : > { %3200 = vmatprep.subr.bf16.mxu1 %v4851_v11  ;;  %v4889_v11 = vld [vmem:[%s5273_s17 + $0x58] sm:$0xff]  }
 0xae0   : > { %v2418_v48 = vpop.permute.xlu0 %2417 }
 0xae1   : > { %2427 = vst.msk [vmem:[#allocation3] sm:$0xff] %vm2426_vm14, %v2418_v48  ;;  %v4849_v48 = vld [vmem:[%s5960_s25 + $0x60] ss:$16 sps:$4 sm:$0xff]  }
 0xae2   : > { %3201 = vmatpush1.bf16.msra.mxu1 %v4849_v48  ;;  %v4890_v48 = vld [vmem:[%s5273_s17 + $0xd8] sm:$0xff]  }
 0xae4   : > { %v2422_v36 = vpop.permute.xlu0 %2421  ;;  %v2420_v7 = vpop.permute.xlu1 %2419 }
 0xae5   : > { %2430 = vst.msk [vmem:[#allocation3 + $0x10] sm:$0xf] %vm2429_vm15, %v2422_v36  ;;  %v4852_v36 = vld [vmem:[%s5960_s25 + $0x68] ss:$16 sps:$4 sm:$0xff]  }
 0xae6   : > { %2428 = vst.msk [vmem:[#allocation3 + $0x8] sm:$0xff] %vm2426_vm14, %v2420_v7  ;;  %v4854_v7 = vld [vmem:[%s5960_s25 + $0x6c] ss:$16 sps:$4 sm:$0xff]  }
 0xae8   : > { %v2608_v9 = vpop.permute.xlu0 %2607  ;;  %v2606_v34 = vpop.permute.xlu1 %2605 }
 0xae9   : > { %2616 = vst.msk [vmem:[#allocation3 + $0x8] sm:$0xff] %vm2614_vm0, %v2608_v9  ;;  %2615 = vst.msk [vmem:[#allocation3] sm:$0xff] %vm2614_vm0, %v2606_v34  ;;  %v4857_v9 = vld [vmem:[%s5960_s25 + $0x44] ss:$16 sps:$4 sm:$0xff]   ;;  %v4860_v34 = vld [vmem:[%s5960_s25 + $0x4c] ss:$16 sps:$4 sm:$0xff]  }
 0xaea   : > { %3202 = vmatprep.subr.bf16.mxu1 %v4857_v9  ;;  %v4893_v9 = vld [vmem:[%s5273_s17 + $0x50] sm:$0xff]  }
 0xaec   : > { %v2794_v13 = vpop.permute.xlu0 %2793  ;;  %v2610_v12 = vpop.permute.xlu1 %2609 }
 0xaed   : > { %2803 = vst.msk [vmem:[#allocation3] sm:$0xff] %vm2802_vm1, %v2794_v13  ;;  %v4855_v13 = vld [vmem:[%s5960_s25 + $0x40] ss:$16 sps:$4 sm:$0xff]  }
 0xaee   : > { %2618 = vst.msk [vmem:[#allocation3 + $0x10] sm:$0xf] %vm2617_vm2, %v2610_v12  ;;  %v4858_v12 = vld [vmem:[%s5960_s25 + $0x48] ss:$16 sps:$4 sm:$0xff]   ;;  %3203 = vmatpush1.bf16.msra.mxu1 %v4855_v13  ;;  %v4895_v13 = vld [vmem:[%s5273_s17 + $0x10] sm:$0xff]  }
 0xaf0   : > { %v2798_v14 = vpop.permute.xlu0 %2797  ;;  %v2796_v58 = vpop.permute.xlu1 %2795 }
 0xaf1   : > { %2806 = vst.msk [vmem:[#allocation3 + $0x10] sm:$0xf] %vm2805_vm3, %v2798_v14  ;;  %v4863_v14 = vld [vmem:[%s5960_s25 + $0x24] ss:$16 sps:$4 sm:$0xff]  }
 0xaf2   : > { %2804 = vst.msk [vmem:[#allocation3 + $0x8] sm:$0xff] %vm2802_vm1, %v2796_v58  ;;  %v4866_v58 = vld [vmem:[%s5960_s25 + $0x2c] ss:$16 sps:$4 sm:$0xff]   ;;  %3204 = vmatprep.subr.bf16.mxu1 %v4863_v14 }
 0xaf3   : > { %v4897_v14 = vld [vmem:[%s5273_s17 + $0x48] sm:$0xff]  }
 0xaf4   : > { %v2807_v15 = vld [vmem:[#allocation3] sm:$0xff] }
 0xaf8   : > { %v2809_v17 = vld [vmem:[#allocation3 + $0x10] sm:$0xf] }
 0xaf9   : > { %v2808_v16 = vld [vmem:[#allocation3 + $0x8] sm:$0xff]  ;;  %v2811_v50 = vpack.c.bf16 %v2809_v17, %v2809_v17 }
 0xafa   : > { %v2810_v18 = vpack.c.bf16 %v2808_v16, %v2807_v15  ;;  %v4861_v15 = vld [vmem:[%s5960_s25 + $0x20] ss:$16 sps:$4 sm:$0xff]   ;;  %v4864_v16 = vld [vmem:[%s5960_s25 + $0x28] ss:$16 sps:$4 sm:$0xff]   ;;  %v4869_v17 = vld [vmem:[%s5960_s25 + $0x4] ss:$16 sps:$4 sm:$0xff]  }
 0xafb   : > { %3205 = vmatpush1.bf16.msra.mxu1 %v4861_v15  ;;  %v4899_v15 = vld [vmem:[%s5273_s17 + $0x8] sm:$0xff]  }
 0xafc   : > { %4663 = vmatprep.mubr.bf16.mxu0 %v2810_v18  ;;  %v4872_v18 = vld [vmem:[%s5960_s25 + $0xc] ss:$16 sps:$4 sm:$0xff]   ;;  %3206 = vmatprep.subr.bf16.mxu1 %v4869_v17  ;;  %v4901_v17 = vld [vmem:[%s5273_s17 + $0x40] sm:$0xff]  }
 0xafd   : > { %4664 = vmatmul.mubr.bf16.vlgmr.msra.gmra.mxu0 %v2811_v50  ;;  %v4867_v50 = vld [vmem:[%s5960_s25] ss:$16 sps:$4 sm:$0xff]  }
 0xafe   : > { %3275 = vmatprep.mubr.bf16.mxu0 %v5040_v2  ;;  %3244 = vmatpush1.bf16.msra.mxu0 %v4828_v44 }
 0xaff   : > { %3245 = vmatprep.subr.bf16.mxu0 %v4836_v63  ;;  %3207 = vmatpush1.bf16.msra.mxu1 %v4867_v50  ;;  %v4877_v63 = vld [vmem:[%s5273_s17 + $0x70] sm:$0xff]   ;;  %v4903_v50 = vld [vmem:[%s5273_s17] sm:$0xff]  }
 0xb02   : > { %3246 = vmatpush1.bf16.msra.mxu0 %v4834_v3  ;;  %v4880_v3 = vld [vmem:[%s5273_s17 + $0xb0] sm:$0xff]  }
 0xb03   : > { %3247 = vmatprep.subr.bf16.mxu0 %v4842_v5  ;;  %v4882_v5 = vld [vmem:[%s5273_s17 + $0xe8] sm:$0xff]  }
 0xb06   : > { %3248 = vmatpush1.bf16.msra.mxu0 %v4840_v21  ;;  %v4884_v21 = vld [vmem:[%s5273_s17 + $0xa8] sm:$0xff]  }
 0xb07   : > { %3249 = vmatprep.subr.bf16.mxu0 %v4848_v24  ;;  %v4886_v24 = vld [vmem:[%s5273_s17 + $0xe0] sm:$0xff]  }
 0xb0a   : > { %3250 = vmatpush1.bf16.msra.mxu0 %v4846_v10  ;;  %v4888_v10 = vld [vmem:[%s5273_s17 + $0xa0] sm:$0xff]  }
 0xb0b   : > { %3251 = vmatprep.subr.bf16.mxu0 %v4854_v7  ;;  %v4892_v7 = vld [vmem:[%s5273_s17 + $0x98] sm:$0xff]  }
 0xb0e   : > { %3252 = vmatpush1.bf16.msra.mxu0 %v4852_v36  ;;  %v4891_v36 = vld [vmem:[%s5273_s17 + $0x18] sm:$0xff]  }
 0xb0f   : > { %3253 = vmatprep.subr.bf16.mxu0 %v4860_v34  ;;  %v4894_v34 = vld [vmem:[%s5273_s17 + $0xd0] sm:$0xff]  }
 0xb12   : > { %3254 = vmatpush1.bf16.msra.mxu0 %v4858_v12  ;;  %v4896_v12 = vld [vmem:[%s5273_s17 + $0x90] sm:$0xff]  }
 0xb13   : > { %3255 = vmatprep.subr.bf16.mxu0 %v4866_v58  ;;  %v4898_v58 = vld [vmem:[%s5273_s17 + $0xc8] sm:$0xff]  }
 0xb16   : > { %3256 = vmatpush1.bf16.msra.mxu0 %v4864_v16  ;;  %v4900_v16 = vld [vmem:[%s5273_s17 + $0x88] sm:$0xff]  }
 0xb17   : > { %3257 = vmatprep.subr.bf16.mxu0 %v4872_v18  ;;  %v4902_v18 = vld [vmem:[%s5273_s17 + $0xc0] sm:$0xff]  }
 0xbbd   : > { %v4665_v19 = vpop.f32.mrf.mxu0 }
 0xbbe   : > { %v2910_v29 = vadd.f32 %v4990_v28, %v4665_v19  ;;  %v4870_v19 = vld [vmem:[%s5960_s25 + $0x8] ss:$16 sps:$4 sm:$0xff]  }
 0xbbf   : > { %v2894_v20 = vpop.f32.mrf.mxu0  ;;  %3258 = vmatpush1.bf16.msra.mxu0 %v4870_v19  ;;  %v4904_v19 = vld [vmem:[%s5273_s17 + $0x80] sm:$0xff]  }
 0xbc0   : > { %v2908_v23 = vadd.f32 %v4989_v22, %v2894_v20  ;;  %v5624_v37 = vadd.f32 %v4290_v25, %v2910_v29 }
 0xbc1   : > { %v4666_v26 = vpop.f32.mrf.mxu0 }
 0xbc2   : > { %v5619_v27 = vadd.f32 %v4290_v25, %v2908_v23  ;;  %v2927_v38 = vsel %vm1720_vm5, %v5624_v37, 0.0 }
 0xbc3   : > { %v2897_v30 = vpop.f32.mrf.mxu0 }
 0xbc4   : > { %v2909_v33 = vadd.f32 %v4991_v32, %v2897_v30  ;;  %2923 = vadd.xlane.f32.xlu1 %v5619_v27 }
 0xbc6   : > { %v5622_v35 = vadd.f32 %v4290_v25, %v2909_v33 }
 0xbc8   : > { %2925 = vadd.xlane.f32.xlu0 %v5622_v35 }
 0xbcc   : > { %2928 = vadd.xlane.f32.xlu0 %v2927_v38 }
 0xc4d   : > { %v2924_v46 = vpop.xlane.xlu1 %2923 }
 0xc4e   : > { %v2930_v0 = vmul.f32 0.0078125, %v2924_v46  ;;  %v4292_v46 = vld [vmem:[%s5966_s21] ss:$0 sm:$0xff] }
 0xc50   : > { %v5634_v47 = vsub.f32 %v5619_v27, %v2930_v0 }
 0xc51   : > { %v2926_v49 = vpop.xlane.xlu0 %2925 }
 0xc52   : > { %v2931_v51 = vmul.f32 0.0078125, %v2926_v49  ;;  %v2936_v52 = vmul.f32 %v5634_v47, %v5634_v47 }
 0xc54   : > { %v5639_v54 = vsub.f32 %v5622_v35, %v2931_v51  ;;  %2939 = vadd.xlane.f32.xlu1 %v2936_v52 }
 0xc55   : > { %v2929_v55 = vpop.xlane.xlu0 %2928 }
 0xc56   : > { %v2932_v56 = vmul.f32 0.0078125, %v2929_v55  ;;  %v2937_v57 = vmul.f32 %v5639_v54, %v5639_v54 }
 0xc58   : > { %v5644_v59 = vsub.f32 %v5624_v37, %v2932_v56  ;;  %2941 = vadd.xlane.f32.xlu0 %v2937_v57 }
 0xc5a   : > { %v2938_v60 = vmul.f32 %v5644_v59, %v5644_v59 }
 0xc5c   : > { %v2943_v61 = vsel %vm1720_vm5, %v2938_v60, 0.0  ;;  %v4873_v60 = vld [vmem:[%s5273_s17 + $0x78] sm:$0xff]  }
 0xc5d   : > { %2944 = vadd.xlane.f32.xlu1 %v2943_v61  ;;  %v4874_v61 = vld [vmem:[%s5273_s17 + $0xf8] sm:$0xff]   ;;  %4482 = vmatprep.subr.bf16.mxu1 %v4873_v60 }
 0xc5e   : > { %4510 = vmatprep.subr.bf16.mxu0 %v4874_v61 }
 0xcdd   : > { %v2940_v20 = vpop.xlane.xlu1 %2939 }
 0xcde   : > { %v2946_v22 = vmul.f32 0.0078125, %v2940_v20  ;;  %v3010_v20 = vld [vmem:[%s5969_s19] sm:$0xf] }
 0xce0   : > { %v2949_v23 = vadd.f32 1e-05, %v2946_v22  ;;  %v3026_v22 = vsub.s32 3, %v5425_v39 }
 0xce1   : > { %v2942_v25 = vpop.xlane.xlu0 %2941 }
 0xce2   : > { %4959 = vrsqrt.f32 %v2949_v23  ;;  %v2947_v26 = vmul.f32 0.0078125, %v2942_v25  ;;  %v3015_v23 = vrot.slane %v3010_v20, %v1809_v42  ;;  %v5734_v25 = vrot.slane %v3010_v20, %v1817_v40 }
 0xce4   : > { %v2950_v28 = vadd.f32 1e-05, %v2947_v26  ;;  %v5738_v26 = vrot.slane %v3010_v20, %v1813_v53 }
 0xce6   : > { %4961 = vrsqrt.f32 %v2950_v28  ;;  %v2945_v29 = vpop.xlane.xlu1 %2944  ;;  %v5740_v28 = vrot.slane %v3010_v20, %v3026_v22 }
 0xce7   : > { %v2948_v30 = vmul.f32 0.0078125, %v2945_v29 }
 0xce9   : > { %v2951_v32 = vadd.f32 1e-05, %v2948_v30 }
 0xceb   : > { %4963 = vrsqrt.f32 %v2951_v32 }
 0xcef   : > { %v4960_v33 = vpop.eup %4959 }
 0xcf0   : > { %v2955_v38 = vmul.f32 %v4960_v33, %v5634_v47 }
 0xcf2   : > { %v2964_v45 = vmul.f32 %v4291_v41, %v2955_v38 }
 0xcf3   : > { %v4962_v43 = vpop.eup %4961 }
 0xcf4   : > { %v2956_v44 = vmul.f32 %v4962_v43, %v5639_v54  ;;  %v2973_v47 = vadd.f32 %v4292_v46, %v2964_v45 }
 0xcf6   : > { %v2965_v0 = vmul.f32 %v4291_v41, %v2956_v44 }
 0xcf8   : > { %v4964_v49 = vpop.eup %4963  ;;  %v2974_v51 = vadd.f32 %v4292_v46, %v2965_v0 }
 0xcf9   : > { %v2957_v52 = vmul.f32 %v4964_v49, %v5644_v59  ;;  %v4875_v59 = vld [vmem:[%s5273_s17 + $0x38] sm:$0xff]  }
 0xcfa   : > { %v3008_v55 = vpack.c.bf16 %v2974_v51, %v2973_v47 }
 0xcfb   : > { %v2966_v56 = vmul.f32 %v4291_v41, %v2957_v52 }
 0xcfc   : > { %3225 = vmatmul.mubr.bf16.vlgmr.msra.gmra.mxu1 %v3008_v55  ;;  %3276 = vmatmul.mubr.bf16.vlgmr.msra.gmra.mxu0 %v3008_v55 }
 0xcfd   : > { %3234 = vmatprep.mubr.bf16.mxu1 %v5040_v2  ;;  %3285 = vmatprep.mubr.bf16.mxu0 %v5040_v2  ;;  %v2975_v54 = vadd.f32 %v4292_v46, %v2966_v56  ;;  %v4878_v2 = vld [vmem:[%s5273_s17 + $0xf0] sm:$0xff]  }
 0xcfe   : > { %4483 = vmatpush3.bf16.msra.mxu1 %v4875_v59  ;;  %4511 = vmatpush3.bf16.msra.mxu0 %v4876_v62 }
 0xcff   : > { %v3009_v57 = vpack.c.bf16 %v2975_v54, %v2975_v54  ;;  %4484 = vmatprep.subr.bf16.mxu1 %v4877_v63  ;;  %4512 = vmatprep.subr.bf16.mxu0 %v4878_v2 }
 0xd02   : > { %4485 = vmatpush3.bf16.msra.mxu1 %v4879_v1  ;;  %4513 = vmatpush3.bf16.msra.mxu0 %v4880_v3 }
 0xd03   : > { %4486 = vmatprep.subr.bf16.mxu1 %v4881_v4  ;;  %4514 = vmatprep.subr.bf16.mxu0 %v4882_v5 }
 0xd04   : > { %3235 = vmatmul.mubr.bf16.gmra.mxu1 %v3009_v57  ;;  %3286 = vmatmul.mubr.bf16.gmra.mxu0 %v3009_v57 }
 0xd06   : > { %4487 = vmatpush3.bf16.msra.mxu1 %v4883_v6  ;;  %4515 = vmatpush3.bf16.msra.mxu0 %v4884_v21 }
 0xd07   : > { %4488 = vmatprep.subr.bf16.mxu1 %v4885_v8  ;;  %4516 = vmatprep.subr.bf16.mxu0 %v4886_v24 }
 0xd0a   : > { %4489 = vmatpush3.bf16.msra.mxu1 %v4887_v31  ;;  %4517 = vmatpush3.bf16.msra.mxu0 %v4888_v10 }
 0xd0b   : > { %4490 = vmatprep.subr.bf16.mxu1 %v4889_v11  ;;  %4518 = vmatprep.subr.bf16.mxu0 %v4890_v48 }
 0xd0e   : > { %4491 = vmatpush3.bf16.msra.mxu1 %v4891_v36  ;;  %4519 = vmatpush3.bf16.msra.mxu0 %v4892_v7 }
 0xd0f   : > { %4492 = vmatprep.subr.bf16.mxu1 %v4893_v9  ;;  %4520 = vmatprep.subr.bf16.mxu0 %v4894_v34 }
 0xd12   : > { %4493 = vmatpush3.bf16.msra.mxu1 %v4895_v13  ;;  %4521 = vmatpush3.bf16.msra.mxu0 %v4896_v12 }
 0xd13   : > { %4494 = vmatprep.subr.bf16.mxu1 %v4897_v14  ;;  %4522 = vmatprep.subr.bf16.mxu0 %v4898_v58 }
 0xd16   : > { %4495 = vmatpush3.bf16.msra.mxu1 %v4899_v15  ;;  %4523 = vmatpush3.bf16.msra.mxu0 %v4900_v16 }
 0xd17   : > { %4496 = vmatprep.subr.bf16.mxu1 %v4901_v17  ;;  %4524 = vmatprep.subr.bf16.mxu0 %v4902_v18 }
 0xd1a   : > { %4497 = vmatpush3.bf16.msra.mxu1 %v4903_v50  ;;  %4525 = vmatpush3.bf16.msra.mxu0 %v4904_v19 }
 0xdbc   : > { %v3226_v29 = vpop.f32.mrf.mxu1  ;;  %v3277_v30 = vpop.f32.mrf.mxu0 }
 0xdbd   : > { %v5742_v32 = vadd.f32 %v3226_v29, %v3015_v23  ;;  %v5745_v33 = vadd.f32 %v3277_v30, %v5734_v25 }
 0xdbe   : > { %v3228_v38 = vpop.f32.mrf.mxu1  ;;  %v3279_v41 = vpop.f32.mrf.mxu0 }
 0xdbf   : > { %v3294_v42 = vmul.f32 %v5742_v32, %v5742_v32  ;;  %v3296_v40 = vmul.f32 %v5745_v33, %v5745_v33  ;;  %v5752_v39 = vadd.f32 %v3228_v38, %v5738_v26  ;;  %v5755_v53 = vadd.f32 %v3279_v41, %v5740_v28 }
 0xdc0   : > { %v3230_v43 = vpop.f32.mrf.mxu1  ;;  %v3281_v44 = vpop.f32.mrf.mxu0 }
 0xdc1   : > { %v3306_v45 = vmul.f32 %v3294_v42, %v5742_v32  ;;  %v3308_v46 = vmul.f32 %v3296_v40, %v5745_v33  ;;  %v3295_v0 = vmul.f32 %v5752_v39, %v5752_v39  ;;  %v3297_v49 = vmul.f32 %v5755_v53, %v5755_v53 }
 0xdc2   : > { %v5763_v47 = vadd.f32 %v3230_v43, %v3015_v23  ;;  %v5766_v51 = vadd.f32 %v3281_v44, %v5734_v25  ;;  %v3232_v52 = vpop.f32.mrf.mxu1  ;;  %v3283_v55 = vpop.f32.mrf.mxu0 }
 0xdc3   : > { %v3318_v56 = vmul.f32 0.044715, %v3306_v45  ;;  %v3320_v54 = vmul.f32 0.044715, %v3308_v46  ;;  %v3307_v57 = vmul.f32 %v3295_v0, %v5752_v39  ;;  %v3309_v60 = vmul.f32 %v3297_v49, %v5755_v53 }
 0xdc4   : > { %v3298_v61 = vmul.f32 %v5763_v47, %v5763_v47  ;;  %v3300_v59 = vmul.f32 %v5766_v51, %v5766_v51  ;;  %v5775_v62 = vadd.f32 %v3232_v52, %v5738_v26  ;;  %v5778_v63 = vadd.f32 %v3283_v55, %v5740_v28  ;;  %v3236_v2 = vpop.f32.mrf.mxu1  ;;  %v3287_v1 = vpop.f32.mrf.mxu0 }
 0xdc5   : > { %v3330_v3 = vadd.f32 %v3318_v56, %v5742_v32  ;;  %v3332_v4 = vadd.f32 %v3320_v54, %v5745_v33  ;;  %v3319_v5 = vmul.f32 0.044715, %v3307_v57  ;;  %v3321_v6 = vmul.f32 0.044715, %v3309_v60 }
 0xdc6   : > { %v3310_v21 = vmul.f32 %v3298_v61, %v5763_v47  ;;  %v3312_v8 = vmul.f32 %v3300_v59, %v5766_v51  ;;  %v3299_v24 = vmul.f32 %v5775_v62, %v5775_v62  ;;  %v3301_v31 = vmul.f32 %v5778_v63, %v5778_v63  ;;  %v3238_v10 = vpop.f32.mrf.mxu1  ;;  %v3289_v11 = vpop.f32.mrf.mxu0 }
 0xdc7   : > { %v3342_v48 = vmul.f32 0.7978846, %v3330_v3  ;;  %v3344_v36 = vmul.f32 0.7978846, %v3332_v4  ;;  %v3331_v7 = vadd.f32 %v3319_v5, %v5752_v39  ;;  %v3333_v9 = vadd.f32 %v3321_v6, %v5755_v53 }
 0xdc8   : > { %v3322_v34 = vmul.f32 0.044715, %v3310_v21  ;;  %v3324_v13 = vmul.f32 0.044715, %v3312_v8  ;;  %v3311_v12 = vmul.f32 %v3299_v24, %v5775_v62  ;;  %v3313_v14 = vmul.f32 %v3301_v31, %v5778_v63  ;;  %v3240_v58 = vpop.f32.mrf.mxu1  ;;  %v3291_v15 = vpop.f32.mrf.mxu0 }
 0xdc9   : > { %4965 = vtanh.f32 %v3342_v48  ;;  %v3343_v16 = vmul.f32 0.7978846, %v3331_v7  ;;  %v3345_v17 = vmul.f32 0.7978846, %v3333_v9  ;;  %v5792_v18 = vadd.f32 %v3236_v2, %v3015_v23 }
 0xdca   : > { %4967 = vtanh.f32 %v3344_v36  ;;  %v3334_v50 = vadd.f32 %v3322_v34, %v5763_v47  ;;  %v3336_v19 = vadd.f32 %v3324_v13, %v5766_v51  ;;  %v3323_v20 = vmul.f32 0.044715, %v3311_v12  ;;  %v3241_v22 = vpop.f32.mrf.mxu1  ;;  %v3292_v29 = vpop.f32.mrf.mxu0 }
 0xdcb   : > { %4969 = vtanh.f32 %v3343_v16  ;;  %v3325_v30 = vmul.f32 0.044715, %v3313_v14  ;;  %v3302_v38 = vmul.f32 %v5792_v18, %v5792_v18  ;;  %v5799_v41 = vadd.f32 %v3287_v1, %v5734_v25 }
 0xdcc   : > { %4971 = vtanh.f32 %v3345_v17  ;;  %v3346_v42 = vmul.f32 0.7978846, %v3334_v50  ;;  %v3348_v23 = vmul.f32 0.7978846, %v3336_v19  ;;  %v3335_v40 = vadd.f32 %v3323_v20, %v5775_v62 }
 0xdcd   : > { %v3337_v43 = vadd.f32 %v3325_v30, %v5778_v63  ;;  %v3314_v44 = vmul.f32 %v3302_v38, %v5792_v18  ;;  %v3304_v45 = vmul.f32 %v5799_v41, %v5799_v41  ;;  %v5807_v46 = vadd.f32 %v3238_v10, %v5738_v26 }
 0xdce   : > { %4973 = vtanh.f32 %v3346_v42  ;;  %v3347_v0 = vmul.f32 0.7978846, %v3335_v40  ;;  %v5810_v25 = vadd.f32 %v3289_v11, %v5740_v28 }
 0xdcf   : > { %4975 = vtanh.f32 %v3348_v23  ;;  %v3349_v49 = vmul.f32 0.7978846, %v3337_v43  ;;  %v3326_v52 = vmul.f32 0.044715, %v3314_v44  ;;  %v3316_v55 = vmul.f32 %v3304_v45, %v5799_v41 }
 0xdd0   : > { %4977 = vtanh.f32 %v3347_v0  ;;  %v3303_v56 = vmul.f32 %v5807_v46, %v5807_v46  ;;  %v3305_v54 = vmul.f32 %v5810_v25, %v5810_v25 }
 0xdd1   : > { %4979 = vtanh.f32 %v3349_v49  ;;  %v3338_v26 = vadd.f32 %v3326_v52, %v5792_v18  ;;  %v3328_v57 = vmul.f32 0.044715, %v3316_v55 }
 0xdd2   : > { %v3315_v60 = vmul.f32 %v3303_v56, %v5807_v46  ;;  %v3317_v28 = vmul.f32 %v3305_v54, %v5810_v25 }
 0xdd3   : > { %v3350_v61 = vmul.f32 0.7978846, %v3338_v26  ;;  %v3340_v59 = vadd.f32 %v3328_v57, %v5799_v41 }
 0xdd4   : > { %v3327_v2 = vmul.f32 0.044715, %v3315_v60  ;;  %v3329_v1 = vmul.f32 0.044715, %v3317_v28 }
 0xdd5   : > { %4981 = vtanh.f32 %v3350_v61  ;;  %v3352_v3 = vmul.f32 0.7978846, %v3340_v59 }
 0xdd6   : > { %v4966_v4 = vpop.eup %4965  ;;  %v3339_v5 = vadd.f32 %v3327_v2, %v5807_v46  ;;  %v3341_v6 = vadd.f32 %v3329_v1, %v5810_v25 }
 0xdd7   : > { %v4968_v21 = vpop.eup %4967  ;;  %4983 = vtanh.f32 %v3352_v3  ;;  %v3366_v36 = vadd.f32 1.0, %v4966_v4 }
 0xdd8   : > { %v4970_v8 = vpop.eup %4969  ;;  %v3351_v24 = vmul.f32 0.7978846, %v3339_v5  ;;  %v3353_v31 = vmul.f32 0.7978846, %v3341_v6  ;;  %v3368_v34 = vadd.f32 1.0, %v4968_v21 }
 0xdd9   : > { %v4972_v10 = vpop.eup %4971  ;;  %v3367_v11 = vadd.f32 1.0, %v4970_v8  ;;  %v3378_v50 = vmul.f32 0.5, %v3366_v36 }
 0xdda   : > { %4985 = vtanh.f32 %v3351_v24  ;;  %v3369_v7 = vadd.f32 1.0, %v4972_v10  ;;  %v3380_v29 = vmul.f32 0.5, %v3368_v34 }
 0xddb   : > { %v4974_v48 = vpop.eup %4973  ;;  %4987 = vtanh.f32 %v3353_v31  ;;  %v3379_v17 = vmul.f32 0.5, %v3367_v11  ;;  %v3390_v45 = vmul.f32 %v3378_v50, %v5742_v32 }
 0xddc   : > { %v4976_v9 = vpop.eup %4975  ;;  %v3370_v13 = vadd.f32 1.0, %v4974_v48  ;;  %v3381_v22 = vmul.f32 0.5, %v3369_v7  ;;  %v3392_v56 = vmul.f32 %v3380_v29, %v5745_v33 }
 0xddd   : > { %v4978_v12 = vpop.eup %4977  ;;  %v3372_v14 = vadd.f32 1.0, %v4976_v9  ;;  %v3391_v43 = vmul.f32 %v3379_v17, %v5752_v39 }
 0xdde   : > { %v4980_v58 = vpop.eup %4979  ;;  %v3382_v15 = vmul.f32 0.5, %v3370_v13  ;;  %v3371_v16 = vadd.f32 1.0, %v4978_v12  ;;  %v3393_v0 = vmul.f32 %v3381_v22, %v5755_v53 }
 0xddf   : > { %v3384_v19 = vmul.f32 0.5, %v3372_v14  ;;  %v3373_v20 = vadd.f32 1.0, %v4980_v58 }
 0xde0   : > { %v3383_v30 = vmul.f32 0.5, %v3371_v16  ;;  %v3394_v38 = vmul.f32 %v3382_v15, %v5763_v47 }
 0xde1   : > { %v3385_v42 = vmul.f32 0.5, %v3373_v20  ;;  %v3396_v40 = vmul.f32 %v3384_v19, %v5766_v51 }
 0xde2   : > { %v4982_v23 = vpop.eup %4981  ;;  %v3395_v44 = vmul.f32 %v3383_v30, %v5775_v62  ;;  %v3466_v47 = vpack.c.bf16 %v3394_v38, %v3390_v45 }
 0xde3   : > { %v3397_v49 = vmul.f32 %v3385_v42, %v5778_v63  ;;  %v3374_v52 = vadd.f32 1.0, %v4982_v23  ;;  %v3468_v60 = vpack.c.bf16 %v3396_v40, %v3392_v56 }
 0xde4   : > { %v4984_v55 = vpop.eup %4983  ;;  %v3467_v54 = vpack.c.bf16 %v3395_v44, %v3391_v43 }
 0xde5   : > { %v3469_v26 = vpack.c.bf16 %v3397_v49, %v3393_v0  ;;  %v3376_v57 = vadd.f32 1.0, %v4984_v55  ;;  %v3386_v39 = vmul.f32 0.5, %v3374_v52 }
 0xde6   : > { %3698 = vmatprep.mubr.bf16.mxu1 %v3467_v54 }
 0xde7   : > { %v4986_v51 = vpop.eup %4985  ;;  %3746 = vmatprep.mubr.bf16.mxu0 %v3469_v26  ;;  %3699 = vmatmul.mubr.bf16.vlgmr.msra.gmra.mxu1 %v3466_v47  ;;  %v3388_v53 = vmul.f32 0.5, %v3376_v57  ;;  %v3398_v59 = vmul.f32 %v3386_v39, %v5792_v18 }
 0xde8   : > { %v4988_v62 = vpop.eup %4987  ;;  %3747 = vmatmul.mubr.bf16.vlgmr.msra.gmra.mxu0 %v3468_v60  ;;  %v3375_v32 = vadd.f32 1.0, %v4986_v51 }
 0xde9   : > { %v3377_v28 = vadd.f32 1.0, %v4988_v62  ;;  %v3400_v2 = vmul.f32 %v3388_v53, %v5799_v41  ;;  %v3470_v5 = vpack.c.bf16 %v3398_v59, %v3398_v59 }
 0xdea   : > { %v3387_v63 = vmul.f32 0.5, %v3375_v32 }
 0xdeb   : > { %v3389_v61 = vmul.f32 0.5, %v3377_v28  ;;  %v3472_v6 = vpack.c.bf16 %v3400_v2, %v3400_v2 }
 0xdec   : > { %v3399_v33 = vmul.f32 %v3387_v63, %v5807_v46 }
 0xded   : > { %v3401_v1 = vmul.f32 %v3389_v61, %v5810_v25  ;;  %v4357_v25 = vld [vmem:[%s1061_s28] ss:$0 sm:$0xff] }
 0xdee   : > { %v3471_v3 = vpack.c.bf16 %v3399_v33, %v3399_v33 }
 0xdef   : > { %v3473_v4 = vpack.c.bf16 %v3401_v1, %v3401_v1 }
 0xdf0   : > { %3706 = vmatprep.mubr.bf16.mxu1 %v3471_v3 }
 0xdf1   : > { %3754 = vmatprep.mubr.bf16.mxu0 %v3473_v4  ;;  %3707 = vmatmul.mubr.bf16.gmra.mxu1 %v3470_v5 }
 0xdf2   : > { %3755 = vmatmul.mubr.bf16.gmra.mxu0 %v3472_v6 }
 0xea7   : > { %v4498_v21 = vpop.f32.mrf.mxu1 }
 0xea8   : > { %v4526_v8 = vpop.f32.mrf.mxu0 }
 0xea9   : > { %v4499_v24 = vpop.f32.mrf.mxu1 }
 0xeaa   : > { %v4500_v31 = vadd.f32 %v4499_v24, %v4498_v21  ;;  %v4527_v18 = vpop.f32.mrf.mxu0 }
 0xeab   : > { %v4528_v10 = vadd.f32 %v4527_v18, %v4526_v8  ;;  %v4501_v46 = vpop.f32.mrf.mxu1 }
 0xeac   : > { %v4529_v11 = vpop.f32.mrf.mxu0 }
 0xead   : > { %v3749_v41 = vadd.f32 %v4528_v10, %v4500_v31  ;;  %v4502_v48 = vpop.f32.mrf.mxu1 }
 0xeae   : > { %v4503_v36 = vadd.f32 %v4502_v48, %v4501_v46  ;;  %v4530_v7 = vpop.f32.mrf.mxu0 }
 0xeaf   : > { %v3762_v9 = vadd.f32 %v3749_v41, %v5619_v27  ;;  %v4531_v34 = vadd.f32 %v4530_v7, %v4529_v11 }
 0xeb1   : > { %v3772_v13 = vadd.f32 %v4357_v25, %v3762_v9  ;;  %v3752_v12 = vadd.f32 %v4531_v34, %v4503_v36  ;;  %v4504_v14 = vpop.f32.mrf.mxu1 }
 0xeb2   : > { %v4532_v58 = vpop.f32.mrf.mxu0 }
 0xeb3   : > { %3775 = vst [vmem:[#allocation2 + $0x10] sm:$0xff] %v3772_v13  ;;  %v3763_v15 = vadd.f32 %v3752_v12, %v5622_v35  ;;  %v4505_v16 = vpop.f32.mrf.mxu1 }
 0xeb4   : > { %v4506_v17 = vadd.f32 %v4505_v16, %v4504_v14  ;;  %v4533_v50 = vpop.f32.mrf.mxu0 }
 0xeb5   : > { %v3773_v19 = vadd.f32 %v4357_v25, %v3763_v15  ;;  %v4534_v20 = vadd.f32 %v4533_v50, %v4532_v58  ;;  %v4507_v22 = vpop.f32.mrf.mxu1 }
 0xeb6   : > { %v4535_v29 = vpop.f32.mrf.mxu0 }
 0xeb7   : > { %3776 = vst [vmem:[#allocation2] sm:$0xff] %v3773_v19  ;;  %v3757_v30 = vadd.f32 %v4534_v20, %v4506_v17  ;;  %v4508_v38 = vpop.f32.mrf.mxu1 }
 0xeb8   : > { %v4536_v42 = vpop.f32.mrf.mxu0 }
 0xeb9   : > { %v3764_v27 = vadd.f32 %v3757_v30, %v5624_v37  ;;  %3781 = sbr.rel (%p4358_p8) target bundleno = 4090 (0xffa), region = 108 }
 0xebb   : > { %v3774_v23 = vadd.f32 %v4357_v25, %v3764_v27 }
 0xebd   : > { %3777 = vst [vmem:[#allocation2 + $0x8] sm:$0xf] %v3774_v23 }
 0xebe   : > { %3786 = vadd.xlane.f32.xlu1 %v3773_v19  ;;  %v3788_v35 = vsel %vm1720_vm5, %v3774_v23, 0.0  ;;  %v4359_v59 = vld [vmem:[%s1064_s12] ss:$0 sm:$0xff] }
 0xebf   : > { %3789 = vadd.xlane.f32.xlu0 %v3788_v35  ;;  %v4360_v2 = vld [vmem:[%s1067_s15] ss:$0 sm:$0xff] }
 0xec3   : > { %3784 = vadd.xlane.f32.xlu0 %v3772_v13 }
 0xf47   : > { %v3787_v40 = vpop.xlane.xlu1 %3786 }
 0xf48   : > { %v3792_v43 = vmul.f32 0.0078125, %v3787_v40  ;;  %v3790_v44 = vpop.xlane.xlu0 %3789 }
 0xf49   : > { %v3793_v0 = vmul.f32 0.0078125, %v3790_v44 }
 0xf4a   : > { %v3795_v45 = vsub.f32 %v3773_v19, %v3792_v43 }
 0xf4b   : > { %v3796_v56 = vsub.f32 %v3774_v23, %v3793_v0 }
 0xf4c   : > { %v3785_v49 = vpop.xlane.xlu0 %3784  ;;  %v3798_v52 = vmul.f32 %v3795_v45, %v3795_v45 }
 0xf4d   : > { %v3791_v55 = vmul.f32 0.0078125, %v3785_v49  ;;  %v3799_v47 = vmul.f32 %v3796_v56, %v3796_v56 }
 0xf4e   : > { %3802 = vadd.xlane.f32.xlu0 %v3798_v52 }
 0xf4f   : > { %v3794_v37 = vsub.f32 %v3772_v13, %v3791_v55  ;;  %v3804_v26 = vsel %vm1720_vm5, %v3799_v47, 0.0 }
 0xf51   : > { %v3797_v54 = vmul.f32 %v3794_v37, %v3794_v37 }
 0xf53   : > { %3800 = vadd.xlane.f32.xlu1 %v3797_v54 }
 0xf57   : > { %3805 = vadd.xlane.f32.xlu1 %v3804_v26 }
 0xfd7   : > { %v3803_v57 = vpop.xlane.xlu0 %3802 }
 0xfd8   : > { %v3808_v60 = vmul.f32 0.0078125, %v3803_v57 }
 0xfda   : > { %v3811_v51 = vadd.f32 1e-05, %v3808_v60 }
 0xfdc   : > { %4992 = vrsqrt.f32 %v3811_v51  ;;  %v3801_v39 = vpop.xlane.xlu1 %3800 }
 0xfdd   : > { %v3807_v62 = vmul.f32 0.0078125, %v3801_v39 }
 0xfdf   : > { %v3810_v32 = vadd.f32 1e-05, %v3807_v62 }
 0xfe0   : > { %v3806_v53 = vpop.xlane.xlu1 %3805 }
 0xfe1   : > { %4994 = vrsqrt.f32 %v3810_v32  ;;  %v3809_v28 = vmul.f32 0.0078125, %v3806_v53 }
 0xfe3   : > { %v3812_v63 = vadd.f32 1e-05, %v3809_v28 }
 0xfe5   : > { %4996 = vrsqrt.f32 %v3812_v63 }
 0xfe9   : > { %v4993_v61 = vpop.eup %4992 }
 0xfea   : > { %v3817_v33 = vmul.f32 %v4993_v61, %v3795_v45 }
 0xfec   : > { %v3826_v1 = vmul.f32 %v4359_v59, %v3817_v33 }
 0xfee   : > { %v4995_v3 = vpop.eup %4994  ;;  %v3835_v4 = vadd.f32 %v4360_v2, %v3826_v1 }
 0xfef   : > { %v3816_v5 = vmul.f32 %v4995_v3, %v3794_v37 }
 0xff0   : > { %3838 = vst [vmem:[%s5291_s1 + $0x8] sm:$0xff] %v3835_v4 }
 0xff1   : > { %v3825_v6 = vmul.f32 %v4359_v59, %v3816_v5 }
 0xff2   : > { %v4997_v21 = vpop.eup %4996 }
 0xff3   : > { %v3834_v8 = vadd.f32 %v4360_v2, %v3825_v6  ;;  %v3818_v24 = vmul.f32 %v4997_v21, %v3796_v56 }
 0xff5   : > { %3837 = vst [vmem:[%s5291_s1] sm:$0xff] %v3834_v8  ;;  %v3827_v31 = vmul.f32 %v4359_v59, %v3818_v24 }
 0xff7   : > { %v3836_v18 = vadd.f32 %v4360_v2, %v3827_v31 }
 0xff9   : > { %3839 = vst [vmem:[%s5291_s1 + $0x10] sm:$0xf] %v3836_v18 }
 0xffa PF: > { %s5974_s12 = sld [smem:[#allocation7_spill]] }
 0xffb   : > { %s5975_s1 = sld [smem:[#allocation5_spill]] }
 0xffc   : > { %s5976_s22 = sld [smem:[#allocation6_spill]] }
 0xffd   : > { %s5977_s23 = sld [smem:[#allocation8_spill]] }
 0xffe   : > { %s5978_s24 = sld [smem:[#allocation9_spill]] }
0x1000   : > { %s30_s2 = sadd.s32 1, %s5974_s12  }
0x1001   : > { %p27_p9 = scmp.ge.s32.totalorder %s30_s2, 6  }
0x1003   :  { %29 = sbr.rel (!%p27_p9) target bundleno = 21 (0x15), region = 186 }

// kernel: navdp_rgbd_backbone_forward.3
= control target key start
LH: loop header
LB: loop body
LE: loop exit
PB: predicated region body
PF: predicated region fallthrough
CT: control target
= control target key end

     0   :  { %s9008_s0 = inlined_call_operand.vmem [shape: f32[64,128], index: 0, kind: input, shape index: {}]   ;;  %s9009_s1 = inlined_call_operand.vmem [shape: f32[2,16,128], index: 1, kind: input, shape index: {}]   ;;  %s9010_s2 = inlined_call_operand.vmem [shape: bf16[2,128,384], index: 2, kind: input, shape index: {}]   ;;  %s9011_s3 = inlined_call_operand.vmem [shape: f32[2,1,384], index: 3, kind: input, shape index: {}]   ;;  %s9012_s4 = inlined_call_operand.vmem [shape: bf16[2,128,128], index: 4, kind: input, shape index: {}]   ;;  %s9013_s5 = inlined_call_operand.vmem [shape: f32[2,1,128], index: 5, kind: input, shape index: {}]   ;;  %s9014_s6 = inlined_call_operand.vmem [shape: f32[2,1,128], index: 6, kind: input, shape index: {}]   ;;  %s9015_s7 = inlined_call_operand.vmem [shape: f32[2,1,128], index: 7, kind: input, shape index: {}]   ;;  %s9016_s8 = inlined_call_operand.vmem [shape: bf16[2,128,128], index: 8, kind: input, shape index: {}]   ;;  %s9017_s9 = inlined_call_operand.vmem [shape: f32[2,1,128], index: 9, kind: input, shape index: {}]   ;;  %s9018_s10 = inlined_call_operand.vmem [shape: bf16[2,128,256], index: 10, kind: input, shape index: {}]   ;;  %s9019_s11 = inlined_call_operand.vmem [shape: f32[2,1,256], index: 11, kind: input, shape index: {}]   ;;  %s9020_s12 = inlined_call_operand.vmem [shape: bf16[2,128,128], index: 12, kind: input, shape index: {}]   ;;  %s9021_s13 = inlined_call_operand.vmem [shape: f32[2,1,128], index: 13, kind: input, shape index: {}]   ;;  %s9022_s14 = inlined_call_operand.vmem [shape: f32[2,1,128], index: 14, kind: input, shape index: {}]   ;;  %s9023_s15 = inlined_call_operand.vmem [shape: f32[2,1,128], index: 15, kind: input, shape index: {}]   ;;  %s9024_s16 = inlined_call_operand.vmem [shape: bf16[2,128,256], index: 16, kind: input, shape index: {}]   ;;  %s9025_s17 = inlined_call_operand.vmem [shape: f32[2,1,256], index: 17, kind: input, shape index: {}]   ;;  %s9026_s18 = inlined_call_operand.vmem [shape: bf16[2,256,128], index: 18, kind: input, shape index: {}]   ;;  %s9027_s19 = inlined_call_operand.vmem [shape: f32[2,1,128], index: 19, kind: input, shape index: {}]   ;;  %s9028_s20 = inlined_call_operand.vmem [shape: f32[2,1,128], index: 20, kind: input, shape index: {}]   ;;  %s9029_s21 = inlined_call_operand.vmem [shape: f32[2,1,128], index: 21, kind: input, shape index: {}]   ;;  %s9030_s22 = inlined_call_operand.vmem [shape: bf16[128,128], index: 22, kind: input, shape index: {}]   ;;  %s9031_s23 = inlined_call_operand.vmem [shape: f32[1,128], index: 23, kind: input, shape index: {}]   ;;  %s9032_s24 = inlined_call_operand.hbm [shape: f32[2,64,128], index: 24, kind: output, shape index: {}]  }
   0x1   :  { %9054 = sst [smem:[#allocation24_spill]] %s9008_s0 }
   0x2   :  { %9055 = sst [smem:[#allocation25_spill]] %s9009_s1 }
   0x3   :  { %9056 = sst [smem:[#allocation26_spill]] %s9010_s2 }
   0x4   :  { %9057 = sst [smem:[#allocation27_spill]] %s9011_s3 }
   0x5   :  { %9058 = sst [smem:[#allocation28_spill]] %s9012_s4 }
   0x6   :  { %9059 = sst [smem:[#allocation29_spill]] %s9013_s5 }
   0x7   :  { %9060 = sst [smem:[#allocation30_spill]] %s9014_s6 }
   0x8   :  { %9061 = sst [smem:[#allocation31_spill]] %s9015_s7 }
   0x9   :  { %9062 = sst [smem:[#allocation32_spill]] %s9016_s8 }
   0xa   :  { %9063 = sst [smem:[#allocation33_spill]] %s9018_s10 }
   0xb   :  { %9064 = sst [smem:[#allocation34_spill]] %s9019_s11 }
   0xc   :  { %9065 = sst [smem:[#allocation35_spill]] %s9020_s12 }
   0xd   :  { %9066 = sst [smem:[#allocation36_spill]] %s9022_s14 }
   0xe   :  { %9067 = sst [smem:[#allocation37_spill]] %s9023_s15 }
   0xf   :  { %9068 = sst [smem:[#allocation38_spill]] %s9024_s16 }
  0x10   :  { %9069 = sst [smem:[#allocation39_spill]] %s9025_s17 }
  0x11   :  { %9070 = sst [smem:[#allocation40_spill]] %s9026_s18 }
  0x12   :  { %9071 = sst [smem:[#allocation41_spill]] %s9027_s19 }
  0x13   :  { %9072 = sst [smem:[#allocation42_spill]] %s9028_s20 }
  0x14   :  { %9073 = sst [smem:[#allocation43_spill]] %s9029_s21 }
  0x15   :  { %9074 = sst [smem:[#allocation44_spill]] %s9030_s22 }
  0x16   :  { %9075 = sst [smem:[#allocation45_spill]] %s9031_s23 }
  0x17   :  { %9076 = sst [smem:[#allocation46_spill]] %s9032_s24 }
  0x18   :  { %29 = vsyncpa [#allocation5], 0 }
  0x19   :  { %31 = vsyncpa [#allocation5 + $0x1], 0  ;;  %s7329_s5 = smov 0   ;;  %s7331_s26 = smov 0  }
  0x1a   :  { %s7333_s27 = smov 0   ;;  %s7335_s28 = smov 0  }
  0x1b   :  { %s7337_s6 = smov 0   ;;  %s7339_s2 = smov 0  }
  0x1c   :  { %s7341_s29 = smov 0   ;;  %s7343_s0 = smov 0  }
  0x1d LB: > { %9077 = sst [smem:[#allocation7_spill]] %s7167_s5  ;;  %s5799_s7 = sadd.s32 4294967295, %s7195_s0   ;;  %s7195_s0 = sphi %s7343_s0, %s37_s0   ;;  %s7191_s29 = sphi %s7341_s29, %s9153_s29   ;;  %s7187_s2 = sphi %s7339_s2, %s9152_s2   ;;  %s7183_s6 = sphi %s7337_s6, %s9151_s6   ;;  %s7179_s28 = sphi %s7335_s28, %s9150_s28   ;;  %s7175_s27 = sphi %s7333_s27, %s9149_s27   ;;  %s7171_s26 = sphi %s7331_s26, %s9148_s26   ;;  %s7167_s5 = sphi %s7329_s5, %s9147_s5  }
  0x1e   : > { %9078 = sst [smem:[#allocation8_spill]] %s7171_s26  ;;  %s5800_s30 = sadd.s32 4294967294, %s7195_s0  }
  0x1f   : > { %9079 = sst [smem:[#allocation9_spill]] %s7175_s27  ;;  %s46_s3 = sadd.s32 1, %s7187_s2 }
  0x20   : > { %9080 = sst [smem:[#allocation10_spill]] %s7179_s28  ;;  %p47_p0 = scmp.ge.s32.totalorder %s46_s3, 2 }
  0x21   : > { %9081 = sst [smem:[#allocation11_spill]] %s7183_s6  ;;  %s49_s25 = sadd.s32 1, %s7191_s29 }
  0x22   : > { %9082 = sst [smem:[#allocation12_spill]] %s7187_s2  ;;  %p675_p1 = scmp.ne.s32.totalorder %s7175_s27, %s7171_s26 }
  0x23   : > { %9083 = sst [smem:[#allocation13_spill]] %s7191_s29  ;;  %p676_p2 = scmp.eq.s32.totalorder %s5799_s7, 3 }
  0x24   : > { %9084 = sst [smem:[#allocation14_spill]] %s7195_s0  ;;  %s9155_s3 = smov (%p47_p0, %s46_s3), 0 }
  0x25   : > { %9085 = sst [smem:[#allocation15_spill]] %s9155_s3  ;;  %s9157_s25 = smov (!%p47_p0, %s49_s25), %s7191_s29 }
  0x26   : > { %p7378_p3 = por %p676_p2, %p675_p1  ;;  %p681_p4 = scmp.ne.s32.totalorder %s7171_s26, %s7167_s5 }
  0x27   : > { %p51_p5 = scmp.ge.s32.totalorder %s9157_s25, 2  ;;  %p682_p6 = scmp.eq.s32.totalorder %s5800_s30, 3 }
  0x28   : > { %s9086_s8 = scalar_select %p7378_p3, 1, 0 }
  0x29   : > { %p5803_p7 = scmp.ge.s32.totalorder %s7195_s0, 1  ;;  %p854_p8 = scmp.lt.s32.totalorder %s7195_s0, 5 }
  0x2a   : > { %9087 = sst [smem:[#allocation16_spill]] %s9086_s8  ;;  %s9159_s25 = smov (%p51_p5, %s9157_s25), 0 }
  0x2b   : > { %9088 = sst [smem:[#allocation17_spill]] %s9159_s25  ;;  %p7388_p9 = por %p682_p6, %p681_p4 }
  0x2c   : > { %p855_p10 = pnand %p5803_p7, %p854_p8  ;;  %s662_s1 = ssub.s32 %s7191_s29, %s9159_s25 }
  0x2d   : > { %s9089_s4 = scalar_select %p7388_p9, 1, 0 }
  0x2e   : > { %s665_s7 = sadd.s32 1, %s7175_s27  ;;  %p663_p11 = scmp.eq.s32.totalorder %s662_s1, 0 }
  0x2f   : > { %9090 = sst [smem:[#allocation18_spill]] %s9089_s4  ;;  %858 = sbr.rel (%p855_p10) target bundleno = 5802 (0x16aa), region = 116 }
  0x30   : > { %s7396_s3 = scalar_select %p663_p11, %s7175_s27, %s665_s7  }
  0x32   : > { %9091 = sst [smem:[#allocation19_spill]] %s7396_s3 }
  0x34   : > { %s9039_s30 = sand.u32 1, %s7171_s26   ;;  %p997_p12 = scmp.lt.s32.totalorder %s7183_s6, 1 }
  0x35   : > { %s7402_s2 = sshll.u32 %s9039_s30, 6  ;;  %p1002_p13 = scmp.lt.s32.totalorder %s7179_s28, 1 }
  0x36   : > { %s998_s4 = scalar_select %p997_p12, %s7183_s6, 1 }
  0x37   : > { %s7407_s5 = scalar_select %p1002_p13, %s7179_s28, 1 }
  0x38   : > { %s6008_s1 = sshll.u32 %s998_s4, 4  ;;  %s9092_s29 = sld [smem:[#allocation25_spill]] }
  0x39   : > { %s6584_s30 = smul.u32 192, %s7407_s5  ;;  %s6009_s0 = sshll.u32 %s7407_s5, 6 }
  0x3a   : > { %s6585_s27 = smul.u32 3, %s7407_s5  ;;  %s9094_s26 = sld [smem:[#allocation26_spill]] }
  0x3b   : > { %s9096_s28 = sld [smem:[#allocation28_spill]]  ;;  %s5814_s17 = sshll.u32 %s7407_s5, 1 }
  0x3c   : > { %s9103_s10 = sld [smem:[#allocation33_spill]] }
  0x3d   : > { %s9104_s11 = sld [smem:[#allocation34_spill]] }
  0x3e   : > { %s7412_s3 = scalar_lea.vmem %s9092_s29, %s6008_s1  ;;  %s9098_s29 = sld [smem:[#allocation27_spill]] }
  0x3f   : > { %9093 = sst [smem:[#allocation20_spill]] %s7412_s3  ;;  %s6011_s3 = sshll.u32 %s7407_s5, 7 }
  0x40   : > { %s7420_s6 = scalar_lea.vmem %s9094_s26, %s6584_s30  ;;  %s9105_s12 = sld [smem:[#allocation35_spill]] }
  0x41   : > { %9095 = sst [smem:[#allocation21_spill]] %s7420_s6  ;;  %s7425_s4 = scalar_lea.vmem %s9096_s28, %s6009_s0 }
  0x42   : > { %9097 = sst [smem:[#allocation22_spill]] %s7425_s4  ;;  %s7458_s7 = scalar_lea.vmem %s9103_s10, %s6011_s3 }
  0x43   : > { %s9102_s4 = sld [smem:[#allocation32_spill]]  ;;  %s7463_s8 = scalar_lea.vmem %s9104_s11, %s5814_s17 }
  0x44   : > { %s7430_s1 = scalar_lea.vmem %s9098_s29, %s6585_s27  ;;  %s9108_s16 = sld [smem:[#allocation38_spill]] }
  0x45   : > { %s9111_s25 = sld [smem:[#allocation40_spill]]  ;;  %s7510_s30 = scalar_lea.vmem [#allocation4], %s7402_s2 }
  0x46   : > { %s7468_s23 = scalar_lea.vmem %s9105_s12, %s6009_s0  ;;  %s9112_s18 = sld [smem:[#allocation41_spill]] }
  0x47   : > { %s9113_s15 = sld [smem:[#allocation42_spill]] }
  0x48   : > { %s9114_s14 = sld [smem:[#allocation43_spill]] }
  0x49   : > { %s7447_s21 = scalar_lea.vmem %s9102_s4, %s6009_s0  ;;  %s9110_s4 = sld [smem:[#allocation39_spill]] }
  0x4a   : > { %s7485_s10 = scalar_lea.vmem %s9108_s16, %s6011_s3 }
  0x4b   : > { %9109 = sst [smem:[#allocation23_spill]] %s7485_s10  ;;  %s7495_s12 = scalar_lea.vmem %s9111_s25, %s6011_s3 }
  0x4c   : > { %s1072_s26 = scalar_lea.vmem %s9112_s18, %s7407_s5 }
  0x4d   : > { %s1075_s24 = scalar_lea.vmem %s9113_s15, %s7407_s5 }
  0x4e   : > { %s1078_s10 = scalar_lea.vmem %s9114_s14, %s7407_s5 }
  0x4f   : > { %s7490_s11 = scalar_lea.vmem %s9110_s4, %s5814_s17  ;;  %s9115_s17 = sld [smem:[#allocation10_spill]] }
  0x55   : > { %p5822_p0 = scmp.ne.s32.totalorder %s9115_s17, 0 }
  0x56   : > { %s9116_s25 = sld [smem:[#allocation24_spill]] (!%p5822_p0) }
  0x57   : > { %1083 = sbr.rel (%p5822_p0) target bundleno = 97 (0x61), region = 120 }
  0x5c   : > { %v1084_v0 = vld [vmem:[%s9116_s25] sm:$0xff]  ;;  %v1085_v1 = vld [vmem:[%s9116_s25 + $0x8] sm:$0xff]  ;;  %v1086_v2 = vld [vmem:[%s9116_s25 + $0x10] sm:$0xff] }
  0x5d   : > { %1092 = vst [vmem:[#allocation2 + $0x30] sm:$0xff] %v1084_v0  ;;  %1093 = vst [vmem:[#allocation2] sm:$0xff] %v1085_v1  ;;  %v1087_v3 = vld [vmem:[%s9116_s25 + $0x18] sm:$0xff]  ;;  %v1088_v4 = vld [vmem:[%s9116_s25 + $0x20] sm:$0xff] }
  0x5e   : > { %1094 = vst [vmem:[#allocation2 + $0x18] sm:$0xff] %v1086_v2  ;;  %v1089_v5 = vld [vmem:[%s9116_s25 + $0x28] sm:$0xff]  ;;  %1095 = vst [vmem:[#allocation2 + $0x10] sm:$0xff] %v1087_v3  ;;  %v1090_v6 = vld [vmem:[%s9116_s25 + $0x30] sm:$0xff] }
  0x5f   : > { %1096 = vst [vmem:[#allocation2 + $0x8] sm:$0xff] %v1088_v4  ;;  %1097 = vst [vmem:[#allocation2 + $0x20] sm:$0xff] %v1089_v5  ;;  %v1091_v7 = vld [vmem:[%s9116_s25 + $0x38] sm:$0xff] }
  0x60   : > { %1098 = vst [vmem:[#allocation2 + $0x28] sm:$0xff] %v1090_v6  ;;  %1099 = vst [vmem:[#allocation2 + $0x38] sm:$0xff] %v1091_v7 }
  0x61 PF: > { %s9117_s0 = sld [smem:[#allocation21_spill]]  ;;  %v7197_v10 = vmov 0   ;;  %v1148_v37 = vlaneseq  ;;  %v7572_v40 = vld [vmem:[%s7430_s1] sm:$0x7]  ;;  %vm1457_vm0 = vcmask 261120   ;;  %vm1555_vm1 = vcmask 523264  }
  0x62   : > { %1323 = vmatprep.mubr.bf16.mxu0 %v7197_v10  ;;  %s7198_s1 = smov 96   ;;  %s7199_s3 = smov 64   ;;  %vm2071_vm2 = vcmask 523520   ;;  %vm2406_vm3 = vcmask 785920   ;;  %vm2741_vm4 = vcmask 1048320   ;;  %vm3419_vm5 = vcmask 130048  }
  0x63   : > { %v7566_v38 = vshrl.u32 %v1148_v37, 7  ;;  %s7200_s4 = smov 32   ;;  %s9118_s28 = sld [smem:[#allocation22_spill]] }
  0x64   : > { %v1100_v16 = vld [vmem:[#allocation2 + $0x30] sm:$0xff]  ;;  %v1101_v18 = vld [vmem:[#allocation2] sm:$0xff]  ;;  %s9119_s14 = sld [smem:[#allocation29_spill]] }
  0x65   : > { %v1142_v20 = vpack.c.bf16 %v1101_v18, %v1100_v16  ;;  %v1102_v28 = vld [vmem:[#allocation2 + $0x18] sm:$0xff]  ;;  %v1103_v29 = vld [vmem:[#allocation2 + $0x10] sm:$0xff]  ;;  %v7569_v39 = vsub.s32 0, %v7566_v38  ;;  %v7581_v58 = vsub.s32 1, %v7566_v38  ;;  %s9121_s16 = sld [smem:[#allocation20_spill]] }
  0x66   : > { %v7555_v30 = vpack.c.bf16 %v1103_v29, %v1102_v28  ;;  %v1104_v31 = vld [vmem:[#allocation2 + $0x8] sm:$0xff]  ;;  %v1105_v32 = vld [vmem:[#allocation2 + $0x20] sm:$0xff]  ;;  %s9122_s2 = sld [smem:[#allocation30_spill]] }
  0x67   : > { %v6663_v8 = vld [vmem:[%s9117_s0 + $0xac] ss:$12 sps:$4 sm:$0xff]   ;;  %v6665_v9 = vld [vmem:[%s9117_s0 + $0xa8] ss:$12 sps:$4 sm:$0xff]   ;;  %v6668_v12 = vld [vmem:[%s9117_s0 + $0x90] ss:$12 sps:$4 sm:$0xff]   ;;  %6236 = vmatprep.mubr.bf16.mxu1 %v1142_v20  ;;  %v7559_v33 = vpack.c.bf16 %v1105_v32, %v1104_v31  ;;  %v1151_v42 = vrot.slane %v7572_v40, %v7569_v39  ;;  %v1155_v61 = vrot.slane %v7572_v40, %v7581_v58 }
  0x68   : > { %1291 = vmatprep.subr.bf16.mxu0 %v6663_v8  ;;  %v6666_v11 = vld [vmem:[%s9117_s0 + $0x94] ss:$12 sps:$4 sm:$0xff]   ;;  %v6669_v13 = vld [vmem:[%s9117_s0 + $0x7c] ss:$12 sps:$4 sm:$0xff]   ;;  %v6671_v14 = vld [vmem:[%s9117_s0 + $0x78] ss:$12 sps:$4 sm:$0xff]  }
  0x69   : > { %1292 = vmatpush1.bf16.msra.mxu0 %v6665_v9  ;;  %v6672_v15 = vld [vmem:[%s9117_s0 + $0x64] ss:$12 sps:$4 sm:$0xff]   ;;  %v6674_v17 = vld [vmem:[%s9117_s0 + $0x60] ss:$12 sps:$4 sm:$0xff]   ;;  %v6677_v21 = vld [vmem:[%s9117_s0 + $0x48] ss:$12 sps:$4 sm:$0xff]  }
  0x6a   : > { %1293 = vmatprep.subr.bf16.mxu0 %v6666_v11  ;;  %v6675_v19 = vld [vmem:[%s9117_s0 + $0x4c] ss:$12 sps:$4 sm:$0xff]   ;;  %v6678_v22 = vld [vmem:[%s9117_s0 + $0x34] ss:$12 sps:$4 sm:$0xff]   ;;  %v6680_v23 = vld [vmem:[%s9117_s0 + $0x30] ss:$12 sps:$4 sm:$0xff]   ;;  %s9120_s15 = scalar_lea.vmem %s9119_s14, %s7407_s5 }
  0x6b   : > { %v6681_v24 = vld [vmem:[%s9117_s0 + $0x1c] ss:$12 sps:$4 sm:$0xff]   ;;  %v6683_v25 = vld [vmem:[%s9117_s0 + $0x18] ss:$12 sps:$4 sm:$0xff]   ;;  %v6686_v27 = vld [vmem:[%s9117_s0] ss:$12 sps:$4 sm:$0xff]  }
  0x6c   : > { %v6684_v26 = vld [vmem:[%s9117_s0 + $0x4] ss:$12 sps:$4 sm:$0xff]   ;;  %v1106_v34 = vld [vmem:[#allocation2 + $0x28] sm:$0xff]  ;;  %v1107_v35 = vld [vmem:[#allocation2 + $0x38] sm:$0xff]  ;;  %s9123_s27 = scalar_lea.vmem %s9122_s2, %s7407_s5  ;;  %s9124_s29 = sld [smem:[#allocation31_spill]] }
  0x6d   : > { %1294 = vmatpush1.bf16.msra.mxu0 %v6668_v12  ;;  %v7563_v36 = vpack.c.bf16 %v1107_v35, %v1106_v34  ;;  %v6690_v28 = vld [vmem:[%s9117_s0 + $0x68] ss:$12 sps:$4 sm:$0xff]   ;;  %v6691_v29 = vld [vmem:[%s9117_s0 + $0x50] ss:$12 sps:$4 sm:$0xff]   ;;  %v6692_v31 = vld [vmem:[%s9117_s0 + $0x38] ss:$12 sps:$4 sm:$0xff]  }
  0x6e   : > { %1295 = vmatprep.subr.bf16.mxu0 %v6669_v13  ;;  %v6693_v32 = vld [vmem:[%s9117_s0 + $0x20] ss:$12 sps:$4 sm:$0xff]   ;;  %v6694_v34 = vld [vmem:[%s9117_s0 + $0x8] ss:$12 sps:$4 sm:$0xff]   ;;  %s9129_s19 = sld [smem:[#allocation36_spill]] }
  0x71   : > { %1296 = vmatpush1.bf16.msra.mxu0 %v6671_v14 }
  0x72   : > { %1297 = vmatprep.subr.bf16.mxu0 %v6672_v15  ;;  %s9125_s6 = scalar_lea.vmem %s9124_s29, %s7407_s5 }
  0x74   : > { %s9130_s14 = scalar_lea.vmem %s9129_s19, %s7407_s5 }
  0x75   : > { %1298 = vmatpush1.bf16.msra.mxu0 %v6674_v17 }
  0x76   : > { %1299 = vmatprep.subr.bf16.mxu0 %v6675_v19 }
  0x79   : > { %1300 = vmatpush1.bf16.msra.mxu0 %v6677_v21 }
  0x7a   : > { %1301 = vmatprep.subr.bf16.mxu0 %v6678_v22 }
  0x7d   : > { %1302 = vmatpush1.bf16.msra.mxu0 %v6680_v23 }
  0x7e   : > { %1303 = vmatprep.subr.bf16.mxu0 %v6681_v24 }
  0x81   : > { %1304 = vmatpush1.bf16.msra.mxu0 %v6683_v25  ;;  %v6687_v25 = vld [vmem:[%s9117_s0 + $0xb0] ss:$12 sps:$4 sm:$0xff]  }
  0x82   : > { %1305 = vmatprep.subr.bf16.mxu0 %v6684_v26  ;;  %v6688_v26 = vld [vmem:[%s9117_s0 + $0x98] ss:$12 sps:$4 sm:$0xff]   ;;  %6220 = vmatprep.subr.bf16.mxu1 %v6687_v25 }
  0x83   : > { %6221 = vmatpush3.bf16.msra.mxu1 %v6687_v25 }
  0x84   : > { %6222 = vmatprep.subr.bf16.mxu1 %v6688_v26 }
  0x85   : > { %1306 = vmatpush1.bf16.msra.mxu0 %v6686_v27  ;;  %v6689_v27 = vld [vmem:[%s9117_s0 + $0x80] ss:$12 sps:$4 sm:$0xff]   ;;  %s9126_s0 = scalar_lea.vmem %s9017_s9, %s7407_s5 }
  0x87   : > { %6223 = vmatpush3.bf16.msra.mxu1 %v6688_v26 }
  0x88   : > { %1324 = vmatmul.mubr.bf16.vlgmr.msra.gmra.mxu0 %v1142_v20  ;;  %6224 = vmatprep.subr.bf16.mxu1 %v6689_v27 }
  0x89   : > { %1333 = vmatprep.mubr.bf16.mxu0 %v7197_v10 }
  0x8b   : > { %6225 = vmatpush3.bf16.msra.mxu1 %v6689_v27 }
  0x8c   : > { %6226 = vmatprep.subr.bf16.mxu1 %v6690_v28 }
  0x8f   : > { %6227 = vmatpush3.bf16.msra.mxu1 %v6690_v28 }
  0x90   : > { %1334 = vmatmul.mubr.bf16.gmra.mxu0 %v7555_v30  ;;  %6228 = vmatprep.subr.bf16.mxu1 %v6691_v29 }
  0x91   : > { %1343 = vmatprep.mubr.bf16.mxu0 %v7197_v10 }
  0x93   : > { %6229 = vmatpush3.bf16.msra.mxu1 %v6691_v29 }
  0x94   : > { %6230 = vmatprep.subr.bf16.mxu1 %v6692_v31 }
  0x97   : > { %6231 = vmatpush3.bf16.msra.mxu1 %v6692_v31 }
  0x98   : > { %1344 = vmatmul.mubr.bf16.gmra.mxu0 %v7559_v33  ;;  %6232 = vmatprep.subr.bf16.mxu1 %v6693_v32 }
  0x99   : > { %1353 = vmatprep.mubr.bf16.mxu0 %v7197_v10 }
  0x9b   : > { %6233 = vmatpush3.bf16.msra.mxu1 %v6693_v32 }
  0x9c   : > { %6234 = vmatprep.subr.bf16.mxu1 %v6694_v34 }
  0x9f   : > { %6235 = vmatpush3.bf16.msra.mxu1 %v6694_v34 }
  0xa0   : > { %1354 = vmatmul.mubr.bf16.gmra.mxu0 %v7563_v36 }
  0xa2   : > { %6237 = vmatmul.mubr.bf16.vlgmr.msra.gmra.mxu1 %v7555_v30 }
  0xa3   : > { %6240 = vmatprep.mubr.bf16.mxu1 %v7559_v33 }
  0xaa   : > { %6241 = vmatmul.mubr.bf16.gmra.mxu1 %v7563_v36 }
 0x148   : > { %v1325_v41 = vpop.f32.mrf.mxu0 }
 0x149   : > { %v1326_v45 = vadd.f32 %v1325_v41, %v1151_v42 }
 0x14a   : > { %v1327_v43 = vpop.f32.mrf.mxu0 }
 0x14b   : > { %v1328_v12 = vadd.f32 %v1327_v43, %v1155_v61 }
 0x14c   : > { %v1329_v44 = vpop.f32.mrf.mxu0 }
 0x14d   : > { %v1330_v46 = vadd.f32 %v1329_v44, %v1151_v42 }
 0x14e   : > { %v1331_v47 = vpop.f32.mrf.mxu0 }
 0x14f   : > { %v7576_v48 = vpack.c.bf16 %v1330_v46, %v1326_v45  ;;  %v1332_v11 = vadd.f32 %v1331_v47, %v1155_v61 }
 0x150   : > { %v1335_v49 = vpop.f32.mrf.mxu0 }
 0x151   : > { %6252 = vmatprep.mubr.msk.bf16.mxu0 %vm1457_vm0, %v7576_v48  ;;  %v7601_v13 = vpack.c.bf16 %v1332_v11, %v1328_v12  ;;  %v1336_v18 = vadd.f32 %v1335_v49, %v1151_v42 }
 0x152   : > { %v1337_v50 = vpop.f32.mrf.mxu0 }
 0x153   : > { %v1338_v7 = vadd.f32 %v1337_v50, %v1155_v61  ;;  %v1471_v15 = vsel %vm1457_vm0, %v7601_v13, 0 }
 0x154   : > { %v1339_v51 = vpop.f32.mrf.mxu0 }
 0x155   : > { %v1340_v16 = vadd.f32 %v1339_v51, %v1151_v42 }
 0x156   : > { %v1341_v52 = vpop.f32.mrf.mxu0 }
 0x157   : > { %v1342_v6 = vadd.f32 %v1341_v52, %v1155_v61  ;;  %v7609_v20 = vpack.c.bf16 %v1340_v16, %v1336_v18 }
 0x158   : > { %v1345_v53 = vpop.f32.mrf.mxu0 }
 0x159   : > { %v7595_v8 = vpack.c.bf16 %v1342_v6, %v1338_v7  ;;  %v1346_v19 = vadd.f32 %v1345_v53, %v1151_v42 }
 0x15a   : > { %v1347_v54 = vpop.f32.mrf.mxu0 }
 0x15b   : > { %v1348_v2 = vadd.f32 %v1347_v54, %v1155_v61  ;;  %v1474_v14 = vsel %vm1457_vm0, %v7595_v8, 0 }
 0x15c   : > { %v1349_v55 = vpop.f32.mrf.mxu0 }
 0x15d   : > { %v1350_v17 = vadd.f32 %v1349_v55, %v1151_v42 }
 0x15e   : > { %v1351_v56 = vpop.f32.mrf.mxu0 }
 0x15f   : > { %v1352_v63 = vadd.f32 %v1351_v56, %v1155_v61  ;;  %v7611_v21 = vpack.c.bf16 %v1350_v17, %v1346_v19 }
 0x160   : > { %v1355_v57 = vpop.f32.mrf.mxu0 }
 0x161   : > { %v7587_v4 = vpack.c.bf16 %v1352_v63, %v1348_v2  ;;  %v1356_v23 = vadd.f32 %v1355_v57, %v1151_v42  ;;  %v1158_v2 = vsub.s32 2, %v7566_v38 }
 0x162   : > { %v1357_v59 = vpop.f32.mrf.mxu0 }
 0x163   : > { %v1358_v0 = vadd.f32 %v1357_v59, %v1155_v61  ;;  %v1477_v9 = vsel %vm1457_vm0, %v7587_v4, 0  ;;  %v1159_v16 = vrot.slane %v7572_v40, %v1158_v2 }
 0x164   : > { %v1359_v60 = vpop.f32.mrf.mxu0 }
 0x165   : > { %v1360_v22 = vadd.f32 %v1359_v60, %v1151_v42 }
 0x166   : > { %v1361_v62 = vpop.f32.mrf.mxu0 }
 0x167   : > { %v1362_v1 = vadd.f32 %v1361_v62, %v1155_v61  ;;  %v7617_v24 = vpack.c.bf16 %v1360_v22, %v1356_v23  ;;  %v6238_v62 = vpop.f32.mrf.mxu1 }
 0x168   : > { %v1407_v31 = vadd.f32 %v6238_v62, %v1159_v16 }
 0x169   : > { %v7585_v3 = vpack.c.bf16 %v1362_v1, %v1358_v0  ;;  %v1398_v0 = vpop.f32.mrf.mxu1 }
 0x16b   : > { %6564 = vmatprep.subr.msk.bf16.mxu0 %vm1457_vm0, %v7585_v3  ;;  %v1480_v5 = vsel %vm1457_vm0, %v7585_v3, 0  ;;  %v6239_v6 = vpop.f32.mrf.mxu1 }
 0x16c   : > { %6245 = vmatpush3.bf16.xpose.msra.mxu0 %v1480_v5  ;;  %v1410_v32 = vadd.f32 %v6239_v6, %v1159_v16 }
 0x16d   : > { %6565 = vmatprep.subr.msk.bf16.mxu0 %vm1457_vm0, %v7587_v4  ;;  %v1401_v12 = vpop.f32.mrf.mxu1 }
 0x16f   : > { %v6242_v18 = vpop.f32.mrf.mxu1 }
 0x170   : > { %v1423_v38 = vadd.f32 %v6242_v18, %v1159_v16 }
 0x171   : > { %v1414_v23 = vpop.f32.mrf.mxu1 }
 0x172   : > { %v1415_v27 = vadd.f32 %v1414_v23, %v1159_v16 }
 0x173   : > { %v6243_v26 = vpop.f32.mrf.mxu1 }
 0x174   : > { %6247 = vmatpush3.bf16.xpose.msra.mxu0 %v1477_v9  ;;  %v1426_v28 = vadd.f32 %v6243_v26, %v1159_v16 }
 0x175   : > { %6566 = vmatprep.subr.msk.bf16.mxu0 %vm1457_vm0, %v7595_v8  ;;  %v1417_v29 = vpop.f32.mrf.mxu1 }
 0x176   : > { %v7658_v34 = vpack.c.bf16 %v1426_v28, %v1423_v38 }
 0x178   : > { %6260 = vmatprep.subr.bf16.mxu1 %v7658_v34 }
 0x179   : > { %6261 = vmatpush3.bf16.msra.mxu1 %v7658_v34 }
 0x17c   : > { %6249 = vmatpush3.bf16.xpose.msra.mxu0 %v1474_v14 }
 0x17d   : > { %6567 = vmatprep.subr.msk.bf16.mxu0 %vm1457_vm0, %v7601_v13 }
 0x184   : > { %6251 = vmatpush3.bf16.xpose.msra.mxu0 %v1471_v15 }
 0x18b   : > { %6253 = vmatmul.mubr.msk.bf16.vlgmr.msra.gmra.mxu0 %vm1457_vm0, %v7609_v20 }
 0x18c   : > { %6256 = vmatprep.mubr.msk.bf16.mxu0 %vm1457_vm0, %v7611_v21 }
 0x193   : > { %6257 = vmatmul.mubr.msk.bf16.gmra.mxu0 %vm1457_vm0, %v7617_v24 }
 0x24b   : > { %v6254_v35 = vpop.f32.mrf.mxu0 }
 0x24c   : > { %v1549_v37 = vmul.f32 0.17677669, %v6254_v35  ;;  %v1418_v35 = vadd.f32 %v1417_v29, %v1159_v16 }
 0x24d   : > { %v1516_v41 = vpop.f32.mrf.mxu0 }
 0x24e   : > { %v1547_v42 = vmul.f32 0.17677669, %v1516_v41  ;;  %v1562_v43 = vsel %vm1555_vm1, %v1549_v37, -inf  ;;  %v7660_v40 = vpack.c.bf16 %v1418_v35, %v1415_v27 }
 0x24f   : > { %1563 = vmax.xlane.f32.xlu1 %v1562_v43  ;;  %v6255_v44 = vpop.f32.mrf.mxu0  ;;  %v1402_v43 = vadd.f32 %v1401_v12, %v1159_v16 }
 0x250   : > { %v1550_v45 = vmul.f32 0.17677669, %v6255_v44  ;;  %v1556_v46 = vsel %vm1555_vm1, %v1547_v42, -inf  ;;  %6262 = vmatprep.subr.bf16.mxu1 %v7660_v40 }
 0x251   : > { %1557 = vmax.xlane.f32.xlu0 %v1556_v46  ;;  %v1519_v47 = vpop.f32.mrf.mxu0  ;;  %6263 = vmatpush3.bf16.msra.mxu1 %v7660_v40 }
 0x252   : > { %v1548_v49 = vmul.f32 0.17677669, %v1519_v47  ;;  %v1565_v30 = vsel %vm1555_vm1, %v1550_v45, -inf }
 0x253   : > { %1566 = vmax.xlane.f32.xlu1 %v1565_v30  ;;  %v6258_v33 = vpop.f32.mrf.mxu0 }
 0x254   : > { %v1559_v36 = vsel %vm1555_vm1, %v1548_v49, -inf  ;;  %v7638_v53 = vmul.f32 0.17677669, %v6258_v33 }
 0x255   : > { %1560 = vmax.xlane.f32.xlu0 %v1559_v36  ;;  %v1532_v50 = vpop.f32.mrf.mxu0 }
 0x256   : > { %v7636_v51 = vmul.f32 0.17677669, %v1532_v50  ;;  %v1574_v60 = vsel %vm1555_vm1, %v7638_v53, -inf }
 0x257   : > { %v6259_v52 = vpop.f32.mrf.mxu0 }
 0x258   : > { %v7640_v54 = vmul.f32 0.17677669, %v6259_v52  ;;  %v1568_v55 = vsel %vm1555_vm1, %v7636_v51, -inf }
 0x259   : > { %1569 = vmax.xlane.f32.xlu0 %v1568_v55  ;;  %v1535_v56 = vpop.f32.mrf.mxu0 }
 0x25a   : > { %v7644_v57 = vmul.f32 0.17677669, %v1535_v56  ;;  %v1577_v59 = vsel %vm1555_vm1, %v7640_v54, -inf }
 0x25b   : > { %1578 = vmax.xlane.f32.xlu1 %v1577_v59 }
 0x25c   : > { %v1571_v61 = vsel %vm1555_vm1, %v7644_v57, -inf }
 0x25d   : > { %1575 = vmax.xlane.f32.xlu0 %v1574_v60 }
 0x25f   : > { %1572 = vmax.xlane.f32.xlu1 %v1571_v61 }
 0x270   : > { %1753 = vrot.lane.b32.xlu1 %v7587_v4, %s7198_s1 }
 0x274   : > { %1751 = vrot.lane.b32.xlu1 %v7595_v8, %s7198_s1 }
 0x2d8   : > { %v1564_v63 = vpop.xlane.xlu1 %1563 }
 0x2d9   : > { %v1582_v1 = vsub.f32 %v1549_v37, %v1564_v63  ;;  %v7664_v37 = vpack.c.bf16 %v1410_v32, %v1407_v31 }
 0x2da   : > { %v1558_v5 = vpop.xlane.xlu0 %1557 }
 0x2db   : > { %v1592_v7 = vmul.f32 1.442695, %v1582_v1  ;;  %v1580_v9 = vsub.f32 %v1547_v42, %v1558_v5  ;;  %v1399_v42 = vadd.f32 %v1398_v0, %v1159_v16  ;;  %6264 = vmatprep.subr.bf16.mxu1 %v7664_v37 }
 0x2dc   : > { %v1567_v11 = vpop.xlane.xlu1 %1566  ;;  %6265 = vmatpush3.bf16.msra.mxu1 %v7664_v37 }
 0x2dd   : > { %6783 = vpow2.f32 %v1592_v7  ;;  %v1588_v14 = vmul.f32 1.442695, %v1580_v9  ;;  %v1583_v15 = vsub.f32 %v1550_v45, %v1567_v11  ;;  %v7677_v47 = vpack.c.bf16 %v1402_v43, %v1399_v42 }
 0x2de   : > { %v1561_v17 = vpop.xlane.xlu0 %1560 }
 0x2df   : > { %6785 = vpow2.f32 %v1588_v14  ;;  %v1594_v19 = vmul.f32 1.442695, %v1583_v15  ;;  %v1581_v22 = vsub.f32 %v1548_v49, %v1561_v17  ;;  %6266 = vmatprep.subr.bf16.mxu1 %v7677_v47 }
 0x2e0   : > { %6267 = vmatpush3.bf16.msra.mxu1 %v7677_v47 }
 0x2e1   : > { %6787 = vpow2.f32 %v1594_v19  ;;  %v1590_v25 = vmul.f32 1.442695, %v1581_v22 }
 0x2e2   : > { %v1570_v50 = vpop.xlane.xlu0 %1569 }
 0x2e3   : > { %6789 = vpow2.f32 %v1590_v25  ;;  %v1584_v59 = vsub.f32 %v7636_v51, %v1570_v50 }
 0x2e4   : > { %v1579_v55 = vpop.xlane.xlu1 %1578 }
 0x2e5   : > { %v1587_v60 = vsub.f32 %v7640_v54, %v1579_v55  ;;  %v1596_v63 = vmul.f32 1.442695, %v1584_v59 }
 0x2e6   : > { %v1576_v52 = vpop.xlane.xlu0 %1575 }
 0x2e7   : > { %v1586_v56 = vsub.f32 %v7638_v53, %v1576_v52  ;;  %v1602_v0 = vmul.f32 1.442695, %v1587_v60 }
 0x2e8   : > { %v1573_v62 = vpop.xlane.xlu1 %1572 }
 0x2e9   : > { %v1600_v61 = vmul.f32 1.442695, %v1586_v56  ;;  %v1585_v1 = vsub.f32 %v7644_v57, %v1573_v62 }
 0x2ea   : > { %v7667_v41 = vpop.eup %6783 }
 0x2eb   : > { %v1610_v44 = vsel %vm1555_vm1, %v7667_v41, 0.0  ;;  %6791 = vpow2.f32 %v1600_v61  ;;  %v1598_v2 = vmul.f32 1.442695, %v1585_v1 }
 0x2ec   : > { %v7671_v45 = vpop.eup %6785  ;;  %1611 = vadd.xlane.f32.xlu0 %v1610_v44  ;;  %6793 = vpow2.f32 %v1596_v63  ;;  %v1754_v11 = vpop.permute.xlu1 %1753 }
 0x2ed   : > { %v1604_v49 = vsel %vm1555_vm1, %v7671_v45, 0.0  ;;  %6795 = vpow2.f32 %v1602_v0  ;;  %v1776_v43 = vsel %vm1457_vm0, %v1754_v11, 0 }
 0x2ee   : > { %v7675_v46 = vpop.eup %6787  ;;  %6797 = vpow2.f32 %v1598_v2 }
 0x2ef   : > { %v1613_v30 = vsel %vm1555_vm1, %v7675_v46, 0.0 }
 0x2f0   : > { %v7683_v33 = vpop.eup %6789  ;;  %1605 = vadd.xlane.f32.xlu0 %v1604_v49  ;;  %1614 = vadd.xlane.f32.xlu1 %v1613_v30  ;;  %v1752_v12 = vpop.permute.xlu1 %1751 }
 0x2f1   : > { %v1607_v36 = vsel %vm1555_vm1, %v7683_v33, 0.0  ;;  %v1773_v44 = vsel %vm1457_vm0, %v1752_v12, 0 }
 0x2f4   : > { %1608 = vadd.xlane.f32.xlu1 %v1607_v36 }
 0x2f8   : > { %v7698_v5 = vpop.eup %6791 }
 0x2f9   : > { %v7700_v6 = vpop.eup %6793  ;;  %v1622_v51 = vsel %vm1555_vm1, %v7698_v5, 0.0 }
 0x2fa   : > { %v7704_v53 = vpop.eup %6795  ;;  %v1616_v54 = vsel %vm1555_vm1, %v7700_v6, 0.0 }
 0x2fb   : > { %v1625_v57 = vsel %vm1555_vm1, %v7704_v53, 0.0  ;;  %v7710_v7 = vpop.eup %6797 }
 0x2fc   : > { %v1619_v9 = vsel %vm1555_vm1, %v7710_v7, 0.0 }
 0x305   : > { %2094 = vrot.lane.b32.xlu1 %v7585_v3, %s7199_s3 }
 0x306   : > { %1755 = vrot.lane.b32.xlu0 %v7585_v3, %s7198_s1 }
 0x325   : > { %1623 = vadd.xlane.f32.xlu0 %v1622_v51 }
 0x329   : > { %1617 = vadd.xlane.f32.xlu0 %v1616_v54  ;;  %1626 = vadd.xlane.f32.xlu1 %v1625_v57 }
 0x32d   : > { %1620 = vadd.xlane.f32.xlu1 %v1619_v9 }
 0x33e   : > { %2092 = vrot.lane.b32.xlu1 %v7587_v4, %s7199_s3 }
 0x33f   : > { %1749 = vrot.lane.b32.xlu0 %v7601_v13, %s7198_s1 }
 0x342   : > { %1739 = vrot.lane.b32.xlu1 %v7609_v20, %s7198_s1 }
 0x343   : > { %1737 = vrot.lane.b32.xlu0 %v7576_v48, %s7198_s1 }
 0x346   : > { %1741 = vrot.lane.b32.xlu1 %v7611_v21, %s7198_s1 }
 0x347   : > { %2090 = vrot.lane.b32.xlu0 %v7595_v8, %s7199_s3 }
 0x34a   : > { %2088 = vrot.lane.b32.xlu1 %v7601_v13, %s7199_s3 }
 0x34b   : > { %1743 = vrot.lane.b32.xlu0 %v7617_v24, %s7198_s1 }
 0x34e   : > { %2082 = vrot.lane.b32.xlu1 %v7609_v20, %s7199_s3 }
 0x34f   : > { %2080 = vrot.lane.b32.xlu0 %v7576_v48, %s7199_s3 }
 0x352   : > { %2086 = vrot.lane.b32.xlu1 %v7617_v24, %s7199_s3 }
 0x353   : > { %2084 = vrot.lane.b32.xlu0 %v7611_v21, %s7199_s3 }
 0x375   : > { %v1612_v14 = vpop.xlane.xlu0 %1611 }
 0x379   : > { %v1606_v15 = vpop.xlane.xlu0 %1605  ;;  %v1615_v16 = vpop.xlane.xlu1 %1614 }
 0x37a   : > { %6799 = vrcp.f32 %v1615_v16 }
 0x37b   : > { %6801 = vrcp.f32 %v1606_v15 }
 0x37c   : > { %6803 = vrcp.f32 %v1612_v14 }
 0x37d   : > { %v1756_v17 = vpop.permute.xlu0 %1755  ;;  %v1609_v18 = vpop.xlane.xlu1 %1608 }
 0x37e   : > { %6805 = vrcp.f32 %v1609_v18  ;;  %6568 = vmatprep.subr.msk.bf16.mxu1 %vm1457_vm0, %v1756_v17  ;;  %v1779_v42 = vsel %vm1457_vm0, %v1756_v17, 0 }
 0x381   : > { %v2095_v19 = vpop.permute.xlu1 %2094 }
 0x382   : > { %6572 = vmatprep.subr.msk.bf16.mxu0 %vm1457_vm0, %v2095_v19  ;;  %v2118_v22 = vsel %vm1457_vm0, %v2095_v19, 0 }
 0x383   : > { %6309 = vmatpush3.bf16.xpose.msra.mxu0 %v2118_v22 }
 0x387   : > { %v6800_v23 = vpop.eup %6799 }
 0x388   : > { %v6802_v25 = vpop.eup %6801  ;;  %v1639_v27 = vmul.f32 %v6800_v23, %v7675_v46 }
 0x389   : > { %v6804_v38 = vpop.eup %6803  ;;  %v1636_v28 = vmul.f32 %v6802_v25, %v7671_v45 }
 0x38a   : > { %v1638_v31 = vmul.f32 %v6804_v38, %v7667_v41 }
 0x38b   : > { %v6806_v26 = vpop.eup %6805 }
 0x38c   : > { %v1637_v29 = vmul.f32 %v6806_v26, %v7683_v33  ;;  %v1645_v35 = vpack.c.bf16 %v1639_v27, %v1638_v31 }
 0x38e   : > { %v1644_v32 = vpack.c.bf16 %v1637_v29, %v1636_v28 }
 0x390   : > { %6268 = vmatprep.mubr.msk.bf16.mxu1 %vm1555_vm1, %v1644_v32 }
 0x391   : > { %6269 = vmatmul.mubr.msk.bf16.vlgmr.msra.gmra.mxu1 %vm1555_vm1, %v1645_v35 }
 0x392   : > { %6277 = vmatpush3.bf16.xpose.msra.mxu1 %v1779_v42 }
 0x393   : > { %6569 = vmatprep.subr.msk.bf16.mxu1 %vm1457_vm0, %v1754_v11 }
 0x39a   : > { %6279 = vmatpush3.bf16.xpose.msra.mxu1 %v1776_v43 }
 0x39b   : > { %6570 = vmatprep.subr.msk.bf16.mxu1 %vm1457_vm0, %v1752_v12 }
 0x3a2   : > { %6281 = vmatpush3.bf16.xpose.msra.mxu1 %v1773_v44 }
 0x3ae   : > { %v1624_v41 = vpop.xlane.xlu0 %1623 }
 0x3b2   : > { %v1618_v45 = vpop.xlane.xlu0 %1617  ;;  %v1627_v46 = vpop.xlane.xlu1 %1626 }
 0x3b3   : > { %6807 = vrcp.f32 %v1627_v46 }
 0x3b4   : > { %6809 = vrcp.f32 %v1618_v45 }
 0x3b5   : > { %6811 = vrcp.f32 %v1624_v41 }
 0x3b6   : > { %v1750_v49 = vpop.permute.xlu0 %1749  ;;  %v1621_v30 = vpop.xlane.xlu1 %1620 }
 0x3b7   : > { %6813 = vrcp.f32 %v1621_v30  ;;  %6571 = vmatprep.subr.msk.bf16.mxu1 %vm1457_vm0, %v1750_v49  ;;  %v1770_v33 = vsel %vm1457_vm0, %v1750_v49, 0 }
 0x3b8   : > { %6283 = vmatpush3.bf16.xpose.msra.mxu1 %v1770_v33 }
 0x3ba   : > { %v1738_v36 = vpop.permute.xlu0 %1737  ;;  %v2093_v50 = vpop.permute.xlu1 %2092 }
 0x3bb   : > { %6573 = vmatprep.subr.msk.bf16.mxu0 %vm1457_vm0, %v2093_v50  ;;  %v2115_v52 = vsel %vm1457_vm0, %v2093_v50, 0 }
 0x3bc   : > { %6311 = vmatpush3.bf16.xpose.msra.mxu0 %v2115_v52 }
 0x3be   : > { %v2091_v55 = vpop.permute.xlu0 %2090  ;;  %v1740_v56 = vpop.permute.xlu1 %1739 }
 0x3bf   : > { %6574 = vmatprep.subr.msk.bf16.mxu0 %vm1457_vm0, %v2091_v55  ;;  %v2112_v0 = vsel %vm1457_vm0, %v2091_v55, 0 }
 0x3c0   : > { %v6808_v59 = vpop.eup %6807 }
 0x3c1   : > { %v6810_v60 = vpop.eup %6809  ;;  %v1643_v2 = vmul.f32 %v6808_v59, %v7704_v53 }
 0x3c2   : > { %v1744_v61 = vpop.permute.xlu0 %1743  ;;  %v1742_v62 = vpop.permute.xlu1 %1741  ;;  %v1640_v51 = vmul.f32 %v6810_v60, %v7700_v6 }
 0x3c3   : > { %v6812_v63 = vpop.eup %6811 }
 0x3c4   : > { %v6814_v1 = vpop.eup %6813  ;;  %6313 = vmatpush3.bf16.xpose.msra.mxu0 %v2112_v0  ;;  %v1642_v11 = vmul.f32 %v6812_v63, %v7698_v5 }
 0x3c5   : > { %v1641_v54 = vmul.f32 %v6814_v1, %v7710_v7 }
 0x3c6   : > { %v2081_v57 = vpop.permute.xlu0 %2080  ;;  %v2089_v9 = vpop.permute.xlu1 %2088  ;;  %v1647_v14 = vpack.c.bf16 %v1643_v2, %v1642_v11 }
 0x3c7   : > { %6575 = vmatprep.subr.msk.bf16.mxu0 %vm1457_vm0, %v2089_v9  ;;  %6316 = vmatprep.mubr.msk.bf16.mxu0 %vm1457_vm0, %v2081_v57  ;;  %v1646_v12 = vpack.c.bf16 %v1641_v54, %v1640_v51  ;;  %v2109_v6 = vsel %vm1457_vm0, %v2089_v9, 0 }
 0x3c9   : > { %6272 = vmatprep.mubr.msk.bf16.mxu1 %vm1555_vm1, %v1646_v12 }
 0x3ca   : > { %6273 = vmatmul.mubr.msk.bf16.gmra.mxu1 %vm1555_vm1, %v1647_v14  ;;  %v2083_v53 = vpop.permute.xlu1 %2082  ;;  %v2085_v7 = vpop.permute.xlu0 %2084 }
 0x3cb   : > { %6284 = vmatprep.mubr.msk.bf16.mxu1 %vm1457_vm0, %v1738_v36 }
 0x3cc   : > { %6315 = vmatpush3.bf16.xpose.msra.mxu0 %v2109_v6 }
 0x3ce   : > { %v2087_v5 = vpop.permute.xlu1 %2086 }
 0x3d2   : > { %6285 = vmatmul.mubr.msk.bf16.vlgmr.msra.gmra.mxu1 %vm1457_vm0, %v1740_v56 }
 0x3d3   : > { %6288 = vmatprep.mubr.msk.bf16.mxu1 %vm1457_vm0, %v1742_v62  ;;  %6317 = vmatmul.mubr.msk.bf16.vlgmr.msra.gmra.mxu0 %vm1457_vm0, %v2083_v53 }
 0x3d4   : > { %6320 = vmatprep.mubr.msk.bf16.mxu0 %vm1457_vm0, %v2085_v7 }
 0x3da   : > { %6289 = vmatmul.mubr.msk.bf16.gmra.mxu1 %vm1457_vm0, %v1744_v61 }
 0x3db   : > { %6321 = vmatmul.mubr.msk.bf16.gmra.mxu0 %vm1457_vm0, %v2087_v5 }
 0x451   : > { %v6270_v15 = vpop.f32.mrf.mxu1 }
 0x452   : > { %1727 = vst.msk [vmem:[#allocation3 + $0x10] sm:$0xff] %vm1457_vm0, %v6270_v15 }
 0x453   : > { %v1694_v16 = vpop.f32.mrf.mxu1 }
 0x454   : > { %1725 = vst.msk [vmem:[#allocation3] sm:$0xff] %vm1457_vm0, %v1694_v16 }
 0x455   : > { %v6271_v17 = vpop.f32.mrf.mxu1 }
 0x456   : > { %1728 = vst.msk [vmem:[#allocation3 + $0x18] sm:$0xff] %vm1457_vm0, %v6271_v17 }
 0x457   : > { %v1697_v18 = vpop.f32.mrf.mxu1 }
 0x458   : > { %1726 = vst.msk [vmem:[#allocation3 + $0x8] sm:$0xff] %vm1457_vm0, %v1697_v18 }
 0x48a   : > { %v6274_v19 = vpop.f32.mrf.mxu1 }
 0x48b   : > { %1731 = vst.msk [vmem:[#allocation3 + $0x30] sm:$0xff] %vm1457_vm0, %v6274_v19 }
 0x48c   : > { %v1710_v22 = vpop.f32.mrf.mxu1 }
 0x48d   : > { %1729 = vst.msk [vmem:[#allocation3 + $0x20] sm:$0xff] %vm1457_vm0, %v1710_v22 }
 0x48e   : > { %v6275_v23 = vpop.f32.mrf.mxu1 }
 0x48f   : > { %1732 = vst.msk [vmem:[#allocation3 + $0x38] sm:$0xff] %vm1457_vm0, %v6275_v23 }
 0x490   : > { %v1713_v25 = vpop.f32.mrf.mxu1 }
 0x491   : > { %1730 = vst.msk [vmem:[#allocation3 + $0x28] sm:$0xff] %vm1457_vm0, %v1713_v25 }
 0x492   : > { %v6286_v38 = vpop.f32.mrf.mxu1 }
 0x493   : > { %v6318_v26 = vpop.f32.mrf.mxu0  ;;  %v7798_v52 = vmul.f32 0.17677669, %v6286_v38 }
 0x494   : > { %v1815_v27 = vpop.f32.mrf.mxu1  ;;  %v7784_v32 = vmul.f32 0.17677669, %v6318_v26 }
 0x495   : > { %v2154_v28 = vpop.f32.mrf.mxu0  ;;  %v7804_v62 = vmul.f32 0.17677669, %v1815_v27  ;;  %v1860_v0 = vsel %vm1555_vm1, %v7798_v52, -inf }
 0x496   : > { %v7782_v29 = vmul.f32 0.17677669, %v2154_v28  ;;  %v6287_v42 = vpop.f32.mrf.mxu1  ;;  %v2199_v46 = vsel %vm1555_vm1, %v7784_v32, -inf }
 0x497   : > { %v6319_v31 = vpop.f32.mrf.mxu0  ;;  %v7811_v51 = vmul.f32 0.17677669, %v6287_v42  ;;  %v1854_v57 = vsel %vm1555_vm1, %v7804_v62, -inf }
 0x498   : > { %v2193_v35 = vsel %vm1555_vm1, %v7782_v29, -inf  ;;  %v7790_v45 = vmul.f32 0.17677669, %v6319_v31  ;;  %v1818_v30 = vpop.f32.mrf.mxu1 }
 0x499   : > { %2194 = vmax.xlane.f32.xlu0 %v2193_v35  ;;  %v2157_v43 = vpop.f32.mrf.mxu0  ;;  %v7806_v63 = vmul.f32 0.17677669, %v1818_v30  ;;  %v1863_v6 = vsel %vm1555_vm1, %v7811_v51, -inf }
 0x49a   : > { %v7788_v44 = vmul.f32 0.17677669, %v2157_v43  ;;  %v2202_v55 = vsel %vm1555_vm1, %v7790_v45, -inf  ;;  %v6290_v59 = vpop.f32.mrf.mxu1 }
 0x49b   : > { %v6322_v41 = vpop.f32.mrf.mxu0  ;;  %v1857_v9 = vsel %vm1555_vm1, %v7806_v63, -inf  ;;  %v7819_v12 = vmul.f32 0.17677669, %v6290_v59 }
 0x49c   : > { %v2196_v49 = vsel %vm1555_vm1, %v7788_v44, -inf  ;;  %v1831_v2 = vpop.f32.mrf.mxu1  ;;  %v7835_v18 = vmul.f32 0.17677669, %v6322_v41 }
 0x49d   : > { %2200 = vmax.xlane.f32.xlu0 %v2199_v46  ;;  %2197 = vmax.xlane.f32.xlu1 %v2196_v49  ;;  %v2170_v33 = vpop.f32.mrf.mxu0  ;;  %v7827_v5 = vmul.f32 0.17677669, %v1831_v2  ;;  %v1872_v16 = vsel %vm1555_vm1, %v7819_v12, -inf }
 0x49e   : > { %v7796_v36 = vmul.f32 0.17677669, %v2170_v33  ;;  %v6291_v11 = vpop.f32.mrf.mxu1  ;;  %v2211_v23 = vsel %vm1555_vm1, %v7835_v18, -inf }
 0x49f   : > { %v6323_v50 = vpop.f32.mrf.mxu0  ;;  %v7821_v14 = vmul.f32 0.17677669, %v6291_v11  ;;  %v1866_v19 = vsel %vm1555_vm1, %v7827_v5, -inf }
 0x4a0   : > { %v2205_v56 = vsel %vm1555_vm1, %v7796_v36, -inf  ;;  %v7813_v54 = vmul.f32 0.17677669, %v6323_v50  ;;  %v1834_v7 = vpop.f32.mrf.mxu1 }
 0x4a1   : > { %2203 = vmax.xlane.f32.xlu1 %v2202_v55  ;;  %2206 = vmax.xlane.f32.xlu0 %v2205_v56  ;;  %v2173_v60 = vpop.f32.mrf.mxu0  ;;  %v7829_v15 = vmul.f32 0.17677669, %v1834_v7  ;;  %v1875_v17 = vsel %vm1555_vm1, %v7821_v14, -inf }
 0x4a2   : > { %v2190_v61 = vmul.f32 0.17677669, %v2173_v60  ;;  %v2214_v53 = vsel %vm1555_vm1, %v7813_v54, -inf }
 0x4a3   : > { %v1869_v22 = vsel %vm1555_vm1, %v7829_v15, -inf }
 0x4a4   : > { %v2208_v1 = vsel %vm1555_vm1, %v2190_v61, -inf }
 0x4a5   : > { %1861 = vmax.xlane.f32.xlu0 %v1860_v0  ;;  %2209 = vmax.xlane.f32.xlu1 %v2208_v1 }
 0x4a9   : > { %1855 = vmax.xlane.f32.xlu0 %v1854_v57  ;;  %1858 = vmax.xlane.f32.xlu1 %v1857_v9 }
 0x4ad   : > { %1864 = vmax.xlane.f32.xlu0 %v1863_v6  ;;  %2215 = vmax.xlane.f32.xlu1 %v2214_v53 }
 0x4b1   : > { %1873 = vmax.xlane.f32.xlu0 %v1872_v16  ;;  %1876 = vmax.xlane.f32.xlu1 %v1875_v17 }
 0x4b5   : > { %1867 = vmax.xlane.f32.xlu0 %v1866_v19  ;;  %1870 = vmax.xlane.f32.xlu1 %v1869_v22 }
 0x4b9   : > { %2212 = vmax.xlane.f32.xlu0 %v2211_v23 }
 0x4cf   : > { %1956 = vrot.lane.b32.xlu0 %v7658_v34, %s7198_s1 }
 0x4d3   : > { %1952 = vrot.lane.b32.xlu0 %v7664_v37, %s7198_s1 }
 0x4d7   : > { %1950 = vrot.lane.b32.xlu0 %v7677_v47, %s7198_s1 }
 0x4db   : > { %2291 = vrot.lane.b32.xlu0 %v7658_v34, %s7199_s3 }
 0x4df   : > { %2287 = vrot.lane.b32.xlu0 %v7664_v37, %s7199_s3 }
 0x522   : > { %v2195_v25 = vpop.xlane.xlu0 %2194 }
 0x523   : > { %v2217_v38 = vsub.f32 %v7782_v29, %v2195_v25 }
 0x525   : > { %v2225_v26 = vmul.f32 1.442695, %v2217_v38 }
 0x526   : > { %v2201_v27 = vpop.xlane.xlu0 %2200  ;;  %v2198_v28 = vpop.xlane.xlu1 %2197 }
 0x527   : > { %6815 = vpow2.f32 %v2225_v26  ;;  %v2219_v31 = vsub.f32 %v7784_v32, %v2201_v27  ;;  %v2218_v35 = vsub.f32 %v7788_v44, %v2198_v28 }
 0x529   : > { %v2227_v42 = vmul.f32 1.442695, %v2218_v35  ;;  %v2229_v43 = vmul.f32 1.442695, %v2219_v31 }
 0x52a   : > { %v7856_v41 = vpop.xlane.xlu0 %2206  ;;  %v2204_v46 = vpop.xlane.xlu1 %2203 }
 0x52b   : > { %v2220_v49 = vsub.f32 %v7790_v45, %v2204_v46  ;;  %6817 = vpow2.f32 %v2227_v42 }
 0x52c   : > { %6819 = vpow2.f32 %v2229_v43 }
 0x52d   : > { %v2231_v30 = vmul.f32 1.442695, %v2220_v49 }
 0x52e   : > { %v1862_v33 = vpop.xlane.xlu0 %1861  ;;  %v2210_v29 = vpop.xlane.xlu1 %2209 }
 0x52f   : > { %v1880_v50 = vsub.f32 %v7798_v52, %v1862_v33  ;;  %v2222_v55 = vsub.f32 %v2190_v61, %v2210_v29  ;;  %6821 = vpow2.f32 %v2231_v30 }
 0x531   : > { %v2235_v56 = vmul.f32 1.442695, %v2222_v55  ;;  %v1890_v32 = vmul.f32 1.442695, %v1880_v50  ;;  %v2221_v55 = vsub.f32 %v7796_v36, %v7856_v41 }
 0x532   : > { %v1856_v59 = vpop.xlane.xlu0 %1855  ;;  %v1859_v52 = vpop.xlane.xlu1 %1858 }
 0x533   : > { %v1878_v44 = vsub.f32 %v7804_v62, %v1856_v59  ;;  %6823 = vpow2.f32 %v2235_v56  ;;  %v2233_v56 = vmul.f32 1.442695, %v2221_v55 }
 0x534   : > { %v7861_v60 = vpop.eup %6815  ;;  %6825 = vpow2.f32 %v1890_v32 }
 0x535   : > { %v2241_v45 = vsel %vm1555_vm1, %v7861_v60, 0.0  ;;  %v1886_v0 = vmul.f32 1.442695, %v1878_v44  ;;  %v1879_v44 = vsub.f32 %v7806_v63, %v1859_v52 }
 0x536   : > { %v1865_v1 = vpop.xlane.xlu0 %1864  ;;  %2242 = vadd.xlane.f32.xlu1 %v2241_v45  ;;  %v2216_v16 = vpop.xlane.xlu1 %2215 }
 0x537   : > { %6827 = vpow2.f32 %v1886_v0  ;;  %v2224_v23 = vsub.f32 %v7813_v54, %v2216_v16  ;;  %v1881_v32 = vsub.f32 %v7811_v51, %v1865_v1  ;;  %v1888_v0 = vmul.f32 1.442695, %v1879_v44 }
 0x538   : > { %v7865_v2 = vpop.eup %6817 }
 0x539   : > { %v2244_v57 = vsel %vm1555_vm1, %v7865_v2, 0.0  ;;  %v7869_v9 = vpop.eup %6819  ;;  %v2239_v28 = vmul.f32 1.442695, %v2224_v23  ;;  %v1892_v45 = vmul.f32 1.442695, %v1881_v32 }
 0x53a   : > { %v1874_v61 = vpop.xlane.xlu0 %1873  ;;  %2245 = vadd.xlane.f32.xlu1 %v2244_v57  ;;  %v2247_v53 = vsel %vm1555_vm1, %v7869_v9, 0.0  ;;  %v1877_v59 = vpop.xlane.xlu1 %1876 }
 0x53b   : > { %v1884_v62 = vsub.f32 %v7819_v12, %v1874_v61  ;;  %v1885_v61 = vsub.f32 %v7821_v14, %v1877_v59 }
 0x53c   : > { %v7874_v7 = vpop.eup %6821 }
 0x53d   : > { %v1898_v11 = vmul.f32 1.442695, %v1884_v62  ;;  %v2250_v12 = vsel %vm1555_vm1, %v7874_v7, 0.0  ;;  %v1900_v62 = vmul.f32 1.442695, %v1885_v61 }
 0x53e   : > { %v1868_v6 = vpop.xlane.xlu0 %1867  ;;  %2248 = vadd.xlane.f32.xlu1 %v2247_v53  ;;  %v1871_v57 = vpop.xlane.xlu1 %1870 }
 0x53f   : > { %6829 = vpow2.f32 %v1898_v11  ;;  %v1882_v17 = vsub.f32 %v7827_v5, %v1868_v6  ;;  %v1883_v36 = vsub.f32 %v7829_v15, %v1871_v57 }
 0x540   : > { %v7877_v19 = vpop.eup %6823 }
 0x541   : > { %v1894_v22 = vmul.f32 1.442695, %v1882_v17  ;;  %v2256_v38 = vsel %vm1555_vm1, %v7877_v19, 0.0  ;;  %v7884_v26 = vpop.eup %6825  ;;  %v1896_v51 = vmul.f32 1.442695, %v1883_v36 }
 0x542   : > { %v2213_v25 = vpop.xlane.xlu0 %2212  ;;  %2251 = vadd.xlane.f32.xlu1 %v2250_v12  ;;  %2257 = vadd.xlane.f32.xlu0 %v2256_v38  ;;  %v1908_v54 = vsel %vm1555_vm1, %v7884_v26, 0.0 }
 0x543   : > { %6831 = vpow2.f32 %v1894_v22  ;;  %v2223_v27 = vsub.f32 %v7835_v18, %v2213_v25 }
 0x544   : > { %v7889_v35 = vpop.eup %6827 }
 0x545   : > { %v2237_v5 = vmul.f32 1.442695, %v2223_v27  ;;  %v1902_v42 = vsel %vm1555_vm1, %v7889_v35, 0.0 }
 0x546   : > { %v1957_v31 = vpop.permute.xlu0 %1956  ;;  %1909 = vadd.xlane.f32.xlu0 %v1908_v54 }
 0x547   : > { %6833 = vpow2.f32 %v2237_v5  ;;  %6292 = vmatprep.subr.bf16.mxu1 %v1957_v31 }
 0x548   : > { %6293 = vmatpush3.bf16.msra.mxu1 %v1957_v31  ;;  %6835 = vpow2.f32 %v2239_v28 }
 0x549   : > { %6837 = vpow2.f32 %v2233_v56 }
 0x54a   : > { %1903 = vadd.xlane.f32.xlu0 %v1902_v42  ;;  %6839 = vpow2.f32 %v1892_v45  ;;  %v1953_v22 = vpop.permute.xlu0 %1952 }
 0x54b   : > { %6841 = vpow2.f32 %v1888_v0 }
 0x54c   : > { %v7893_v18 = vpop.eup %6829  ;;  %6843 = vpow2.f32 %v1900_v62 }
 0x54d   : > { %v1920_v43 = vsel %vm1555_vm1, %v7893_v18, 0.0  ;;  %6845 = vpow2.f32 %v1896_v51 }
 0x54e   : > { %1921 = vadd.xlane.f32.xlu0 %v1920_v43 }
 0x550   : > { %v7897_v46 = vpop.eup %6831 }
 0x551   : > { %v1914_v49 = vsel %vm1555_vm1, %v7897_v46, 0.0 }
 0x552   : > { %1915 = vadd.xlane.f32.xlu0 %v1914_v49 }
 0x553   : > { %1954 = vrot.lane.b32.xlu1 %v7660_v40, %s7198_s1 }
 0x554   : > { %v7901_v30 = vpop.eup %6833 }
 0x555   : > { %v2259_v33 = vsel %vm1555_vm1, %v7901_v30, 0.0  ;;  %v7907_v29 = vpop.eup %6835 }
 0x556   : > { %2260 = vadd.xlane.f32.xlu0 %v2259_v33  ;;  %v2262_v50 = vsel %vm1555_vm1, %v7907_v29, 0.0  ;;  %v7923_v63 = vpop.eup %6837 }
 0x557   : > { %2289 = vrot.lane.b32.xlu1 %v7660_v40, %s7199_s3  ;;  %v2253_v14 = vsel %vm1555_vm1, %v7923_v63, 0.0  ;;  %v6840_v41 = vpop.eup %6839 }
 0x558   : > { %v6842_v1 = vpop.eup %6841 }
 0x559   : > { %v1905_v15 = vsel %vm1555_vm1, %v6842_v1, 0.0 }
 0x55a   : > { %2263 = vadd.xlane.f32.xlu0 %v2262_v50 }
 0x570   : > { %2429 = vrot.lane.b32.xlu0 %v7585_v3, %s7200_s4  ;;  %v1911_v3 = vsel %vm1555_vm1, %v6840_v41, 0.0 }
 0x574   : > { %2415 = vrot.lane.b32.xlu0 %v7576_v48, %s7200_s4  ;;  %v7931_v48 = vpop.eup %6843 }
 0x575   : > { %v1923_v52 = vsel %vm1555_vm1, %v7931_v48, 0.0  ;;  %v7935_v11 = vpop.eup %6845 }
 0x578   : > { %2419 = vrot.lane.b32.xlu0 %v7611_v21, %s7200_s4  ;;  %v1917_v21 = vsel %vm1555_vm1, %v7935_v11, 0.0 }
 0x57b   : > { %2254 = vadd.xlane.f32.xlu1 %v2253_v14 }
 0x57f   : > { %1912 = vadd.xlane.f32.xlu1 %v1911_v3 }
 0x583   : > { %1906 = vadd.xlane.f32.xlu1 %v1905_v15 }
 0x587   : > { %1924 = vadd.xlane.f32.xlu1 %v1923_v52 }
 0x58b   : > { %1918 = vadd.xlane.f32.xlu1 %v1917_v21 }
 0x59c   : > { %2285 = vrot.lane.b32.xlu1 %v7677_v47, %s7199_s3 }
 0x5a0   : > { %2427 = vrot.lane.b32.xlu1 %v7587_v4, %s7200_s4  ;;  %v1951_v4 = vpop.permute.xlu0 %1950 }
 0x5a4   : > { %2425 = vrot.lane.b32.xlu1 %v7595_v8, %s7200_s4  ;;  %v2292_v8 = vpop.permute.xlu0 %2291 }
 0x5a8   : > { %2423 = vrot.lane.b32.xlu1 %v7601_v13, %s7200_s4  ;;  %v7951_v13 = vpop.permute.xlu0 %2287 }
 0x5ac   : > { %2417 = vrot.lane.b32.xlu1 %v7609_v20, %s7200_s4 }
 0x5b0   : > { %2421 = vrot.lane.b32.xlu1 %v7617_v24, %s7200_s4 }
 0x5bf   : > { %v2243_v6 = vpop.xlane.xlu1 %2242 }
 0x5c3   : > { %v2246_v53 = vpop.xlane.xlu1 %2245 }
 0x5c7   : > { %v2249_v16 = vpop.xlane.xlu1 %2248 }
 0x5cb   : > { %v2252_v17 = vpop.xlane.xlu1 %2251  ;;  %v2258_v20 = vpop.xlane.xlu0 %2257 }
 0x5cf   : > { %v1955_v23 = vpop.permute.xlu1 %1954  ;;  %v1910_v25 = vpop.xlane.xlu0 %1909 }
 0x5d0   : > { %6294 = vmatprep.subr.bf16.mxu1 %v1955_v23 }
 0x5d1   : > { %6295 = vmatpush3.bf16.msra.mxu1 %v1955_v23 }
 0x5d2   : > { %6296 = vmatprep.subr.bf16.mxu1 %v1953_v22 }
 0x5d3   : > { %v2290_v24 = vpop.permute.xlu1 %2289  ;;  %v1904_v12 = vpop.xlane.xlu0 %1903 }
 0x5d5   : > { %6297 = vmatpush3.bf16.msra.mxu1 %v1953_v22 }
 0x5d6   : > { %6298 = vmatprep.subr.bf16.mxu1 %v1951_v4 }
 0x5d7   : > { %v1922_v5 = vpop.xlane.xlu0 %1921 }
 0x5d9   : > { %6299 = vmatpush3.bf16.msra.mxu1 %v1951_v4 }
 0x5da   : > { %6324 = vmatprep.subr.bf16.mxu1 %v2292_v8 }
 0x5db   : > { %v1916_v31 = vpop.xlane.xlu0 %1915 }
 0x5df   : > { %v2261_v50 = vpop.xlane.xlu0 %2260 }
 0x5e3   : > { %v2264_v36 = vpop.xlane.xlu0 %2263 }
 0x5e7   : > { %v2430_v22 = vpop.permute.xlu0 %2429 }
 0x604   : > { %v2255_v38 = vpop.xlane.xlu1 %2254 }
 0x608   : > { %v1913_v27 = vpop.xlane.xlu1 %1912 }
 0x609   : > { %6847 = vrcp.f32 %v1913_v27 }
 0x60a   : > { %6849 = vrcp.f32 %v1904_v12 }
 0x60b   : > { %6851 = vrcp.f32 %v1910_v25 }
 0x60c   : > { %v1907_v28 = vpop.xlane.xlu1 %1906 }
 0x60d   : > { %6853 = vrcp.f32 %v1907_v28 }
 0x60e   : > { %6855 = vrcp.f32 %v2243_v6 }
 0x60f   : > { %6857 = vrcp.f32 %v2246_v53 }
 0x610   : > { %v1925_v54 = vpop.xlane.xlu1 %1924 }
 0x611   : > { %6859 = vrcp.f32 %v1925_v54 }
 0x612   : > { %6861 = vrcp.f32 %v1916_v31 }
 0x613   : > { %6863 = vrcp.f32 %v1922_v5 }
 0x614   : > { %v1919_v42 = vpop.xlane.xlu1 %1918 }
 0x615   : > { %6865 = vrcp.f32 %v1919_v42 }
 0x616   : > { %v6848_v43 = vpop.eup %6847  ;;  %6867 = vrcp.f32 %v2252_v17 }
 0x617   : > { %v6850_v49 = vpop.eup %6849  ;;  %v1937_v56 = vmul.f32 %v6848_v43, %v6840_v41  ;;  %6869 = vrcp.f32 %v2255_v38 }
 0x618   : > { %v6852_v33 = vpop.eup %6851  ;;  %v1934_v32 = vmul.f32 %v6850_v49, %v7889_v35  ;;  %6871 = vrcp.f32 %v2249_v16 }
 0x619   : > { %v1936_v44 = vmul.f32 %v6852_v33, %v7884_v26  ;;  %6873 = vrcp.f32 %v2258_v20 }
 0x61a   : > { %v6854_v55 = vpop.eup %6853  ;;  %6875 = vrcp.f32 %v2264_v36 }
 0x61b   : > { %v1935_v59 = vmul.f32 %v6854_v55, %v6842_v1  ;;  %v6856_v45 = vpop.eup %6855  ;;  %v1943_v57 = vpack.c.bf16 %v1937_v56, %v1936_v44  ;;  %6877 = vrcp.f32 %v2261_v50 }
 0x61c   : > { %v6858_v61 = vpop.eup %6857  ;;  %v2273_v21 = vmul.f32 %v6856_v45, %v7861_v60 }
 0x61d   : > { %v1942_v0 = vpack.c.bf16 %v1935_v59, %v1934_v32  ;;  %v2274_v1 = vmul.f32 %v6858_v61, %v7865_v2 }
 0x61e   : > { %v6860_v62 = vpop.eup %6859 }
 0x61f   : > { %6300 = vmatprep.mubr.msk.bf16.mxu1 %vm1555_vm1, %v1942_v0  ;;  %v6862_v51 = vpop.eup %6861  ;;  %v1941_v35 = vmul.f32 %v6860_v62, %v7931_v48  ;;  %v2281_v48 = vpack.c.bf16 %v2274_v1, %v2273_v21 }
 0x620   : > { %6301 = vmatmul.mubr.msk.bf16.vlgmr.msra.gmra.mxu1 %vm1555_vm1, %v1943_v57  ;;  %v6864_v14 = vpop.eup %6863  ;;  %v1938_v26 = vmul.f32 %v6862_v51, %v7897_v46 }
 0x621   : > { %6325 = vmatpush3.bf16.msra.mxu1 %v2292_v8  ;;  %v1940_v15 = vmul.f32 %v6864_v14, %v7893_v18 }
 0x622   : > { %v6866_v41 = vpop.eup %6865  ;;  %6326 = vmatprep.subr.bf16.mxu1 %v2290_v24 }
 0x623   : > { %v1939_v3 = vmul.f32 %v6866_v41, %v7935_v11  ;;  %v1945_v6 = vpack.c.bf16 %v1941_v35, %v1940_v15  ;;  %v6868_v53 = vpop.eup %6867  ;;  %v2286_v11 = vpop.permute.xlu1 %2285 }
 0x624   : > { %v6870_v16 = vpop.eup %6869  ;;  %v2276_v18 = vmul.f32 %v6868_v53, %v7874_v7 }
 0x625   : > { %6327 = vmatpush3.bf16.msra.mxu1 %v2290_v24  ;;  %v1944_v52 = vpack.c.bf16 %v1939_v3, %v1938_v26  ;;  %v6872_v46 = vpop.eup %6871  ;;  %v2277_v60 = vmul.f32 %v6870_v16, %v7923_v63  ;;  %v2416_v24 = vpop.permute.xlu0 %2415 }
 0x626   : > { %6328 = vmatprep.subr.bf16.mxu1 %v7951_v13  ;;  %v6874_v2 = vpop.eup %6873  ;;  %v2275_v17 = vmul.f32 %v6872_v46, %v7869_v9 }
 0x627   : > { %6304 = vmatprep.mubr.msk.bf16.mxu1 %vm1555_vm1, %v1944_v52  ;;  %v2278_v23 = vmul.f32 %v6874_v2, %v7877_v19  ;;  %v6876_v8 = vpop.eup %6875  ;;  %v2428_v7 = vpop.permute.xlu1 %2427 }
 0x628   : > { %6305 = vmatmul.mubr.msk.bf16.gmra.mxu1 %vm1555_vm1, %v1945_v6  ;;  %v2282_v4 = vpack.c.bf16 %v2276_v18, %v2275_v17  ;;  %v6878_v25 = vpop.eup %6877  ;;  %v2280_v9 = vmul.f32 %v6876_v8, %v7907_v29  ;;  %v2450_v12 = vsel %vm1457_vm0, %v2428_v7, 0 }
 0x629   : > { %6329 = vmatpush3.bf16.msra.mxu1 %v7951_v13  ;;  %6332 = vmatprep.mubr.msk.bf16.mxu1 %vm1555_vm1, %v2281_v48  ;;  %v2283_v20 = vpack.c.bf16 %v2278_v23, %v2277_v60  ;;  %v2453_v13 = vsel %vm1457_vm0, %v2430_v22, 0  ;;  %v2279_v19 = vmul.f32 %v6878_v25, %v7901_v30  ;;  %v2420_v28 = vpop.permute.xlu0 %2419 }
 0x62a   : > { %6330 = vmatprep.subr.bf16.mxu1 %v2286_v11 }
 0x62b   : > { %v2284_v63 = vpack.c.bf16 %v2280_v9, %v2279_v19  ;;  %v2426_v38 = vpop.permute.xlu1 %2425 }
 0x62c   : > { %v2447_v27 = vsel %vm1457_vm0, %v2426_v38, 0 }
 0x62d   : > { %6331 = vmatpush3.bf16.msra.mxu1 %v2286_v11 }
 0x62e   : > { %6576 = vmatprep.subr.msk.bf16.mxu1 %vm1457_vm0, %v2430_v22 }
 0x62f   : > { %v2424_v5 = vpop.permute.xlu1 %2423 }
 0x630   : > { %6333 = vmatmul.mubr.msk.bf16.vlgmr.msra.gmra.mxu1 %vm1555_vm1, %v2282_v4  ;;  %v2444_v30 = vsel %vm1457_vm0, %v2424_v5, 0 }
 0x631   : > { %6341 = vmatpush3.bf16.xpose.msra.mxu1 %v2453_v13  ;;  %6336 = vmatprep.mubr.msk.bf16.mxu1 %vm1555_vm1, %v2283_v20 }
 0x632   : > { %6577 = vmatprep.subr.msk.bf16.mxu1 %vm1457_vm0, %v2428_v7 }
 0x633   : > { %v2418_v29 = vpop.permute.xlu1 %2417 }
 0x637   : > { %v2422_v31 = vpop.permute.xlu1 %2421 }
 0x638   : > { %6337 = vmatmul.mubr.msk.bf16.gmra.mxu1 %vm1555_vm1, %v2284_v63 }
 0x639   : > { %6343 = vmatpush3.bf16.xpose.msra.mxu1 %v2450_v12  ;;  %6348 = vmatprep.mubr.msk.bf16.mxu1 %vm1457_vm0, %v2416_v24 }
 0x63a   : > { %6578 = vmatprep.subr.msk.bf16.mxu1 %vm1457_vm0, %v2426_v38 }
 0x641   : > { %6345 = vmatpush3.bf16.xpose.msra.mxu1 %v2447_v27 }
 0x642   : > { %6579 = vmatprep.subr.msk.bf16.mxu1 %vm1457_vm0, %v2424_v5 }
 0x649   : > { %6347 = vmatpush3.bf16.xpose.msra.mxu1 %v2444_v30 }
 0x650   : > { %6349 = vmatmul.mubr.msk.bf16.vlgmr.msra.gmra.mxu1 %vm1457_vm0, %v2418_v29 }
 0x651   : > { %6352 = vmatprep.mubr.msk.bf16.mxu1 %vm1457_vm0, %v2420_v28 }
 0x658   : > { %6353 = vmatmul.mubr.msk.bf16.gmra.mxu1 %vm1457_vm0, %v2422_v31 }
 0x6e0   : > { %v7989_v54 = vpop.f32.mrf.mxu1 }
 0x6e2   : > { %v7991_v42 = vpop.f32.mrf.mxu1 }
 0x6e4   : > { %v7993_v43 = vpop.f32.mrf.mxu1 }
 0x6e6   : > { %v7995_v49 = vpop.f32.mrf.mxu1 }
 0x6e8   : > { %v7997_v33 = vpop.f32.mrf.mxu1 }
 0x6ea   : > { %v7999_v50 = vpop.f32.mrf.mxu1 }
 0x6ec   : > { %v8001_v55 = vpop.f32.mrf.mxu1 }
 0x6ee   : > { %v8003_v56 = vpop.f32.mrf.mxu1 }
 0x6f0   : > { %v8005_v32 = vpop.f32.mrf.mxu1 }
 0x6f2   : > { %v8007_v59 = vpop.f32.mrf.mxu1 }
 0x6f4   : > { %v8009_v44 = vpop.f32.mrf.mxu1 }
 0x6f6   : > { %v8011_v45 = vpop.f32.mrf.mxu1 }
 0x6f8   : > { %v8013_v0 = vpop.f32.mrf.mxu1 }
 0x6fa   : > { %v8015_v61 = vpop.f32.mrf.mxu1 }
 0x6fc   : > { %v8017_v57 = vpop.f32.mrf.mxu1 }
 0x6fe   : > { %v8019_v62 = vpop.f32.mrf.mxu1 }
 0x710   : > { %v6350_v36 = vpop.f32.mrf.mxu1 }
 0x711   : > { %v2522_v35 = vmul.f32 0.17677669, %v6350_v36 }
 0x712   : > { %v2489_v51 = vpop.f32.mrf.mxu1 }
 0x713   : > { %v2520_v14 = vmul.f32 0.17677669, %v2489_v51  ;;  %v2534_v21 = vsel %vm1555_vm1, %v2522_v35, -inf }
 0x714   : > { %v6351_v41 = vpop.f32.mrf.mxu1 }
 0x715   : > { %v2528_v26 = vsel %vm1555_vm1, %v2520_v14, -inf  ;;  %v2523_v52 = vmul.f32 0.17677669, %v6351_v41 }
 0x716   : > { %2529 = vmax.xlane.f32.xlu0 %v2528_v26  ;;  %v2492_v3 = vpop.f32.mrf.mxu1 }
 0x717   : > { %v2521_v1 = vmul.f32 0.17677669, %v2492_v3  ;;  %v2537_v46 = vsel %vm1555_vm1, %v2523_v52, -inf }
 0x718   : > { %v6354_v15 = vpop.f32.mrf.mxu1 }
 0x719   : > { %v2531_v6 = vsel %vm1555_vm1, %v2521_v1, -inf  ;;  %v2526_v18 = vmul.f32 0.17677669, %v6354_v15 }
 0x71a   : > { %2535 = vmax.xlane.f32.xlu0 %v2534_v21  ;;  %2532 = vmax.xlane.f32.xlu1 %v2531_v6  ;;  %v2505_v53 = vpop.f32.mrf.mxu1 }
 0x71b   : > { %v2524_v16 = vmul.f32 0.17677669, %v2505_v53  ;;  %v2546_v23 = vsel %vm1555_vm1, %v2526_v18, -inf }
 0x71c   : > { %v6355_v48 = vpop.f32.mrf.mxu1 }
 0x71d   : > { %v2527_v60 = vmul.f32 0.17677669, %v6355_v48  ;;  %v2540_v17 = vsel %vm1555_vm1, %v2524_v16, -inf }
 0x71e   : > { %2538 = vmax.xlane.f32.xlu0 %v2537_v46  ;;  %v2508_v11 = vpop.f32.mrf.mxu1 }
 0x71f   : > { %v8025_v2 = vmul.f32 0.17677669, %v2508_v11  ;;  %v2549_v4 = vsel %vm1555_vm1, %v2527_v60, -inf }
 0x721   : > { %v2543_v22 = vsel %vm1555_vm1, %v8025_v2, -inf }
 0x722   : > { %2541 = vmax.xlane.f32.xlu0 %v2540_v17  ;;  %2544 = vmax.xlane.f32.xlu1 %v2543_v22 }
 0x726   : > { %2547 = vmax.xlane.f32.xlu0 %v2546_v23  ;;  %2550 = vmax.xlane.f32.xlu1 %v2549_v4 }
 0x79f   : > { %v2530_v8 = vpop.xlane.xlu0 %2529 }
 0x7a0   : > { %v2552_v20 = vsub.f32 %v2520_v14, %v2530_v8 }
 0x7a2   : > { %v2560_v9 = vmul.f32 1.442695, %v2552_v20 }
 0x7a3   : > { %v2536_v13 = vpop.xlane.xlu0 %2535  ;;  %v2533_v25 = vpop.xlane.xlu1 %2532 }
 0x7a4   : > { %v2554_v7 = vsub.f32 %v2522_v35, %v2536_v13  ;;  %v2553_v63 = vsub.f32 %v2521_v1, %v2533_v25 }
 0x7a6   : > { %v2564_v19 = vmul.f32 1.442695, %v2554_v7  ;;  %v2562_v38 = vmul.f32 1.442695, %v2553_v63 }
 0x7a7   : > { %v2539_v24 = vpop.xlane.xlu0 %2538 }
 0x7a8   : > { %6879 = vpow2.f32 %v2564_v19  ;;  %v2555_v12 = vsub.f32 %v2523_v52, %v2539_v24 }
 0x7a9   : > { %6881 = vpow2.f32 %v2560_v9 }
 0x7aa   : > { %v2566_v27 = vmul.f32 1.442695, %v2555_v12 }
 0x7ab   : > { %v2542_v5 = vpop.xlane.xlu0 %2541  ;;  %v2545_v48 = vpop.xlane.xlu1 %2544 }
 0x7ac   : > { %6883 = vpow2.f32 %v2566_v27  ;;  %v2556_v30 = vsub.f32 %v2524_v16, %v2542_v5  ;;  %v2557_v11 = vsub.f32 %v8025_v2, %v2545_v48  ;;  %v6698_v48 = vld [vmem:[%s9118_s28 + $0x20] sm:$0xff]  }
 0x7ad   : > { %6885 = vpow2.f32 %v2562_v38 }
 0x7ae   : > { %v2568_v31 = vmul.f32 1.442695, %v2556_v30  ;;  %v2570_v17 = vmul.f32 1.442695, %v2557_v11  ;;  %v6701_v11 = vld [vmem:[%s9118_s28 + $0x8] sm:$0xff]  }
 0x7af   : > { %v2548_v29 = vpop.xlane.xlu0 %2547  ;;  %v2551_v16 = vpop.xlane.xlu1 %2550 }
 0x7b0   : > { %v2558_v28 = vsub.f32 %v2526_v18, %v2548_v29  ;;  %v2559_v46 = vsub.f32 %v2527_v60, %v2551_v16  ;;  %v6699_v16 = vld [vmem:[%s9118_s28 + $0x18] sm:$0xff]  }
 0x7b2   : > { %v2572_v36 = vmul.f32 1.442695, %v2558_v28  ;;  %v2574_v18 = vmul.f32 1.442695, %v2559_v46  ;;  %v6700_v46 = vld [vmem:[%s9118_s28 + $0x10] sm:$0xff]  }
 0x7b4   : > { %6887 = vpow2.f32 %v2572_v36 }
 0x7b5   : > { %v8032_v51 = vpop.eup %6879  ;;  %6889 = vpow2.f32 %v2568_v31 }
 0x7b6   : > { %v2582_v14 = vsel %vm1555_vm1, %v8032_v51, 0.0  ;;  %v8036_v41 = vpop.eup %6881  ;;  %6891 = vpow2.f32 %v2574_v18 }
 0x7b7   : > { %2583 = vadd.xlane.f32.xlu0 %v2582_v14  ;;  %v2576_v26 = vsel %vm1555_vm1, %v8036_v41, 0.0  ;;  %6893 = vpow2.f32 %v2570_v17  ;;  %v6702_v17 = vld [vmem:[%s9118_s28] sm:$0xff]  }
 0x7b9   : > { %v8038_v35 = vpop.eup %6883 }
 0x7ba   : > { %v2585_v3 = vsel %vm1555_vm1, %v8038_v35, 0.0  ;;  %v6886_v1 = vpop.eup %6885 }
 0x7bb   : > { %2577 = vadd.xlane.f32.xlu0 %v2576_v26  ;;  %2586 = vadd.xlane.f32.xlu1 %v2585_v3  ;;  %v2579_v15 = vsel %vm1555_vm1, %v6886_v1, 0.0 }
 0x7bf   : > { %2580 = vadd.xlane.f32.xlu1 %v2579_v15 }
 0x7c1   : > { %v8045_v52 = vpop.eup %6887 }
 0x7c2   : > { %v2594_v21 = vsel %vm1555_vm1, %v8045_v52, 0.0  ;;  %v8049_v6 = vpop.eup %6889 }
 0x7c3   : > { %2595 = vadd.xlane.f32.xlu0 %v2594_v21  ;;  %v2588_v53 = vsel %vm1555_vm1, %v8049_v6, 0.0  ;;  %v6695_v21 = vld [vmem:[%s9118_s28 + $0x38] sm:$0xff]  }
 0x7c7   : > { %2589 = vadd.xlane.f32.xlu0 %v2588_v53  ;;  %v6697_v53 = vld [vmem:[%s9118_s28 + $0x28] sm:$0xff]  }
 0x7d0   : > { %2624 = vrot.lane.b32.xlu1 %v7660_v40, %s7200_s4 }
 0x7d4   : > { %2622 = vrot.lane.b32.xlu1 %v7664_v37, %s7200_s4 }
 0x7dd   : > { %2626 = vrot.lane.b32.xlu0 %v7658_v34, %s7200_s4  ;;  %v8070_v34 = vpop.eup %6891 }
 0x7de   : > { %v2597_v40 = vsel %vm1555_vm1, %v8070_v34, 0.0  ;;  %v8076_v37 = vpop.eup %6893 }
 0x7e1   : > { %2047 = vrot.lane.b32.xlu0 %v7991_v42, %s7200_s4 }
 0x7e5   : > { %2051 = vrot.lane.b32.xlu0 %v7989_v54, %s7200_s4  ;;  %v2591_v54 = vsel %vm1555_vm1, %v8076_v37, 0.0 }
 0x7e9   : > { %2382 = vrot.lane.b32.xlu0 %v8007_v59, %s7199_s3 }
 0x7ed   : > { %2386 = vrot.lane.b32.xlu0 %v8005_v32, %s7199_s3 }
 0x7f1   : > { %2055 = vrot.lane.b32.xlu0 %v7999_v50, %s7200_s4 }
 0x7f5   : > { %2059 = vrot.lane.b32.xlu0 %v7997_v33, %s7200_s4 }
 0x7f8   : > { %2598 = vadd.xlane.f32.xlu1 %v2597_v40 }
 0x7f9   : > { %2390 = vrot.lane.b32.xlu0 %v8015_v61, %s7199_s3 }
 0x7fc   : > { %2592 = vadd.xlane.f32.xlu1 %v2591_v54 }
 0x80d   : > { %2620 = vrot.lane.b32.xlu1 %v7677_v47, %s7200_s4 }
 0x811   : > { %2049 = vrot.lane.b32.xlu1 %v7995_v49, %s7200_s4 }
 0x815   : > { %2053 = vrot.lane.b32.xlu1 %v7993_v43, %s7200_s4 }
 0x819   : > { %2384 = vrot.lane.b32.xlu1 %v8011_v45, %s7199_s3 }
 0x81d   : > { %2388 = vrot.lane.b32.xlu1 %v8009_v44, %s7199_s3 }
 0x821   : > { %2057 = vrot.lane.b32.xlu1 %v8003_v56, %s7200_s4 }
 0x825   : > { %2061 = vrot.lane.b32.xlu1 %v8001_v55, %s7200_s4 }
 0x829   : > { %2392 = vrot.lane.b32.xlu1 %v8019_v62, %s7199_s3 }
 0x840   : > { %v2584_v47 = vpop.xlane.xlu0 %2583 }
 0x844   : > { %v2578_v42 = vpop.xlane.xlu0 %2577  ;;  %v2587_v49 = vpop.xlane.xlu1 %2586 }
 0x845   : > { %6895 = vrcp.f32 %v2578_v42 }
 0x848   : > { %v2581_v43 = vpop.xlane.xlu1 %2580 }
 0x849   : > { %6897 = vrcp.f32 %v2581_v43 }
 0x84a   : > { %6899 = vrcp.f32 %v2587_v49 }
 0x84b   : > { %6901 = vrcp.f32 %v2584_v47 }
 0x84c   : > { %v2596_v33 = vpop.xlane.xlu0 %2595  ;;  %v2625_v59 = vpop.permute.xlu1 %2624 }
 0x850   : > { %v2590_v50 = vpop.xlane.xlu0 %2589  ;;  %v2623_v2 = vpop.permute.xlu1 %2622 }
 0x852   : > { %v6896_v32 = vpop.eup %6895 }
 0x853   : > { %v2608_v55 = vmul.f32 %v6896_v32, %v8036_v41 }
 0x854   : > { %v2627_v44 = vpop.permute.xlu0 %2626 }
 0x855   : > { %6356 = vmatprep.subr.bf16.mxu0 %v2627_v44 }
 0x856   : > { %v6898_v45 = vpop.eup %6897  ;;  %6357 = vmatpush3.bf16.msra.mxu0 %v2627_v44 }
 0x857   : > { %6358 = vmatprep.subr.bf16.mxu0 %v2625_v59  ;;  %v2609_v56 = vmul.f32 %v6898_v45, %v6886_v1  ;;  %v6900_v25 = vpop.eup %6899 }
 0x858   : > { %v2048_v61 = vpop.permute.xlu0 %2047  ;;  %v6902_v9 = vpop.eup %6901  ;;  %v2611_v19 = vmul.f32 %v6900_v25, %v8038_v35 }
 0x859   : > { %2072 = vst.msk [vmem:[#allocation3] sm:$0xff] %vm2071_vm2, %v2048_v61  ;;  %v2616_v62 = vpack.c.bf16 %v2609_v56, %v2608_v55  ;;  %v2610_v24 = vmul.f32 %v6902_v9, %v8032_v51 }
 0x85a   : > { %6359 = vmatpush3.bf16.msra.mxu0 %v2625_v59 }
 0x85b   : > { %6360 = vmatprep.subr.bf16.mxu0 %v2623_v2  ;;  %6364 = vmatprep.mubr.msk.bf16.mxu0 %vm1555_vm1, %v2616_v62  ;;  %v2617_v12 = vpack.c.bf16 %v2611_v19, %v2610_v24  ;;  %v7087_v19 = vld [vmem:[#allocation2 + $0x30] sm:$0xff]  ;;  %v5887_v24 = vld [vmem:[%s9120_s15] ss:$0 sm:$0xff] }
 0x85c   : > { %v2052_v60 = vpop.permute.xlu0 %2051 }
 0x85d   : > { %2074 = vst.msk [vmem:[#allocation3 + $0x10] sm:$0xff] %vm2071_vm2, %v2052_v60 }
 0x85e   : > { %6361 = vmatpush3.bf16.msra.mxu0 %v2623_v2 }
 0x860   : > { %v2383_v22 = vpop.permute.xlu0 %2382 }
 0x861   : > { %2407 = vst.msk [vmem:[#allocation3] sm:$0xff] %vm2406_vm3, %v2383_v22 }
 0x864   : > { %v2387_v23 = vpop.permute.xlu0 %2386 }
 0x865   : > { %2409 = vst.msk [vmem:[#allocation3 + $0x10] sm:$0xff] %vm2406_vm3, %v2387_v23 }
 0x868   : > { %v2056_v4 = vpop.permute.xlu0 %2055 }
 0x869   : > { %2076 = vst.msk [vmem:[#allocation3 + $0x20] sm:$0xff] %vm2071_vm2, %v2056_v4 }
 0x86c   : > { %v2060_v8 = vpop.permute.xlu0 %2059 }
 0x86d   : > { %2078 = vst.msk [vmem:[#allocation3 + $0x30] sm:$0xff] %vm2071_vm2, %v2060_v8 }
 0x870   : > { %v2391_v20 = vpop.permute.xlu0 %2390 }
 0x871   : > { %2411 = vst.msk [vmem:[#allocation3 + $0x20] sm:$0xff] %vm2406_vm3, %v2391_v20 }
 0x881   : > { %v2599_v13 = vpop.xlane.xlu1 %2598 }
 0x882   : > { %6903 = vrcp.f32 %v2599_v13 }
 0x883   : > { %6905 = vrcp.f32 %v2590_v50 }
 0x884   : > { %6907 = vrcp.f32 %v2596_v33 }
 0x885   : > { %v2593_v7 = vpop.xlane.xlu1 %2592 }
 0x886   : > { %6909 = vrcp.f32 %v2593_v7 }
 0x889   : > { %v2621_v63 = vpop.permute.xlu1 %2620 }
 0x88a   : > { %6362 = vmatprep.subr.bf16.mxu0 %v2621_v63 }
 0x88b   : > { %6363 = vmatpush3.bf16.msra.mxu0 %v2621_v63 }
 0x88c   : > { %6372 = vmatprep.subr.bf16.mxu0 %v6695_v21 }
 0x88d   : > { %v2050_v38 = vpop.permute.xlu1 %2049 }
 0x88e   : > { %2073 = vst.msk [vmem:[#allocation3 + $0x8] sm:$0xff] %vm2071_vm2, %v2050_v38  ;;  %6365 = vmatmul.mubr.msk.bf16.vlgmr.msra.gmra.mxu0 %vm1555_vm1, %v2617_v12  ;;  %v7088_v38 = vld [vmem:[#allocation2 + $0x18] sm:$0xff] }
 0x88f   : > { %v6904_v27 = vpop.eup %6903  ;;  %6373 = vmatpush3.bf16.msra.mxu0 %v6695_v21 }
 0x890   : > { %v6906_v5 = vpop.eup %6905  ;;  %v2615_v31 = vmul.f32 %v6904_v27, %v8070_v34 }
 0x891   : > { %v2054_v30 = vpop.permute.xlu1 %2053  ;;  %v6908_v29 = vpop.eup %6907  ;;  %v2612_v36 = vmul.f32 %v6906_v5, %v8049_v6  ;;  %v6696_v6 = vld [vmem:[%s9118_s28 + $0x30] sm:$0xff]  }
 0x892   : > { %2075 = vst.msk [vmem:[#allocation3 + $0x18] sm:$0xff] %vm2071_vm2, %v2054_v30  ;;  %v2614_v41 = vmul.f32 %v6908_v29, %v8045_v52  ;;  %6374 = vmatprep.subr.bf16.mxu0 %v6696_v6  ;;  %v7089_v29 = vld [vmem:[#allocation2] sm:$0xff] }
 0x893   : > { %v6910_v28 = vpop.eup %6909  ;;  %6375 = vmatpush3.bf16.msra.mxu0 %v6696_v6 }
 0x894   : > { %v2613_v51 = vmul.f32 %v6910_v28, %v8076_v37  ;;  %v2619_v26 = vpack.c.bf16 %v2615_v31, %v2614_v41  ;;  %6376 = vmatprep.subr.bf16.mxu0 %v6697_v53 }
 0x895   : > { %v2385_v14 = vpop.permute.xlu1 %2384 }
 0x896   : > { %2408 = vst.msk [vmem:[#allocation3 + $0x8] sm:$0xff] %vm2406_vm3, %v2385_v14  ;;  %v2618_v35 = vpack.c.bf16 %v2613_v51, %v2612_v36  ;;  %v7090_v36 = vld [vmem:[#allocation2 + $0x10] sm:$0xff] }
 0x897   : > { %6377 = vmatpush3.bf16.msra.mxu0 %v6697_v53 }
 0x898   : > { %6368 = vmatprep.mubr.msk.bf16.mxu0 %vm1555_vm1, %v2618_v35  ;;  %6378 = vmatprep.subr.bf16.mxu0 %v6698_v48 }
 0x899   : > { %6369 = vmatmul.mubr.msk.bf16.gmra.mxu0 %vm1555_vm1, %v2619_v26  ;;  %v2389_v3 = vpop.permute.xlu1 %2388 }
 0x89a   : > { %2410 = vst.msk [vmem:[#allocation3 + $0x18] sm:$0xff] %vm2406_vm3, %v2389_v3  ;;  %v7091_v3 = vld [vmem:[#allocation2 + $0x8] sm:$0xff] }
 0x89b   : > { %6379 = vmatpush3.bf16.msra.mxu0 %v6698_v48  ;;  %v7093_v48 = vld [vmem:[#allocation2 + $0x20] sm:$0xff] }
 0x89c   : > { %6380 = vmatprep.subr.bf16.mxu0 %v6699_v16 }
 0x89d   : > { %v2058_v1 = vpop.permute.xlu1 %2057 }
 0x89e   : > { %2077 = vst.msk [vmem:[#allocation3 + $0x28] sm:$0xff] %vm2071_vm2, %v2058_v1 }
 0x89f   : > { %6381 = vmatpush3.bf16.msra.mxu0 %v6699_v16 }
 0x8a0   : > { %6382 = vmatprep.subr.bf16.mxu0 %v6700_v46 }
 0x8a1   : > { %v2062_v15 = vpop.permute.xlu1 %2061 }
 0x8a2   : > { %2079 = vst.msk [vmem:[#allocation3 + $0x38] sm:$0xff] %vm2071_vm2, %v2062_v15 }
 0x8a3   : > { %6383 = vmatpush3.bf16.msra.mxu0 %v6700_v46 }
 0x8a4   : > { %6384 = vmatprep.subr.bf16.mxu0 %v6701_v11 }
 0x8a5   : > { %v2393_v52 = vpop.permute.xlu1 %2392 }
 0x8a6   : > { %2412 = vst.msk [vmem:[#allocation3 + $0x28] sm:$0xff] %vm2406_vm3, %v2393_v52  ;;  %v7092_v52 = vld [vmem:[#allocation2 + $0x28] sm:$0xff] }
 0x8a7   : > { %6385 = vmatpush3.bf16.msra.mxu0 %v6701_v11  ;;  %v7094_v11 = vld [vmem:[#allocation2 + $0x38] sm:$0xff] }
 0x8a8   : > { %6386 = vmatprep.subr.bf16.mxu0 %v6702_v17 }
 0x8ab   : > { %6387 = vmatpush3.bf16.msra.mxu0 %v6702_v17 }
 0x94e   : > { %v6366_v18 = vpop.f32.mrf.mxu0 }
 0x94f   : > { %2721 = vrot.lane.b32.xlu0 %v6366_v18, %s7198_s1 }
 0x950   : > { %v2678_v34 = vpop.f32.mrf.mxu0 }
 0x952   : > { %v6367_v40 = vpop.f32.mrf.mxu0 }
 0x953   : > { %2717 = vrot.lane.b32.xlu0 %v2678_v34, %s7198_s1  ;;  %2723 = vrot.lane.b32.xlu1 %v6367_v40, %s7198_s1  ;;  %v6703_v40 = vld [vmem:[%s7458_s7 + $0x70] ss:$8 sps:$4 sm:$0xff]  }
 0x954   : > { %v2681_v37 = vpop.f32.mrf.mxu0 }
 0x957   : > { %2394 = vrot.lane.b32.xlu0 %v8013_v0, %s7199_s3  ;;  %2719 = vrot.lane.b32.xlu1 %v2681_v37, %s7198_s1  ;;  %v6705_v37 = vld [vmem:[%s7458_s7 + $0x74] ss:$8 sps:$4 sm:$0xff]  }
 0x958   : > { %3266 = vmatprep.subr.bf16.mxu0 %v6705_v37 }
 0x959   : > { %v6370_v54 = vpop.f32.mrf.mxu0 }
 0x95b   : > { %2396 = vrot.lane.b32.xlu1 %v8017_v57, %s7199_s3  ;;  %v2694_v47 = vpop.f32.mrf.mxu0 }
 0x95c   : > { %2725 = vrot.lane.b32.xlu0 %v2694_v47, %s7198_s1 }
 0x95d   : > { %v6371_v42 = vpop.f32.mrf.mxu0 }
 0x95f   : > { %v2697_v49 = vpop.f32.mrf.mxu0 }
 0x960   : > { %2729 = vrot.lane.b32.xlu0 %v6370_v54, %s7198_s1  ;;  %2727 = vrot.lane.b32.xlu1 %v2697_v49, %s7198_s1 }
 0x964   : > { %2731 = vrot.lane.b32.xlu1 %v6371_v42, %s7198_s1 }
 0x9c1   : > { %v2722_v43 = vpop.permute.xlu0 %2721 }
 0x9c2   : > { %2744 = vst.msk [vmem:[#allocation3 + $0x10] sm:$0xff] %vm2741_vm4, %v2722_v43 }
 0x9c5   : > { %v2718_v0 = vpop.permute.xlu0 %2717  ;;  %v2724_v33 = vpop.permute.xlu1 %2723 }
 0x9c6   : > { %2742 = vst.msk [vmem:[#allocation3] sm:$0xff] %vm2741_vm4, %v2718_v0  ;;  %2745 = vst.msk [vmem:[#allocation3 + $0x18] sm:$0xff] %vm2741_vm4, %v2724_v33 }
 0x9c9   : > { %v2395_v57 = vpop.permute.xlu0 %2394  ;;  %v2720_v50 = vpop.permute.xlu1 %2719  ;;  %v2752_v2 = vld [vmem:[#allocation3 + $0x10] sm:$0xff] }
 0x9ca   : > { %2413 = vst.msk [vmem:[#allocation3 + $0x30] sm:$0xff] %vm2406_vm3, %v2395_v57 }
 0x9cb   : > { %2743 = vst.msk [vmem:[#allocation3 + $0x8] sm:$0xff] %vm2741_vm4, %v2720_v50 }
 0x9cd   : > { %v2397_v32 = vpop.permute.xlu1 %2396  ;;  %v2753_v44 = vld [vmem:[#allocation3 + $0x18] sm:$0xff]  ;;  %v2750_v45 = vld [vmem:[#allocation3] sm:$0xff] }
 0x9ce   : > { %2414 = vst.msk [vmem:[#allocation3 + $0x38] sm:$0xff] %vm2406_vm3, %v2397_v32  ;;  %v2726_v59 = vpop.permute.xlu0 %2725  ;;  %v2759_v60 = vpack.c.bf16 %v2753_v44, %v2752_v2 }
 0x9cf   : > { %2746 = vst.msk [vmem:[#allocation3 + $0x20] sm:$0xff] %vm2741_vm4, %v2726_v59 }
 0x9d2   : > { %v2751_v55 = vld [vmem:[#allocation3 + $0x8] sm:$0xff]  ;;  %v2730_v56 = vpop.permute.xlu0 %2729  ;;  %v2728_v61 = vpop.permute.xlu1 %2727 }
 0x9d3   : > { %v2758_v62 = vpack.c.bf16 %v2751_v55, %v2750_v45  ;;  %2748 = vst.msk [vmem:[#allocation3 + $0x30] sm:$0xff] %vm2741_vm4, %v2730_v56  ;;  %2747 = vst.msk [vmem:[#allocation3 + $0x28] sm:$0xff] %vm2741_vm4, %v2728_v61 }
 0x9d5   : > { %6388 = vmatprep.mubr.bf16.mxu0 %v2758_v62 }
 0x9d6   : > { %6389 = vmatmul.mubr.bf16.vlgmr.msra.gmra.mxu0 %v2759_v60  ;;  %v2732_v22 = vpop.permute.xlu1 %2731  ;;  %v2754_v23 = vld [vmem:[#allocation3 + $0x20] sm:$0xff] }
 0x9d7   : > { %2749 = vst.msk [vmem:[#allocation3 + $0x38] sm:$0xff] %vm2741_vm4, %v2732_v22  ;;  %3267 = vmatpush1.bf16.msra.mxu0 %v6703_v40 }
 0x9da   : > { %v2755_v4 = vld [vmem:[#allocation3 + $0x28] sm:$0xff]  ;;  %v2756_v20 = vld [vmem:[#allocation3 + $0x30] sm:$0xff] }
 0x9db   : > { %v2760_v8 = vpack.c.bf16 %v2755_v4, %v2754_v23  ;;  %v6708_v4 = vld [vmem:[%s7458_s7 + $0x64] ss:$8 sps:$4 sm:$0xff]  }
 0x9dc   : > { %3268 = vmatprep.subr.bf16.mxu0 %v6708_v4 }
 0x9dd   : > { %6392 = vmatprep.mubr.bf16.mxu0 %v2760_v8 }
 0x9de   : > { %v2757_v13 = vld [vmem:[#allocation3 + $0x38] sm:$0xff] }
 0x9df   : > { %v2761_v25 = vpack.c.bf16 %v2757_v13, %v2756_v20 }
 0x9e1   : > { %6393 = vmatmul.mubr.bf16.gmra.mxu0 %v2761_v25  ;;  %v6706_v25 = vld [vmem:[%s7458_s7 + $0x60] ss:$8 sps:$4 sm:$0xff]  }
 0x9e2   : > { %3298 = vmatprep.mubr.bf16.mxu0 %v7197_v10  ;;  %3269 = vmatpush1.bf16.msra.mxu0 %v6706_v25 }
 0xa96   : > { %v6390_v7 = vpop.f32.mrf.mxu0 }
 0xa97   : > { %v2877_v27 = vadd.f32 %v7088_v38, %v6390_v7  ;;  %v6709_v7 = vld [vmem:[%s7447_s21 + $0x38] sm:$0xff]  }
 0xa98   : > { %v2844_v9 = vpop.f32.mrf.mxu0  ;;  %6396 = vmatprep.subr.bf16.mxu1 %v6709_v7 }
 0xa99   : > { %v2875_v63 = vadd.f32 %v7087_v19, %v2844_v9  ;;  %v2892_v31 = vadd.f32 %v5887_v24, %v2877_v27  ;;  %6397 = vmatpush3.bf16.msra.mxu1 %v6709_v7  ;;  %v5888_v7 = vld [vmem:[%s9123_s27] ss:$0 sm:$0xff] }
 0xa9a   : > { %v6391_v12 = vpop.f32.mrf.mxu0 }
 0xa9b   : > { %v2890_v5 = vadd.f32 %v5887_v24, %v2875_v63  ;;  %v2878_v51 = vadd.f32 %v7090_v36, %v6391_v12  ;;  %v6714_v36 = vld [vmem:[%s7458_s7 + $0x40] ss:$8 sps:$4 sm:$0xff]  }
 0xa9c   : > { %v2847_v30 = vpop.f32.mrf.mxu0 }
 0xa9d   : > { %v2876_v28 = vadd.f32 %v7089_v29, %v2847_v30  ;;  %2900 = vadd.xlane.f32.xlu0 %v2890_v5  ;;  %v2893_v35 = vadd.f32 %v5887_v24, %v2878_v51  ;;  %v6713_v30 = vld [vmem:[%s7447_s21 + $0x30] sm:$0xff]   ;;  %v6717_v51 = vld [vmem:[%s7447_s21 + $0x28] sm:$0xff]  }
 0xa9e   : > { %6398 = vmatprep.subr.bf16.mxu1 %v6713_v30 }
 0xa9f   : > { %v2891_v14 = vadd.f32 %v5887_v24, %v2876_v28  ;;  %v6716_v28 = vld [vmem:[%s7458_s7 + $0x44] ss:$8 sps:$4 sm:$0xff]   ;;  %6399 = vmatpush3.bf16.msra.mxu1 %v6713_v30 }
 0xaa0   : > { %6400 = vmatprep.subr.bf16.mxu1 %v6717_v51 }
 0xaa1   : > { %2904 = vadd.xlane.f32.xlu0 %v2892_v31  ;;  %2902 = vadd.xlane.f32.xlu1 %v2891_v14  ;;  %v6394_v41 = vpop.f32.mrf.mxu0 }
 0xaa2   : > { %v2881_v21 = vadd.f32 %v7092_v52, %v6394_v41  ;;  %v6718_v41 = vld [vmem:[%s7458_s7 + $0x30] ss:$8 sps:$4 sm:$0xff]  }
 0xaa3   : > { %v2860_v26 = vpop.f32.mrf.mxu0  ;;  %6401 = vmatpush3.bf16.msra.mxu1 %v6717_v51  ;;  %v6726_v52 = vld [vmem:[%s7458_s7 + $0x10] ss:$8 sps:$4 sm:$0xff]  }
 0xaa4   : > { %v2879_v1 = vadd.f32 %v7091_v3, %v2860_v26  ;;  %v2896_v46 = vadd.f32 %v5887_v24, %v2881_v21  ;;  %v6724_v26 = vld [vmem:[%s7458_s7 + $0x24] ss:$8 sps:$4 sm:$0xff]   ;;  %v6722_v3 = vld [vmem:[%s7458_s7 + $0x20] ss:$8 sps:$4 sm:$0xff]   ;;  %v6729_v21 = vld [vmem:[%s7447_s21 + $0x10] sm:$0xff]  }
 0xaa5   : > { %2906 = vadd.xlane.f32.xlu0 %v2893_v35  ;;  %v6395_v15 = vpop.f32.mrf.mxu0 }
 0xaa6   : > { %v2894_v6 = vadd.f32 %v5887_v24, %v2879_v1  ;;  %v2882_v18 = vadd.f32 %v7094_v11, %v6395_v15  ;;  %v6725_v1 = vld [vmem:[%s7447_s21 + $0x18] sm:$0xff]   ;;  %v6734_v11 = vld [vmem:[%s7447_s21] sm:$0xff]  }
 0xaa7   : > { %v2863_v53 = vpop.f32.mrf.mxu0  ;;  %v6728_v15 = vld [vmem:[%s7458_s7 + $0x14] ss:$8 sps:$4 sm:$0xff]  }
 0xaa8   : > { %v2880_v16 = vadd.f32 %v7093_v48, %v2863_v53  ;;  %v2897_v34 = vadd.f32 %v5887_v24, %v2882_v18  ;;  %v6730_v53 = vld [vmem:[%s7458_s7] ss:$8 sps:$4 sm:$0xff]  }
 0xaa9   : > { %2908 = vadd.xlane.f32.xlu0 %v2894_v6  ;;  %v6733_v48 = vld [vmem:[%s7447_s21 + $0x8] sm:$0xff]  }
 0xaaa   : > { %v2895_v17 = vadd.f32 %v5887_v24, %v2880_v16  ;;  %v6712_v24 = vld [vmem:[%s7458_s7 + $0x54] ss:$8 sps:$4 sm:$0xff]   ;;  %v1108_v16 = vld [vmem:[%s9121_s16] sm:$0xff] }
 0xaab   : > { %3270 = vmatprep.subr.bf16.mxu0 %v6712_v24 }
 0xaac   : > { %2910 = vadd.xlane.f32.xlu1 %v2895_v17 }
 0xaad   : > { %2912 = vadd.xlane.f32.xlu0 %v2896_v46 }
 0xab0   : > { %2914 = vadd.xlane.f32.xlu1 %v2897_v34 }
 0xb26   : > { %v2901_v54 = vpop.xlane.xlu0 %2900 }
 0xb27   : > { %v2917_v47 = vmul.f32 0.0078125, %v2901_v54 }
 0xb29   : > { %v8161_v42 = vsub.f32 %v2890_v5, %v2917_v47  ;;  %v6710_v5 = vld [vmem:[%s7458_s7 + $0x50] ss:$8 sps:$4 sm:$0xff]  }
 0xb2a   : > { %v2905_v49 = vpop.xlane.xlu0 %2904  ;;  %v2903_v43 = vpop.xlane.xlu1 %2902  ;;  %3271 = vmatpush1.bf16.msra.mxu0 %v6710_v5 }
 0xb2b   : > { %v2919_v0 = vmul.f32 0.0078125, %v2905_v49  ;;  %v2918_v33 = vmul.f32 0.0078125, %v2903_v43  ;;  %v2933_v57 = vmul.f32 %v8161_v42, %v8161_v42  ;;  %3272 = vmatprep.subr.bf16.mxu0 %v6716_v28 }
 0xb2d   : > { %v8165_v50 = vsub.f32 %v2892_v31, %v2919_v0  ;;  %v8167_v32 = vsub.f32 %v2891_v14, %v2918_v33  ;;  %2941 = vadd.xlane.f32.xlu0 %v2933_v57  ;;  %v6720_v14 = vld [vmem:[%s7458_s7 + $0x34] ss:$8 sps:$4 sm:$0xff]  }
 0xb2e   : > { %v2907_v59 = vpop.xlane.xlu0 %2906  ;;  %3273 = vmatpush1.bf16.msra.mxu0 %v6714_v36 }
 0xb2f   : > { %v2920_v44 = vmul.f32 0.0078125, %v2907_v59  ;;  %v2935_v45 = vmul.f32 %v8165_v50, %v8165_v50  ;;  %v2934_v55 = vmul.f32 %v8167_v32, %v8167_v32  ;;  %3274 = vmatprep.subr.bf16.mxu0 %v6720_v14 }
 0xb31   : > { %v8173_v56 = vsub.f32 %v2893_v35, %v2920_v44  ;;  %2945 = vadd.xlane.f32.xlu0 %v2935_v45  ;;  %2943 = vadd.xlane.f32.xlu1 %v2934_v55  ;;  %v6721_v35 = vld [vmem:[%s7447_s21 + $0x20] sm:$0xff]   ;;  %s9131_s21 = sld [smem:[#allocation37_spill]] }
 0xb32   : > { %v2909_v61 = vpop.xlane.xlu0 %2908  ;;  %3275 = vmatpush1.bf16.msra.mxu0 %v6718_v41  ;;  %6402 = vmatprep.subr.bf16.mxu1 %v6721_v35 }
 0xb33   : > { %v2921_v62 = vmul.f32 0.0078125, %v2909_v61  ;;  %v2936_v2 = vmul.f32 %v8173_v56, %v8173_v56  ;;  %6403 = vmatpush3.bf16.msra.mxu1 %v6721_v35  ;;  %3276 = vmatprep.subr.bf16.mxu0 %v6724_v26 }
 0xb34   : > { %6404 = vmatprep.subr.bf16.mxu1 %v6725_v1 }
 0xb35   : > { %v8177_v60 = vsub.f32 %v2894_v6, %v2921_v62  ;;  %2947 = vadd.xlane.f32.xlu1 %v2936_v2  ;;  %v2911_v23 = vpop.xlane.xlu1 %2910  ;;  %v6732_v6 = vld [vmem:[%s7458_s7 + $0x4] ss:$8 sps:$4 sm:$0xff]  }
 0xb36   : > { %v2913_v22 = vpop.xlane.xlu0 %2912  ;;  %v2922_v20 = vmul.f32 0.0078125, %v2911_v23  ;;  %3277 = vmatpush1.bf16.msra.mxu0 %v6722_v3 }
 0xb37   : > { %v2923_v8 = vmul.f32 0.0078125, %v2913_v22  ;;  %v2937_v13 = vmul.f32 %v8177_v60, %v8177_v60  ;;  %6405 = vmatpush3.bf16.msra.mxu1 %v6725_v1  ;;  %3278 = vmatprep.subr.bf16.mxu0 %v6728_v15  ;;  %s9132_s7 = scalar_lea.vmem %s9131_s21, %s7407_s5 }
 0xb38   : > { %v8186_v19 = vsub.f32 %v2895_v17, %v2922_v20  ;;  %6406 = vmatprep.subr.bf16.mxu1 %v6729_v21 }
 0xb39   : > { %v8184_v9 = vsub.f32 %v2896_v46, %v2923_v8  ;;  %2949 = vadd.xlane.f32.xlu0 %v2937_v13  ;;  %v2915_v63 = vpop.xlane.xlu1 %2914  ;;  %v1109_v46 = vld [vmem:[%s9121_s16 + $0x8] sm:$0xff] }
 0xb3a   : > { %v2924_v12 = vmul.f32 0.0078125, %v2915_v63  ;;  %v2938_v27 = vmul.f32 %v8186_v19, %v8186_v19  ;;  %3279 = vmatpush1.bf16.msra.mxu0 %v6726_v52  ;;  %v3173_v18 = vpack.c.bf16 %v1109_v46, %v1108_v16 }
 0xb3b   : > { %v2939_v38 = vmul.f32 %v8184_v9, %v8184_v9  ;;  %6407 = vmatpush3.bf16.msra.mxu1 %v6729_v21  ;;  %3280 = vmatprep.subr.bf16.mxu0 %v6732_v6 }
 0xb3c   : > { %v8195_v29 = vsub.f32 %v2897_v34, %v2924_v12  ;;  %2951 = vadd.xlane.f32.xlu1 %v2938_v27  ;;  %6408 = vmatprep.subr.bf16.mxu1 %v6733_v48 }
 0xb3d   : > { %2953 = vadd.xlane.f32.xlu0 %v2939_v38 }
 0xb3e   : > { %v2940_v31 = vmul.f32 %v8195_v29, %v8195_v29  ;;  %3281 = vmatpush1.bf16.msra.mxu0 %v6730_v53 }
 0xb3f   : > { %6409 = vmatpush3.bf16.msra.mxu1 %v6733_v48 }
 0xb40   : > { %2955 = vadd.xlane.f32.xlu1 %v2940_v31  ;;  %6410 = vmatprep.subr.bf16.mxu1 %v6734_v11 }
 0xb41   : > { %3299 = vmatmul.mubr.bf16.vlgmr.msra.gmra.mxu0 %v3173_v18 }
 0xb43   : > { %6411 = vmatpush3.bf16.msra.mxu1 %v6734_v11 }
 0xbb6   : > { %v2942_v17 = vpop.xlane.xlu0 %2941 }
 0xbb7   : > { %v2957_v34 = vmul.f32 0.0078125, %v2942_v17 }
 0xbb9   : > { %v2965_v40 = vadd.f32 1e-05, %v2957_v34 }
 0xbba   : > { %v2946_v37 = vpop.xlane.xlu0 %2945  ;;  %v2944_v54 = vpop.xlane.xlu1 %2943 }
 0xbbb   : > { %6911 = vrsqrt.f32 %v2965_v40  ;;  %v2959_v47 = vmul.f32 0.0078125, %v2946_v37  ;;  %v2958_v49 = vmul.f32 0.0078125, %v2944_v54  ;;  %v3174_v40 = vld [vmem:[%s7463_s8] sm:$0x3] }
 0xbbc   : > { %v3183_v54 = vrot.slane %v3174_v40, %v7581_v58 }
 0xbbd   : > { %v2967_v43 = vadd.f32 1e-05, %v2959_v47  ;;  %v2966_v0 = vadd.f32 1e-05, %v2958_v49 }
 0xbbe   : > { %v2948_v33 = vpop.xlane.xlu1 %2947 }
 0xbbf   : > { %6913 = vrsqrt.f32 %v2967_v43  ;;  %v2960_v57 = vmul.f32 0.0078125, %v2948_v33 }
 0xbc0   : > { %6915 = vrsqrt.f32 %v2966_v0 }
 0xbc1   : > { %v2968_v59 = vadd.f32 1e-05, %v2960_v57 }
 0xbc2   : > { %v2950_v44 = vpop.xlane.xlu0 %2949 }
 0xbc3   : > { %6917 = vrsqrt.f32 %v2968_v59  ;;  %v2961_v45 = vmul.f32 0.0078125, %v2950_v44 }
 0xbc5   : > { %v2969_v55 = vadd.f32 1e-05, %v2961_v45  ;;  %v2952_v62 = vpop.xlane.xlu1 %2951 }
 0xbc6   : > { %v2954_v61 = vpop.xlane.xlu0 %2953  ;;  %v2962_v22 = vmul.f32 0.0078125, %v2952_v62 }
 0xbc7   : > { %6919 = vrsqrt.f32 %v2969_v55  ;;  %v2963_v2 = vmul.f32 0.0078125, %v2954_v61 }
 0xbc8   : > { %v6912_v23 = vpop.eup %6911  ;;  %v2970_v8 = vadd.f32 1e-05, %v2962_v22 }
 0xbc9   : > { %v2971_v4 = vadd.f32 1e-05, %v2963_v2  ;;  %v2956_v20 = vpop.xlane.xlu1 %2955  ;;  %v2981_v13 = vmul.f32 %v6912_v23, %v8161_v42  ;;  %v5889_v42 = vld [vmem:[%s9125_s6] ss:$0 sm:$0xff] }
 0xbca   : > { %v2964_v25 = vmul.f32 0.0078125, %v2956_v20 }
 0xbcb   : > { %6921 = vrsqrt.f32 %v2971_v4  ;;  %v2995_v5 = vmul.f32 %v5888_v7, %v2981_v13  ;;  %v5890_v4 = vld [vmem:[%s9126_s0] ss:$0 sm:$0xff] }
 0xbcc   : > { %v6914_v63 = vpop.eup %6913  ;;  %6923 = vrsqrt.f32 %v2970_v8  ;;  %v2972_v38 = vadd.f32 1e-05, %v2964_v25 }
 0xbcd   : > { %v6916_v24 = vpop.eup %6915  ;;  %v2983_v12 = vmul.f32 %v6914_v63, %v8165_v50  ;;  %v8231_v51 = vadd.f32 %v5889_v42, %v2995_v5 }
 0xbce   : > { %v2982_v27 = vmul.f32 %v6916_v24, %v8167_v32  ;;  %6925 = vrsqrt.f32 %v2972_v38 }
 0xbcf   : > { %v2997_v36 = vmul.f32 %v5888_v7, %v2983_v12 }
 0xbd0   : > { %v6918_v30 = vpop.eup %6917  ;;  %v2996_v28 = vmul.f32 %v5888_v7, %v2982_v27 }
 0xbd1   : > { %v2984_v31 = vmul.f32 %v6918_v30, %v8173_v56  ;;  %v8237_v35 = vadd.f32 %v5889_v42, %v2997_v36 }
 0xbd2   : > { %v8233_v14 = vadd.f32 %v5889_v42, %v2996_v28 }
 0xbd3   : > { %v2998_v50 = vmul.f32 %v5888_v7, %v2984_v31 }
 0xbd4   : > { %v6920_v41 = vpop.eup %6919  ;;  %v3033_v32 = vpack.c.bf16 %v8233_v14, %v8231_v51 }
 0xbd5   : > { %v8239_v26 = vadd.f32 %v5889_v42, %v2998_v50  ;;  %v2985_v3 = vmul.f32 %v6920_v41, %v8177_v60 }
 0xbd6   : > { %6412 = vmatprep.mubr.bf16.mxu1 %v3033_v32 }
 0xbd7   : > { %v3034_v56 = vpack.c.bf16 %v8239_v26, %v8237_v35  ;;  %v2999_v6 = vmul.f32 %v5888_v7, %v2985_v3 }
 0xbd8   : > { %v6922_v1 = vpop.eup %6921 }
 0xbd9   : > { %v6924_v15 = vpop.eup %6923  ;;  %6413 = vmatmul.mubr.bf16.vlgmr.msra.gmra.mxu1 %v3034_v56  ;;  %v2987_v52 = vmul.f32 %v6922_v1, %v8184_v9  ;;  %v8247_v11 = vadd.f32 %v5889_v42, %v2999_v6 }
 0xbda   : > { %v2986_v21 = vmul.f32 %v6924_v15, %v8186_v19 }
 0xbdb   : > { %v6926_v53 = vpop.eup %6925  ;;  %v3001_v46 = vmul.f32 %v5888_v7, %v2987_v52 }
 0xbdc   : > { %v3000_v48 = vmul.f32 %v5888_v7, %v2986_v21  ;;  %v2988_v16 = vmul.f32 %v6926_v53, %v8195_v29  ;;  %v3179_v29 = vrot.slane %v3174_v40, %v7569_v39 }
 0xbdd   : > { %v8253_v34 = vadd.f32 %v5889_v42, %v3001_v46 }
 0xbde   : > { %v8249_v60 = vadd.f32 %v5889_v42, %v3000_v48  ;;  %v3002_v18 = vmul.f32 %v5888_v7, %v2988_v16 }
 0xbe0   : > { %v3035_v17 = vpack.c.bf16 %v8249_v60, %v8247_v11  ;;  %v8255_v9 = vadd.f32 %v5889_v42, %v3002_v18 }
 0xbe2   : > { %6416 = vmatprep.mubr.bf16.mxu1 %v3035_v17  ;;  %v3036_v19 = vpack.c.bf16 %v8255_v9, %v8253_v34 }
 0xbe4   : > { %6417 = vmatmul.mubr.bf16.gmra.mxu1 %v3036_v19 }
 0xc01   : > { %v3300_v37 = vpop.f32.mrf.mxu0 }
 0xc02   : > { %v3301_v49 = vadd.f32 %v3300_v37, %v3179_v29 }
 0xc03   : > { %v3302_v47 = vpop.f32.mrf.mxu0 }
 0xc04   : > { %v3303_v33 = vadd.f32 %v3302_v47, %v3183_v54 }
 0xc05   : > { %v3304_v43 = vpop.f32.mrf.mxu0 }
 0xc06   : > { %v3305_v0 = vadd.f32 %v3304_v43, %v3179_v29 }
 0xc07   : > { %v3306_v59 = vpop.f32.mrf.mxu0 }
 0xc08   : > { %v3329_v57 = vpack.c.bf16 %v3305_v0, %v3301_v49  ;;  %v3307_v44 = vadd.f32 %v3306_v59, %v3183_v54 }
 0xc0a   : > { %6580 = vmatprep.subr.msk.bf16.mxu1 %vm1457_vm0, %v3329_v57  ;;  %v3344_v45 = vsel %vm1457_vm0, %v3329_v57, 0  ;;  %3610 = vrot.lane.b32.xlu0 %v3329_v57, %s7198_s1  ;;  %v8265_v55 = vpack.c.bf16 %v3307_v44, %v3303_v33 }
 0xc0b   : > { %6421 = vmatpush3.bf16.xpose.msra.mxu1 %v3344_v45 }
 0xc0c   : > { %6430 = vmatprep.subr.bf16.mxu1 %v8265_v55 }
 0xc7c   : > { %v3611_v61 = vpop.permute.xlu0 %3610 }
 0xc7d   : > { %6581 = vmatprep.subr.msk.bf16.mxu0 %vm1457_vm0, %v3611_v61  ;;  %v3625_v62 = vsel %vm1457_vm0, %v3611_v61, 0 }
 0xc7e   : > { %6441 = vmatpush3.bf16.xpose.msra.mxu0 %v3625_v62 }
 0xc99   : > { %v6414_v2 = vpop.f32.mrf.mxu1 }
 0xc9a   : > { %v3135_v7 = vadd.f32 %v6414_v2, %v5890_v4 }
 0xc9b   : > { %v3126_v22 = vpop.f32.mrf.mxu1 }
 0xc9c   : > { %v3127_v13 = vadd.f32 %v5890_v4, %v3126_v22 }
 0xc9d   : > { %v6415_v23 = vpop.f32.mrf.mxu1 }
 0xc9e   : > { %v3138_v8 = vadd.f32 %v6415_v23, %v5890_v4 }
 0xc9f   : > { %v3129_v20 = vpop.f32.mrf.mxu1 }
 0xca0   : > { %v3130_v25 = vadd.f32 %v5890_v4, %v3129_v20  ;;  %v3326_v24 = vpack.c.bf16 %v3138_v8, %v3135_v7 }
 0xca2   : > { %v3325_v63 = vpack.c.bf16 %v3130_v25, %v3127_v13 }
 0xca4   : > { %3601 = vrot.lane.b32.xlu1 %v3325_v63, %s7198_s1  ;;  %6422 = vmatprep.mubr.msk.bf16.mxu1 %vm1457_vm0, %v3325_v63  ;;  %v6418_v12 = vpop.f32.mrf.mxu1 }
 0xca5   : > { %6423 = vmatmul.mubr.msk.bf16.vlgmr.msra.gmra.mxu1 %vm1457_vm0, %v3326_v24  ;;  %v3151_v5 = vadd.f32 %v6418_v12, %v5890_v4 }
 0xca6   : > { %6431 = vmatpush3.bf16.msra.mxu1 %v8265_v55  ;;  %v3142_v38 = vpop.f32.mrf.mxu1 }
 0xca7   : > { %v3143_v28 = vadd.f32 %v5890_v4, %v3142_v38 }
 0xca8   : > { %3603 = vrot.lane.b32.xlu1 %v3326_v24, %s7198_s1  ;;  %v6419_v27 = vpop.f32.mrf.mxu1 }
 0xca9   : > { %v3154_v42 = vadd.f32 %v6419_v27, %v5890_v4 }
 0xcaa   : > { %v3145_v30 = vpop.f32.mrf.mxu1 }
 0xcab   : > { %v3328_v31 = vpack.c.bf16 %v3154_v42, %v3151_v5  ;;  %v3146_v36 = vadd.f32 %v5890_v4, %v3145_v30 }
 0xcad   : > { %v3327_v50 = vpack.c.bf16 %v3146_v36, %v3143_v28  ;;  %3607 = vrot.lane.b32.xlu0 %v3328_v31, %s7198_s1 }
 0xcaf   : > { %3605 = vrot.lane.b32.xlu1 %v3327_v50, %s7198_s1  ;;  %6426 = vmatprep.mubr.msk.bf16.mxu1 %vm1457_vm0, %v3327_v50 }
 0xcb0   : > { %6427 = vmatmul.mubr.msk.bf16.gmra.mxu1 %vm1457_vm0, %v3328_v31 }
 0xcb1   : > { %3913 = vrot.lane.b32.xlu0 %v3325_v63, %s7199_s3 }
 0xcb3   : > { %3921 = vrot.lane.b32.xlu1 %v3329_v57, %s7199_s3 }
 0xcb5   : > { %3917 = vrot.lane.b32.xlu0 %v3327_v50, %s7199_s3 }
 0xcb7   : > { %3915 = vrot.lane.b32.xlu1 %v3326_v24, %s7199_s3 }
 0xcb9   : > { %4231 = vrot.lane.b32.xlu0 %v3329_v57, %s7200_s4 }
 0xcbb   : > { %3919 = vrot.lane.b32.xlu1 %v3328_v31, %s7199_s3 }
 0xcbd   : > { %4225 = vrot.lane.b32.xlu0 %v3326_v24, %s7200_s4 }
 0xcbf   : > { %4223 = vrot.lane.b32.xlu1 %v3325_v63, %s7200_s4 }
 0xcc1   : > { %4229 = vrot.lane.b32.xlu0 %v3328_v31, %s7200_s4 }
 0xcc3   : > { %4227 = vrot.lane.b32.xlu1 %v3327_v50, %s7200_s4 }
 0xd16   : > { %v3602_v41 = vpop.permute.xlu1 %3601 }
 0xd17   : > { %6442 = vmatprep.mubr.msk.bf16.mxu0 %vm1457_vm0, %v3602_v41 }
 0xd1a   : > { %v3604_v32 = vpop.permute.xlu1 %3603 }
 0xd1b   : > { %6443 = vmatmul.mubr.msk.bf16.vlgmr.msra.gmra.mxu0 %vm1457_vm0, %v3604_v32 }
 0xd1f   : > { %v3608_v3 = vpop.permute.xlu0 %3607 }
 0xd21   : > { %v3606_v56 = vpop.permute.xlu1 %3605 }
 0xd22   : > { %6446 = vmatprep.mubr.msk.bf16.mxu0 %vm1457_vm0, %v3606_v56 }
 0xd23   : > { %v3914_v1 = vpop.permute.xlu0 %3913  ;;  %6447 = vmatmul.mubr.msk.bf16.gmra.mxu0 %vm1457_vm0, %v3608_v3 }
 0xd24   : > { %6462 = vmatprep.mubr.msk.bf16.mxu0 %vm1457_vm0, %v3914_v1 }
 0xd25   : > { %v3922_v15 = vpop.permute.xlu1 %3921 }
 0xd26   : > { %6582 = vmatprep.subr.msk.bf16.mxu0 %vm1457_vm0, %v3922_v15  ;;  %v3936_v52 = vsel %vm1457_vm0, %v3922_v15, 0 }
 0xd27   : > { %v3918_v21 = vpop.permute.xlu0 %3917  ;;  %6461 = vmatpush3.bf16.xpose.msra.mxu0 %v3936_v52 }
 0xd29   : > { %v3916_v6 = vpop.permute.xlu1 %3915 }
 0xd2b   : > { %v4232_v53 = vpop.permute.xlu0 %4231 }
 0xd2c   : > { %6583 = vmatprep.subr.msk.bf16.mxu0 %vm1457_vm0, %v4232_v53  ;;  %v4246_v48 = vsel %vm1457_vm0, %v4232_v53, 0 }
 0xd2d   : > { %v3920_v16 = vpop.permute.xlu1 %3919 }
 0xd2e   : > { %6463 = vmatmul.mubr.msk.bf16.vlgmr.msra.gmra.mxu0 %vm1457_vm0, %v3916_v6 }
 0xd2f   : > { %6466 = vmatprep.mubr.msk.bf16.mxu0 %vm1457_vm0, %v3918_v21  ;;  %6481 = vmatpush3.bf16.xpose.msra.mxu0 %v4246_v48  ;;  %v4226_v18 = vpop.permute.xlu0 %4225 }
 0xd31   : > { %v4224_v46 = vpop.permute.xlu1 %4223 }
 0xd33   : > { %v4230_v19 = vpop.permute.xlu0 %4229 }
 0xd35   : > { %v4228_v17 = vpop.permute.xlu1 %4227 }
 0xd36   : > { %6467 = vmatmul.mubr.msk.bf16.gmra.mxu0 %vm1457_vm0, %v3920_v16 }
 0xd37   : > { %6482 = vmatprep.mubr.msk.bf16.mxu0 %vm1457_vm0, %v4224_v46 }
 0xd3e   : > { %6483 = vmatmul.mubr.msk.bf16.vlgmr.msra.gmra.mxu0 %vm1457_vm0, %v4226_v18 }
 0xd3f   : > { %6486 = vmatprep.mubr.msk.bf16.mxu0 %vm1457_vm0, %v4228_v17 }
 0xd46   : > { %6487 = vmatmul.mubr.msk.bf16.gmra.mxu0 %vm1457_vm0, %v4230_v19 }
 0xd65   : > { %v6424_v40 = vpop.f32.mrf.mxu1 }
 0xd66   : > { %v8310_v29 = vmul.f32 0.17677669, %v6424_v40 }
 0xd67   : > { %v3380_v37 = vpop.f32.mrf.mxu1 }
 0xd68   : > { %v8312_v54 = vmul.f32 0.17677669, %v3380_v37  ;;  %v3426_v47 = vsel %vm3419_vm5, %v8310_v29, -inf }
 0xd69   : > { %v6425_v49 = vpop.f32.mrf.mxu1  ;;  %3427 = vmax.xlane.f32.xlu0 %v3426_v47 }
 0xd6a   : > { %v3420_v43 = vsel %vm3419_vm5, %v8312_v54, -inf  ;;  %v8320_v57 = vmul.f32 0.17677669, %v6425_v49 }
 0xd6b   : > { %v3383_v0 = vpop.f32.mrf.mxu1  ;;  %3421 = vmax.xlane.f32.xlu1 %v3420_v43 }
 0xd6c   : > { %v8318_v33 = vmul.f32 0.17677669, %v3383_v0  ;;  %v3429_v61 = vsel %vm3419_vm5, %v8320_v57, -inf }
 0xd6e   : > { %v3423_v59 = vsel %vm3419_vm5, %v8318_v33, -inf }
 0xd6f   : > { %3424 = vmax.xlane.f32.xlu0 %v3423_v59 }
 0xd70   : > { %v6428_v44 = vpop.f32.mrf.mxu1 }
 0xd71   : > { %v8324_v45 = vmul.f32 0.17677669, %v6428_v44 }
 0xd72   : > { %v3396_v62 = vpop.f32.mrf.mxu1 }
 0xd73   : > { %3430 = vmax.xlane.f32.xlu0 %v3429_v61  ;;  %v8328_v2 = vmul.f32 0.17677669, %v3396_v62  ;;  %v3438_v22 = vsel %vm3419_vm5, %v8324_v45, -inf }
 0xd74   : > { %3439 = vmax.xlane.f32.xlu1 %v3438_v22  ;;  %v6429_v23 = vpop.f32.mrf.mxu1 }
 0xd75   : > { %v3432_v20 = vsel %vm3419_vm5, %v8328_v2, -inf  ;;  %v8336_v13 = vmul.f32 0.17677669, %v6429_v23 }
 0xd76   : > { %v3399_v4 = vpop.f32.mrf.mxu1 }
 0xd77   : > { %v8332_v8 = vmul.f32 0.17677669, %v3399_v4  ;;  %v3441_v7 = vsel %vm3419_vm5, %v8336_v13, -inf }
 0xd78   : > { %3433 = vmax.xlane.f32.xlu1 %v3432_v20 }
 0xd79   : > { %v3435_v25 = vsel %vm3419_vm5, %v8332_v8, -inf }
 0xd7a   : > { %3436 = vmax.xlane.f32.xlu0 %v3435_v25 }
 0xd7e   : > { %3442 = vmax.xlane.f32.xlu0 %v3441_v7 }
 0xddb   : > { %v6444_v63 = vpop.f32.mrf.mxu0 }
 0xddc   : > { %v8342_v24 = vmul.f32 0.17677669, %v6444_v63 }
 0xddd   : > { %v3661_v12 = vpop.f32.mrf.mxu0 }
 0xdde   : > { %v8344_v38 = vmul.f32 0.17677669, %v3661_v12  ;;  %v3706_v27 = vsel %vm3419_vm5, %v8342_v24, -inf }
 0xddf   : > { %3707 = vmax.xlane.f32.xlu1 %v3706_v27  ;;  %v6445_v5 = vpop.f32.mrf.mxu0 }
 0xde0   : > { %v3700_v28 = vsel %vm3419_vm5, %v8344_v38, -inf  ;;  %v8352_v31 = vmul.f32 0.17677669, %v6445_v5 }
 0xde1   : > { %v3664_v42 = vpop.f32.mrf.mxu0 }
 0xde2   : > { %v8348_v30 = vmul.f32 0.17677669, %v3664_v42  ;;  %v3709_v15 = vsel %vm3419_vm5, %v8352_v31, -inf }
 0xde3   : > { %3701 = vmax.xlane.f32.xlu1 %v3700_v28  ;;  %v6448_v36 = vpop.f32.mrf.mxu0 }
 0xde4   : > { %v3703_v50 = vsel %vm3419_vm5, %v8348_v30, -inf  ;;  %v8356_v41 = vmul.f32 0.17677669, %v6448_v36 }
 0xde5   : > { %3704 = vmax.xlane.f32.xlu0 %v3703_v50  ;;  %v3677_v32 = vpop.f32.mrf.mxu0 }
 0xde6   : > { %v8358_v3 = vmul.f32 0.17677669, %v3677_v32  ;;  %v3718_v56 = vsel %vm3419_vm5, %v8356_v41, -inf }
 0xde7   : > { %3719 = vmax.xlane.f32.xlu1 %v3718_v56  ;;  %v6449_v1 = vpop.f32.mrf.mxu0 }
 0xde8   : > { %v3712_v6 = vsel %vm3419_vm5, %v8358_v3, -inf  ;;  %v8368_v53 = vmul.f32 0.17677669, %v6449_v1 }
 0xde9   : > { %3710 = vmax.xlane.f32.xlu0 %v3709_v15  ;;  %v3680_v52 = vpop.f32.mrf.mxu0 }
 0xdea   : > { %v8364_v21 = vmul.f32 0.17677669, %v3680_v52  ;;  %v3721_v17 = vsel %vm3419_vm5, %v8368_v53, -inf }
 0xdeb   : > { %3713 = vmax.xlane.f32.xlu1 %v3712_v6 }
 0xdec   : > { %v3715_v48 = vsel %vm3419_vm5, %v8364_v21, -inf }
 0xded   : > { %3716 = vmax.xlane.f32.xlu0 %v3715_v48 }
 0xdee   : > { %v6464_v16 = vpop.f32.mrf.mxu0 }
 0xdef   : > { %v8372_v46 = vmul.f32 0.17677669, %v6464_v16 }
 0xdf0   : > { %v3972_v18 = vpop.f32.mrf.mxu0 }
 0xdf1   : > { %v8376_v19 = vmul.f32 0.17677669, %v3972_v18  ;;  %3722 = vmax.xlane.f32.xlu0 %v3721_v17  ;;  %v4017_v40 = vsel %vm3419_vm5, %v8372_v46, -inf }
 0xdf2   : > { %4018 = vmax.xlane.f32.xlu1 %v4017_v40  ;;  %v6465_v37 = vpop.f32.mrf.mxu0  ;;  %v8380_v47 = vpop.xlane.xlu0 %3427 }
 0xdf3   : > { %v4011_v0 = vsel %vm3419_vm5, %v8376_v19, -inf  ;;  %v8386_v44 = vmul.f32 0.17677669, %v6465_v37 }
 0xdf4   : > { %v3975_v49 = vpop.f32.mrf.mxu0 }
 0xdf5   : > { %v8382_v43 = vmul.f32 0.17677669, %v3975_v49  ;;  %v4020_v7 = vsel %vm3419_vm5, %v8386_v44, -inf }
 0xdf6   : > { %4012 = vmax.xlane.f32.xlu1 %v4011_v0  ;;  %v6468_v59 = vpop.f32.mrf.mxu0 }
 0xdf7   : > { %v8388_v61 = vmul.f32 0.17677669, %v6468_v59  ;;  %v4014_v22 = vsel %vm3419_vm5, %v8382_v43, -inf }
 0xdf8   : > { %v3425_v62 = vpop.xlane.xlu0 %3424  ;;  %4015 = vmax.xlane.f32.xlu0 %v4014_v22  ;;  %v3988_v23 = vpop.f32.mrf.mxu0 }
 0xdf9   : > { %v8392_v4 = vmul.f32 0.17677669, %v3988_v23  ;;  %v4029_v20 = vsel %vm3419_vm5, %v8388_v61, -inf  ;;  %v3445_v52 = vsub.f32 %v8318_v33, %v3425_v62 }
 0xdfa   : > { %4030 = vmax.xlane.f32.xlu1 %v4029_v20  ;;  %v6469_v25 = vpop.f32.mrf.mxu0 }
 0xdfb   : > { %v4023_v5 = vsel %vm3419_vm5, %v8392_v4, -inf  ;;  %v8402_v28 = vmul.f32 0.17677669, %v6469_v25  ;;  %v3454_v37 = vmul.f32 1.442695, %v3445_v52 }
 0xdfc   : > { %v3431_v63 = vpop.xlane.xlu0 %3430  ;;  %4021 = vmax.xlane.f32.xlu0 %v4020_v7  ;;  %v3991_v12 = vpop.f32.mrf.mxu0 }
 0xdfd   : > { %v8398_v27 = vmul.f32 0.17677669, %v3991_v12  ;;  %v3447_v36 = vsub.f32 %v8320_v57, %v3431_v63  ;;  %v4032_v57 = vsel %vm3419_vm5, %v8402_v28, -inf }
 0xdfe   : > { %4024 = vmax.xlane.f32.xlu1 %v4023_v5  ;;  %v6484_v42 = vpop.f32.mrf.mxu0 }
 0xdff   : > { %v8405_v50 = vmul.f32 0.17677669, %v6484_v42  ;;  %v4026_v32 = vsel %vm3419_vm5, %v8398_v27, -inf  ;;  %v3458_v48 = vmul.f32 1.442695, %v3447_v36 }
 0xe00   : > { %4027 = vmax.xlane.f32.xlu0 %v4026_v32  ;;  %v4282_v56 = vpop.f32.mrf.mxu0 }
 0xe01   : > { %v8409_v1 = vmul.f32 0.17677669, %v4282_v56  ;;  %v4327_v15 = vsel %vm3419_vm5, %v8405_v50, -inf  ;;  %6927 = vpow2.f32 %v3458_v48 }
 0xe02   : > { %4328 = vmax.xlane.f32.xlu1 %v4327_v15  ;;  %v6485_v6 = vpop.f32.mrf.mxu0  ;;  %6929 = vpow2.f32 %v3454_v37 }
 0xe03   : > { %v3437_v16 = vpop.xlane.xlu0 %3436  ;;  %v4321_v40 = vsel %vm3419_vm5, %v8409_v1, -inf  ;;  %v8420_v0 = vmul.f32 0.17677669, %v6485_v6 }
 0xe04   : > { %4033 = vmax.xlane.f32.xlu0 %v4032_v57  ;;  %v4285_v18 = vpop.f32.mrf.mxu0  ;;  %v3449_v20 = vsub.f32 %v8332_v8, %v3437_v16  ;;  %v3422_v57 = vpop.xlane.xlu1 %3421 }
 0xe05   : > { %v8416_v17 = vmul.f32 0.17677669, %v4285_v18  ;;  %v4330_v63 = vsel %vm3419_vm5, %v8420_v0, -inf  ;;  %v3446_v18 = vsub.f32 %v8310_v29, %v8380_v47 }
 0xe06   : > { %4322 = vmax.xlane.f32.xlu1 %v4321_v40  ;;  %v6488_v49 = vpop.f32.mrf.mxu0  ;;  %v3462_v5 = vmul.f32 1.442695, %v3449_v20 }
 0xe07   : > { %v3443_v33 = vpop.xlane.xlu0 %3442  ;;  %v4324_v59 = vsel %vm3419_vm5, %v8416_v17, -inf  ;;  %v3456_v37 = vmul.f32 1.442695, %v3446_v18 }
 0xe08   : > { %v3451_v62 = vsub.f32 %v8336_v13, %v3443_v33  ;;  %4325 = vmax.xlane.f32.xlu0 %v4324_v59  ;;  %v4298_v22 = vpop.f32.mrf.mxu0  ;;  %v3440_v40 = vpop.xlane.xlu1 %3439  ;;  %v3444_v33 = vsub.f32 %v8312_v54, %v3422_v57 }
 0xe0a   : > { %v6489_v23 = vpop.f32.mrf.mxu0  ;;  %v3466_v25 = vmul.f32 1.442695, %v3451_v62  ;;  %v3452_v59 = vmul.f32 1.442695, %v3444_v33  ;;  %v3450_v62 = vsub.f32 %v8324_v45, %v3440_v40 }
 0xe0b   : > { %v8426_v7 = vmul.f32 0.17677669, %v6489_v23 }
 0xe0c   : > { %4331 = vmax.xlane.f32.xlu0 %v4330_v63  ;;  %v4301_v12 = vpop.f32.mrf.mxu0  ;;  %6931 = vpow2.f32 %v3466_v25  ;;  %v3434_v23 = vpop.xlane.xlu1 %3433  ;;  %v3464_v20 = vmul.f32 1.442695, %v3450_v62  ;;  %v8459_v63 = vmul.f32 0.17677669, %v6488_v49 }
 0xe0d   : > { %v8430_v42 = vmul.f32 0.17677669, %v4301_v12  ;;  %v4342_v13 = vsel %vm3419_vm5, %v8426_v7, -inf  ;;  %6933 = vpow2.f32 %v3462_v5  ;;  %v3448_v25 = vsub.f32 %v8328_v2, %v3434_v23 }
 0xe0e   : > { %v8436_v36 = vpop.eup %6927  ;;  %6935 = vpow2.f32 %v3456_v37  ;;  %v8461_v5 = vmul.f32 0.17677669, %v4298_v22  ;;  %v4339_v29 = vsel %vm3419_vm5, %v8459_v63, -inf }
 0xe0f   : > { %v4336_v8 = vsel %vm3419_vm5, %v8430_v42, -inf  ;;  %v8438_v32 = vpop.eup %6929  ;;  %v3477_v56 = vsel %vm3419_vm5, %v8436_v36, 0.0  ;;  %6937 = vpow2.f32 %v3452_v59  ;;  %v3460_v12 = vmul.f32 1.442695, %v3448_v25 }
 0xe10   : > { %4343 = vmax.xlane.f32.xlu0 %v4342_v13  ;;  %v3471_v15 = vsel %vm3419_vm5, %v8438_v32, 0.0  ;;  %6939 = vpow2.f32 %v3464_v20  ;;  %v4333_v54 = vsel %vm3419_vm5, %v8461_v5, -inf }
 0xe11   : > { %6941 = vpow2.f32 %v3460_v12 }
 0xe14   : > { %4337 = vmax.xlane.f32.xlu0 %v4336_v8 }
 0xe17   : > { %3793 = vrot.lane.b32.xlu1 %v8265_v55, %s7198_s1 }
 0xe18   : > { %3478 = vadd.xlane.f32.xlu0 %v3477_v56 }
 0xe19   : > { %v8446_v52 = vpop.eup %6931 }
 0xe1a   : > { %v3489_v6 = vsel %vm3419_vm5, %v8446_v52, 0.0  ;;  %v8450_v48 = vpop.eup %6933 }
 0xe1b   : > { %v3483_v16 = vsel %vm3419_vm5, %v8450_v48, 0.0  ;;  %v8467_v45 = vpop.eup %6935 }
 0xe1c   : > { %3472 = vadd.xlane.f32.xlu0 %v3471_v15  ;;  %v3474_v2 = vsel %vm3419_vm5, %v8467_v45, 0.0  ;;  %v8471_v47 = vpop.eup %6937 }
 0xe1d   : > { %v3468_v49 = vsel %vm3419_vm5, %v8471_v47, 0.0  ;;  %v8475_v22 = vpop.eup %6939 }
 0xe1e   : > { %v3486_v13 = vsel %vm3419_vm5, %v8475_v22, 0.0  ;;  %v8479_v8 = vpop.eup %6941 }
 0xe1f   : > { %v3480_v56 = vsel %vm3419_vm5, %v8479_v8, 0.0 }
 0xe20   : > { %3490 = vadd.xlane.f32.xlu0 %v3489_v6 }
 0xe24   : > { %3484 = vadd.xlane.f32.xlu0 %v3483_v16 }
 0xe3b   : > { %4340 = vmax.xlane.f32.xlu1 %v4339_v29 }
 0xe3f   : > { %4334 = vmax.xlane.f32.xlu1 %v4333_v54 }
 0xe43   : > { %3475 = vadd.xlane.f32.xlu1 %v3474_v2 }
 0xe47   : > { %3469 = vadd.xlane.f32.xlu1 %v3468_v49 }
 0xe4b   : > { %3487 = vadd.xlane.f32.xlu1 %v3486_v13 }
 0xe4f   : > { %3481 = vadd.xlane.f32.xlu1 %v3480_v56 }
 0xe68   : > { %v3708_v15 = vpop.xlane.xlu1 %3707 }
 0xe69   : > { %v3726_v6 = vsub.f32 %v8342_v24, %v3708_v15 }
 0xe6b   : > { %v3736_v16 = vmul.f32 1.442695, %v3726_v6 }
 0xe6c   : > { %v3702_v57 = vpop.xlane.xlu1 %3701 }
 0xe6d   : > { %6943 = vpow2.f32 %v3736_v16  ;;  %v3724_v18 = vsub.f32 %v8344_v38, %v3702_v57 }
 0xe6e   : > { %v3705_v40 = vpop.xlane.xlu0 %3704 }
 0xe6f   : > { %v3732_v37 = vmul.f32 1.442695, %v3724_v18  ;;  %v3725_v33 = vsub.f32 %v8348_v30, %v3705_v40 }
 0xe70   : > { %v3720_v59 = vpop.xlane.xlu1 %3719 }
 0xe71   : > { %6945 = vpow2.f32 %v3732_v37  ;;  %v3730_v62 = vsub.f32 %v8356_v41, %v3720_v59  ;;  %v3734_v12 = vmul.f32 1.442695, %v3725_v33 }
 0xe72   : > { %v3711_v23 = vpop.xlane.xlu0 %3710 }
 0xe73   : > { %v3727_v20 = vsub.f32 %v8352_v31, %v3711_v23  ;;  %v3744_v25 = vmul.f32 1.442695, %v3730_v62 }
 0xe74   : > { %v3714_v24 = vpop.xlane.xlu1 %3713 }
 0xe75   : > { %v3738_v29 = vmul.f32 1.442695, %v3727_v20  ;;  %6947 = vpow2.f32 %v3744_v25  ;;  %v3728_v54 = vsub.f32 %v8358_v3, %v3714_v24 }
 0xe76   : > { %v3717_v38 = vpop.xlane.xlu0 %3716 }
 0xe77   : > { %6949 = vpow2.f32 %v3738_v29  ;;  %v3740_v2 = vmul.f32 1.442695, %v3728_v54  ;;  %v3729_v30 = vsub.f32 %v8364_v21, %v3717_v38 }
 0xe78   : > { %6951 = vpow2.f32 %v3734_v12 }
 0xe79   : > { %6953 = vpow2.f32 %v3740_v2  ;;  %v3742_v6 = vmul.f32 1.442695, %v3729_v30 }
 0xe7a   : > { %v8489_v49 = vpop.eup %6943  ;;  %v3723_v41 = vpop.xlane.xlu0 %3722 }
 0xe7b   : > { %v3754_v31 = vsel %vm3419_vm5, %v8489_v49, 0.0  ;;  %v3731_v13 = vsub.f32 %v8368_v53, %v3723_v41  ;;  %v4019_v56 = vpop.xlane.xlu1 %4018 }
 0xe7c   : > { %3755 = vadd.xlane.f32.xlu1 %v3754_v31  ;;  %v4037_v15 = vsub.f32 %v8372_v46, %v4019_v56 }
 0xe7d   : > { %v3746_v16 = vmul.f32 1.442695, %v3731_v13 }
 0xe7e   : > { %v8496_v3 = vpop.eup %6945  ;;  %v4047_v57 = vmul.f32 1.442695, %v4037_v15 }
 0xe7f   : > { %v3748_v18 = vsel %vm3419_vm5, %v8496_v3, 0.0  ;;  %6955 = vpow2.f32 %v3746_v16  ;;  %v4013_v21 = vpop.xlane.xlu1 %4012 }
 0xe80   : > { %3749 = vadd.xlane.f32.xlu1 %v3748_v18  ;;  %6957 = vpow2.f32 %v4047_v57  ;;  %v4035_v40 = vsub.f32 %v8376_v19, %v4013_v21 }
 0xe81   : > { %6959 = vpow2.f32 %v3742_v6  ;;  %v4016_v53 = vpop.xlane.xlu0 %4015 }
 0xe82   : > { %v8501_v37 = vpop.eup %6947  ;;  %v4043_v33 = vmul.f32 1.442695, %v4035_v40  ;;  %v4036_v59 = vsub.f32 %v8382_v43, %v4016_v53 }
 0xe83   : > { %v4031_v62 = vpop.xlane.xlu1 %4030  ;;  %v3766_v23 = vsel %vm3419_vm5, %v8501_v37, 0.0 }
 0xe84   : > { %v8503_v46 = vpop.eup %6949  ;;  %6961 = vpow2.f32 %v4043_v33  ;;  %v4041_v20 = vsub.f32 %v8388_v61, %v4031_v62  ;;  %3767 = vadd.xlane.f32.xlu1 %v3766_v23  ;;  %v4045_v54 = vmul.f32 1.442695, %v4036_v59 }
 0xe85   : > { %v3757_v19 = vsel %vm3419_vm5, %v8503_v46, 0.0  ;;  %v8511_v25 = vpop.eup %6951  ;;  %v4022_v12 = vpop.xlane.xlu0 %4021 }
 0xe86   : > { %3758 = vadd.xlane.f32.xlu0 %v3757_v19  ;;  %v8513_v29 = vpop.eup %6953  ;;  %v4055_v24 = vmul.f32 1.442695, %v4041_v20  ;;  %v4038_v43 = vsub.f32 %v8386_v44, %v4022_v12  ;;  %v3751_v41 = vsel %vm3419_vm5, %v8511_v25, 0.0 }
 0xe87   : > { %v4025_v38 = vpop.xlane.xlu1 %4024  ;;  %v3760_v2 = vsel %vm3419_vm5, %v8513_v29, 0.0 }
 0xe88   : > { %6963 = vpow2.f32 %v4055_v24  ;;  %v4049_v61 = vmul.f32 1.442695, %v4038_v43  ;;  %v4039_v30 = vsub.f32 %v8392_v4, %v4025_v38  ;;  %3761 = vadd.xlane.f32.xlu1 %v3760_v2 }
 0xe89   : > { %v4028_v31 = vpop.xlane.xlu0 %4027 }
 0xe8a   : > { %3752 = vadd.xlane.f32.xlu0 %v3751_v41  ;;  %6965 = vpow2.f32 %v4049_v61  ;;  %v4051_v13 = vmul.f32 1.442695, %v4039_v30  ;;  %v4040_v15 = vsub.f32 %v8398_v27, %v4028_v31 }
 0xe8b   : > { %6967 = vpow2.f32 %v4045_v54  ;;  %v4329_v56 = vpop.xlane.xlu1 %4328 }
 0xe8c   : > { %v8521_v44 = vpop.eup %6955  ;;  %6969 = vpow2.f32 %v4051_v13  ;;  %v4053_v53 = vmul.f32 1.442695, %v4040_v15  ;;  %v4347_v33 = vsub.f32 %v8405_v50, %v4329_v56 }
 0xe8d   : > { %v8524_v6 = vpop.eup %6957  ;;  %v4034_v16 = vpop.xlane.xlu0 %4033  ;;  %v3769_v4 = vsel %vm3419_vm5, %v8521_v44, 0.0 }
 0xe8e   : > { %v8528_v57 = vpop.eup %6959  ;;  %v4042_v18 = vsub.f32 %v8402_v28, %v4034_v16  ;;  %3770 = vadd.xlane.f32.xlu0 %v3769_v4  ;;  %v4065_v21 = vsel %vm3419_vm5, %v8524_v6, 0.0  ;;  %v4357_v19 = vmul.f32 1.442695, %v4347_v33 }
 0xe8f   : > { %4066 = vadd.xlane.f32.xlu1 %v4065_v21  ;;  %v4323_v40 = vpop.xlane.xlu1 %4322  ;;  %v3763_v23 = vsel %vm3419_vm5, %v8528_v57, 0.0 }
 0xe90   : > { %v4057_v27 = vmul.f32 1.442695, %v4042_v18  ;;  %v4345_v12 = vsub.f32 %v8409_v1, %v4323_v40 }
 0xe91   : > { %v8534_v59 = vpop.eup %6961  ;;  %v4326_v62 = vpop.xlane.xlu0 %4325 }
 0xe92   : > { %6971 = vpow2.f32 %v4057_v27  ;;  %3764 = vadd.xlane.f32.xlu0 %v3763_v23  ;;  %v4059_v28 = vsel %vm3419_vm5, %v8534_v59, 0.0  ;;  %v4353_v2 = vmul.f32 1.442695, %v4345_v12  ;;  %v4346_v31 = vsub.f32 %v8416_v17, %v4326_v62 }
 0xe93   : > { %4060 = vadd.xlane.f32.xlu1 %v4059_v28  ;;  %v8540_v20 = vpop.permute.xlu1 %3793  ;;  %6973 = vpow2.f32 %v4053_v53 }
 0xe94   : > { %6450 = vmatprep.subr.bf16.mxu1 %v8540_v20  ;;  %6975 = vpow2.f32 %v4357_v19 }
 0xe95   : > { %v8544_v50 = vpop.eup %6963  ;;  %v4332_v24 = vpop.xlane.xlu0 %4331  ;;  %6977 = vpow2.f32 %v4353_v2 }
 0xe96   : > { %v4077_v43 = vsel %vm3419_vm5, %v8544_v50, 0.0  ;;  %v4348_v61 = vsub.f32 %v8420_v0, %v4332_v24  ;;  %v4355_v0 = vmul.f32 1.442695, %v4346_v31 }
 0xe97   : > { %v8548_v54 = vpop.eup %6965  ;;  %4078 = vadd.xlane.f32.xlu1 %v4077_v43 }
 0xe98   : > { %v8550_v38 = vpop.eup %6967  ;;  %v4068_v1 = vsel %vm3419_vm5, %v8548_v54, 0.0  ;;  %v4359_v13 = vmul.f32 1.442695, %v4348_v61 }
 0xe99   : > { %v8555_v30 = vpop.eup %6969  ;;  %4069 = vadd.xlane.f32.xlu0 %v4068_v1  ;;  %v4062_v56 = vsel %vm3419_vm5, %v8550_v38, 0.0  ;;  %v4344_v27 = vpop.xlane.xlu0 %4343 }
 0xe9a   : > { %v4071_v41 = vsel %vm3419_vm5, %v8555_v30, 0.0  ;;  %6979 = vpow2.f32 %v4359_v13  ;;  %v4352_v13 = vsub.f32 %v8426_v7, %v4344_v27 }
 0xe9b   : > { %4072 = vadd.xlane.f32.xlu1 %v4071_v41  ;;  %6981 = vpow2.f32 %v4355_v0 }
 0xe9d   : > { %4063 = vadd.xlane.f32.xlu0 %v4062_v56  ;;  %v4338_v28 = vpop.xlane.xlu0 %4337 }
 0xe9e   : > { %v4350_v12 = vsub.f32 %v8430_v42, %v4338_v28 }
 0xe9f   : > { %v8562_v15 = vpop.eup %6971 }
 0xea0   : > { %v4080_v16 = vsel %vm3419_vm5, %v8562_v15, 0.0  ;;  %v8566_v4 = vpop.eup %6973  ;;  %v4363_v24 = vmul.f32 1.442695, %v4350_v12 }
 0xea1   : > { %4081 = vadd.xlane.f32.xlu0 %v4080_v16  ;;  %v4074_v18 = vsel %vm3419_vm5, %v8566_v4, 0.0  ;;  %v8570_v17 = vpop.eup %6975  ;;  %v3479_v43 = vpop.xlane.xlu0 %3478 }
 0xea2   : > { %v4375_v21 = vsel %vm3419_vm5, %v8570_v17, 0.0  ;;  %v8574_v40 = vpop.eup %6977  ;;  %6983 = vpow2.f32 %v4363_v24 }
 0xea3   : > { %v4369_v53 = vsel %vm3419_vm5, %v8574_v40, 0.0 }
 0xea5   : > { %4075 = vadd.xlane.f32.xlu0 %v4074_v18  ;;  %v3473_v1 = vpop.xlane.xlu0 %3472 }
 0xea6   : > { %6985 = vrcp.f32 %v3473_v1 }
 0xea7   : > { %v8580_v33 = vpop.eup %6979 }
 0xea8   : > { %v4378_v62 = vsel %vm3419_vm5, %v8580_v33, 0.0  ;;  %v8584_v23 = vpop.eup %6981 }
 0xea9   : > { %4376 = vadd.xlane.f32.xlu0 %v4375_v21  ;;  %v4372_v19 = vsel %vm3419_vm5, %v8584_v23, 0.0  ;;  %v3491_v42 = vpop.xlane.xlu0 %3490  ;;  %v4367_v21 = vmul.f32 1.442695, %v4352_v13 }
 0xeac   : > { %4103 = vrot.lane.b32.xlu1 %v8265_v55, %s7199_s3 }
 0xead   : > { %4370 = vadd.xlane.f32.xlu0 %v4369_v53  ;;  %v3485_v7 = vpop.xlane.xlu0 %3484 }
 0xeaf   : > { %v8592_v16 = vpop.eup %6983 }
 0xeb1   : > { %4379 = vadd.xlane.f32.xlu0 %v4378_v62 }
 0xeb3   : > { %v6986_v62 = vpop.eup %6985 }
 0xeb5   : > { %4373 = vadd.xlane.f32.xlu0 %v4372_v19 }
 0xec4   : > { %v4341_v2 = vpop.xlane.xlu1 %4340 }
 0xec5   : > { %v4351_v61 = vsub.f32 %v8459_v63, %v4341_v2  ;;  %v4384_v63 = vsel %vm3419_vm5, %v8592_v16, 0.0 }
 0xec7   : > { %v4365_v56 = vmul.f32 1.442695, %v4351_v61 }
 0xec8   : > { %v4335_v41 = vpop.xlane.xlu1 %4334 }
 0xec9   : > { %v4349_v31 = vsub.f32 %v8461_v5, %v4335_v41 }
 0xecb   : > { %v4361_v0 = vmul.f32 1.442695, %v4349_v31  ;;  %v3501_v31 = vmul.f32 %v6986_v62, %v8438_v32 }
 0xecc   : > { %v3476_v18 = vpop.xlane.xlu1 %3475 }
 0xecd   : > { %6987 = vpow2.f32 %v4361_v0 }
 0xece   : > { %6989 = vrcp.f32 %v3476_v18 }
 0xecf   : > { %6991 = vpow2.f32 %v4365_v56 }
 0xed0   : > { %6993 = vrcp.f32 %v3479_v43  ;;  %4385 = vadd.xlane.f32.xlu1 %v4384_v63  ;;  %v3470_v53 = vpop.xlane.xlu1 %3469 }
 0xed1   : > { %6995 = vrcp.f32 %v3470_v53 }
 0xed2   : > { %6997 = vpow2.f32 %v4367_v21 }
 0xed4   : > { %v3488_v5 = vpop.xlane.xlu1 %3487 }
 0xed5   : > { %6999 = vrcp.f32 %v3488_v5 }
 0xed6   : > { %7001 = vrcp.f32 %v3485_v7 }
 0xed7   : > { %7003 = vrcp.f32 %v3491_v42 }
 0xed8   : > { %v3482_v27 = vpop.xlane.xlu1 %3481 }
 0xed9   : > { %7005 = vrcp.f32 %v3482_v27 }
 0xeda   : > { %v8596_v28 = vpop.eup %6987 }
 0xedb   : > { %v6990_v19 = vpop.eup %6989  ;;  %v4381_v12 = vsel %vm3419_vm5, %v8596_v28, 0.0 }
 0xedc   : > { %v8600_v24 = vpop.eup %6991  ;;  %4382 = vadd.xlane.f32.xlu0 %v4381_v12  ;;  %v3502_v61 = vmul.f32 %v6990_v19, %v8467_v45 }
 0xedd   : > { %v6994_v43 = vpop.eup %6993  ;;  %v4387_v1 = vsel %vm3419_vm5, %v8600_v24, 0.0 }
 0xede   : > { %v6996_v2 = vpop.eup %6995  ;;  %v3503_v56 = vmul.f32 %v6994_v43, %v8436_v36 }
 0xedf   : > { %v3500_v41 = vmul.f32 %v6996_v2, %v8471_v47  ;;  %v8607_v13 = vpop.eup %6997 }
 0xee0   : > { %4388 = vadd.xlane.f32.xlu0 %v4387_v1  ;;  %v3509_v18 = vpack.c.bf16 %v3503_v56, %v3502_v61  ;;  %v4390_v45 = vsel %vm3419_vm5, %v8607_v13, 0.0 }
 0xee1   : > { %v3508_v0 = vpack.c.bf16 %v3501_v31, %v3500_v41 }
 0xee2   : > { %v7000_v42 = vpop.eup %6999 }
 0xee3   : > { %6432 = vmatprep.mubr.msk.bf16.mxu1 %vm3419_vm5, %v3508_v0  ;;  %v7002_v21 = vpop.eup %7001  ;;  %v3506_v63 = vmul.f32 %v7000_v42, %v8475_v22 }
 0xee4   : > { %4391 = vadd.xlane.f32.xlu0 %v4390_v45  ;;  %6433 = vmatmul.mubr.msk.bf16.vlgmr.msra.gmra.mxu1 %vm3419_vm5, %v3509_v18  ;;  %v7004_v47 = vpop.eup %7003  ;;  %v3505_v53 = vmul.f32 %v7002_v21, %v8450_v48 }
 0xee5   : > { %6451 = vmatpush3.bf16.msra.mxu1 %v8540_v20  ;;  %v3507_v7 = vmul.f32 %v7004_v47, %v8446_v52 }
 0xee6   : > { %v7006_v32 = vpop.eup %7005 }
 0xee7   : > { %v3504_v36 = vmul.f32 %v7006_v32, %v8479_v8  ;;  %v3511_v27 = vpack.c.bf16 %v3507_v7, %v3506_v63 }
 0xee9   : > { %v3510_v5 = vpack.c.bf16 %v3505_v53, %v3504_v36 }
 0xeeb   : > { %6436 = vmatprep.mubr.msk.bf16.mxu1 %vm3419_vm5, %v3510_v5 }
 0xeec   : > { %6437 = vmatmul.mubr.msk.bf16.gmra.mxu1 %vm3419_vm5, %v3511_v27 }
 0xefa   : > { %4413 = vrot.lane.b32.xlu0 %v8265_v55, %s7200_s4 }
 0xf05   : > { %v3756_v62 = vpop.xlane.xlu1 %3755 }
 0xf09   : > { %v3750_v20 = vpop.xlane.xlu1 %3749 }
 0xf0d   : > { %v3768_v19 = vpop.xlane.xlu1 %3767 }
 0xf0f   : > { %v3759_v12 = vpop.xlane.xlu0 %3758 }
 0xf10   : > { %7007 = vrcp.f32 %v3759_v12 }
 0xf11   : > { %7009 = vrcp.f32 %v3750_v20  ;;  %v3762_v48 = vpop.xlane.xlu1 %3761 }
 0xf12   : > { %7011 = vrcp.f32 %v3756_v62 }
 0xf13   : > { %v3753_v22 = vpop.xlane.xlu0 %3752 }
 0xf14   : > { %7013 = vrcp.f32 %v3753_v22 }
 0xf17   : > { %v3771_v52 = vpop.xlane.xlu0 %3770 }
 0xf18   : > { %v4067_v8 = vpop.xlane.xlu1 %4066  ;;  %7015 = vrcp.f32 %v3771_v52 }
 0xf19   : > { %7017 = vrcp.f32 %v3762_v48 }
 0xf1a   : > { %7019 = vrcp.f32 %v3768_v19 }
 0xf1b   : > { %v3765_v43 = vpop.xlane.xlu0 %3764 }
 0xf1c   : > { %7021 = vrcp.f32 %v3765_v43  ;;  %v4061_v2 = vpop.xlane.xlu1 %4060 }
 0xf1d   : > { %v7008_v61 = vpop.eup %7007 }
 0xf1e   : > { %v7010_v55 = vpop.eup %7009  ;;  %v3783_v31 = vmul.f32 %v7008_v61, %v8503_v46 }
 0xf1f   : > { %v7012_v1 = vpop.eup %7011  ;;  %v3780_v0 = vmul.f32 %v7010_v55, %v8496_v3 }
 0xf20   : > { %v4079_v56 = vpop.xlane.xlu1 %4078  ;;  %v3782_v42 = vmul.f32 %v7012_v1, %v8489_v49 }
 0xf21   : > { %v7014_v41 = vpop.eup %7013 }
 0xf22   : > { %v3781_v18 = vmul.f32 %v7014_v41, %v8511_v25  ;;  %v4070_v45 = vpop.xlane.xlu0 %4069  ;;  %v3789_v47 = vpack.c.bf16 %v3783_v31, %v3782_v42 }
 0xf23   : > { %7023 = vrcp.f32 %v4070_v45 }
 0xf24   : > { %v3788_v21 = vpack.c.bf16 %v3781_v18, %v3780_v0  ;;  %v4073_v32 = vpop.xlane.xlu1 %4072  ;;  %7025 = vrcp.f32 %v4061_v2 }
 0xf25   : > { %v7016_v63 = vpop.eup %7015  ;;  %7027 = vrcp.f32 %v4067_v8 }
 0xf26   : > { %6452 = vmatprep.mubr.msk.bf16.mxu1 %vm3419_vm5, %v3788_v21  ;;  %v4064_v36 = vpop.xlane.xlu0 %4063  ;;  %v7018_v46 = vpop.eup %7017  ;;  %v3787_v49 = vmul.f32 %v7016_v63, %v8521_v44 }
 0xf27   : > { %6453 = vmatmul.mubr.msk.bf16.vlgmr.msra.gmra.mxu1 %vm3419_vm5, %v3789_v47  ;;  %7029 = vrcp.f32 %v4064_v36  ;;  %v7020_v3 = vpop.eup %7019  ;;  %v3784_v5 = vmul.f32 %v7018_v46, %v8513_v29 }
 0xf28   : > { %v4104_v53 = vpop.permute.xlu1 %4103  ;;  %v3786_v62 = vmul.f32 %v7020_v3, %v8501_v37 }
 0xf29   : > { %v7022_v25 = vpop.eup %7021  ;;  %6470 = vmatprep.subr.bf16.mxu1 %v4104_v53 }
 0xf2a   : > { %v4082_v7 = vpop.xlane.xlu0 %4081  ;;  %6471 = vmatpush3.bf16.msra.mxu1 %v4104_v53  ;;  %v3785_v27 = vmul.f32 %v7022_v25, %v8528_v57  ;;  %v3791_v19 = vpack.c.bf16 %v3787_v49, %v3786_v62 }
 0xf2b   : > { %7031 = vrcp.f32 %v4082_v7 }
 0xf2c   : > { %v3790_v20 = vpack.c.bf16 %v3785_v27, %v3784_v5  ;;  %7033 = vrcp.f32 %v4073_v32 }
 0xf2d   : > { %7035 = vrcp.f32 %v4079_v56 }
 0xf2e   : > { %v4076_v12 = vpop.xlane.xlu0 %4075  ;;  %6456 = vmatprep.mubr.msk.bf16.mxu1 %vm3419_vm5, %v3790_v20 }
 0xf2f   : > { %7037 = vrcp.f32 %v4076_v12  ;;  %6457 = vmatmul.mubr.msk.bf16.gmra.mxu1 %vm3419_vm5, %v3791_v19 }
 0xf30   : > { %v7024_v44 = vpop.eup %7023 }
 0xf31   : > { %v7026_v22 = vpop.eup %7025  ;;  %v4094_v57 = vmul.f32 %v7024_v44, %v8548_v54 }
 0xf32   : > { %v4377_v48 = vpop.xlane.xlu0 %4376  ;;  %v7028_v52 = vpop.eup %7027  ;;  %v4091_v37 = vmul.f32 %v7026_v22, %v8534_v59 }
 0xf33   : > { %v4093_v43 = vmul.f32 %v7028_v52, %v8524_v6 }
 0xf34   : > { %v7030_v29 = vpop.eup %7029 }
 0xf35   : > { %v4092_v8 = vmul.f32 %v7030_v29, %v8550_v38  ;;  %v4100_v55 = vpack.c.bf16 %v4094_v57, %v4093_v43 }
 0xf36   : > { %v4371_v2 = vpop.xlane.xlu0 %4370 }
 0xf37   : > { %v4099_v61 = vpack.c.bf16 %v4092_v8, %v4091_v37  ;;  %7039 = vrcp.f32 %v4371_v2 }
 0xf38   : > { %v7032_v1 = vpop.eup %7031 }
 0xf39   : > { %6472 = vmatprep.mubr.msk.bf16.mxu1 %vm3419_vm5, %v4099_v61  ;;  %v7034_v41 = vpop.eup %7033  ;;  %v4098_v54 = vmul.f32 %v7032_v1, %v8562_v15  ;;  %v6735_v1 = vld [vmem:[%s7468_s23 + $0x38] sm:$0xff]  }
 0xf3a   : > { %v4380_v31 = vpop.xlane.xlu0 %4379  ;;  %6473 = vmatmul.mubr.msk.bf16.vlgmr.msra.gmra.mxu1 %vm3419_vm5, %v4100_v55  ;;  %v7036_v56 = vpop.eup %7035  ;;  %v4095_v59 = vmul.f32 %v7034_v41, %v8555_v30  ;;  %v6736_v41 = vld [vmem:[%s7468_s23 + $0x30] sm:$0xff]   ;;  %6500 = vmatprep.subr.bf16.mxu0 %v6735_v1 }
 0xf3b   : > { %v4097_v18 = vmul.f32 %v7036_v56, %v8544_v50  ;;  %6501 = vmatpush3.bf16.msra.mxu0 %v6735_v1  ;;  %v6737_v56 = vld [vmem:[%s7468_s23 + $0x28] sm:$0xff]  }
 0xf3c   : > { %v7038_v0 = vpop.eup %7037  ;;  %6502 = vmatprep.subr.bf16.mxu0 %v6736_v41 }
 0xf3d   : > { %v4096_v38 = vmul.f32 %v7038_v0, %v8566_v4  ;;  %v4102_v45 = vpack.c.bf16 %v4098_v54, %v4097_v18  ;;  %v6739_v18 = vld [vmem:[%s7468_s23 + $0x18] sm:$0xff]  }
 0xf3e   : > { %v4374_v6 = vpop.xlane.xlu0 %4373 }
 0xf3f   : > { %7041 = vrcp.f32 %v4374_v6  ;;  %v4101_v42 = vpack.c.bf16 %v4096_v38, %v4095_v59  ;;  %6503 = vmatpush3.bf16.msra.mxu0 %v6736_v41  ;;  %v6738_v59 = vld [vmem:[%s7468_s23 + $0x20] sm:$0xff]  }
 0xf40   : > { %7043 = vrcp.f32 %v4380_v31  ;;  %6504 = vmatprep.subr.bf16.mxu0 %v6737_v56 }
 0xf41   : > { %6476 = vmatprep.mubr.msk.bf16.mxu1 %vm3419_vm5, %v4101_v42  ;;  %7045 = vrcp.f32 %v4377_v48 }
 0xf42   : > { %6477 = vmatmul.mubr.msk.bf16.gmra.mxu1 %vm3419_vm5, %v4102_v45  ;;  %v6740_v45 = vld [vmem:[%s7468_s23 + $0x10] sm:$0xff]  }
 0xf43   : > { %6505 = vmatpush3.bf16.msra.mxu0 %v6737_v56 }
 0xf44   : > { %v7040_v21 = vpop.eup %7039  ;;  %6506 = vmatprep.subr.bf16.mxu0 %v6738_v59 }
 0xf45   : > { %v4401_v32 = vmul.f32 %v7040_v21, %v8574_v40 }
 0xf47   : > { %6507 = vmatpush3.bf16.msra.mxu0 %v6738_v59 }
 0xf48   : > { %6508 = vmatprep.subr.bf16.mxu0 %v6739_v18 }
 0xf4b   : > { %6509 = vmatpush3.bf16.msra.mxu0 %v6739_v18 }
 0xf4c   : > { %v7042_v47 = vpop.eup %7041  ;;  %6510 = vmatprep.subr.bf16.mxu0 %v6740_v45 }
 0xf4d   : > { %v4402_v15 = vmul.f32 %v7042_v47, %v8584_v23  ;;  %v7044_v36 = vpop.eup %7043  ;;  %v6741_v47 = vld [vmem:[%s7468_s23 + $0x8] sm:$0xff]  }
 0xf4e   : > { %v7046_v3 = vpop.eup %7045  ;;  %v4404_v53 = vmul.f32 %v7044_v36, %v8580_v33 }
 0xf4f   : > { %v4409_v63 = vpack.c.bf16 %v4402_v15, %v4401_v32  ;;  %v4403_v23 = vmul.f32 %v7046_v3, %v8570_v17  ;;  %6511 = vmatpush3.bf16.msra.mxu0 %v6740_v45 }
 0xf50   : > { %6512 = vmatprep.subr.bf16.mxu0 %v6741_v47 }
 0xf51   : > { %6492 = vmatprep.mubr.msk.bf16.mxu1 %vm3419_vm5, %v4409_v63  ;;  %v4410_v7 = vpack.c.bf16 %v4404_v53, %v4403_v23  ;;  %v6742_v63 = vld [vmem:[%s7468_s23] sm:$0xff]  }
 0xf53   : > { %6513 = vmatpush3.bf16.msra.mxu0 %v6741_v47 }
 0xf54   : > { %6514 = vmatprep.subr.bf16.mxu0 %v6742_v63 }
 0xf57   : > { %6515 = vmatpush3.bf16.msra.mxu0 %v6742_v63 }
 0xf59   : > { %v4386_v30 = vpop.xlane.xlu1 %4385 }
 0xf5a   : > { %7047 = vrcp.f32 %v4386_v30 }
 0xf65   : > { %v4383_v50 = vpop.xlane.xlu0 %4382 }
 0xf66   : > { %7049 = vrcp.f32 %v4383_v50 }
 0xf67   : > { %v7048_v40 = vpop.eup %7047 }
 0xf68   : > { %v4406_v27 = vmul.f32 %v7048_v40, %v8592_v16 }
 0xf69   : > { %v4389_v4 = vpop.xlane.xlu0 %4388 }
 0xf6a   : > { %7051 = vrcp.f32 %v4389_v4 }
 0xf6d   : > { %v4392_v46 = vpop.xlane.xlu0 %4391 }
 0xf6e   : > { %7053 = vrcp.f32 %v4392_v46 }
 0xf71   : > { %v4414_v25 = vpop.permute.xlu0 %4413 }
 0xf72   : > { %6490 = vmatprep.subr.bf16.mxu1 %v4414_v25 }
 0xf73   : > { %v7050_v49 = vpop.eup %7049  ;;  %6491 = vmatpush3.bf16.msra.mxu1 %v4414_v25 }
 0xf74   : > { %v4405_v5 = vmul.f32 %v7050_v49, %v8596_v28 }
 0xf76   : > { %6493 = vmatmul.mubr.msk.bf16.vlgmr.msra.gmra.mxu1 %vm3419_vm5, %v4410_v7  ;;  %v4411_v62 = vpack.c.bf16 %v4406_v27, %v4405_v5 }
 0xf77   : > { %v7052_v20 = vpop.eup %7051 }
 0xf78   : > { %6496 = vmatprep.mubr.msk.bf16.mxu1 %vm3419_vm5, %v4411_v62  ;;  %v4407_v33 = vmul.f32 %v7052_v20, %v8600_v24 }
 0xf7b   : > { %v7054_v19 = vpop.eup %7053 }
 0xf7c   : > { %v4408_v12 = vmul.f32 %v7054_v19, %v8607_v13 }
 0xf7e   : > { %v4412_v17 = vpack.c.bf16 %v4408_v12, %v4407_v33 }
 0xf80   : > { %6497 = vmatmul.mubr.msk.bf16.gmra.mxu1 %vm3419_vm5, %v4412_v17 }
 0xf81   : > { %4943 = vmatprep.mubr.bf16.mxu1 %v7197_v10 }
 0xfa4   : > { %v6434_v44 = vpop.f32.mrf.mxu1 }
 0xfa5   : > { %3591 = vst.msk [vmem:[#allocation3 + $0x10] sm:$0xff] %vm1457_vm0, %v6434_v44 }
 0xfa6   : > { %v3558_v16 = vpop.f32.mrf.mxu1 }
 0xfa7   : > { %3589 = vst.msk [vmem:[#allocation3] sm:$0xff] %vm1457_vm0, %v3558_v16 }
 0xfa8   : > { %v6435_v28 = vpop.f32.mrf.mxu1 }
 0xfa9   : > { %3592 = vst.msk [vmem:[#allocation3 + $0x18] sm:$0xff] %vm1457_vm0, %v6435_v28 }
 0xfaa   : > { %v3561_v22 = vpop.f32.mrf.mxu1 }
 0xfab   : > { %3590 = vst.msk [vmem:[#allocation3 + $0x8] sm:$0xff] %vm1457_vm0, %v3561_v22 }
 0xfac   : > { %v6438_v24 = vpop.f32.mrf.mxu1 }
 0xfad   : > { %3595 = vst.msk [vmem:[#allocation3 + $0x30] sm:$0xff] %vm1457_vm0, %v6438_v24 }
 0xfae   : > { %v3574_v13 = vpop.f32.mrf.mxu1 }
 0xfaf   : > { %3593 = vst.msk [vmem:[#allocation3 + $0x20] sm:$0xff] %vm1457_vm0, %v3574_v13 }
 0xfb0   : > { %v6439_v48 = vpop.f32.mrf.mxu1 }
 0xfb1   : > { %3596 = vst.msk [vmem:[#allocation3 + $0x38] sm:$0xff] %vm1457_vm0, %v6439_v48 }
 0xfb2   : > { %v3577_v52 = vpop.f32.mrf.mxu1 }
 0xfb3   : > { %3594 = vst.msk [vmem:[#allocation3 + $0x28] sm:$0xff] %vm1457_vm0, %v3577_v52 }
 0xfe7   : > { %v6454_v29 = vpop.f32.mrf.mxu1 }
 0xfe8   : > { %3885 = vrot.lane.b32.xlu0 %v6454_v29, %s7200_s4 }
 0xfe9   : > { %v3842_v57 = vpop.f32.mrf.mxu1 }
 0xfeb   : > { %v6455_v37 = vpop.f32.mrf.mxu1 }
 0xfec   : > { %3881 = vrot.lane.b32.xlu0 %v3842_v57, %s7200_s4 }
 0xfed   : > { %v3845_v8 = vpop.f32.mrf.mxu1 }
 0xfee   : > { %3883 = vrot.lane.b32.xlu1 %v3845_v8, %s7200_s4 }
 0xfef   : > { %v6458_v43 = vpop.f32.mrf.mxu1 }
 0xff0   : > { %3887 = vrot.lane.b32.xlu0 %v6455_v37, %s7200_s4 }
 0xff1   : > { %v3858_v2 = vpop.f32.mrf.mxu1 }
 0xff3   : > { %v6459_v61 = vpop.f32.mrf.mxu1 }
 0xff4   : > { %3889 = vrot.lane.b32.xlu0 %v3858_v2, %s7200_s4 }
 0xff5   : > { %v3861_v55 = vpop.f32.mrf.mxu1 }
 0xff6   : > { %3891 = vrot.lane.b32.xlu1 %v3861_v55, %s7200_s4 }
 0xffa   : > { %v6474_v31 = vpop.f32.mrf.mxu1 }
 0xffb   : > { %4195 = vrot.lane.b32.xlu0 %v6474_v31, %s7199_s3 }
 0xffc   : > { %v4152_v0 = vpop.f32.mrf.mxu1 }
 0xffe   : > { %v6475_v54 = vpop.f32.mrf.mxu1 }
 0xfff   : > { %4191 = vrot.lane.b32.xlu0 %v4152_v0, %s7199_s3  ;;  %4197 = vrot.lane.b32.xlu1 %v6475_v54, %s7199_s3 }
0x1000   : > { %v4155_v38 = vpop.f32.mrf.mxu1 }
0x1002   : > { %v6478_v6 = vpop.f32.mrf.mxu1 }
0x1003   : > { %4193 = vrot.lane.b32.xlu0 %v4155_v38, %s7199_s3 }
0x1004   : > { %v4168_v42 = vpop.f32.mrf.mxu1 }
0x1006   : > { %v6479_v21 = vpop.f32.mrf.mxu1 }
0x1008   : > { %v4171_v32 = vpop.f32.mrf.mxu1 }
0x1036   : > { %v6494_v15 = vpop.f32.mrf.mxu1 }
0x1037   : > { %4505 = vrot.lane.b32.xlu0 %v6494_v15, %s7198_s1 }
0x1038   : > { %v4462_v30 = vpop.f32.mrf.mxu1 }
0x103a   : > { %v6495_v50 = vpop.f32.mrf.mxu1 }
0x103b   : > { %4501 = vrot.lane.b32.xlu0 %v4462_v30, %s7198_s1  ;;  %4507 = vrot.lane.b32.xlu1 %v6495_v50, %s7198_s1 }
0x103c   : > { %v4465_v4 = vpop.f32.mrf.mxu1 }
0x103f   : > { %3893 = vrot.lane.b32.xlu0 %v6458_v43, %s7200_s4  ;;  %4503 = vrot.lane.b32.xlu1 %v4465_v4, %s7198_s1 }
0x1040   : > { %v6498_v36 = vpop.f32.mrf.mxu1 }
0x1042   : > { %v4478_v46 = vpop.f32.mrf.mxu1 }
0x1043   : > { %4199 = vrot.lane.b32.xlu0 %v4168_v42, %s7199_s3  ;;  %3895 = vrot.lane.b32.xlu1 %v6459_v61, %s7200_s4  ;;  %s9128_s4 = sld [smem:[#allocation23_spill]] }
0x1044   : > { %v6499_v3 = vpop.f32.mrf.mxu1 }
0x1046   : > { %v4481_v53 = vpop.f32.mrf.mxu1 }
0x1047   : > { %4203 = vrot.lane.b32.xlu0 %v6478_v6, %s7199_s3  ;;  %4201 = vrot.lane.b32.xlu1 %v4171_v32, %s7199_s3 }
0x104b   : > { %4205 = vrot.lane.b32.xlu1 %v6479_v21, %s7199_s3  ;;  %4509 = vrot.lane.b32.xlu0 %v4478_v46, %s7198_s1  ;;  %s9127_s3 = scalar_lea.vmem %s9021_s13, %s7407_s5 }
0x104c   : > { %v5955_v42 = vld [vmem:[%s9127_s3] ss:$0 sm:$0xff] }
0x104f   : > { %4513 = vrot.lane.b32.xlu0 %v6498_v36, %s7198_s1  ;;  %4511 = vrot.lane.b32.xlu1 %v4481_v53, %s7198_s1 }
0x1053   : > { %4515 = vrot.lane.b32.xlu1 %v6499_v3, %s7198_s1 }
0x105a   : > { %v3886_v40 = vpop.permute.xlu0 %3885 }
0x105b   : > { %3907 = vst.msk [vmem:[#allocation3 + $0x10] sm:$0xff] %vm2071_vm2, %v3886_v40 }
0x105e   : > { %v3882_v25 = vpop.permute.xlu0 %3881 }
0x105f   : > { %3905 = vst.msk [vmem:[#allocation3] sm:$0xff] %vm2071_vm2, %v3882_v25 }
0x1060   : > { %v3884_v23 = vpop.permute.xlu1 %3883 }
0x1061   : > { %3906 = vst.msk [vmem:[#allocation3 + $0x8] sm:$0xff] %vm2071_vm2, %v3884_v23 }
0x1062   : > { %v3888_v49 = vpop.permute.xlu0 %3887 }
0x1063   : > { %3908 = vst.msk [vmem:[#allocation3 + $0x18] sm:$0xff] %vm2071_vm2, %v3888_v49 }
0x1066   : > { %v3890_v7 = vpop.permute.xlu0 %3889 }
0x1067   : > { %3909 = vst.msk [vmem:[#allocation3 + $0x20] sm:$0xff] %vm2071_vm2, %v3890_v7  ;;  %v6743_v7 = vld [vmem:[%s9128_s4 + $0x70] ss:$8 sps:$4 sm:$0xff]  }
0x1068   : > { %v3892_v5 = vpop.permute.xlu1 %3891 }
0x1069   : > { %3910 = vst.msk [vmem:[#allocation3 + $0x28] sm:$0xff] %vm2071_vm2, %v3892_v5  ;;  %v6745_v5 = vld [vmem:[%s9128_s4 + $0x74] ss:$8 sps:$4 sm:$0xff]  }
0x106a   : > { %4911 = vmatprep.subr.bf16.mxu1 %v6745_v5 }
0x106b   : > { %4912 = vmatpush1.bf16.msra.mxu1 %v6743_v7 }
0x106d   : > { %v4196_v27 = vpop.permute.xlu0 %4195 }
0x106e   : > { %4217 = vst.msk [vmem:[#allocation3 + $0x10] sm:$0xff] %vm2406_vm3, %v4196_v27 }
0x1071   : > { %v4192_v62 = vpop.permute.xlu0 %4191  ;;  %v4198_v20 = vpop.permute.xlu1 %4197 }
0x1072   : > { %4215 = vst.msk [vmem:[#allocation3] sm:$0xff] %vm2406_vm3, %v4192_v62  ;;  %4218 = vst.msk [vmem:[#allocation3 + $0x18] sm:$0xff] %vm2406_vm3, %v4198_v20 }
0x1075   : > { %v4194_v19 = vpop.permute.xlu0 %4193 }
0x1076   : > { %4216 = vst.msk [vmem:[#allocation3 + $0x8] sm:$0xff] %vm2406_vm3, %v4194_v19 }
0x10a9   : > { %v4506_v33 = vpop.permute.xlu0 %4505 }
0x10aa   : > { %4527 = vst.msk [vmem:[#allocation3 + $0x10] sm:$0xff] %vm2741_vm4, %v4506_v33 }
0x10ad   : > { %v4502_v12 = vpop.permute.xlu0 %4501  ;;  %v4508_v17 = vpop.permute.xlu1 %4507 }
0x10ae   : > { %4525 = vst.msk [vmem:[#allocation3] sm:$0xff] %vm2741_vm4, %v4502_v12  ;;  %4528 = vst.msk [vmem:[#allocation3 + $0x18] sm:$0xff] %vm2741_vm4, %v4508_v17 }
0x10b1   : > { %v3894_v44 = vpop.permute.xlu0 %3893  ;;  %v4504_v16 = vpop.permute.xlu1 %4503  ;;  %v4535_v37 = vld [vmem:[#allocation3 + $0x10] sm:$0xff] }
0x10b2   : > { %3911 = vst.msk [vmem:[#allocation3 + $0x30] sm:$0xff] %vm2071_vm2, %v3894_v44 }
0x10b3   : > { %4526 = vst.msk [vmem:[#allocation3 + $0x8] sm:$0xff] %vm2741_vm4, %v4504_v16 }
0x10b5   : > { %v4200_v28 = vpop.permute.xlu0 %4199  ;;  %v3896_v22 = vpop.permute.xlu1 %3895  ;;  %v4536_v24 = vld [vmem:[#allocation3 + $0x18] sm:$0xff]  ;;  %v4533_v52 = vld [vmem:[#allocation3] sm:$0xff] }
0x10b6   : > { %4219 = vst.msk [vmem:[#allocation3 + $0x20] sm:$0xff] %vm2406_vm3, %v4200_v28  ;;  %v4542_v8 = vpack.c.bf16 %v4536_v24, %v4535_v37  ;;  %v6751_v37 = vld [vmem:[%s9128_s4 + $0x54] ss:$8 sps:$4 sm:$0xff]  }
0x10b7   : > { %3912 = vst.msk [vmem:[#allocation3 + $0x38] sm:$0xff] %vm2071_vm2, %v3896_v22 }
0x10b9   : > { %v4204_v13 = vpop.permute.xlu0 %4203  ;;  %v4202_v48 = vpop.permute.xlu1 %4201 }
0x10ba   : > { %v4534_v29 = vld [vmem:[#allocation3 + $0x8] sm:$0xff]  ;;  %4221 = vst.msk [vmem:[#allocation3 + $0x30] sm:$0xff] %vm2406_vm3, %v4204_v13  ;;  %4220 = vst.msk [vmem:[#allocation3 + $0x28] sm:$0xff] %vm2406_vm3, %v4202_v48 }
0x10bb   : > { %v4541_v57 = vpack.c.bf16 %v4534_v29, %v4533_v52  ;;  %v6748_v13 = vld [vmem:[%s9128_s4 + $0x64] ss:$8 sps:$4 sm:$0xff]   ;;  %v6746_v52 = vld [vmem:[%s9128_s4 + $0x60] ss:$8 sps:$4 sm:$0xff]  }
0x10bc   : > { %4913 = vmatprep.subr.bf16.mxu1 %v6748_v13 }
0x10bd   : > { %6516 = vmatprep.mubr.bf16.mxu0 %v4541_v57  ;;  %v4510_v43 = vpop.permute.xlu0 %4509  ;;  %v4206_v2 = vpop.permute.xlu1 %4205  ;;  %4914 = vmatpush1.bf16.msra.mxu1 %v6746_v52 }
0x10be   : > { %6517 = vmatmul.mubr.bf16.vlgmr.msra.gmra.mxu0 %v4542_v8  ;;  %4529 = vst.msk [vmem:[#allocation3 + $0x20] sm:$0xff] %vm2741_vm4, %v4510_v43  ;;  %4915 = vmatprep.subr.bf16.mxu1 %v6751_v37 }
0x10bf   : > { %4222 = vst.msk [vmem:[#allocation3 + $0x38] sm:$0xff] %vm2406_vm3, %v4206_v2  ;;  %v6749_v2 = vld [vmem:[%s9128_s4 + $0x50] ss:$8 sps:$4 sm:$0xff]  }
0x10c1   : > { %v4514_v61 = vpop.permute.xlu0 %4513  ;;  %v4512_v55 = vpop.permute.xlu1 %4511  ;;  %4916 = vmatpush1.bf16.msra.mxu1 %v6749_v2 }
0x10c2   : > { %4531 = vst.msk [vmem:[#allocation3 + $0x30] sm:$0xff] %vm2741_vm4, %v4514_v61  ;;  %4530 = vst.msk [vmem:[#allocation3 + $0x28] sm:$0xff] %vm2741_vm4, %v4512_v55 }
0x10c5   : > { %v4516_v1 = vpop.permute.xlu1 %4515  ;;  %v4537_v41 = vld [vmem:[#allocation3 + $0x20] sm:$0xff] }
0x10c6   : > { %4532 = vst.msk [vmem:[#allocation3 + $0x38] sm:$0xff] %vm2741_vm4, %v4516_v1 }
0x10c9   : > { %v4538_v31 = vld [vmem:[#allocation3 + $0x28] sm:$0xff]  ;;  %v4539_v0 = vld [vmem:[#allocation3 + $0x30] sm:$0xff] }
0x10ca   : > { %v4543_v56 = vpack.c.bf16 %v4538_v31, %v4537_v41 }
0x10cc   : > { %6520 = vmatprep.mubr.bf16.mxu0 %v4543_v56  ;;  %v6754_v56 = vld [vmem:[%s9128_s4 + $0x44] ss:$8 sps:$4 sm:$0xff]  }
0x10cd   : > { %v4540_v54 = vld [vmem:[#allocation3 + $0x38] sm:$0xff]  ;;  %4917 = vmatprep.subr.bf16.mxu1 %v6754_v56 }
0x10ce   : > { %v4544_v59 = vpack.c.bf16 %v4540_v54, %v4539_v0  ;;  %v6752_v54 = vld [vmem:[%s9128_s4 + $0x40] ss:$8 sps:$4 sm:$0xff]  }
0x10cf   : > { %4918 = vmatpush1.bf16.msra.mxu1 %v6752_v54 }
0x10d0   : > { %6521 = vmatmul.mubr.bf16.gmra.mxu0 %v4544_v59 }
0x117e   : > { %v6518_v38 = vpop.f32.mrf.mxu0 }
0x117f   : > { %v4660_v21 = vadd.f32 %v6518_v38, %v8237_v35 }
0x1180   : > { %v4627_v6 = vpop.f32.mrf.mxu0 }
0x1181   : > { %v4658_v18 = vadd.f32 %v4627_v6, %v8231_v51  ;;  %v4675_v63 = vadd.f32 %v5955_v42, %v4660_v21 }
0x1182   : > { %v6519_v45 = vpop.f32.mrf.mxu0 }
0x1183   : > { %v4673_v47 = vadd.f32 %v5955_v42, %v4658_v18  ;;  %v4661_v30 = vadd.f32 %v6519_v45, %v8239_v26  ;;  %v6755_v45 = vld [vmem:[%s9128_s4 + $0x30] ss:$8 sps:$4 sm:$0xff]  }
0x1184   : > { %v4630_v32 = vpop.f32.mrf.mxu0 }
0x1185   : > { %v4659_v15 = vadd.f32 %v4630_v32, %v8233_v14  ;;  %4683 = vadd.xlane.f32.xlu0 %v4673_v47  ;;  %v4676_v51 = vadd.f32 %v5955_v42, %v4661_v30  ;;  %v6758_v32 = vld [vmem:[%s9128_s4 + $0x20] ss:$8 sps:$4 sm:$0xff]   ;;  %v6766_v30 = vld [vmem:[%s9128_s4 + $0x4] ss:$8 sps:$4 sm:$0xff]  }
0x1187   : > { %v4674_v50 = vadd.f32 %v5955_v42, %v4659_v15  ;;  %v6763_v15 = vld [vmem:[%s9128_s4 + $0x14] ss:$8 sps:$4 sm:$0xff]  }
0x1189   : > { %4687 = vadd.xlane.f32.xlu0 %v4675_v63  ;;  %4685 = vadd.xlane.f32.xlu1 %v4674_v50 }
0x118d   : > { %4689 = vadd.xlane.f32.xlu0 %v4676_v51 }
0x1190   : > { %v6522_v4 = vpop.f32.mrf.mxu0 }
0x1191   : > { %v4664_v3 = vadd.f32 %v6522_v4, %v8253_v34  ;;  %v6768_v4 = vld [vmem:[%s7495_s12 + $0x38] sm:$0xff]  }
0x1192   : > { %v4643_v36 = vpop.f32.mrf.mxu0 }
0x1193   : > { %v4662_v46 = vadd.f32 %v4643_v36, %v8247_v11  ;;  %v4679_v26 = vadd.f32 %v5955_v42, %v4664_v3  ;;  %v6769_v36 = vld [vmem:[%s7495_s12 + $0x70] sm:$0xff]   ;;  %v6772_v3 = vld [vmem:[%s7495_s12 + $0x28] sm:$0xff]  }
0x1194   : > { %v6523_v35 = vpop.f32.mrf.mxu0 }
0x1195   : > { %v4677_v53 = vadd.f32 %v5955_v42, %v4662_v46  ;;  %v4665_v25 = vadd.f32 %v6523_v35, %v8255_v9  ;;  %v6770_v46 = vld [vmem:[%s7495_s12 + $0x30] sm:$0xff]   ;;  %v6771_v35 = vld [vmem:[%s7495_s12 + $0x68] sm:$0xff]  }
0x1196   : > { %v4646_v14 = vpop.f32.mrf.mxu0 }
0x1197   : > { %v4663_v40 = vadd.f32 %v4646_v14, %v8249_v60  ;;  %4691 = vadd.xlane.f32.xlu1 %v4677_v53  ;;  %v4680_v49 = vadd.f32 %v5955_v42, %v4665_v25  ;;  %v6774_v14 = vld [vmem:[%s7495_s12 + $0x20] sm:$0xff]  }
0x1199   : > { %v4678_v23 = vadd.f32 %v5955_v42, %v4663_v40  ;;  %v6757_v42 = vld [vmem:[%s9128_s4 + $0x34] ss:$8 sps:$4 sm:$0xff]  }
0x119a   : > { %4919 = vmatprep.subr.bf16.mxu1 %v6757_v42  ;;  %v6775_v40 = vld [vmem:[%s7495_s12 + $0x58] sm:$0xff]  }
0x119b   : > { %4695 = vadd.xlane.f32.xlu1 %v4679_v26  ;;  %4693 = vadd.xlane.f32.xlu0 %v4678_v23 }
0x119c   : > { %4920 = vmatpush1.bf16.msra.mxu1 %v6755_v45 }
0x119f   : > { %4697 = vadd.xlane.f32.xlu0 %v4680_v49 }
0x120e   : > { %v4684_v11 = vpop.xlane.xlu0 %4683 }
0x120f   : > { %v4699_v27 = vmul.f32 0.0078125, %v4684_v11 }
0x1211   : > { %v8739_v34 = vsub.f32 %v4673_v47, %v4699_v27  ;;  %v6760_v47 = vld [vmem:[%s9128_s4 + $0x24] ss:$8 sps:$4 sm:$0xff]  }
0x1212   : > { %v4688_v62 = vpop.xlane.xlu0 %4687  ;;  %v4686_v20 = vpop.xlane.xlu1 %4685  ;;  %4921 = vmatprep.subr.bf16.mxu1 %v6760_v47 }
0x1213   : > { %v4701_v60 = vmul.f32 0.0078125, %v4688_v62  ;;  %v4700_v19 = vmul.f32 0.0078125, %v4686_v20  ;;  %v4715_v9 = vmul.f32 %v8739_v34, %v8739_v34  ;;  %4922 = vmatpush1.bf16.msra.mxu1 %v6758_v32 }
0x1214   : > { %4923 = vmatprep.subr.bf16.mxu1 %v6763_v15 }
0x1215   : > { %v8743_v33 = vsub.f32 %v4675_v63, %v4701_v60  ;;  %v8745_v12 = vsub.f32 %v4674_v50, %v4700_v19  ;;  %4723 = vadd.xlane.f32.xlu1 %v4715_v9  ;;  %v6761_v63 = vld [vmem:[%s9128_s4 + $0x10] ss:$8 sps:$4 sm:$0xff]   ;;  %v6764_v50 = vld [vmem:[%s9128_s4] ss:$8 sps:$4 sm:$0xff]  }
0x1216   : > { %v4690_v17 = vpop.xlane.xlu0 %4689 }
0x1217   : > { %v4702_v44 = vmul.f32 0.0078125, %v4690_v17  ;;  %v4717_v16 = vmul.f32 %v8743_v33, %v8743_v33  ;;  %v4716_v28 = vmul.f32 %v8745_v12, %v8745_v12  ;;  %4924 = vmatpush1.bf16.msra.mxu1 %v6761_v63 }
0x1218   : > { %4925 = vmatprep.subr.bf16.mxu1 %v6766_v30 }
0x1219   : > { %v8751_v22 = vsub.f32 %v4676_v51, %v4702_v44  ;;  %4727 = vadd.xlane.f32.xlu1 %v4717_v16  ;;  %4725 = vadd.xlane.f32.xlu0 %v4716_v28  ;;  %v6767_v51 = vld [vmem:[%s7495_s12 + $0x78] sm:$0xff]  }
0x121a   : > { %6168 = vmatprep.subr.bf16.mxu0 %v6767_v51 }
0x121b   : > { %v4718_v24 = vmul.f32 %v8751_v22, %v8751_v22  ;;  %4926 = vmatpush1.bf16.msra.mxu1 %v6764_v50  ;;  %6169 = vmatpush3.bf16.msra.mxu0 %v6768_v4 }
0x121c   : > { %6170 = vmatprep.subr.bf16.mxu0 %v6769_v36 }
0x121d   : > { %4729 = vadd.xlane.f32.xlu0 %v4718_v24  ;;  %v5956_v24 = vld [vmem:[%s9130_s14] ss:$0 sm:$0xff] }
0x121f   : > { %6171 = vmatpush3.bf16.msra.mxu0 %v6770_v46 }
0x1220   : > { %v4692_v48 = vpop.xlane.xlu1 %4691  ;;  %6172 = vmatprep.subr.bf16.mxu0 %v6771_v35 }
0x1221   : > { %v4703_v29 = vmul.f32 0.0078125, %v4692_v48 }
0x1223   : > { %v8757_v57 = vsub.f32 %v4677_v53, %v4703_v29  ;;  %v6773_v53 = vld [vmem:[%s7495_s12 + $0x60] sm:$0xff]   ;;  %6173 = vmatpush3.bf16.msra.mxu0 %v6772_v3 }
0x1224   : > { %v4694_v8 = vpop.xlane.xlu0 %4693  ;;  %v4696_v43 = vpop.xlane.xlu1 %4695  ;;  %6174 = vmatprep.subr.bf16.mxu0 %v6773_v53 }
0x1225   : > { %v4704_v61 = vmul.f32 0.0078125, %v4694_v8  ;;  %v4705_v55 = vmul.f32 0.0078125, %v4696_v43  ;;  %v4719_v1 = vmul.f32 %v8757_v57, %v8757_v57 }
0x1227   : > { %v8763_v41 = vsub.f32 %v4678_v23, %v4704_v61  ;;  %v8765_v31 = vsub.f32 %v4679_v26, %v4705_v55  ;;  %4731 = vadd.xlane.f32.xlu1 %v4719_v1  ;;  %6175 = vmatpush3.bf16.msra.mxu0 %v6774_v14  ;;  %v6776_v26 = vld [vmem:[%s7495_s12 + $0x18] sm:$0xff]  }
0x1228   : > { %v4698_v0 = vpop.xlane.xlu0 %4697  ;;  %6176 = vmatprep.subr.bf16.mxu0 %v6775_v40 }
0x1229   : > { %v4706_v59 = vmul.f32 0.0078125, %v4698_v0  ;;  %v4720_v38 = vmul.f32 %v8763_v41, %v8763_v41  ;;  %v4721_v6 = vmul.f32 %v8765_v31, %v8765_v31 }
0x122b   : > { %v8773_v18 = vsub.f32 %v4680_v49, %v4706_v59  ;;  %4733 = vadd.xlane.f32.xlu0 %v4720_v38  ;;  %4735 = vadd.xlane.f32.xlu1 %v4721_v6 }
0x122c   : > { %6177 = vmatpush3.bf16.msra.mxu0 %v6776_v26 }
0x122d   : > { %v4722_v21 = vmul.f32 %v8773_v18, %v8773_v18 }
0x122f   : > { %4737 = vadd.xlane.f32.xlu0 %v4722_v21 }
0x129e   : > { %v4724_v25 = vpop.xlane.xlu1 %4723 }
0x129f   : > { %v4739_v23 = vmul.f32 0.0078125, %v4724_v25 }
0x12a1   : > { %v4747_v49 = vadd.f32 1e-05, %v4739_v23 }
0x12a2   : > { %v4726_v7 = vpop.xlane.xlu0 %4725  ;;  %v4728_v5 = vpop.xlane.xlu1 %4727 }
0x12a3   : > { %7055 = vrsqrt.f32 %v4747_v49  ;;  %v4740_v11 = vmul.f32 0.0078125, %v4726_v7  ;;  %v4741_v27 = vmul.f32 0.0078125, %v4728_v5  ;;  %v6778_v49 = vld [vmem:[%s7495_s12 + $0x10] sm:$0xff]   ;;  %v6779_v7 = vld [vmem:[%s7495_s12 + $0x48] sm:$0xff]  }
0x12a4   : > { %v6780_v5 = vld [vmem:[%s7495_s12 + $0x8] sm:$0xff]  }
0x12a5   : > { %v4748_v62 = vadd.f32 1e-05, %v4740_v11  ;;  %v4749_v20 = vadd.f32 1e-05, %v4741_v27  ;;  %v6781_v11 = vld [vmem:[%s7495_s12 + $0x40] sm:$0xff]  }
0x12a6   : > { %v4730_v60 = vpop.xlane.xlu0 %4729  ;;  %v6782_v27 = vld [vmem:[%s7495_s12] sm:$0xff]  }
0x12a7   : > { %7057 = vrsqrt.f32 %v4748_v62  ;;  %v4742_v19 = vmul.f32 0.0078125, %v4730_v60 }
0x12a8   : > { %7059 = vrsqrt.f32 %v4749_v20 }
0x12a9   : > { %v4750_v9 = vadd.f32 1e-05, %v4742_v19 }
0x12ab   : > { %7061 = vrsqrt.f32 %v4750_v9 }
0x12b0   : > { %v7056_v17 = vpop.eup %7055  ;;  %v4732_v16 = vpop.xlane.xlu1 %4731 }
0x12b1   : > { %v4763_v44 = vmul.f32 %v7056_v17, %v8739_v34  ;;  %v4743_v28 = vmul.f32 0.0078125, %v4732_v16  ;;  %v5957_v34 = vld [vmem:[%s9132_s7] ss:$0 sm:$0xff] }
0x12b3   : > { %v4751_v48 = vadd.f32 1e-05, %v4743_v28  ;;  %v4777_v8 = vmul.f32 %v5956_v24, %v4763_v44 }
0x12b4   : > { %v7058_v13 = vpop.eup %7057  ;;  %v4734_v29 = vpop.xlane.xlu0 %4733 }
0x12b5   : > { %v4764_v52 = vmul.f32 %v7058_v13, %v8745_v12  ;;  %v4736_v37 = vpop.xlane.xlu1 %4735  ;;  %v7060_v43 = vpop.eup %7059  ;;  %7063 = vrsqrt.f32 %v4751_v48  ;;  %v4744_v2 = vmul.f32 0.0078125, %v4734_v29  ;;  %v8807_v59 = vadd.f32 %v5957_v34, %v4777_v8 }
0x12b6   : > { %v4745_v61 = vmul.f32 0.0078125, %v4736_v37  ;;  %v4765_v38 = vmul.f32 %v7060_v43, %v8743_v33 }
0x12b7   : > { %v4778_v55 = vmul.f32 %v5956_v24, %v4764_v52  ;;  %v4752_v56 = vadd.f32 1e-05, %v4744_v2 }
0x12b8   : > { %v7062_v1 = vpop.eup %7061  ;;  %v4753_v0 = vadd.f32 1e-05, %v4745_v61  ;;  %v4738_v54 = vpop.xlane.xlu0 %4737  ;;  %v4779_v32 = vmul.f32 %v5956_v24, %v4765_v38 }
0x12b9   : > { %v8809_v12 = vadd.f32 %v5957_v34, %v4778_v55  ;;  %v4766_v6 = vmul.f32 %v7062_v1, %v8751_v22  ;;  %7065 = vrsqrt.f32 %v4752_v56  ;;  %v4746_v42 = vmul.f32 0.0078125, %v4738_v54 }
0x12ba   : > { %7067 = vrsqrt.f32 %v4753_v0  ;;  %v8818_v63 = vadd.f32 %v5957_v34, %v4779_v32 }
0x12bb   : > { %v4815_v45 = vpack.c.bf16 %v8809_v12, %v8807_v59  ;;  %v4780_v21 = vmul.f32 %v5956_v24, %v4766_v6  ;;  %v4754_v47 = vadd.f32 1e-05, %v4746_v42 }
0x12bd   : > { %4944 = vmatmul.mubr.bf16.vlgmr.msra.gmra.mxu1 %v4815_v45  ;;  %7069 = vrsqrt.f32 %v4754_v47  ;;  %v8816_v15 = vadd.f32 %v5957_v34, %v4780_v21 }
0x12be   : > { %4953 = vmatprep.mubr.bf16.mxu1 %v7197_v10 }
0x12bf   : > { %v4816_v22 = vpack.c.bf16 %v8816_v15, %v8818_v63 }
0x12c2   : > { %v7064_v33 = vpop.eup %7063 }
0x12c3   : > { %v4767_v30 = vmul.f32 %v7064_v33, %v8757_v57 }
0x12c5   : > { %4954 = vmatmul.mubr.bf16.gmra.mxu1 %v4816_v22  ;;  %v4781_v4 = vmul.f32 %v5956_v24, %v4767_v30 }
0x12c6   : > { %4963 = vmatprep.mubr.bf16.mxu1 %v7197_v10  ;;  %v7066_v50 = vpop.eup %7065 }
0x12c7   : > { %v4768_v51 = vmul.f32 %v7066_v50, %v8763_v41  ;;  %v7068_v36 = vpop.eup %7067  ;;  %v8825_v3 = vadd.f32 %v5957_v34, %v4781_v4 }
0x12c8   : > { %v4769_v14 = vmul.f32 %v7068_v36, %v8765_v31 }
0x12c9   : > { %v4782_v46 = vmul.f32 %v5956_v24, %v4768_v51 }
0x12ca   : > { %v7070_v35 = vpop.eup %7069  ;;  %v4783_v26 = vmul.f32 %v5956_v24, %v4769_v14 }
0x12cb   : > { %v8827_v53 = vadd.f32 %v5957_v34, %v4782_v46  ;;  %v4770_v57 = vmul.f32 %v7070_v35, %v8773_v18  ;;  %v6777_v18 = vld [vmem:[%s7495_s12 + $0x50] sm:$0xff]  }
0x12cc   : > { %v8836_v23 = vadd.f32 %v5957_v34, %v4783_v26  ;;  %6178 = vmatprep.subr.bf16.mxu0 %v6777_v18 }
0x12cd   : > { %v4817_v40 = vpack.c.bf16 %v8827_v53, %v8825_v3  ;;  %v4784_v41 = vmul.f32 %v5956_v24, %v4770_v57  ;;  %6179 = vmatpush3.bf16.msra.mxu0 %v6778_v49 }
0x12ce   : > { %6180 = vmatprep.subr.bf16.mxu0 %v6779_v7 }
0x12cf   : > { %4964 = vmatmul.mubr.bf16.gmra.mxu1 %v4817_v40  ;;  %v8834_v25 = vadd.f32 %v5957_v34, %v4784_v41 }
0x12d0   : > { %4973 = vmatprep.mubr.bf16.mxu1 %v7197_v10  ;;  %v4819_v10 = vld [vmem:[%s7490_s11] sm:$0x3] }
0x12d1   : > { %v4818_v31 = vpack.c.bf16 %v8834_v25, %v8836_v23  ;;  %6181 = vmatpush3.bf16.msra.mxu0 %v6780_v5  ;;  %v4828_v20 = vrot.slane %v4819_v10, %v7581_v58  ;;  %v4824_v60 = vrot.slane %v4819_v10, %v7569_v39 }
0x12d2   : > { %6182 = vmatprep.subr.bf16.mxu0 %v6781_v11 }
0x12d5   : > { %6183 = vmatpush3.bf16.msra.mxu0 %v6782_v27 }
0x12d7   : > { %4974 = vmatmul.mubr.bf16.gmra.mxu1 %v4818_v31 }
0x137d   : > { %v4945_v62 = vpop.f32.mrf.mxu1 }
0x137e   : > { %v4946_v16 = vadd.f32 %v4945_v62, %v4824_v60 }
0x137f   : > { %v4947_v19 = vpop.f32.mrf.mxu1 }
0x1380   : > { %v4948_v17 = vadd.f32 %v4947_v19, %v4828_v20  ;;  %v4984_v37 = vmax.f32 %v4946_v16, 0.0 }
0x1381   : > { %v4949_v9 = vpop.f32.mrf.mxu1 }
0x1382   : > { %v4950_v44 = vadd.f32 %v4949_v9, %v4824_v60  ;;  %v4985_v52 = vmax.f32 %v4948_v17, 0.0 }
0x1383   : > { %v4951_v28 = vpop.f32.mrf.mxu1 }
0x1384   : > { %v4952_v24 = vadd.f32 %v4951_v28, %v4828_v20  ;;  %v4986_v13 = vmax.f32 %v4950_v44, 0.0 }
0x1385   : > { %v4955_v48 = vpop.f32.mrf.mxu1 }
0x1386   : > { %v4987_v29 = vmax.f32 %v4952_v24, 0.0  ;;  %v5032_v2 = vpack.c.bf16 %v4986_v13, %v4984_v37  ;;  %v4956_v39 = vadd.f32 %v4955_v48, %v4824_v60 }
0x1387   : > { %v4957_v8 = vpop.f32.mrf.mxu1 }
0x1388   : > { %v5033_v43 = vpack.c.bf16 %v4987_v29, %v4985_v52  ;;  %v4958_v34 = vadd.f32 %v4957_v8, %v4828_v20  ;;  %v4988_v38 = vmax.f32 %v4956_v39, 0.0 }
0x1389   : > { %v4959_v61 = vpop.f32.mrf.mxu1 }
0x138a   : > { %v4960_v58 = vadd.f32 %v4959_v61, %v4824_v60  ;;  %5168 = vmatprep.mubr.bf16.mxu0 %v5033_v43  ;;  %v4989_v0 = vmax.f32 %v4958_v34, 0.0 }
0x138b   : > { %v4961_v55 = vpop.f32.mrf.mxu1  ;;  %5169 = vmatmul.mubr.bf16.vlgmr.msra.gmra.mxu0 %v5032_v2 }
0x138c   : > { %v4962_v1 = vadd.f32 %v4961_v55, %v4828_v20  ;;  %v4990_v56 = vmax.f32 %v4960_v58, 0.0 }
0x138e   : > { %v4991_v54 = vmax.f32 %v4962_v1, 0.0  ;;  %v5034_v45 = vpack.c.bf16 %v4990_v56, %v4988_v38 }
0x138f   : > { %v4965_v42 = vpop.f32.mrf.mxu1 }
0x1390   : > { %v5035_v6 = vpack.c.bf16 %v4991_v54, %v4989_v0  ;;  %v4966_v22 = vadd.f32 %v4965_v42, %v4824_v60 }
0x1391   : > { %v4967_v21 = vpop.f32.mrf.mxu1 }
0x1392   : > { %5176 = vmatprep.mubr.bf16.mxu0 %v5035_v6  ;;  %v4968_v32 = vadd.f32 %v4967_v21, %v4828_v20  ;;  %v4992_v35 = vmax.f32 %v4966_v22, 0.0 }
0x1393   : > { %5177 = vmatmul.mubr.bf16.gmra.mxu0 %v5034_v45  ;;  %v4969_v47 = vpop.f32.mrf.mxu1 }
0x1394   : > { %v4970_v33 = vadd.f32 %v4969_v47, %v4824_v60  ;;  %v4993_v36 = vmax.f32 %v4968_v32, 0.0 }
0x1395   : > { %v4971_v30 = vpop.f32.mrf.mxu1 }
0x1396   : > { %v4972_v50 = vadd.f32 %v4971_v30, %v4828_v20  ;;  %v4994_v51 = vmax.f32 %v4970_v33, 0.0 }
0x1397   : > { %v4975_v4 = vpop.f32.mrf.mxu1 }
0x1398   : > { %v4995_v46 = vmax.f32 %v4972_v50, 0.0  ;;  %v5036_v40 = vpack.c.bf16 %v4994_v51, %v4992_v35  ;;  %v4976_v18 = vadd.f32 %v4975_v4, %v4824_v60 }
0x1399   : > { %v4977_v14 = vpop.f32.mrf.mxu1 }
0x139a   : > { %v5037_v57 = vpack.c.bf16 %v4995_v46, %v4993_v36  ;;  %v4978_v26 = vadd.f32 %v4977_v14, %v4828_v20  ;;  %v4996_v10 = vmax.f32 %v4976_v18, 0.0 }
0x139b   : > { %v4979_v41 = vpop.f32.mrf.mxu1 }
0x139c   : > { %v4980_v31 = vadd.f32 %v4979_v41, %v4824_v60  ;;  %5184 = vmatprep.mubr.bf16.mxu0 %v5037_v57  ;;  %v4997_v11 = vmax.f32 %v4978_v26, 0.0  ;;  %v5990_v60 = vld [vmem:[%s1072_s26] ss:$0 sm:$0xff] }
0x139d   : > { %v4981_v49 = vpop.f32.mrf.mxu1  ;;  %5185 = vmatmul.mubr.bf16.gmra.mxu0 %v5036_v40 }
0x139e   : > { %v4982_v7 = vadd.f32 %v4981_v49, %v4828_v20  ;;  %v4998_v5 = vmax.f32 %v4980_v31, 0.0 }
0x13a0   : > { %v4999_v27 = vmax.f32 %v4982_v7, 0.0  ;;  %v5038_v19 = vpack.c.bf16 %v4998_v5, %v4996_v10 }
0x13a2   : > { %v5039_v62 = vpack.c.bf16 %v4999_v27, %v4997_v11 }
0x13a4   : > { %5192 = vmatprep.mubr.bf16.mxu0 %v5039_v62 }
0x13a5   : > { %5193 = vmatmul.mubr.bf16.gmra.mxu0 %v5038_v19 }
0x144b   : > { %v6184_v9 = vpop.f32.mrf.mxu0 }
0x144d   : > { %v6185_v17 = vpop.f32.mrf.mxu0 }
0x144e   : > { %v6186_v44 = vadd.f32 %v6185_v17, %v6184_v9 }
0x144f   : > { %v6187_v16 = vpop.f32.mrf.mxu0 }
0x1450   : > { %v5201_v28 = vadd.f32 %v6186_v44, %v8807_v59 }
0x1451   : > { %v6188_v20 = vpop.f32.mrf.mxu0 }
0x1452   : > { %v6189_v24 = vadd.f32 %v6188_v20, %v6187_v16  ;;  %v5216_v13 = vadd.f32 %v5990_v60, %v5201_v28 }
0x1453   : > { %v6190_v48 = vpop.f32.mrf.mxu0 }
0x1454   : > { %v5202_v52 = vadd.f32 %v6189_v24, %v8809_v12  ;;  %5226 = vadd.xlane.f32.xlu1 %v5216_v13 }
0x1455   : > { %v6191_v29 = vpop.f32.mrf.mxu0 }
0x1456   : > { %v6192_v37 = vadd.f32 %v6191_v29, %v6190_v48  ;;  %v5217_v8 = vadd.f32 %v5990_v60, %v5202_v52 }
0x1457   : > { %v6193_v43 = vpop.f32.mrf.mxu0 }
0x1458   : > { %v5203_v2 = vadd.f32 %v6192_v37, %v8818_v63  ;;  %5228 = vadd.xlane.f32.xlu0 %v5217_v8 }
0x1459   : > { %v6194_v61 = vpop.f32.mrf.mxu0 }
0x145a   : > { %v6195_v34 = vadd.f32 %v6194_v61, %v6193_v43  ;;  %v5218_v58 = vadd.f32 %v5990_v60, %v5203_v2 }
0x145c   : > { %v5204_v39 = vadd.f32 %v6195_v34, %v8816_v15  ;;  %5230 = vadd.xlane.f32.xlu1 %v5218_v58 }
0x145d   : > { %v6196_v59 = vpop.f32.mrf.mxu0 }
0x145e   : > { %v5219_v55 = vadd.f32 %v5990_v60, %v5204_v39 }
0x145f   : > { %v6197_v1 = vpop.f32.mrf.mxu0 }
0x1460   : > { %5232 = vadd.xlane.f32.xlu0 %v5219_v55  ;;  %v6198_v56 = vadd.f32 %v6197_v1, %v6196_v59  ;;  %v5991_v1 = vld [vmem:[%s1075_s24] ss:$0 sm:$0xff] }
0x1461   : > { %v6199_v12 = vpop.f32.mrf.mxu0 }
0x1462   : > { %v5205_v0 = vadd.f32 %v6198_v56, %v8825_v3 }
0x1463   : > { %v6200_v54 = vpop.f32.mrf.mxu0 }
0x1464   : > { %v6201_v38 = vadd.f32 %v6200_v54, %v6199_v12  ;;  %v5220_v6 = vadd.f32 %v5990_v60, %v5205_v0  ;;  %v5992_v0 = vld [vmem:[%s1078_s10] ss:$0 sm:$0xff]  ;;  %s9136_s10 = sld [smem:[#allocation10_spill]] }
0x1465   : > { %v6202_v42 = vpop.f32.mrf.mxu0 }
0x1466   : > { %v5206_v63 = vadd.f32 %v6201_v38, %v8827_v53  ;;  %5234 = vadd.xlane.f32.xlu1 %v5220_v6 }
0x1467   : > { %v6203_v45 = vpop.f32.mrf.mxu0 }
0x1468   : > { %v6204_v21 = vadd.f32 %v6203_v45, %v6202_v42  ;;  %v5221_v47 = vadd.f32 %v5990_v60, %v5206_v63 }
0x1469   : > { %v6205_v15 = vpop.f32.mrf.mxu0 }
0x146a   : > { %v5207_v32 = vadd.f32 %v6204_v21, %v8836_v23  ;;  %5236 = vadd.xlane.f32.xlu0 %v5221_v47  ;;  %p5993_p1 = scmp.ne.s32.totalorder %s9136_s10, 1 }
0x146b   : > { %v6206_v33 = vpop.f32.mrf.mxu0  ;;  %s9137_s8 = sld [smem:[#allocation44_spill]] (!%p5993_p1) }
0x146c   : > { %v6207_v22 = vadd.f32 %v6206_v33, %v6205_v15  ;;  %v5222_v30 = vadd.f32 %v5990_v60, %v5207_v32  ;;  %s9138_s2 = sld [smem:[#allocation45_spill]] (!%p5993_p1) }
0x146e   : > { %v5208_v50 = vadd.f32 %v6207_v22, %v8834_v25  ;;  %5238 = vadd.xlane.f32.xlu1 %v5222_v30 }
0x1470   : > { %v5223_v3 = vadd.f32 %v5990_v60, %v5208_v50 }
0x1472   : > { %5240 = vadd.xlane.f32.xlu0 %v5223_v3 }
0x14dd   : > { %v5227_v51 = vpop.xlane.xlu1 %5226 }
0x14de   : > { %v5242_v4 = vmul.f32 0.0078125, %v5227_v51 }
0x14e0   : > { %v5250_v36 = vsub.f32 %v5216_v13, %v5242_v4 }
0x14e1   : > { %v5229_v53 = vpop.xlane.xlu0 %5228 }
0x14e2   : > { %v5243_v46 = vmul.f32 0.0078125, %v5229_v53  ;;  %v5258_v35 = vmul.f32 %v5250_v36, %v5250_v36 }
0x14e4   : > { %v5251_v14 = vsub.f32 %v5217_v8, %v5243_v46  ;;  %5266 = vadd.xlane.f32.xlu1 %v5258_v35 }
0x14e5   : > { %v5231_v57 = vpop.xlane.xlu1 %5230 }
0x14e6   : > { %v5244_v40 = vmul.f32 0.0078125, %v5231_v57  ;;  %v5259_v23 = vmul.f32 %v5251_v14, %v5251_v14 }
0x14e8   : > { %v8862_v41 = vsub.f32 %v5218_v58, %v5244_v40  ;;  %5268 = vadd.xlane.f32.xlu0 %v5259_v23 }
0x14e9   : > { %v5233_v26 = vpop.xlane.xlu0 %5232 }
0x14ea   : > { %v5245_v31 = vmul.f32 0.0078125, %v5233_v26  ;;  %v5260_v25 = vmul.f32 %v8862_v41, %v8862_v41 }
0x14ec   : > { %v8866_v18 = vsub.f32 %v5219_v55, %v5245_v31  ;;  %5270 = vadd.xlane.f32.xlu1 %v5260_v25 }
0x14ee   : > { %v5261_v49 = vmul.f32 %v8866_v18, %v8866_v18 }
0x14ef   : > { %v5235_v7 = vpop.xlane.xlu1 %5234 }
0x14f0   : > { %5272 = vadd.xlane.f32.xlu0 %v5261_v49  ;;  %v5246_v5 = vmul.f32 0.0078125, %v5235_v7 }
0x14f2   : > { %v8870_v11 = vsub.f32 %v5220_v6, %v5246_v5 }
0x14f3   : > { %v5237_v27 = vpop.xlane.xlu0 %5236 }
0x14f4   : > { %v5247_v10 = vmul.f32 0.0078125, %v5237_v27  ;;  %v5262_v62 = vmul.f32 %v8870_v11, %v8870_v11 }
0x14f6   : > { %v8874_v19 = vsub.f32 %v5221_v47, %v5247_v10  ;;  %5274 = vadd.xlane.f32.xlu1 %v5262_v62 }
0x14f7   : > { %v5239_v9 = vpop.xlane.xlu1 %5238 }
0x14f8   : > { %v5248_v17 = vmul.f32 0.0078125, %v5239_v9  ;;  %v5263_v44 = vmul.f32 %v8874_v19, %v8874_v19 }
0x14fa   : > { %v8878_v16 = vsub.f32 %v5222_v30, %v5248_v17  ;;  %5276 = vadd.xlane.f32.xlu0 %v5263_v44 }
0x14fb   : > { %v5241_v60 = vpop.xlane.xlu0 %5240 }
0x14fc   : > { %v5249_v28 = vmul.f32 0.0078125, %v5241_v60  ;;  %v5264_v20 = vmul.f32 %v8878_v16, %v8878_v16 }
0x14fe   : > { %v8882_v24 = vsub.f32 %v5223_v3, %v5249_v28  ;;  %5278 = vadd.xlane.f32.xlu1 %v5264_v20 }
0x1500   : > { %v5265_v13 = vmul.f32 %v8882_v24, %v8882_v24 }
0x1502   : > { %5280 = vadd.xlane.f32.xlu0 %v5265_v13 }
0x156d   : > { %v5267_v48 = vpop.xlane.xlu1 %5266 }
0x156e   : > { %v5282_v52 = vmul.f32 0.0078125, %v5267_v48 }
0x1570   : > { %v5290_v29 = vadd.f32 1e-05, %v5282_v52 }
0x1571   : > { %v5269_v37 = vpop.xlane.xlu0 %5268 }
0x1572   : > { %7071 = vrsqrt.f32 %v5290_v29  ;;  %v5283_v8 = vmul.f32 0.0078125, %v5269_v37 }
0x1574   : > { %v5291_v43 = vadd.f32 1e-05, %v5283_v8 }
0x1575   : > { %v5271_v2 = vpop.xlane.xlu1 %5270 }
0x1576   : > { %7073 = vrsqrt.f32 %v5291_v43  ;;  %v5284_v61 = vmul.f32 0.0078125, %v5271_v2 }
0x1578   : > { %v5292_v34 = vadd.f32 1e-05, %v5284_v61 }
0x1579   : > { %v5273_v58 = vpop.xlane.xlu0 %5272 }
0x157a   : > { %7075 = vrsqrt.f32 %v5292_v34  ;;  %v5285_v39 = vmul.f32 0.0078125, %v5273_v58 }
0x157c   : > { %v5293_v59 = vadd.f32 1e-05, %v5285_v39 }
0x157e   : > { %7077 = vrsqrt.f32 %v5293_v59 }
0x157f   : > { %v7072_v55 = vpop.eup %7071  ;;  %v5275_v12 = vpop.xlane.xlu1 %5274 }
0x1580   : > { %v5306_v56 = vmul.f32 %v7072_v55, %v5250_v36  ;;  %v5286_v54 = vmul.f32 0.0078125, %v5275_v12 }
0x1582   : > { %v5320_v38 = vmul.f32 %v5991_v1, %v5306_v56  ;;  %v5294_v42 = vadd.f32 1e-05, %v5286_v54 }
0x1583   : > { %v7074_v6 = vpop.eup %7073  ;;  %v5277_v21 = vpop.xlane.xlu0 %5276 }
0x1584   : > { %v5334_v63 = vadd.f32 %v5992_v0, %v5320_v38  ;;  %v5307_v45 = vmul.f32 %v7074_v6, %v5251_v14  ;;  %7079 = vrsqrt.f32 %v5294_v42  ;;  %v5287_v47 = vmul.f32 0.0078125, %v5277_v21 }
0x1586   : > { %5342 = vst [vmem:[#allocation2 + $0x30] sm:$0xff] %v5334_v63  ;;  %v5321_v15 = vmul.f32 %v5991_v1, %v5307_v45  ;;  %v5295_v33 = vadd.f32 1e-05, %v5287_v47 }
0x1587   : > { %v7076_v32 = vpop.eup %7075  ;;  %v5279_v50 = vpop.xlane.xlu1 %5278 }
0x1588   : > { %v5335_v22 = vadd.f32 %v5992_v0, %v5321_v15  ;;  %v5308_v30 = vmul.f32 %v7076_v32, %v8862_v41  ;;  %7081 = vrsqrt.f32 %v5295_v33  ;;  %v5288_v3 = vmul.f32 0.0078125, %v5279_v50 }
0x158a   : > { %5343 = vst [vmem:[#allocation2] sm:$0xff] %v5335_v22  ;;  %v5322_v51 = vmul.f32 %v5991_v1, %v5308_v30  ;;  %v5296_v36 = vadd.f32 1e-05, %v5288_v3 }
0x158b   : > { %v7078_v4 = vpop.eup %7077  ;;  %v5281_v35 = vpop.xlane.xlu0 %5280 }
0x158c   : > { %v8897_v53 = vadd.f32 %v5992_v0, %v5322_v51  ;;  %v5309_v46 = vmul.f32 %v7078_v4, %v8866_v18  ;;  %7083 = vrsqrt.f32 %v5296_v36  ;;  %v5289_v14 = vmul.f32 0.0078125, %v5281_v35 }
0x158e   : > { %5344 = vst [vmem:[#allocation2 + $0x18] sm:$0xff] %v8897_v53  ;;  %v5323_v57 = vmul.f32 %v5991_v1, %v5309_v46  ;;  %v5297_v40 = vadd.f32 1e-05, %v5289_v14 }
0x1590   : > { %v8901_v23 = vadd.f32 %v5992_v0, %v5323_v57  ;;  %7085 = vrsqrt.f32 %v5297_v40 }
0x1591   : > { %v7080_v41 = vpop.eup %7079 }
0x1592   : > { %5345 = vst [vmem:[#allocation2 + $0x10] sm:$0xff] %v8901_v23  ;;  %v5310_v26 = vmul.f32 %v7080_v41, %v8870_v11 }
0x1594   : > { %v5324_v31 = vmul.f32 %v5991_v1, %v5310_v26 }
0x1595   : > { %v7082_v25 = vpop.eup %7081 }
0x1596   : > { %v5338_v49 = vadd.f32 %v5992_v0, %v5324_v31  ;;  %v5311_v18 = vmul.f32 %v7082_v25, %v8874_v19 }
0x1598   : > { %5346 = vst [vmem:[#allocation2 + $0x8] sm:$0xff] %v5338_v49  ;;  %v5325_v7 = vmul.f32 %v5991_v1, %v5311_v18 }
0x1599   : > { %v7084_v5 = vpop.eup %7083 }
0x159a   : > { %v5339_v27 = vadd.f32 %v5992_v0, %v5325_v7  ;;  %v5312_v10 = vmul.f32 %v7084_v5, %v8878_v16 }
0x159c   : > { %5347 = vst [vmem:[#allocation2 + $0x20] sm:$0xff] %v5339_v27  ;;  %v5326_v62 = vmul.f32 %v5991_v1, %v5312_v10 }
0x159d   : > { %v7086_v9 = vpop.eup %7085 }
0x159e   : > { %v5340_v17 = vadd.f32 %v5992_v0, %v5326_v62  ;;  %v5313_v44 = vmul.f32 %v7086_v9, %v8882_v24 }
0x15a0   : > { %5348 = vst [vmem:[#allocation2 + $0x28] sm:$0xff] %v5340_v17  ;;  %v5327_v60 = vmul.f32 %v5991_v1, %v5313_v44  ;;  %5353 = sbr.rel (%p5993_p1) target bundleno = 5776 (0x1690), region = 124 }
0x15a2   : > { %v5341_v11 = vadd.f32 %v5992_v0, %v5327_v60 }
0x15a4   : > { %5349 = vst [vmem:[#allocation2 + $0x38] sm:$0xff] %v5341_v11 }
0x15a5   : > { %v7095_v19 = vld [vmem:[%s9137_s8 + $0x38] sm:$0xff]   ;;  %v7096_v16 = vld [vmem:[%s9137_s8 + $0x30] sm:$0xff]   ;;  %v5370_v28 = vpack.c.bf16 %v5335_v22, %v5334_v63  ;;  %v5372_v20 = vpack.c.bf16 %v5339_v27, %v5338_v49  ;;  %v7097_v24 = vld [vmem:[%s9137_s8 + $0x28] sm:$0xff]   ;;  %v5371_v8 = vpack.c.bf16 %v8901_v23, %v8897_v53  ;;  %v5373_v43 = vpack.c.bf16 %v5341_v11, %v5340_v17 }
0x15a6   : > { %6524 = vmatprep.subr.bf16.mxu0 %v7095_v19  ;;  %6548 = vmatprep.subr.bf16.mxu1 %v7095_v19  ;;  %v7098_v13 = vld [vmem:[%s9137_s8 + $0x20] sm:$0xff]   ;;  %v7099_v48 = vld [vmem:[%s9137_s8 + $0x18] sm:$0xff]   ;;  %v7100_v52 = vld [vmem:[%s9137_s8 + $0x10] sm:$0xff]  }
0x15a7   : > { %6525 = vmatpush3.bf16.msra.mxu0 %v7095_v19  ;;  %6556 = vmatpush3.bf16.msra.mxu1 %v7095_v19  ;;  %v7101_v29 = vld [vmem:[%s9137_s8 + $0x8] sm:$0xff]   ;;  %v7102_v37 = vld [vmem:[%s9137_s8] sm:$0xff]  }
0x15a8   : > { %6526 = vmatprep.subr.bf16.mxu0 %v7096_v16  ;;  %6549 = vmatprep.subr.bf16.mxu1 %v7096_v16  ;;  %v5994_v2 = vld [vmem:[%s9138_s2] ss:$0 sm:$0xff] }
0x15a9   : > { %6540 = vmatprep.mubr.bf16.mxu0 %v5370_v28  ;;  %6544 = vmatprep.mubr.bf16.mxu1 %v5372_v20 }
0x15ab   : > { %6527 = vmatpush3.bf16.msra.mxu0 %v7096_v16  ;;  %6557 = vmatpush3.bf16.msra.mxu1 %v7096_v16 }
0x15ac   : > { %6528 = vmatprep.subr.bf16.mxu0 %v7097_v24  ;;  %6550 = vmatprep.subr.bf16.mxu1 %v7097_v24 }
0x15af   : > { %6529 = vmatpush3.bf16.msra.mxu0 %v7097_v24  ;;  %6558 = vmatpush3.bf16.msra.mxu1 %v7097_v24 }
0x15b0   : > { %6530 = vmatprep.subr.bf16.mxu0 %v7098_v13  ;;  %6551 = vmatprep.subr.bf16.mxu1 %v7098_v13 }
0x15b3   : > { %6531 = vmatpush3.bf16.msra.mxu0 %v7098_v13  ;;  %6559 = vmatpush3.bf16.msra.mxu1 %v7098_v13 }
0x15b4   : > { %6532 = vmatprep.subr.bf16.mxu0 %v7099_v48  ;;  %6552 = vmatprep.subr.bf16.mxu1 %v7099_v48 }
0x15b7   : > { %6533 = vmatpush3.bf16.msra.mxu0 %v7099_v48  ;;  %6560 = vmatpush3.bf16.msra.mxu1 %v7099_v48 }
0x15b8   : > { %6534 = vmatprep.subr.bf16.mxu0 %v7100_v52  ;;  %6553 = vmatprep.subr.bf16.mxu1 %v7100_v52 }
0x15bb   : > { %6535 = vmatpush3.bf16.msra.mxu0 %v7100_v52  ;;  %6561 = vmatpush3.bf16.msra.mxu1 %v7100_v52 }
0x15bc   : > { %6536 = vmatprep.subr.bf16.mxu0 %v7101_v29  ;;  %6554 = vmatprep.subr.bf16.mxu1 %v7101_v29 }
0x15bf   : > { %6537 = vmatpush3.bf16.msra.mxu0 %v7101_v29  ;;  %6562 = vmatpush3.bf16.msra.mxu1 %v7101_v29 }
0x15c0   : > { %6538 = vmatprep.subr.bf16.mxu0 %v7102_v37  ;;  %6555 = vmatprep.subr.bf16.mxu1 %v7102_v37 }
0x15c3   : > { %6539 = vmatpush3.bf16.msra.mxu0 %v7102_v37  ;;  %6563 = vmatpush3.bf16.msra.mxu1 %v7102_v37 }
0x15c6   : > { %6541 = vmatmul.mubr.bf16.vlgmr.msra.gmra.mxu0 %v5371_v8  ;;  %6545 = vmatmul.mubr.bf16.vlgmr.msra.gmra.mxu1 %v5373_v43 }
0x1686   : > { %v6542_v61 = vpop.f32.mrf.mxu0  ;;  %v6546_v34 = vpop.f32.mrf.mxu1 }
0x1687   : > { %v5472_v58 = vadd.f32 %v6542_v61, %v5994_v2  ;;  %v5488_v39 = vadd.f32 %v6546_v34, %v5994_v2 }
0x1688   : > { %v5463_v59 = vpop.f32.mrf.mxu0  ;;  %v5479_v55 = vpop.f32.mrf.mxu1 }
0x1689   : > { %5496 = vst [vmem:[%s7510_s30 + $0x10] sm:$0xff] %v5472_v58  ;;  %5500 = vst [vmem:[%s7510_s30 + $0x30] sm:$0xff] %v5488_v39  ;;  %v5464_v1 = vadd.f32 %v5994_v2, %v5463_v59  ;;  %v5480_v56 = vadd.f32 %v5994_v2, %v5479_v55 }
0x168a   : > { %v6543_v12 = vpop.f32.mrf.mxu0  ;;  %v6547_v0 = vpop.f32.mrf.mxu1 }
0x168b   : > { %5494 = vst [vmem:[%s7510_s30] sm:$0xff] %v5464_v1  ;;  %5498 = vst [vmem:[%s7510_s30 + $0x20] sm:$0xff] %v5480_v56  ;;  %v5475_v54 = vadd.f32 %v6543_v12, %v5994_v2  ;;  %v5491_v38 = vadd.f32 %v6547_v0, %v5994_v2 }
0x168c   : > { %v5466_v6 = vpop.f32.mrf.mxu0  ;;  %v5482_v42 = vpop.f32.mrf.mxu1 }
0x168d   : > { %5497 = vst [vmem:[%s7510_s30 + $0x18] sm:$0xff] %v5475_v54  ;;  %5501 = vst [vmem:[%s7510_s30 + $0x38] sm:$0xff] %v5491_v38  ;;  %v5467_v63 = vadd.f32 %v5994_v2, %v5466_v6  ;;  %v5483_v45 = vadd.f32 %v5994_v2, %v5482_v42 }
0x168f   : > { %5495 = vst [vmem:[%s7510_s30 + $0x8] sm:$0xff] %v5467_v63  ;;  %5499 = vst [vmem:[%s7510_s30 + $0x28] sm:$0xff] %v5483_v45 }
0x1690 PF: > { %s9139_s26 = sld [smem:[#allocation11_spill]]  ;;  %s5516_s24 = sshll.u32 %s7510_s30, 4  ;;  %s8953_s24 = int_to_ptr.vmem [resolvable:$true] %s5516_s24 }
0x1691   : > { %s9140_s27 = sld [smem:[#allocation8_spill]]  ;;  %s7103_s23 = scalar_lea.vmem %s8953_s24, 1024 }
0x1692   : > { %s9142_s10 = sld [smem:[#allocation46_spill]]  ;;  %p7104_p2 = scmp.ne.s32.totalorder %s8953_s24, %s7103_s23 }
0x1693   : > { %s7201_s1 = smov [#allocation4]  }
0x1694   : > { %p7105_p4 = pnand %p7104_p2, %p7378_p3  ;;  %s7107_s3 = sshll.u32 %s7201_s1, 4  ;;  %s7108_s3 = int_to_ptr.vmem [resolvable:$false] %s7107_s3 }
0x1695   : > { %s7109_s4 = scalar_lea.vmem %s7108_s3, 2048  ;;  %p7110_p6 = scmp.lt.s32.totalorder %s8953_s24, %s7108_s3 }
0x1696   : > { %s6015_s20 = sshll.u32 %s9139_s26, 10  ;;  %p7106_p5 = pneg %p7105_p4 }
0x1697   : > { %s9143_s17 = sand.u32 1, %s9140_s27   ;;  %p7111_p7 = scmp.lt.s32.totalorder %s7109_s4, %s7103_s23 }
0x1698   : > { %s8950_s5 = scalar_lea.hbm %s9142_s10, %s6015_s20  ;;  %s8957_s0 = scalar_lea.sflag [#allocation5], %s9143_s17 }
0x1699   : > { %p7112_p8 = por %p7111_p7, %p7110_p6 }
0x169b   : > { %p7113_p10 = pnand %p7112_p8, %p7106_p5 }
0x169d   : > { %7116 = shalt.err (!%p7113_p10)
}
0x169e   : > { %s7117_s30 = scalar_lea.hbm %s8950_s5, 1024  ;;  %s7121_s19 = scalar_lea.hbm %s9142_s10, 2048 }
0x169f   : > { %p7118_p11 = scmp.ne.s32.totalorder %s8950_s5, %s7117_s30  ;;  %p7122_p0 = scmp.lt.s32.totalorder %s8950_s5, %s9142_s10 }
0x16a0   : > { %p7123_p1 = scmp.lt.s32.totalorder %s7121_s19, %s7117_s30 }
0x16a1   : > { %p7119_p12 = pnand %p7118_p11, %p7378_p3 }
0x16a2   : > { %p7124_p2 = por %p7123_p1, %p7122_p0 }
0x16a3   : > { %p7120_p13 = pneg %p7119_p12 }
0x16a5   : > { %p7125_p4 = pnand %p7124_p2, %p7120_p13 }
0x16a7   : > { %7128 = shalt.err (!%p7125_p4)
}
0x16a8   : > { %s7202_s16 = smov 128   ;;  %s7203_s21 = smov 8  }
0x16a9   : > { %6586 = dma.vmem_to_hbm [thread:$0]  (%p7378_p3), %s8953_s24, 1024, %s8950_s5, %s8957_s0, %s7202_s16, %s7202_s16, %s7203_s21  }
0x16aa PF: > { %s9144_s7 = sld [smem:[#allocation14_spill]] }
0x16ab   : > { %s9145_s11 = sld [smem:[#allocation7_spill]] }
0x16b0   : > { %p6592_p5 = scmp.ge.s32.totalorder %s9144_s7, 2 }
0x16b1   : > { %s5531_s2 = sand.u32 1, %s9145_s11  }
0x16b2   : > { %p6589_p6 = pnand %p6592_p5, %p7388_p9  ;;  %s5532_s26 = scalar_lea.sflag [#allocation5], %s5531_s2 }
0x16b4   : > { %p6590_p7 = pneg %p6589_p6 }
0x16b6   : > { %7162 = dma.done.wait (%p6590_p7), %s5532_s26, 1024  }
0x16b7   : > { %7164 = vsyncadd (%p6590_p7), %s5532_s26, 4294966272  ;;  %s37_s0 = sadd.s32 1, %s9144_s7   ;;  %s9147_s5 = sld [smem:[#allocation8_spill]] }
0x16b8   : > { %p34_p8 = scmp.ge.s32.totalorder %s37_s0, 6   ;;  %s9148_s26 = sld [smem:[#allocation9_spill]] }
0x16b9   : > { %s9149_s27 = sld [smem:[#allocation19_spill]] }
0x16ba   : > { %s9150_s28 = sld [smem:[#allocation12_spill]]  ;;  %36 = sbr.rel (!%p34_p8) target bundleno = 29 (0x1d), region = 219 }
0x16bb   : > { %s9151_s6 = sld [smem:[#allocation13_spill]] }
0x16bc   : > { %s9152_s2 = sld [smem:[#allocation15_spill]] }
0x16bd   : > { %s9153_s29 = sld [smem:[#allocation17_spill]] }
0x16bf   :  { %5537 = vsyncpa [#allocation5], 1 }
0x16c0   :  { %5539 = vsyncpa [#allocation5 + $0x1], 1 }

</bundles_post_ra>
